<compile_context>
chip_gen: v5e
topology: v5e:2x2
jax: 0.10.0
libtpu: 0.0.40
codegen_flags: <defaults>
</compile_context>

<pallas_src>
import functools

import jax
import jax.numpy as jnp
from jax import lax
from jax.experimental import pallas as pl
from jax.experimental.pallas import tpu as pltpu

_NOUT = 30          # nn.Linear(128, 30)
_NOUT_PAD = 128     # lane-dense padded output width


def _round_up(n, m):
    return ((n + m - 1) // m) * m


# ----------------------------- in-kernel helpers -----------------------------

def _maxpool2x2(x):
    """2x2 max pool, stride 2.  x: (H, W, BT, C) -> (H//2, W//2, BT, C)."""
    H, W, BT, C = x.shape
    x = x.reshape(H // 2, 2, W, BT, C)            # split major dim H
    x = jnp.maximum(x[:, 0], x[:, 1])             # (H//2, W, BT, C)
    x = x.reshape(H // 2, W // 2, 2, BT, C)       # split major dim W
    return jnp.maximum(x[:, :, 0], x[:, :, 1])    # (H//2, W//2, BT, C)


def _conv3x3_relu(x, w_ref, b_ref):
    """3x3 conv, stride 1, padding 1, + bias + ReLU.

    x: (H, W, BT, Cin) f32 value; w_ref: (3, 3, Cin, Cout) bf16 ref;
    b_ref: (1, Cout) f32 ref.  Returns (H, W, BT, Cout) f32.
    """
    H, W, BT, Cin = x.shape
    Cout = w_ref.shape[-1]
    M = H * W * BT

    xb = x.astype(jnp.bfloat16)
    # zero-pad the (major) spatial dims by 1 via concatenation.
    zr = jnp.zeros((1, W, BT, Cin), jnp.bfloat16)
    xp = jnp.concatenate([zr, xb, zr], axis=0)               # (H+2, W, BT, Cin)
    zc = jnp.zeros((H + 2, 1, BT, Cin), jnp.bfloat16)
    xp = jnp.concatenate([zc, xp, zc], axis=1)               # (H+2, W+2, BT, Cin)

    acc = jnp.zeros((M, Cout), jnp.float32)
    for kh in range(3):
        for kw in range(3):
            # tap window: static slices on major dims, then flatten to (M, Cin)
            patch = xp[kh:kh + H, kw:kw + W].reshape(M, Cin)
            acc = acc + jnp.dot(patch, w_ref[kh, kw],
                                preferred_element_type=jnp.float32)
    acc = jnp.maximum(acc + b_ref[...], 0.0)                 # bias + ReLU (f32)
    return acc.reshape(H, W, BT, Cout)


# --------------------------------- kernel ------------------------------------

def _locnet_kernel(x_ref, w1_ref, b1_ref, w2_ref, b2_ref, w3_ref, b3_ref,
                   wl_ref, bl_ref, o_ref):
    x = x_ref[...]                              # (16, 16, BT, 4) f32
    x = _maxpool2x2(x)                          # (8, 8, BT, 4)
    x = _conv3x3_relu(x, w1_ref, b1_ref)        # (8, 8, BT, 64)
    x = _maxpool2x2(x)                          # (4, 4, BT, 64)
    x = _conv3x3_relu(x, w2_ref, b2_ref)        # (4, 4, BT, 64)
    x = _maxpool2x2(x)                          # (2, 2, BT, 64)
    x = _conv3x3_relu(x, w3_ref, b3_ref)        # (2, 2, BT, 128)
    x = _maxpool2x2(x)                          # (1, 1, BT, 128)

    bt = x.shape[2]
    v = x.reshape(bt, x.shape[3]).astype(jnp.bfloat16)       # (BT, 128)
    y = jnp.dot(v, wl_ref[...], preferred_element_type=jnp.float32) + bl_ref[...]
    o_ref[...] = jnp.maximum(y, 0.0).astype(o_ref.dtype)     # (BT, 128) lane-dense


# --------------------------------- wrapper -----------------------------------

@functools.partial(jax.jit, static_argnames=("block_b",))
def localization_net_forward(x_nchw, params, block_b=64):
    """x_nchw: (B, 4, 16, 16) float32 -> (B, 30) float32."""
    w1, b1, w2, b2, w3, b3, wl, bl = params
    B, Cin, H, W = x_nchw.shape

    # batch tile: multiple of 16 so sublane packing stays aligned for f32/bf16.
    bt = min(_round_up(block_b, 16), _round_up(B, 16))
    Bp = _round_up(B, bt)

    # (B, C, H, W) -> (H, W, B, C): batch on sublanes, channels on lanes.
    x = jnp.transpose(x_nchw, (2, 3, 0, 1)).astype(jnp.float32)
    if Bp != B:
        x = jnp.pad(x, ((0, 0), (0, 0), (0, Bp - B), (0, 0)))

    # MXU operands in bf16 (f32 accumulation); biases stay f32.
    w1b = w1.astype(jnp.bfloat16)
    w2b = w2.astype(jnp.bfloat16)
    w3b = w3.astype(jnp.bfloat16)
    # pad the 30-wide linear layer to a lane-dense 128-wide output.
    wl_pad = jnp.zeros((wl.shape[0], _NOUT_PAD), jnp.float32).at[:, :_NOUT].set(wl)
    wl_pad = wl_pad.astype(jnp.bfloat16)
    bl_pad = jnp.zeros((1, _NOUT_PAD), jnp.float32).at[:, :_NOUT].set(bl)

    grid_spec = pltpu.PrefetchScalarGridSpec(
        num_scalar_prefetch=0,
        grid=(Bp // bt,),
        in_specs=[
            pl.BlockSpec((H, W, bt, Cin), lambda b: (0, 0, b, 0)),
            pl.BlockSpec(w1b.shape, lambda b: (0, 0, 0, 0)),
            pl.BlockSpec(b1.shape, lambda b: (0, 0)),
            pl.BlockSpec(w2b.shape, lambda b: (0, 0, 0, 0)),
            pl.BlockSpec(b2.shape, lambda b: (0, 0)),
            pl.BlockSpec(w3b.shape, lambda b: (0, 0, 0, 0)),
            pl.BlockSpec(b3.shape, lambda b: (0, 0)),
            pl.BlockSpec(wl_pad.shape, lambda b: (0, 0)),
            pl.BlockSpec(bl_pad.shape, lambda b: (0, 0)),
        ],
        out_specs=pl.BlockSpec((bt, _NOUT_PAD), lambda b: (b, 0)),
    )

    out = pl.pallas_call(
        _locnet_kernel,
        out_shape=jax.ShapeDtypeStruct((Bp, _NOUT_PAD), jnp.float32),
        grid_spec=grid_spec,
        compiler_params=pltpu.CompilerParams(
            dimension_semantics=("parallel",),
        ),
    )(x, w1b, b1, w2b, b2, w3b, b3, wl_pad, bl_pad)

    return out[:B, :_NOUT]                                   # (B, 30)


# ---------------------------- pure-JAX reference ------------------------------

def reference_forward(x_nchw, params):
    w1, b1, w2, b2, w3, b3, wl, bl = params
    x = jnp.transpose(x_nchw, (0, 2, 3, 1)).astype(jnp.float32)

    def pool(t):
        return lax.reduce_window(t, -jnp.inf, lax.max,
                                 (1, 2, 2, 1), (1, 2, 2, 1), "VALID")

    def conv_relu(t, w, b):
        y = lax.conv_general_dilated(
            t, w, window_strides=(1, 1), padding="SAME",
            dimension_numbers=("NHWC", "HWIO", "NHWC"))
        return jnp.maximum(y + b.reshape(1, 1, 1, -1), 0.0)

    x = pool(x)
    x = conv_relu(x, w1, b1)
    x = pool(x)
    x = conv_relu(x, w2, b2)
    x = pool(x)
    x = conv_relu(x, w3, b3)
    x = pool(x)
    v = x.reshape(x.shape[0], -1)                            # (B, 128)
    return jnp.maximum(v @ wl + bl, 0.0)


# ----------------------------------- main -------------------------------------

def _init_params(key):
    # Note: conv weights stored HWIO, linear weight stored (in, out); real
    # PyTorch checkpoints (OIHW / (out, in)) would need a transpose on load.
    ks = jax.random.split(key, 9)
    w1 = jax.random.normal(ks[0], (3, 3, 4, 64), jnp.float32) / jnp.sqrt(4 * 9)
    b1 = 0.01 * jax.random.normal(ks[1], (1, 64), jnp.float32)
    w2 = jax.random.normal(ks[2], (3, 3, 64, 64), jnp.float32) / jnp.sqrt(64 * 9)
    b2 = 0.01 * jax.random.normal(ks[3], (1, 64), jnp.float32)
    w3 = jax.random.normal(ks[4], (3, 3, 64, 128), jnp.float32) / jnp.sqrt(64 * 9)
    b3 = 0.01 * jax.random.normal(ks[5], (1, 128), jnp.float32)
    wl = jax.random.normal(ks[6], (128, 30), jnp.float32) / jnp.sqrt(128)
    bl = 0.01 * jax.random.normal(ks[7], (1, 30), jnp.float32)
    return (w1, b1, w2, b2, w3, b3, wl, bl), ks[8]


if __name__ == "__main__":
    key = jax.random.PRNGKey(0)
    params, xkey = _init_params(key)
    x = jax.random.normal(xkey, (2, 4, 16, 16), jnp.float32)   # NCHW, like PyTorch

    out = localization_net_forward(x, params)
    out = jax.block_until_ready(out)

    ref = jax.block_until_ready(reference_forward(x, params))

    assert out.shape == (2, 30) and out.dtype == jnp.float32
    assert bool(jnp.all(jnp.isfinite(out)))
    # Loose tolerance: the kernel feeds bf16 operands to the MXU (f32 accumulate),
    # while the XLA reference conv uses default f32 precision.
    assert bool(jnp.allclose(out, ref, rtol=1e-1, atol=1e-1))

    print("KERNEL_OK")
</pallas_src>

<mosaic_0001>
module attributes {stable_mosaic.version = 11 : i64} {
  func.func @_locnet_kernel(%arg0: i32, %arg1: memref<16x16x16x4xf32, #tpu.memory_space<vmem>>, %arg2: memref<3x3x4x64xbf16, #tpu.memory_space<vmem>>, %arg3: memref<1x64xf32, #tpu.memory_space<vmem>>, %arg4: memref<3x3x64x64xbf16, #tpu.memory_space<vmem>>, %arg5: memref<1x64xf32, #tpu.memory_space<vmem>>, %arg6: memref<3x3x64x128xbf16, #tpu.memory_space<vmem>>, %arg7: memref<1x128xf32, #tpu.memory_space<vmem>>, %arg8: memref<128x128xbf16, #tpu.memory_space<vmem>>, %arg9: memref<1x128xf32, #tpu.memory_space<vmem>>, %arg10: memref<16x128xf32, #tpu.memory_space<vmem>>) attributes {dimension_semantics = [#tpu.dimension_semantics<parallel>], iteration_bounds = array<i64: 1>, scalar_prefetch = 0 : i64, scratch_operands = 0 : i64, tpu.core_type = #tpu.core_type<tc>, window_params = [{transform_indices = @transform_0, window_bounds = array<i64: 16, 16, 16, 4>}, {pipeline_mode = #tpu.pipeline_mode<synchronous>, transform_indices = @transform_1, window_bounds = array<i64: 3, 3, 4, 64>}, {pipeline_mode = #tpu.pipeline_mode<synchronous>, transform_indices = @transform_2, window_bounds = array<i64: 1, 64>}, {pipeline_mode = #tpu.pipeline_mode<synchronous>, transform_indices = @transform_3, window_bounds = array<i64: 3, 3, 64, 64>}, {pipeline_mode = #tpu.pipeline_mode<synchronous>, transform_indices = @transform_4, window_bounds = array<i64: 1, 64>}, {pipeline_mode = #tpu.pipeline_mode<synchronous>, transform_indices = @transform_5, window_bounds = array<i64: 3, 3, 64, 128>}, {pipeline_mode = #tpu.pipeline_mode<synchronous>, transform_indices = @transform_6, window_bounds = array<i64: 1, 128>}, {pipeline_mode = #tpu.pipeline_mode<synchronous>, transform_indices = @transform_7, window_bounds = array<i64: 128, 128>}, {pipeline_mode = #tpu.pipeline_mode<synchronous>, transform_indices = @transform_8, window_bounds = array<i64: 1, 128>}, {transform_indices = @transform_9, window_bounds = array<i64: 16, 128>}]} {
    %c0 = arith.constant 0 : index
    %c0_0 = arith.constant 0 : index
    %c0_1 = arith.constant 0 : index
    %c0_2 = arith.constant 0 : index
    %0 = vector.load %arg1[%c0, %c0_0, %c0_1, %c0_2] : memref<16x16x16x4xf32, #tpu.memory_space<vmem>>, vector<16x16x16x4xf32>
    %1 = vector.shape_cast %0 : vector<16x16x16x4xf32> to vector<8x2x16x16x4xf32>
    %2 = vector.extract_strided_slice %1 {offsets = [0, 0, 0, 0, 0], sizes = [8, 1, 16, 16, 4], strides = [1, 1, 1, 1, 1]} : vector<8x2x16x16x4xf32> to vector<8x1x16x16x4xf32>
    %3 = vector.shape_cast %2 : vector<8x1x16x16x4xf32> to vector<8x16x16x4xf32>
    %4 = vector.extract_strided_slice %1 {offsets = [0, 1, 0, 0, 0], sizes = [8, 1, 16, 16, 4], strides = [1, 1, 1, 1, 1]} : vector<8x2x16x16x4xf32> to vector<8x1x16x16x4xf32>
    %5 = vector.shape_cast %4 : vector<8x1x16x16x4xf32> to vector<8x16x16x4xf32>
    %6 = arith.maximumf %3, %5 : vector<8x16x16x4xf32>
    %7 = vector.shape_cast %6 : vector<8x16x16x4xf32> to vector<8x8x2x16x4xf32>
    %8 = vector.extract_strided_slice %7 {offsets = [0, 0, 0, 0, 0], sizes = [8, 8, 1, 16, 4], strides = [1, 1, 1, 1, 1]} : vector<8x8x2x16x4xf32> to vector<8x8x1x16x4xf32>
    %9 = vector.shape_cast %8 : vector<8x8x1x16x4xf32> to vector<8x8x16x4xf32>
    %10 = vector.extract_strided_slice %7 {offsets = [0, 0, 1, 0, 0], sizes = [8, 8, 1, 16, 4], strides = [1, 1, 1, 1, 1]} : vector<8x8x2x16x4xf32> to vector<8x8x1x16x4xf32>
    %11 = vector.shape_cast %10 : vector<8x8x1x16x4xf32> to vector<8x8x16x4xf32>
    %12 = arith.maximumf %9, %11 : vector<8x8x16x4xf32>
    %13 = arith.truncf %12 : vector<8x8x16x4xf32> to vector<8x8x16x4xbf16>
    %cst = arith.constant 0.000000e+00 : bf16
    %14 = vector.broadcast %cst : bf16 to vector<1x8x16x4xbf16>
    %15 = tpu.concatenate %14, %13, %14 in 0 : vector<1x8x16x4xbf16>, vector<8x8x16x4xbf16>, vector<1x8x16x4xbf16> -> vector<10x8x16x4xbf16>
    %cst_3 = arith.constant 0.000000e+00 : bf16
    %16 = vector.broadcast %cst_3 : bf16 to vector<10x1x16x4xbf16>
    %17 = tpu.concatenate %16, %15, %16 in 1 : vector<10x1x16x4xbf16>, vector<10x8x16x4xbf16>, vector<10x1x16x4xbf16> -> vector<10x10x16x4xbf16>
    %cst_4 = arith.constant 0.000000e+00 : f32
    %18 = vector.broadcast %cst_4 : f32 to vector<1024x64xf32>
    %19 = vector.extract_strided_slice %17 {offsets = [0, 0, 0, 0], sizes = [8, 8, 16, 4], strides = [1, 1, 1, 1]} : vector<10x10x16x4xbf16> to vector<8x8x16x4xbf16>
    %20 = vector.shape_cast %19 : vector<8x8x16x4xbf16> to vector<1024x4xbf16>
    %c0_5 = arith.constant 0 : index
    %c0_6 = arith.constant 0 : index
    %c0_7 = arith.constant 0 : index
    %c0_8 = arith.constant 0 : index
    %21 = vector.load %arg2[%c0_5, %c0_6, %c0_7, %c0_8] : memref<3x3x4x64xbf16, #tpu.memory_space<vmem>>, vector<1x1x4x64xbf16>
    %22 = vector.shape_cast %21 : vector<1x1x4x64xbf16> to vector<4x64xbf16>
    %cst_9 = arith.constant dense<0.000000e+00> : vector<1024x64xf32>
    %23 = tpu.matmul %20, %22, %cst_9 {dimension_numbers = #tpu.dot_dimension_numbers<[1], [0], [0], [1], [0, 0, 1, 1], [], []>} : vector<1024x4xbf16>, vector<4x64xbf16>, vector<1024x64xf32> -> vector<1024x64xf32>
    %24 = arith.addf %18, %23 : vector<1024x64xf32>
    %25 = vector.extract_strided_slice %17 {offsets = [0, 1, 0, 0], sizes = [8, 8, 16, 4], strides = [1, 1, 1, 1]} : vector<10x10x16x4xbf16> to vector<8x8x16x4xbf16>
    %26 = vector.shape_cast %25 : vector<8x8x16x4xbf16> to vector<1024x4xbf16>
    %c0_10 = arith.constant 0 : index
    %c1 = arith.constant 1 : index
    %c0_11 = arith.constant 0 : index
    %c0_12 = arith.constant 0 : index
    %27 = vector.load %arg2[%c0_10, %c1, %c0_11, %c0_12] : memref<3x3x4x64xbf16, #tpu.memory_space<vmem>>, vector<1x1x4x64xbf16>
    %28 = vector.shape_cast %27 : vector<1x1x4x64xbf16> to vector<4x64xbf16>
    %cst_13 = arith.constant dense<0.000000e+00> : vector<1024x64xf32>
    %29 = tpu.matmul %26, %28, %cst_13 {dimension_numbers = #tpu.dot_dimension_numbers<[1], [0], [0], [1], [0, 0, 1, 1], [], []>} : vector<1024x4xbf16>, vector<4x64xbf16>, vector<1024x64xf32> -> vector<1024x64xf32>
    %30 = arith.addf %24, %29 : vector<1024x64xf32>
    %31 = vector.extract_strided_slice %17 {offsets = [0, 2, 0, 0], sizes = [8, 8, 16, 4], strides = [1, 1, 1, 1]} : vector<10x10x16x4xbf16> to vector<8x8x16x4xbf16>
    %32 = vector.shape_cast %31 : vector<8x8x16x4xbf16> to vector<1024x4xbf16>
    %c0_14 = arith.constant 0 : index
    %c2 = arith.constant 2 : index
    %c0_15 = arith.constant 0 : index
    %c0_16 = arith.constant 0 : index
    %33 = vector.load %arg2[%c0_14, %c2, %c0_15, %c0_16] : memref<3x3x4x64xbf16, #tpu.memory_space<vmem>>, vector<1x1x4x64xbf16>
    %34 = vector.shape_cast %33 : vector<1x1x4x64xbf16> to vector<4x64xbf16>
    %cst_17 = arith.constant dense<0.000000e+00> : vector<1024x64xf32>
    %35 = tpu.matmul %32, %34, %cst_17 {dimension_numbers = #tpu.dot_dimension_numbers<[1], [0], [0], [1], [0, 0, 1, 1], [], []>} : vector<1024x4xbf16>, vector<4x64xbf16>, vector<1024x64xf32> -> vector<1024x64xf32>
    %36 = arith.addf %30, %35 : vector<1024x64xf32>
    %37 = vector.extract_strided_slice %17 {offsets = [1, 0, 0, 0], sizes = [8, 8, 16, 4], strides = [1, 1, 1, 1]} : vector<10x10x16x4xbf16> to vector<8x8x16x4xbf16>
    %38 = vector.shape_cast %37 : vector<8x8x16x4xbf16> to vector<1024x4xbf16>
    %c1_18 = arith.constant 1 : index
    %c0_19 = arith.constant 0 : index
    %c0_20 = arith.constant 0 : index
    %c0_21 = arith.constant 0 : index
    %39 = vector.load %arg2[%c1_18, %c0_19, %c0_20, %c0_21] : memref<3x3x4x64xbf16, #tpu.memory_space<vmem>>, vector<1x1x4x64xbf16>
    %40 = vector.shape_cast %39 : vector<1x1x4x64xbf16> to vector<4x64xbf16>
    %cst_22 = arith.constant dense<0.000000e+00> : vector<1024x64xf32>
    %41 = tpu.matmul %38, %40, %cst_22 {dimension_numbers = #tpu.dot_dimension_numbers<[1], [0], [0], [1], [0, 0, 1, 1], [], []>} : vector<1024x4xbf16>, vector<4x64xbf16>, vector<1024x64xf32> -> vector<1024x64xf32>
    %42 = arith.addf %36, %41 : vector<1024x64xf32>
    %43 = vector.extract_strided_slice %17 {offsets = [1, 1, 0, 0], sizes = [8, 8, 16, 4], strides = [1, 1, 1, 1]} : vector<10x10x16x4xbf16> to vector<8x8x16x4xbf16>
    %44 = vector.shape_cast %43 : vector<8x8x16x4xbf16> to vector<1024x4xbf16>
    %c1_23 = arith.constant 1 : index
    %c1_24 = arith.constant 1 : index
    %c0_25 = arith.constant 0 : index
    %c0_26 = arith.constant 0 : index
    %45 = vector.load %arg2[%c1_23, %c1_24, %c0_25, %c0_26] : memref<3x3x4x64xbf16, #tpu.memory_space<vmem>>, vector<1x1x4x64xbf16>
    %46 = vector.shape_cast %45 : vector<1x1x4x64xbf16> to vector<4x64xbf16>
    %cst_27 = arith.constant dense<0.000000e+00> : vector<1024x64xf32>
    %47 = tpu.matmul %44, %46, %cst_27 {dimension_numbers = #tpu.dot_dimension_numbers<[1], [0], [0], [1], [0, 0, 1, 1], [], []>} : vector<1024x4xbf16>, vector<4x64xbf16>, vector<1024x64xf32> -> vector<1024x64xf32>
    %48 = arith.addf %42, %47 : vector<1024x64xf32>
    %49 = vector.extract_strided_slice %17 {offsets = [1, 2, 0, 0], sizes = [8, 8, 16, 4], strides = [1, 1, 1, 1]} : vector<10x10x16x4xbf16> to vector<8x8x16x4xbf16>
    %50 = vector.shape_cast %49 : vector<8x8x16x4xbf16> to vector<1024x4xbf16>
    %c1_28 = arith.constant 1 : index
    %c2_29 = arith.constant 2 : index
    %c0_30 = arith.constant 0 : index
    %c0_31 = arith.constant 0 : index
    %51 = vector.load %arg2[%c1_28, %c2_29, %c0_30, %c0_31] : memref<3x3x4x64xbf16, #tpu.memory_space<vmem>>, vector<1x1x4x64xbf16>
    %52 = vector.shape_cast %51 : vector<1x1x4x64xbf16> to vector<4x64xbf16>
    %cst_32 = arith.constant dense<0.000000e+00> : vector<1024x64xf32>
    %53 = tpu.matmul %50, %52, %cst_32 {dimension_numbers = #tpu.dot_dimension_numbers<[1], [0], [0], [1], [0, 0, 1, 1], [], []>} : vector<1024x4xbf16>, vector<4x64xbf16>, vector<1024x64xf32> -> vector<1024x64xf32>
    %54 = arith.addf %48, %53 : vector<1024x64xf32>
    %55 = vector.extract_strided_slice %17 {offsets = [2, 0, 0, 0], sizes = [8, 8, 16, 4], strides = [1, 1, 1, 1]} : vector<10x10x16x4xbf16> to vector<8x8x16x4xbf16>
    %56 = vector.shape_cast %55 : vector<8x8x16x4xbf16> to vector<1024x4xbf16>
    %c2_33 = arith.constant 2 : index
    %c0_34 = arith.constant 0 : index
    %c0_35 = arith.constant 0 : index
    %c0_36 = arith.constant 0 : index
    %57 = vector.load %arg2[%c2_33, %c0_34, %c0_35, %c0_36] : memref<3x3x4x64xbf16, #tpu.memory_space<vmem>>, vector<1x1x4x64xbf16>
    %58 = vector.shape_cast %57 : vector<1x1x4x64xbf16> to vector<4x64xbf16>
    %cst_37 = arith.constant dense<0.000000e+00> : vector<1024x64xf32>
    %59 = tpu.matmul %56, %58, %cst_37 {dimension_numbers = #tpu.dot_dimension_numbers<[1], [0], [0], [1], [0, 0, 1, 1], [], []>} : vector<1024x4xbf16>, vector<4x64xbf16>, vector<1024x64xf32> -> vector<1024x64xf32>
    %60 = arith.addf %54, %59 : vector<1024x64xf32>
    %61 = vector.extract_strided_slice %17 {offsets = [2, 1, 0, 0], sizes = [8, 8, 16, 4], strides = [1, 1, 1, 1]} : vector<10x10x16x4xbf16> to vector<8x8x16x4xbf16>
    %62 = vector.shape_cast %61 : vector<8x8x16x4xbf16> to vector<1024x4xbf16>
    %c2_38 = arith.constant 2 : index
    %c1_39 = arith.constant 1 : index
    %c0_40 = arith.constant 0 : index
    %c0_41 = arith.constant 0 : index
    %63 = vector.load %arg2[%c2_38, %c1_39, %c0_40, %c0_41] : memref<3x3x4x64xbf16, #tpu.memory_space<vmem>>, vector<1x1x4x64xbf16>
    %64 = vector.shape_cast %63 : vector<1x1x4x64xbf16> to vector<4x64xbf16>
    %cst_42 = arith.constant dense<0.000000e+00> : vector<1024x64xf32>
    %65 = tpu.matmul %62, %64, %cst_42 {dimension_numbers = #tpu.dot_dimension_numbers<[1], [0], [0], [1], [0, 0, 1, 1], [], []>} : vector<1024x4xbf16>, vector<4x64xbf16>, vector<1024x64xf32> -> vector<1024x64xf32>
    %66 = arith.addf %60, %65 : vector<1024x64xf32>
    %67 = vector.extract_strided_slice %17 {offsets = [2, 2, 0, 0], sizes = [8, 8, 16, 4], strides = [1, 1, 1, 1]} : vector<10x10x16x4xbf16> to vector<8x8x16x4xbf16>
    %68 = vector.shape_cast %67 : vector<8x8x16x4xbf16> to vector<1024x4xbf16>
    %c2_43 = arith.constant 2 : index
    %c2_44 = arith.constant 2 : index
    %c0_45 = arith.constant 0 : index
    %c0_46 = arith.constant 0 : index
    %69 = vector.load %arg2[%c2_43, %c2_44, %c0_45, %c0_46] : memref<3x3x4x64xbf16, #tpu.memory_space<vmem>>, vector<1x1x4x64xbf16>
    %70 = vector.shape_cast %69 : vector<1x1x4x64xbf16> to vector<4x64xbf16>
    %cst_47 = arith.constant dense<0.000000e+00> : vector<1024x64xf32>
    %71 = tpu.matmul %68, %70, %cst_47 {dimension_numbers = #tpu.dot_dimension_numbers<[1], [0], [0], [1], [0, 0, 1, 1], [], []>} : vector<1024x4xbf16>, vector<4x64xbf16>, vector<1024x64xf32> -> vector<1024x64xf32>
    %72 = arith.addf %66, %71 : vector<1024x64xf32>
    %c0_48 = arith.constant 0 : index
    %c0_49 = arith.constant 0 : index
    %73 = vector.load %arg3[%c0_48, %c0_49] : memref<1x64xf32, #tpu.memory_space<vmem>>, vector<1x64xf32>
    %74 = vector.broadcast %73 : vector<1x64xf32> to vector<1024x64xf32>
    %75 = arith.addf %72, %74 : vector<1024x64xf32>
    %cst_50 = arith.constant 0.000000e+00 : f32
    %76 = vector.broadcast %cst_50 : f32 to vector<1024x64xf32>
    %77 = arith.maximumf %75, %76 : vector<1024x64xf32>
    %78 = vector.shape_cast %77 : vector<1024x64xf32> to vector<8x8x16x64xf32>
    %79 = vector.shape_cast %78 : vector<8x8x16x64xf32> to vector<4x2x8x16x64xf32>
    %80 = vector.extract_strided_slice %79 {offsets = [0, 0, 0, 0, 0], sizes = [4, 1, 8, 16, 64], strides = [1, 1, 1, 1, 1]} : vector<4x2x8x16x64xf32> to vector<4x1x8x16x64xf32>
    %81 = vector.shape_cast %80 : vector<4x1x8x16x64xf32> to vector<4x8x16x64xf32>
    %82 = vector.extract_strided_slice %79 {offsets = [0, 1, 0, 0, 0], sizes = [4, 1, 8, 16, 64], strides = [1, 1, 1, 1, 1]} : vector<4x2x8x16x64xf32> to vector<4x1x8x16x64xf32>
    %83 = vector.shape_cast %82 : vector<4x1x8x16x64xf32> to vector<4x8x16x64xf32>
    %84 = arith.maximumf %81, %83 : vector<4x8x16x64xf32>
    %85 = vector.shape_cast %84 : vector<4x8x16x64xf32> to vector<4x4x2x16x64xf32>
    %86 = vector.extract_strided_slice %85 {offsets = [0, 0, 0, 0, 0], sizes = [4, 4, 1, 16, 64], strides = [1, 1, 1, 1, 1]} : vector<4x4x2x16x64xf32> to vector<4x4x1x16x64xf32>
    %87 = vector.shape_cast %86 : vector<4x4x1x16x64xf32> to vector<4x4x16x64xf32>
    %88 = vector.extract_strided_slice %85 {offsets = [0, 0, 1, 0, 0], sizes = [4, 4, 1, 16, 64], strides = [1, 1, 1, 1, 1]} : vector<4x4x2x16x64xf32> to vector<4x4x1x16x64xf32>
    %89 = vector.shape_cast %88 : vector<4x4x1x16x64xf32> to vector<4x4x16x64xf32>
    %90 = arith.maximumf %87, %89 : vector<4x4x16x64xf32>
    %91 = arith.truncf %90 : vector<4x4x16x64xf32> to vector<4x4x16x64xbf16>
    %cst_51 = arith.constant 0.000000e+00 : bf16
    %92 = vector.broadcast %cst_51 : bf16 to vector<1x4x16x64xbf16>
    %93 = tpu.concatenate %92, %91, %92 in 0 : vector<1x4x16x64xbf16>, vector<4x4x16x64xbf16>, vector<1x4x16x64xbf16> -> vector<6x4x16x64xbf16>
    %cst_52 = arith.constant 0.000000e+00 : bf16
    %94 = vector.broadcast %cst_52 : bf16 to vector<6x1x16x64xbf16>
    %95 = tpu.concatenate %94, %93, %94 in 1 : vector<6x1x16x64xbf16>, vector<6x4x16x64xbf16>, vector<6x1x16x64xbf16> -> vector<6x6x16x64xbf16>
    %cst_53 = arith.constant 0.000000e+00 : f32
    %96 = vector.broadcast %cst_53 : f32 to vector<256x64xf32>
    %97 = vector.extract_strided_slice %95 {offsets = [0, 0, 0, 0], sizes = [4, 4, 16, 64], strides = [1, 1, 1, 1]} : vector<6x6x16x64xbf16> to vector<4x4x16x64xbf16>
    %98 = vector.shape_cast %97 : vector<4x4x16x64xbf16> to vector<256x64xbf16>
    %c0_54 = arith.constant 0 : index
    %c0_55 = arith.constant 0 : index
    %c0_56 = arith.constant 0 : index
    %c0_57 = arith.constant 0 : index
    %99 = vector.load %arg4[%c0_54, %c0_55, %c0_56, %c0_57] : memref<3x3x64x64xbf16, #tpu.memory_space<vmem>>, vector<1x1x64x64xbf16>
    %100 = vector.shape_cast %99 : vector<1x1x64x64xbf16> to vector<64x64xbf16>
    %cst_58 = arith.constant dense<0.000000e+00> : vector<256x64xf32>
    %101 = tpu.matmul %98, %100, %cst_58 {dimension_numbers = #tpu.dot_dimension_numbers<[1], [0], [0], [1], [0, 0, 1, 1], [], []>} : vector<256x64xbf16>, vector<64x64xbf16>, vector<256x64xf32> -> vector<256x64xf32>
    %102 = arith.addf %96, %101 : vector<256x64xf32>
    %103 = vector.extract_strided_slice %95 {offsets = [0, 1, 0, 0], sizes = [4, 4, 16, 64], strides = [1, 1, 1, 1]} : vector<6x6x16x64xbf16> to vector<4x4x16x64xbf16>
    %104 = vector.shape_cast %103 : vector<4x4x16x64xbf16> to vector<256x64xbf16>
    %c0_59 = arith.constant 0 : index
    %c1_60 = arith.constant 1 : index
    %c0_61 = arith.constant 0 : index
    %c0_62 = arith.constant 0 : index
    %105 = vector.load %arg4[%c0_59, %c1_60, %c0_61, %c0_62] : memref<3x3x64x64xbf16, #tpu.memory_space<vmem>>, vector<1x1x64x64xbf16>
    %106 = vector.shape_cast %105 : vector<1x1x64x64xbf16> to vector<64x64xbf16>
    %cst_63 = arith.constant dense<0.000000e+00> : vector<256x64xf32>
    %107 = tpu.matmul %104, %106, %cst_63 {dimension_numbers = #tpu.dot_dimension_numbers<[1], [0], [0], [1], [0, 0, 1, 1], [], []>} : vector<256x64xbf16>, vector<64x64xbf16>, vector<256x64xf32> -> vector<256x64xf32>
    %108 = arith.addf %102, %107 : vector<256x64xf32>
    %109 = vector.extract_strided_slice %95 {offsets = [0, 2, 0, 0], sizes = [4, 4, 16, 64], strides = [1, 1, 1, 1]} : vector<6x6x16x64xbf16> to vector<4x4x16x64xbf16>
    %110 = vector.shape_cast %109 : vector<4x4x16x64xbf16> to vector<256x64xbf16>
    %c0_64 = arith.constant 0 : index
    %c2_65 = arith.constant 2 : index
    %c0_66 = arith.constant 0 : index
    %c0_67 = arith.constant 0 : index
    %111 = vector.load %arg4[%c0_64, %c2_65, %c0_66, %c0_67] : memref<3x3x64x64xbf16, #tpu.memory_space<vmem>>, vector<1x1x64x64xbf16>
    %112 = vector.shape_cast %111 : vector<1x1x64x64xbf16> to vector<64x64xbf16>
    %cst_68 = arith.constant dense<0.000000e+00> : vector<256x64xf32>
    %113 = tpu.matmul %110, %112, %cst_68 {dimension_numbers = #tpu.dot_dimension_numbers<[1], [0], [0], [1], [0, 0, 1, 1], [], []>} : vector<256x64xbf16>, vector<64x64xbf16>, vector<256x64xf32> -> vector<256x64xf32>
    %114 = arith.addf %108, %113 : vector<256x64xf32>
    %115 = vector.extract_strided_slice %95 {offsets = [1, 0, 0, 0], sizes = [4, 4, 16, 64], strides = [1, 1, 1, 1]} : vector<6x6x16x64xbf16> to vector<4x4x16x64xbf16>
    %116 = vector.shape_cast %115 : vector<4x4x16x64xbf16> to vector<256x64xbf16>
    %c1_69 = arith.constant 1 : index
    %c0_70 = arith.constant 0 : index
    %c0_71 = arith.constant 0 : index
    %c0_72 = arith.constant 0 : index
    %117 = vector.load %arg4[%c1_69, %c0_70, %c0_71, %c0_72] : memref<3x3x64x64xbf16, #tpu.memory_space<vmem>>, vector<1x1x64x64xbf16>
    %118 = vector.shape_cast %117 : vector<1x1x64x64xbf16> to vector<64x64xbf16>
    %cst_73 = arith.constant dense<0.000000e+00> : vector<256x64xf32>
    %119 = tpu.matmul %116, %118, %cst_73 {dimension_numbers = #tpu.dot_dimension_numbers<[1], [0], [0], [1], [0, 0, 1, 1], [], []>} : vector<256x64xbf16>, vector<64x64xbf16>, vector<256x64xf32> -> vector<256x64xf32>
    %120 = arith.addf %114, %119 : vector<256x64xf32>
    %121 = vector.extract_strided_slice %95 {offsets = [1, 1, 0, 0], sizes = [4, 4, 16, 64], strides = [1, 1, 1, 1]} : vector<6x6x16x64xbf16> to vector<4x4x16x64xbf16>
    %122 = vector.shape_cast %121 : vector<4x4x16x64xbf16> to vector<256x64xbf16>
    %c1_74 = arith.constant 1 : index
    %c1_75 = arith.constant 1 : index
    %c0_76 = arith.constant 0 : index
    %c0_77 = arith.constant 0 : index
    %123 = vector.load %arg4[%c1_74, %c1_75, %c0_76, %c0_77] : memref<3x3x64x64xbf16, #tpu.memory_space<vmem>>, vector<1x1x64x64xbf16>
    %124 = vector.shape_cast %123 : vector<1x1x64x64xbf16> to vector<64x64xbf16>
    %cst_78 = arith.constant dense<0.000000e+00> : vector<256x64xf32>
    %125 = tpu.matmul %122, %124, %cst_78 {dimension_numbers = #tpu.dot_dimension_numbers<[1], [0], [0], [1], [0, 0, 1, 1], [], []>} : vector<256x64xbf16>, vector<64x64xbf16>, vector<256x64xf32> -> vector<256x64xf32>
    %126 = arith.addf %120, %125 : vector<256x64xf32>
    %127 = vector.extract_strided_slice %95 {offsets = [1, 2, 0, 0], sizes = [4, 4, 16, 64], strides = [1, 1, 1, 1]} : vector<6x6x16x64xbf16> to vector<4x4x16x64xbf16>
    %128 = vector.shape_cast %127 : vector<4x4x16x64xbf16> to vector<256x64xbf16>
    %c1_79 = arith.constant 1 : index
    %c2_80 = arith.constant 2 : index
    %c0_81 = arith.constant 0 : index
    %c0_82 = arith.constant 0 : index
    %129 = vector.load %arg4[%c1_79, %c2_80, %c0_81, %c0_82] : memref<3x3x64x64xbf16, #tpu.memory_space<vmem>>, vector<1x1x64x64xbf16>
    %130 = vector.shape_cast %129 : vector<1x1x64x64xbf16> to vector<64x64xbf16>
    %cst_83 = arith.constant dense<0.000000e+00> : vector<256x64xf32>
    %131 = tpu.matmul %128, %130, %cst_83 {dimension_numbers = #tpu.dot_dimension_numbers<[1], [0], [0], [1], [0, 0, 1, 1], [], []>} : vector<256x64xbf16>, vector<64x64xbf16>, vector<256x64xf32> -> vector<256x64xf32>
    %132 = arith.addf %126, %131 : vector<256x64xf32>
    %133 = vector.extract_strided_slice %95 {offsets = [2, 0, 0, 0], sizes = [4, 4, 16, 64], strides = [1, 1, 1, 1]} : vector<6x6x16x64xbf16> to vector<4x4x16x64xbf16>
    %134 = vector.shape_cast %133 : vector<4x4x16x64xbf16> to vector<256x64xbf16>
    %c2_84 = arith.constant 2 : index
    %c0_85 = arith.constant 0 : index
    %c0_86 = arith.constant 0 : index
    %c0_87 = arith.constant 0 : index
    %135 = vector.load %arg4[%c2_84, %c0_85, %c0_86, %c0_87] : memref<3x3x64x64xbf16, #tpu.memory_space<vmem>>, vector<1x1x64x64xbf16>
    %136 = vector.shape_cast %135 : vector<1x1x64x64xbf16> to vector<64x64xbf16>
    %cst_88 = arith.constant dense<0.000000e+00> : vector<256x64xf32>
    %137 = tpu.matmul %134, %136, %cst_88 {dimension_numbers = #tpu.dot_dimension_numbers<[1], [0], [0], [1], [0, 0, 1, 1], [], []>} : vector<256x64xbf16>, vector<64x64xbf16>, vector<256x64xf32> -> vector<256x64xf32>
    %138 = arith.addf %132, %137 : vector<256x64xf32>
    %139 = vector.extract_strided_slice %95 {offsets = [2, 1, 0, 0], sizes = [4, 4, 16, 64], strides = [1, 1, 1, 1]} : vector<6x6x16x64xbf16> to vector<4x4x16x64xbf16>
    %140 = vector.shape_cast %139 : vector<4x4x16x64xbf16> to vector<256x64xbf16>
    %c2_89 = arith.constant 2 : index
    %c1_90 = arith.constant 1 : index
    %c0_91 = arith.constant 0 : index
    %c0_92 = arith.constant 0 : index
    %141 = vector.load %arg4[%c2_89, %c1_90, %c0_91, %c0_92] : memref<3x3x64x64xbf16, #tpu.memory_space<vmem>>, vector<1x1x64x64xbf16>
    %142 = vector.shape_cast %141 : vector<1x1x64x64xbf16> to vector<64x64xbf16>
    %cst_93 = arith.constant dense<0.000000e+00> : vector<256x64xf32>
    %143 = tpu.matmul %140, %142, %cst_93 {dimension_numbers = #tpu.dot_dimension_numbers<[1], [0], [0], [1], [0, 0, 1, 1], [], []>} : vector<256x64xbf16>, vector<64x64xbf16>, vector<256x64xf32> -> vector<256x64xf32>
    %144 = arith.addf %138, %143 : vector<256x64xf32>
    %145 = vector.extract_strided_slice %95 {offsets = [2, 2, 0, 0], sizes = [4, 4, 16, 64], strides = [1, 1, 1, 1]} : vector<6x6x16x64xbf16> to vector<4x4x16x64xbf16>
    %146 = vector.shape_cast %145 : vector<4x4x16x64xbf16> to vector<256x64xbf16>
    %c2_94 = arith.constant 2 : index
    %c2_95 = arith.constant 2 : index
    %c0_96 = arith.constant 0 : index
    %c0_97 = arith.constant 0 : index
    %147 = vector.load %arg4[%c2_94, %c2_95, %c0_96, %c0_97] : memref<3x3x64x64xbf16, #tpu.memory_space<vmem>>, vector<1x1x64x64xbf16>
    %148 = vector.shape_cast %147 : vector<1x1x64x64xbf16> to vector<64x64xbf16>
    %cst_98 = arith.constant dense<0.000000e+00> : vector<256x64xf32>
    %149 = tpu.matmul %146, %148, %cst_98 {dimension_numbers = #tpu.dot_dimension_numbers<[1], [0], [0], [1], [0, 0, 1, 1], [], []>} : vector<256x64xbf16>, vector<64x64xbf16>, vector<256x64xf32> -> vector<256x64xf32>
    %150 = arith.addf %144, %149 : vector<256x64xf32>
    %c0_99 = arith.constant 0 : index
    %c0_100 = arith.constant 0 : index
    %151 = vector.load %arg5[%c0_99, %c0_100] : memref<1x64xf32, #tpu.memory_space<vmem>>, vector<1x64xf32>
    %152 = vector.broadcast %151 : vector<1x64xf32> to vector<256x64xf32>
    %153 = arith.addf %150, %152 : vector<256x64xf32>
    %cst_101 = arith.constant 0.000000e+00 : f32
    %154 = vector.broadcast %cst_101 : f32 to vector<256x64xf32>
    %155 = arith.maximumf %153, %154 : vector<256x64xf32>
    %156 = vector.shape_cast %155 : vector<256x64xf32> to vector<4x4x16x64xf32>
    %157 = vector.shape_cast %156 : vector<4x4x16x64xf32> to vector<2x2x4x16x64xf32>
    %158 = vector.extract_strided_slice %157 {offsets = [0, 0, 0, 0, 0], sizes = [2, 1, 4, 16, 64], strides = [1, 1, 1, 1, 1]} : vector<2x2x4x16x64xf32> to vector<2x1x4x16x64xf32>
    %159 = vector.shape_cast %158 : vector<2x1x4x16x64xf32> to vector<2x4x16x64xf32>
    %160 = vector.extract_strided_slice %157 {offsets = [0, 1, 0, 0, 0], sizes = [2, 1, 4, 16, 64], strides = [1, 1, 1, 1, 1]} : vector<2x2x4x16x64xf32> to vector<2x1x4x16x64xf32>
    %161 = vector.shape_cast %160 : vector<2x1x4x16x64xf32> to vector<2x4x16x64xf32>
    %162 = arith.maximumf %159, %161 : vector<2x4x16x64xf32>
    %163 = vector.shape_cast %162 : vector<2x4x16x64xf32> to vector<2x2x2x16x64xf32>
    %164 = vector.extract_strided_slice %163 {offsets = [0, 0, 0, 0, 0], sizes = [2, 2, 1, 16, 64], strides = [1, 1, 1, 1, 1]} : vector<2x2x2x16x64xf32> to vector<2x2x1x16x64xf32>
    %165 = vector.shape_cast %164 : vector<2x2x1x16x64xf32> to vector<2x2x16x64xf32>
    %166 = vector.extract_strided_slice %163 {offsets = [0, 0, 1, 0, 0], sizes = [2, 2, 1, 16, 64], strides = [1, 1, 1, 1, 1]} : vector<2x2x2x16x64xf32> to vector<2x2x1x16x64xf32>
    %167 = vector.shape_cast %166 : vector<2x2x1x16x64xf32> to vector<2x2x16x64xf32>
    %168 = arith.maximumf %165, %167 : vector<2x2x16x64xf32>
    %169 = arith.truncf %168 : vector<2x2x16x64xf32> to vector<2x2x16x64xbf16>
    %cst_102 = arith.constant 0.000000e+00 : bf16
    %170 = vector.broadcast %cst_102 : bf16 to vector<1x2x16x64xbf16>
    %171 = tpu.concatenate %170, %169, %170 in 0 : vector<1x2x16x64xbf16>, vector<2x2x16x64xbf16>, vector<1x2x16x64xbf16> -> vector<4x2x16x64xbf16>
    %cst_103 = arith.constant 0.000000e+00 : bf16
    %172 = vector.broadcast %cst_103 : bf16 to vector<4x1x16x64xbf16>
    %173 = tpu.concatenate %172, %171, %172 in 1 : vector<4x1x16x64xbf16>, vector<4x2x16x64xbf16>, vector<4x1x16x64xbf16> -> vector<4x4x16x64xbf16>
    %cst_104 = arith.constant 0.000000e+00 : f32
    %174 = vector.broadcast %cst_104 : f32 to vector<64x128xf32>
    %175 = vector.extract_strided_slice %173 {offsets = [0, 0, 0, 0], sizes = [2, 2, 16, 64], strides = [1, 1, 1, 1]} : vector<4x4x16x64xbf16> to vector<2x2x16x64xbf16>
    %176 = vector.shape_cast %175 : vector<2x2x16x64xbf16> to vector<64x64xbf16>
    %c0_105 = arith.constant 0 : index
    %c0_106 = arith.constant 0 : index
    %c0_107 = arith.constant 0 : index
    %c0_108 = arith.constant 0 : index
    %177 = vector.load %arg6[%c0_105, %c0_106, %c0_107, %c0_108] : memref<3x3x64x128xbf16, #tpu.memory_space<vmem>>, vector<1x1x64x128xbf16>
    %178 = vector.shape_cast %177 : vector<1x1x64x128xbf16> to vector<64x128xbf16>
    %cst_109 = arith.constant dense<0.000000e+00> : vector<64x128xf32>
    %179 = tpu.matmul %176, %178, %cst_109 {dimension_numbers = #tpu.dot_dimension_numbers<[1], [0], [0], [1], [0, 0, 1, 1], [], []>} : vector<64x64xbf16>, vector<64x128xbf16>, vector<64x128xf32> -> vector<64x128xf32>
    %180 = arith.addf %174, %179 : vector<64x128xf32>
    %181 = vector.extract_strided_slice %173 {offsets = [0, 1, 0, 0], sizes = [2, 2, 16, 64], strides = [1, 1, 1, 1]} : vector<4x4x16x64xbf16> to vector<2x2x16x64xbf16>
    %182 = vector.shape_cast %181 : vector<2x2x16x64xbf16> to vector<64x64xbf16>
    %c0_110 = arith.constant 0 : index
    %c1_111 = arith.constant 1 : index
    %c0_112 = arith.constant 0 : index
    %c0_113 = arith.constant 0 : index
    %183 = vector.load %arg6[%c0_110, %c1_111, %c0_112, %c0_113] : memref<3x3x64x128xbf16, #tpu.memory_space<vmem>>, vector<1x1x64x128xbf16>
    %184 = vector.shape_cast %183 : vector<1x1x64x128xbf16> to vector<64x128xbf16>
    %cst_114 = arith.constant dense<0.000000e+00> : vector<64x128xf32>
    %185 = tpu.matmul %182, %184, %cst_114 {dimension_numbers = #tpu.dot_dimension_numbers<[1], [0], [0], [1], [0, 0, 1, 1], [], []>} : vector<64x64xbf16>, vector<64x128xbf16>, vector<64x128xf32> -> vector<64x128xf32>
    %186 = arith.addf %180, %185 : vector<64x128xf32>
    %187 = vector.extract_strided_slice %173 {offsets = [0, 2, 0, 0], sizes = [2, 2, 16, 64], strides = [1, 1, 1, 1]} : vector<4x4x16x64xbf16> to vector<2x2x16x64xbf16>
    %188 = vector.shape_cast %187 : vector<2x2x16x64xbf16> to vector<64x64xbf16>
    %c0_115 = arith.constant 0 : index
    %c2_116 = arith.constant 2 : index
    %c0_117 = arith.constant 0 : index
    %c0_118 = arith.constant 0 : index
    %189 = vector.load %arg6[%c0_115, %c2_116, %c0_117, %c0_118] : memref<3x3x64x128xbf16, #tpu.memory_space<vmem>>, vector<1x1x64x128xbf16>
    %190 = vector.shape_cast %189 : vector<1x1x64x128xbf16> to vector<64x128xbf16>
    %cst_119 = arith.constant dense<0.000000e+00> : vector<64x128xf32>
    %191 = tpu.matmul %188, %190, %cst_119 {dimension_numbers = #tpu.dot_dimension_numbers<[1], [0], [0], [1], [0, 0, 1, 1], [], []>} : vector<64x64xbf16>, vector<64x128xbf16>, vector<64x128xf32> -> vector<64x128xf32>
    %192 = arith.addf %186, %191 : vector<64x128xf32>
    %193 = vector.extract_strided_slice %173 {offsets = [1, 0, 0, 0], sizes = [2, 2, 16, 64], strides = [1, 1, 1, 1]} : vector<4x4x16x64xbf16> to vector<2x2x16x64xbf16>
    %194 = vector.shape_cast %193 : vector<2x2x16x64xbf16> to vector<64x64xbf16>
    %c1_120 = arith.constant 1 : index
    %c0_121 = arith.constant 0 : index
    %c0_122 = arith.constant 0 : index
    %c0_123 = arith.constant 0 : index
    %195 = vector.load %arg6[%c1_120, %c0_121, %c0_122, %c0_123] : memref<3x3x64x128xbf16, #tpu.memory_space<vmem>>, vector<1x1x64x128xbf16>
    %196 = vector.shape_cast %195 : vector<1x1x64x128xbf16> to vector<64x128xbf16>
    %cst_124 = arith.constant dense<0.000000e+00> : vector<64x128xf32>
    %197 = tpu.matmul %194, %196, %cst_124 {dimension_numbers = #tpu.dot_dimension_numbers<[1], [0], [0], [1], [0, 0, 1, 1], [], []>} : vector<64x64xbf16>, vector<64x128xbf16>, vector<64x128xf32> -> vector<64x128xf32>
    %198 = arith.addf %192, %197 : vector<64x128xf32>
    %199 = vector.extract_strided_slice %173 {offsets = [1, 1, 0, 0], sizes = [2, 2, 16, 64], strides = [1, 1, 1, 1]} : vector<4x4x16x64xbf16> to vector<2x2x16x64xbf16>
    %200 = vector.shape_cast %199 : vector<2x2x16x64xbf16> to vector<64x64xbf16>
    %c1_125 = arith.constant 1 : index
    %c1_126 = arith.constant 1 : index
    %c0_127 = arith.constant 0 : index
    %c0_128 = arith.constant 0 : index
    %201 = vector.load %arg6[%c1_125, %c1_126, %c0_127, %c0_128] : memref<3x3x64x128xbf16, #tpu.memory_space<vmem>>, vector<1x1x64x128xbf16>
    %202 = vector.shape_cast %201 : vector<1x1x64x128xbf16> to vector<64x128xbf16>
    %cst_129 = arith.constant dense<0.000000e+00> : vector<64x128xf32>
    %203 = tpu.matmul %200, %202, %cst_129 {dimension_numbers = #tpu.dot_dimension_numbers<[1], [0], [0], [1], [0, 0, 1, 1], [], []>} : vector<64x64xbf16>, vector<64x128xbf16>, vector<64x128xf32> -> vector<64x128xf32>
    %204 = arith.addf %198, %203 : vector<64x128xf32>
    %205 = vector.extract_strided_slice %173 {offsets = [1, 2, 0, 0], sizes = [2, 2, 16, 64], strides = [1, 1, 1, 1]} : vector<4x4x16x64xbf16> to vector<2x2x16x64xbf16>
    %206 = vector.shape_cast %205 : vector<2x2x16x64xbf16> to vector<64x64xbf16>
    %c1_130 = arith.constant 1 : index
    %c2_131 = arith.constant 2 : index
    %c0_132 = arith.constant 0 : index
    %c0_133 = arith.constant 0 : index
    %207 = vector.load %arg6[%c1_130, %c2_131, %c0_132, %c0_133] : memref<3x3x64x128xbf16, #tpu.memory_space<vmem>>, vector<1x1x64x128xbf16>
    %208 = vector.shape_cast %207 : vector<1x1x64x128xbf16> to vector<64x128xbf16>
    %cst_134 = arith.constant dense<0.000000e+00> : vector<64x128xf32>
    %209 = tpu.matmul %206, %208, %cst_134 {dimension_numbers = #tpu.dot_dimension_numbers<[1], [0], [0], [1], [0, 0, 1, 1], [], []>} : vector<64x64xbf16>, vector<64x128xbf16>, vector<64x128xf32> -> vector<64x128xf32>
    %210 = arith.addf %204, %209 : vector<64x128xf32>
    %211 = vector.extract_strided_slice %173 {offsets = [2, 0, 0, 0], sizes = [2, 2, 16, 64], strides = [1, 1, 1, 1]} : vector<4x4x16x64xbf16> to vector<2x2x16x64xbf16>
    %212 = vector.shape_cast %211 : vector<2x2x16x64xbf16> to vector<64x64xbf16>
    %c2_135 = arith.constant 2 : index
    %c0_136 = arith.constant 0 : index
    %c0_137 = arith.constant 0 : index
    %c0_138 = arith.constant 0 : index
    %213 = vector.load %arg6[%c2_135, %c0_136, %c0_137, %c0_138] : memref<3x3x64x128xbf16, #tpu.memory_space<vmem>>, vector<1x1x64x128xbf16>
    %214 = vector.shape_cast %213 : vector<1x1x64x128xbf16> to vector<64x128xbf16>
    %cst_139 = arith.constant dense<0.000000e+00> : vector<64x128xf32>
    %215 = tpu.matmul %212, %214, %cst_139 {dimension_numbers = #tpu.dot_dimension_numbers<[1], [0], [0], [1], [0, 0, 1, 1], [], []>} : vector<64x64xbf16>, vector<64x128xbf16>, vector<64x128xf32> -> vector<64x128xf32>
    %216 = arith.addf %210, %215 : vector<64x128xf32>
    %217 = vector.extract_strided_slice %173 {offsets = [2, 1, 0, 0], sizes = [2, 2, 16, 64], strides = [1, 1, 1, 1]} : vector<4x4x16x64xbf16> to vector<2x2x16x64xbf16>
    %218 = vector.shape_cast %217 : vector<2x2x16x64xbf16> to vector<64x64xbf16>
    %c2_140 = arith.constant 2 : index
    %c1_141 = arith.constant 1 : index
    %c0_142 = arith.constant 0 : index
    %c0_143 = arith.constant 0 : index
    %219 = vector.load %arg6[%c2_140, %c1_141, %c0_142, %c0_143] : memref<3x3x64x128xbf16, #tpu.memory_space<vmem>>, vector<1x1x64x128xbf16>
    %220 = vector.shape_cast %219 : vector<1x1x64x128xbf16> to vector<64x128xbf16>
    %cst_144 = arith.constant dense<0.000000e+00> : vector<64x128xf32>
    %221 = tpu.matmul %218, %220, %cst_144 {dimension_numbers = #tpu.dot_dimension_numbers<[1], [0], [0], [1], [0, 0, 1, 1], [], []>} : vector<64x64xbf16>, vector<64x128xbf16>, vector<64x128xf32> -> vector<64x128xf32>
    %222 = arith.addf %216, %221 : vector<64x128xf32>
    %223 = vector.extract_strided_slice %173 {offsets = [2, 2, 0, 0], sizes = [2, 2, 16, 64], strides = [1, 1, 1, 1]} : vector<4x4x16x64xbf16> to vector<2x2x16x64xbf16>
    %224 = vector.shape_cast %223 : vector<2x2x16x64xbf16> to vector<64x64xbf16>
    %c2_145 = arith.constant 2 : index
    %c2_146 = arith.constant 2 : index
    %c0_147 = arith.constant 0 : index
    %c0_148 = arith.constant 0 : index
    %225 = vector.load %arg6[%c2_145, %c2_146, %c0_147, %c0_148] : memref<3x3x64x128xbf16, #tpu.memory_space<vmem>>, vector<1x1x64x128xbf16>
    %226 = vector.shape_cast %225 : vector<1x1x64x128xbf16> to vector<64x128xbf16>
    %cst_149 = arith.constant dense<0.000000e+00> : vector<64x128xf32>
    %227 = tpu.matmul %224, %226, %cst_149 {dimension_numbers = #tpu.dot_dimension_numbers<[1], [0], [0], [1], [0, 0, 1, 1], [], []>} : vector<64x64xbf16>, vector<64x128xbf16>, vector<64x128xf32> -> vector<64x128xf32>
    %228 = arith.addf %222, %227 : vector<64x128xf32>
    %c0_150 = arith.constant 0 : index
    %c0_151 = arith.constant 0 : index
    %229 = vector.load %arg7[%c0_150, %c0_151] : memref<1x128xf32, #tpu.memory_space<vmem>>, vector<1x128xf32>
    %230 = vector.broadcast %229 : vector<1x128xf32> to vector<64x128xf32>
    %231 = arith.addf %228, %230 : vector<64x128xf32>
    %cst_152 = arith.constant 0.000000e+00 : f32
    %232 = vector.broadcast %cst_152 : f32 to vector<64x128xf32>
    %233 = arith.maximumf %231, %232 : vector<64x128xf32>
    %234 = vector.shape_cast %233 : vector<64x128xf32> to vector<2x2x16x128xf32>
    %235 = vector.shape_cast %234 : vector<2x2x16x128xf32> to vector<1x2x2x16x128xf32>
    %236 = vector.extract_strided_slice %235 {offsets = [0, 0, 0, 0, 0], sizes = [1, 1, 2, 16, 128], strides = [1, 1, 1, 1, 1]} : vector<1x2x2x16x128xf32> to vector<1x1x2x16x128xf32>
    %237 = vector.shape_cast %236 : vector<1x1x2x16x128xf32> to vector<1x2x16x128xf32>
    %238 = vector.extract_strided_slice %235 {offsets = [0, 1, 0, 0, 0], sizes = [1, 1, 2, 16, 128], strides = [1, 1, 1, 1, 1]} : vector<1x2x2x16x128xf32> to vector<1x1x2x16x128xf32>
    %239 = vector.shape_cast %238 : vector<1x1x2x16x128xf32> to vector<1x2x16x128xf32>
    %240 = arith.maximumf %237, %239 : vector<1x2x16x128xf32>
    %241 = vector.shape_cast %240 : vector<1x2x16x128xf32> to vector<1x1x2x16x128xf32>
    %242 = vector.extract_strided_slice %241 {offsets = [0, 0, 0, 0, 0], sizes = [1, 1, 1, 16, 128], strides = [1, 1, 1, 1, 1]} : vector<1x1x2x16x128xf32> to vector<1x1x1x16x128xf32>
    %243 = vector.shape_cast %242 : vector<1x1x1x16x128xf32> to vector<1x1x16x128xf32>
    %244 = vector.extract_strided_slice %241 {offsets = [0, 0, 1, 0, 0], sizes = [1, 1, 1, 16, 128], strides = [1, 1, 1, 1, 1]} : vector<1x1x2x16x128xf32> to vector<1x1x1x16x128xf32>
    %245 = vector.shape_cast %244 : vector<1x1x1x16x128xf32> to vector<1x1x16x128xf32>
    %246 = arith.maximumf %243, %245 : vector<1x1x16x128xf32>
    %247 = vector.shape_cast %246 : vector<1x1x16x128xf32> to vector<16x128xf32>
    %248 = arith.truncf %247 : vector<16x128xf32> to vector<16x128xbf16>
    %c0_153 = arith.constant 0 : index
    %c0_154 = arith.constant 0 : index
    %249 = vector.load %arg8[%c0_153, %c0_154] : memref<128x128xbf16, #tpu.memory_space<vmem>>, vector<128x128xbf16>
    %cst_155 = arith.constant dense<0.000000e+00> : vector<16x128xf32>
    %250 = tpu.matmul %248, %249, %cst_155 {dimension_numbers = #tpu.dot_dimension_numbers<[1], [0], [0], [1], [0, 0, 1, 1], [], []>} : vector<16x128xbf16>, vector<128x128xbf16>, vector<16x128xf32> -> vector<16x128xf32>
    %c0_156 = arith.constant 0 : index
    %c0_157 = arith.constant 0 : index
    %251 = vector.load %arg9[%c0_156, %c0_157] : memref<1x128xf32, #tpu.memory_space<vmem>>, vector<1x128xf32>
    %252 = vector.broadcast %251 : vector<1x128xf32> to vector<16x128xf32>
    %253 = arith.addf %250, %252 : vector<16x128xf32>
    %cst_158 = arith.constant 0.000000e+00 : f32
    %254 = vector.broadcast %cst_158 : f32 to vector<16x128xf32>
    %255 = arith.maximumf %253, %254 : vector<16x128xf32>
    %c0_159 = arith.constant 0 : index
    %c0_160 = arith.constant 0 : index
    %256 = vector.load %arg10[%c0_159, %c0_160] : memref<16x128xf32, #tpu.memory_space<vmem>>, vector<16x128xf32>
    tpu.vector_store %arg10[%c0_159, %c0_160], %255 {strides = array<i32>} : memref<16x128xf32, #tpu.memory_space<vmem>>, vector<16x128xf32>,
    return
  }
  func.func @transform_0(%arg0: i32) -> (i32, i32, i32, i32) {
    %c0_i32 = arith.constant 0 : i32
    %c0_i32_0 = arith.constant 0 : i32
    %c0_i32_1 = arith.constant 0 : i32
    %c0_i32_2 = arith.constant 0 : i32
    return %c0_i32, %c0_i32_0, %arg0, %c0_i32_1 : i32, i32, i32, i32
  }
  func.func @transform_1(%arg0: i32) -> (i32, i32, i32, i32) {
    %c0_i32 = arith.constant 0 : i32
    %c0_i32_0 = arith.constant 0 : i32
    %c0_i32_1 = arith.constant 0 : i32
    %c0_i32_2 = arith.constant 0 : i32
    %c0_i32_3 = arith.constant 0 : i32
    return %c0_i32, %c0_i32_0, %c0_i32_1, %c0_i32_2 : i32, i32, i32, i32
  }
  func.func @transform_2(%arg0: i32) -> (i32, i32) {
    %c0_i32 = arith.constant 0 : i32
    %c0_i32_0 = arith.constant 0 : i32
    %c0_i32_1 = arith.constant 0 : i32
    return %c0_i32, %c0_i32_0 : i32, i32
  }
  func.func @transform_3(%arg0: i32) -> (i32, i32, i32, i32) {
    %c0_i32 = arith.constant 0 : i32
    %c0_i32_0 = arith.constant 0 : i32
    %c0_i32_1 = arith.constant 0 : i32
    %c0_i32_2 = arith.constant 0 : i32
    %c0_i32_3 = arith.constant 0 : i32
    return %c0_i32, %c0_i32_0, %c0_i32_1, %c0_i32_2 : i32, i32, i32, i32
  }
  func.func @transform_4(%arg0: i32) -> (i32, i32) {
    %c0_i32 = arith.constant 0 : i32
    %c0_i32_0 = arith.constant 0 : i32
    %c0_i32_1 = arith.constant 0 : i32
    return %c0_i32, %c0_i32_0 : i32, i32
  }
  func.func @transform_5(%arg0: i32) -> (i32, i32, i32, i32) {
    %c0_i32 = arith.constant 0 : i32
    %c0_i32_0 = arith.constant 0 : i32
    %c0_i32_1 = arith.constant 0 : i32
    %c0_i32_2 = arith.constant 0 : i32
    %c0_i32_3 = arith.constant 0 : i32
    return %c0_i32, %c0_i32_0, %c0_i32_1, %c0_i32_2 : i32, i32, i32, i32
  }
  func.func @transform_6(%arg0: i32) -> (i32, i32) {
    %c0_i32 = arith.constant 0 : i32
    %c0_i32_0 = arith.constant 0 : i32
    %c0_i32_1 = arith.constant 0 : i32
    return %c0_i32, %c0_i32_0 : i32, i32
  }
  func.func @transform_7(%arg0: i32) -> (i32, i32) {
    %c0_i32 = arith.constant 0 : i32
    %c0_i32_0 = arith.constant 0 : i32
    %c0_i32_1 = arith.constant 0 : i32
    return %c0_i32, %c0_i32_0 : i32, i32
  }
  func.func @transform_8(%arg0: i32) -> (i32, i32) {
    %c0_i32 = arith.constant 0 : i32
    %c0_i32_0 = arith.constant 0 : i32
    %c0_i32_1 = arith.constant 0 : i32
    return %c0_i32, %c0_i32_0 : i32, i32
  }
  func.func @transform_9(%arg0: i32) -> (i32, i32) {
    %c0_i32 = arith.constant 0 : i32
    %c0_i32_0 = arith.constant 0 : i32
    return %arg0, %c0_i32 : i32, i32
  }
}

</mosaic_0001>

<bundles_post_ra>
// kernel: localization_net_forward.1
= control target key start
LH: loop header
LB: loop body
LE: loop exit
PB: predicated region body
PF: predicated region fallthrough
CT: control target
= control target key end

     0   :  { %vm1552_vm0 = vcmask 1041408   ;;  %v14990_v19 = vmov 0   ;;  %vm1380_vm1 = vcmask 31744   ;;  %vm5984_vm2 = vcmask 523264   ;;  %s14980_s1 = inlined_call_operand.vmem [shape: bf16[3,3,4,64], index: 1, kind: input, shape index: {}]   ;;  %s14981_s0 = inlined_call_operand.vmem [shape: f32[16,16,16,4], index: 0, kind: input, shape index: {}]   ;;  %s14982_s3 = inlined_call_operand.vmem [shape: bf16[3,3,64,64], index: 3, kind: input, shape index: {}]   ;;  %s14983_s2 = inlined_call_operand.vmem [shape: f32[1,64], index: 2, kind: input, shape index: {}]   ;;  %s14984_s5 = inlined_call_operand.vmem [shape: bf16[3,3,64,128], index: 5, kind: input, shape index: {}]   ;;  %s14985_s4 = inlined_call_operand.vmem [shape: f32[1,64], index: 4, kind: input, shape index: {}]   ;;  %s14986_s6 = inlined_call_operand.vmem [shape: f32[1,128], index: 6, kind: input, shape index: {}]   ;;  %s14987_s8 = inlined_call_operand.vmem [shape: f32[1,128], index: 8, kind: input, shape index: {}]   ;;  %s14988_s7 = inlined_call_operand.vmem [shape: bf16[128,128], index: 7, kind: input, shape index: {}]   ;;  %s14989_s9 = inlined_call_operand.vmem [shape: f32[16,128], index: 9, kind: output, shape index: {}]  }
   0x1   :  { %v8177_v0 = vld [vmem:[%s14980_s1 + $0x2] sm:$0x3]  ;;  %v1377_v1 = vld [vmem:[%s14980_s1] sm:$0x3]  ;;  %v8390_v2 = vld [vmem:[%s14980_s1 + $0x8] sm:$0x3] }
   0x2   :  { %v1554_v3 = vsel %vm1552_vm0, %v8177_v0, 0  ;;  %v1886_v4 = vsel %vm1552_vm0, %v1377_v1, 0  ;;  %v3168_v5 = vsel %vm1552_vm0, %v8390_v2, 0  ;;  %v441_v6 = vld [vmem:[%s14981_s0 + $0xcc0] sm:$0xff]  ;;  %v442_v7 = vld [vmem:[%s14981_s0 + $0xcc8] sm:$0xff]  ;;  %v443_v8 = vld [vmem:[%s14981_s0 + $0xcd0] sm:$0xff] }
   0x3   :  { %1563 = vmatpush.bf16.msra.mxu0 %v1554_v3  ;;  %1895 = vmatpush.bf16.msra.mxu1 %v1886_v4  ;;  %v444_v9 = vld [vmem:[%s14981_s0 + $0xcd8] sm:$0xff]  ;;  %v473_v10 = vld [vmem:[%s14981_s0 + $0xdc0] sm:$0xff]  ;;  %v474_v11 = vld [vmem:[%s14981_s0 + $0xdc8] sm:$0xff] }
   0x4   :  { %9313 = vmatpush.bf16.msra.mxu2 %v1554_v3  ;;  %v475_v12 = vld [vmem:[%s14981_s0 + $0xdd0] sm:$0xff]  ;;  %v476_v13 = vld [vmem:[%s14981_s0 + $0xdd8] sm:$0xff]  ;;  %v761_v14 = vmax.f32 %v441_v6, %v473_v10  ;;  %v762_v15 = vmax.f32 %v442_v7, %v474_v11  ;;  %v445_v18 = vld [vmem:[%s14981_s0 + $0xce0] sm:$0xff] }
   0x5   :  { %v763_v16 = vmax.f32 %v443_v8, %v475_v12  ;;  %v764_v17 = vmax.f32 %v444_v9, %v476_v13  ;;  %v446_v20 = vld [vmem:[%s14981_s0 + $0xce8] sm:$0xff]  ;;  %v447_v21 = vld [vmem:[%s14981_s0 + $0xcf0] sm:$0xff]  ;;  %v477_v22 = vld [vmem:[%s14981_s0 + $0xde0] sm:$0xff] }
   0x6   :  { %1564 = vmatmul.bf16.vlgmr.msra.gmra.mxu0 %v14990_v19  ;;  %1896 = vmatmul.bf16.vlgmr.msra.gmra.mxu1 %v14990_v19  ;;  %v478_v25 = vld [vmem:[%s14981_s0 + $0xde8] sm:$0xff]  ;;  %v8283_v26 = vld [vmem:[%s14980_s1 + $0x4] sm:$0x3]  ;;  %v8333_v27 = vld [vmem:[%s14980_s1 + $0x6] sm:$0x3]  ;;  %v765_v35 = vmax.f32 %v445_v18, %v477_v22 }
   0x7   :  { %3177 = vmatpush.bf16.msrb.mxu0 %v3168_v5  ;;  %v909_v23 = vmax.f32 %v761_v14, %v763_v16  ;;  %v910_v24 = vmax.f32 %v762_v15, %v764_v17  ;;  %v448_v28 = vld [vmem:[%s14981_s0 + $0xcf8] sm:$0xff]  ;;  %v479_v29 = vld [vmem:[%s14981_s0 + $0xdf0] sm:$0xff]  ;;  %v2220_v31 = vsel %vm1552_vm0, %v8283_v26, 0  ;;  %v2703_v32 = vsel %vm1552_vm0, %v8333_v27, 0  ;;  %v33_v46 = vld [vmem:[%s14981_s0] sm:$0xff] }
   0x8   :  { %v480_v30 = vld [vmem:[%s14981_s0 + $0xdf8] sm:$0xff]  ;;  %2229 = vmatpush.bf16.msrb.mxu2 %v2220_v31  ;;  %2712 = vmatpush.bf16.msra.mxu3 %v2703_v32  ;;  %v766_v36 = vmax.f32 %v446_v20, %v478_v25  ;;  %v767_v39 = vmax.f32 %v447_v21, %v479_v29  ;;  %v34_v47 = vld [vmem:[%s14981_s0 + $0x8] sm:$0xff]  ;;  %v35_v48 = vld [vmem:[%s14981_s0 + $0x10] sm:$0xff] }
   0x9   :  { %v1037_v33 = vpack.c.bf16 %v909_v23, %v909_v23  ;;  %v1038_v34 = vpack.c.bf16 %v910_v24, %v910_v24  ;;  %v768_v40 = vmax.f32 %v448_v28, %v480_v30  ;;  %v36_v51 = vld [vmem:[%s14981_s0 + $0x18] sm:$0xff]  ;;  %v65_v52 = vld [vmem:[%s14981_s0 + $0x100] sm:$0xff]  ;;  %v66_v53 = vld [vmem:[%s14981_s0 + $0x108] sm:$0xff] }
   0xa   :  { %v911_v42 = vmax.f32 %v765_v35, %v767_v39  ;;  %v67_v54 = vld [vmem:[%s14981_s0 + $0x110] sm:$0xff]  ;;  %v68_v55 = vld [vmem:[%s14981_s0 + $0x118] sm:$0xff]  ;;  %v545_v56 = vmax.f32 %v33_v46, %v65_v52  ;;  %v546_v57 = vmax.f32 %v34_v47, %v66_v53  ;;  %v37_v4 = vld [vmem:[%s14981_s0 + $0x20] sm:$0xff] }
   0xb   :  { %v1293_v37 = vunpack.c.l.b16 %v1037_v33  ;;  %v1294_v38 = vunpack.c.l.b16 %v1038_v34  ;;  %2713 = vmatmul.bf16.vlgmr.msra.gmra.mxu3 %v14990_v19  ;;  %v912_v43 = vmax.f32 %v766_v36, %v768_v40  ;;  %v547_v58 = vmax.f32 %v35_v48, %v67_v54  ;;  %v38_v5 = vld [vmem:[%s14981_s0 + $0x28] sm:$0xff]  ;;  %v39_v6 = vld [vmem:[%s14981_s0 + $0x30] sm:$0xff]  ;;  %v40_v7 = vld [vmem:[%s14981_s0 + $0x38] sm:$0xff] }
   0xc   :  { %v1039_v44 = vpack.c.bf16 %v911_v42, %v911_v42  ;;  %v548_v59 = vmax.f32 %v36_v51, %v68_v55  ;;  %v69_v8 = vld [vmem:[%s14981_s0 + $0x120] sm:$0xff]  ;;  %v70_v9 = vld [vmem:[%s14981_s0 + $0x128] sm:$0xff]  ;;  %v71_v10 = vld [vmem:[%s14981_s0 + $0x130] sm:$0xff] }
   0xd   :  { %v9443_v41 = vpack.c.b16 %v1294_v38, %v1293_v37  ;;  %v1040_v45 = vpack.c.bf16 %v912_v43, %v912_v43  ;;  %v801_v61 = vmax.f32 %v545_v56, %v547_v58  ;;  %v72_v11 = vld [vmem:[%s14981_s0 + $0x138] sm:$0xff]  ;;  %v549_v12 = vmax.f32 %v37_v4, %v69_v8  ;;  %v41_v24 = vld [vmem:[%s14981_s0 + $0x40] sm:$0xff]  ;;  %v42_v25 = vld [vmem:[%s14981_s0 + $0x48] sm:$0xff] }
   0xe   :  { %v1295_v49 = vunpack.c.l.b16 %v1039_v44  ;;  %v802_v62 = vmax.f32 %v546_v57, %v548_v59  ;;  %v550_v13 = vmax.f32 %v38_v5, %v70_v9  ;;  %v551_v14 = vmax.f32 %v39_v6, %v71_v10  ;;  %v43_v26 = vld [vmem:[%s14981_s0 + $0x50] sm:$0xff]  ;;  %v44_v27 = vld [vmem:[%s14981_s0 + $0x58] sm:$0xff]  ;;  %v73_v28 = vld [vmem:[%s14981_s0 + $0x140] sm:$0xff] }
   0xf   :  { %15094 = vst [vmem:[#allocation2_spill] sm:$0xff] %v9443_v41  ;;  %8232 = vmatmul.msk.bf16.vlgmr.msra.gmra.mxu2 %vm1380_vm1, %v9443_v41  ;;  %v1296_v50 = vunpack.c.l.b16 %v1040_v45  ;;  %v929_v63 = vpack.c.bf16 %v801_v61, %v801_v61  ;;  %v552_v15 = vmax.f32 %v40_v7, %v72_v11  ;;  %v74_v29 = vld [vmem:[%s14981_s0 + $0x148] sm:$0xff]  ;;  %v75_v30 = vld [vmem:[%s14981_s0 + $0x150] sm:$0xff]  ;;  %v76_v31 = vld [vmem:[%s14981_s0 + $0x158] sm:$0xff]  ;;  %v553_v32 = vmax.f32 %v41_v24, %v73_v28 }
  0x10   :  { %v930_v0 = vpack.c.bf16 %v802_v62, %v802_v62  ;;  %v803_v16 = vmax.f32 %v549_v12, %v551_v14  ;;  %v554_v33 = vmax.f32 %v42_v25, %v74_v29  ;;  %v555_v34 = vmax.f32 %v43_v26, %v75_v30  ;;  %v45_v44 = vld [vmem:[%s14981_s0 + $0x60] sm:$0xff]  ;;  %v46_v45 = vld [vmem:[%s14981_s0 + $0x68] sm:$0xff]  ;;  %v47_v46 = vld [vmem:[%s14981_s0 + $0x70] sm:$0xff] }
  0x11   :  { %v9473_v60 = vpack.c.b16 %v1296_v50, %v1295_v49  ;;  %v1185_v1 = vunpack.c.l.b16 %v929_v63  ;;  %v804_v17 = vmax.f32 %v550_v13, %v552_v15  ;;  %v556_v35 = vmax.f32 %v44_v27, %v76_v31  ;;  %v48_v47 = vld [vmem:[%s14981_s0 + $0x78] sm:$0xff]  ;;  %v77_v48 = vld [vmem:[%s14981_s0 + $0x160] sm:$0xff]  ;;  %v78_v49 = vld [vmem:[%s14981_s0 + $0x168] sm:$0xff] }
  0x12   :  { %v1186_v2 = vunpack.c.l.b16 %v930_v0  ;;  %v931_v18 = vpack.c.bf16 %v803_v16, %v803_v16  ;;  %v805_v36 = vmax.f32 %v553_v32, %v555_v34  ;;  %v79_v50 = vld [vmem:[%s14981_s0 + $0x170] sm:$0xff]  ;;  %v80_v51 = vld [vmem:[%s14981_s0 + $0x178] sm:$0xff]  ;;  %v557_v52 = vmax.f32 %v45_v44, %v77_v48  ;;  %v49_v0 = vld [vmem:[%s14981_s0 + $0x80] sm:$0xff] }
  0x13   :  { %15095 = vst [vmem:[#allocation3_spill] sm:$0xff] %v9473_v60  ;;  %v932_v20 = vpack.c.bf16 %v804_v17, %v804_v17  ;;  %v806_v37 = vmax.f32 %v554_v33, %v556_v35  ;;  %v558_v53 = vmax.f32 %v46_v45, %v78_v49  ;;  %v559_v54 = vmax.f32 %v47_v46, %v79_v50  ;;  %v52_v4 = vld [vmem:[%s14981_s0 + $0x98] sm:$0xff]  ;;  %v81_v5 = vld [vmem:[%s14981_s0 + $0x180] sm:$0xff]  ;;  %v82_v6 = vld [vmem:[%s14981_s0 + $0x188] sm:$0xff] }
  0x14   :  { %v9477_v3 = vpack.c.b16 %v1186_v2, %v1185_v1  ;;  %v1187_v21 = vunpack.c.l.b16 %v931_v18  ;;  %v933_v38 = vpack.c.bf16 %v805_v36, %v805_v36  ;;  %v560_v55 = vmax.f32 %v48_v47, %v80_v51  ;;  %v50_v1 = vld [vmem:[%s14981_s0 + $0x88] sm:$0xff]  ;;  %v51_v2 = vld [vmem:[%s14981_s0 + $0x90] sm:$0xff]  ;;  %v84_v8 = vld [vmem:[%s14981_s0 + $0x198] sm:$0xff] }
  0x15   :  { %v1188_v22 = vunpack.c.l.b16 %v932_v20  ;;  %v934_v39 = vpack.c.bf16 %v806_v37, %v806_v37  ;;  %v807_v56 = vmax.f32 %v557_v52, %v559_v54  ;;  %v83_v7 = vld [vmem:[%s14981_s0 + $0x190] sm:$0xff]  ;;  %v561_v9 = vmax.f32 %v49_v0, %v81_v5  ;;  %v56_v25 = vld [vmem:[%s14981_s0 + $0xb8] sm:$0xff]  ;;  %v85_v26 = vld [vmem:[%s14981_s0 + $0x1a0] sm:$0xff] }
  0x16   :  { %1569 = vmatmul.bf16.gmra.mxu0 %v14990_v19  ;;  %1901 = vmatmul.bf16.gmra.mxu1 %v14990_v19  ;;  %v1189_v40 = vunpack.c.l.b16 %v933_v38  ;;  %v808_v57 = vmax.f32 %v558_v53, %v560_v55  ;;  %v562_v10 = vmax.f32 %v50_v1, %v82_v6  ;;  %v563_v11 = vmax.f32 %v51_v2, %v83_v7  ;;  %v55_v24 = vld [vmem:[%s14981_s0 + $0xb0] sm:$0xff]  ;;  %v86_v27 = vld [vmem:[%s14981_s0 + $0x1a8] sm:$0xff]  ;;  %v88_v29 = vld [vmem:[%s14981_s0 + $0x1b8] sm:$0xff] }
  0x17   :  { %v9508_v23 = vpack.c.b16 %v1188_v22, %v1187_v21  ;;  %v1190_v42 = vunpack.c.l.b16 %v934_v39  ;;  %v935_v58 = vpack.c.bf16 %v807_v56, %v807_v56  ;;  %v564_v12 = vmax.f32 %v52_v4, %v84_v8  ;;  %v53_v21 = vld [vmem:[%s14981_s0 + $0xa0] sm:$0xff]  ;;  %v54_v22 = vld [vmem:[%s14981_s0 + $0xa8] sm:$0xff]  ;;  %v87_v28 = vld [vmem:[%s14981_s0 + $0x1b0] sm:$0xff] }
  0x18   :  { %v936_v59 = vpack.c.bf16 %v808_v57, %v808_v57  ;;  %v809_v13 = vmax.f32 %v561_v9, %v563_v11  ;;  %v565_v30 = vmax.f32 %v53_v21, %v85_v26  ;;  %v566_v31 = vmax.f32 %v54_v22, %v86_v27  ;;  %v58_v44 = vld [vmem:[%s14981_s0 + $0xc8] sm:$0xff]  ;;  %v59_v45 = vld [vmem:[%s14981_s0 + $0xd0] sm:$0xff]  ;;  %v60_v46 = vld [vmem:[%s14981_s0 + $0xd8] sm:$0xff] }
  0x19   :  { %v9539_v43 = vpack.c.b16 %v1190_v42, %v1189_v40  ;;  %v1191_v61 = vunpack.c.l.b16 %v935_v58  ;;  %v810_v14 = vmax.f32 %v562_v10, %v564_v12  ;;  %v567_v32 = vmax.f32 %v55_v24, %v87_v28  ;;  %v57_v42 = vld [vmem:[%s14981_s0 + $0xc0] sm:$0xff]  ;;  %v90_v48 = vld [vmem:[%s14981_s0 + $0x1c8] sm:$0xff]  ;;  %v91_v49 = vld [vmem:[%s14981_s0 + $0x1d0] sm:$0xff] }
  0x1a   :  { %v1192_v62 = vunpack.c.l.b16 %v936_v59  ;;  %v937_v15 = vpack.c.bf16 %v809_v13, %v809_v13  ;;  %v568_v33 = vmax.f32 %v56_v25, %v88_v29  ;;  %v89_v47 = vld [vmem:[%s14981_s0 + $0x1c0] sm:$0xff]  ;;  %v92_v50 = vld [vmem:[%s14981_s0 + $0x1d8] sm:$0xff]  ;;  %v570_v52 = vmax.f32 %v58_v44, %v90_v48  ;;  %v98_v13 = vld [vmem:[%s14981_s0 + $0x208] sm:$0xff] }
  0x1b   :  { %8334 = vmatmul.msk.bf16.gmra.mxu3 %vm1380_vm1, %v9477_v3  ;;  %v938_v16 = vpack.c.bf16 %v810_v14, %v810_v14  ;;  %v811_v34 = vmax.f32 %v565_v30, %v567_v32  ;;  %v569_v51 = vmax.f32 %v57_v42, %v89_v47  ;;  %v571_v53 = vmax.f32 %v59_v45, %v91_v49  ;;  %v97_v12 = vld [vmem:[%s14981_s0 + $0x200] sm:$0xff]  ;;  %v99_v14 = vld [vmem:[%s14981_s0 + $0x210] sm:$0xff]  ;;  %v132_v21 = vld [vmem:[%s14981_s0 + $0x318] sm:$0xff] }
  0x1c   :  { %v9570_v63 = vpack.c.b16 %v1192_v62, %v1191_v61  ;;  %v1193_v17 = vunpack.c.l.b16 %v937_v15  ;;  %v812_v35 = vmax.f32 %v566_v31, %v568_v33  ;;  %v572_v54 = vmax.f32 %v60_v46, %v92_v50  ;;  %v100_v15 = vld [vmem:[%s14981_s0 + $0x218] sm:$0xff]  ;;  %v101_v47 = vld [vmem:[%s14981_s0 + $0x220] sm:$0xff]  ;;  %v102_v48 = vld [vmem:[%s14981_s0 + $0x228] sm:$0xff] }
  0x1d   :  { %v1194_v18 = vunpack.c.l.b16 %v938_v16  ;;  %v939_v36 = vpack.c.bf16 %v811_v34, %v811_v34  ;;  %v813_v55 = vmax.f32 %v569_v51, %v571_v53  ;;  %v129_v16 = vld [vmem:[%s14981_s0 + $0x300] sm:$0xff]  ;;  %v580_v26 = vmax.f32 %v100_v15, %v132_v21  ;;  %v103_v49 = vld [vmem:[%s14981_s0 + $0x230] sm:$0xff]  ;;  %v104_v50 = vld [vmem:[%s14981_s0 + $0x238] sm:$0xff] }
  0x1e   :  { %v940_v37 = vpack.c.bf16 %v812_v35, %v812_v35  ;;  %v814_v56 = vmax.f32 %v570_v52, %v572_v54  ;;  %v577_v22 = vmax.f32 %v97_v12, %v129_v16  ;;  %v133_v51 = vld [vmem:[%s14981_s0 + $0x320] sm:$0xff]  ;;  %v134_v52 = vld [vmem:[%s14981_s0 + $0x328] sm:$0xff]  ;;  %v135_v53 = vld [vmem:[%s14981_s0 + $0x330] sm:$0xff] }
  0x1f   :  { %8233 = vmatmul.msk.bf16.gmra.mxu2 %vm1380_vm1, %v9473_v60  ;;  %v9601_v20 = vpack.c.b16 %v1194_v18, %v1193_v17  ;;  %v1195_v38 = vunpack.c.l.b16 %v939_v36  ;;  %v941_v57 = vpack.c.bf16 %v813_v55, %v813_v55  ;;  %v130_v17 = vld [vmem:[%s14981_s0 + $0x308] sm:$0xff]  ;;  %v131_v18 = vld [vmem:[%s14981_s0 + $0x310] sm:$0xff]  ;;  %v136_v54 = vld [vmem:[%s14981_s0 + $0x338] sm:$0xff]  ;;  %v581_v55 = vmax.f32 %v101_v47, %v133_v51 }
  0x20   :  { %v1196_v39 = vunpack.c.l.b16 %v940_v37  ;;  %v942_v58 = vpack.c.bf16 %v814_v56, %v814_v56  ;;  %v578_v24 = vmax.f32 %v98_v13, %v130_v17  ;;  %v579_v25 = vmax.f32 %v99_v14, %v131_v18 }
  0x21   :  { %v1197_v59 = vunpack.c.l.b16 %v941_v57  ;;  %v582_v56 = vmax.f32 %v102_v48, %v134_v52  ;;  %v583_v57 = vmax.f32 %v103_v49, %v135_v53 }
  0x22   :  { %v9632_v40 = vpack.c.b16 %v1196_v39, %v1195_v38  ;;  %v1198_v61 = vunpack.c.l.b16 %v942_v58  ;;  %v817_v30 = vmax.f32 %v577_v22, %v579_v25  ;;  %v818_v31 = vmax.f32 %v578_v24, %v580_v26  ;;  %v106_v26 = vld [vmem:[%s14981_s0 + $0x248] sm:$0xff] }
  0x23   :  { %v584_v58 = vmax.f32 %v104_v50, %v136_v54 }
  0x24   :  { %v9663_v62 = vpack.c.b16 %v1198_v61, %v1197_v59  ;;  %v945_v34 = vpack.c.bf16 %v817_v30, %v817_v30  ;;  %v946_v35 = vpack.c.bf16 %v818_v31, %v818_v31  ;;  %v138_v30 = vld [vmem:[%s14981_s0 + $0x348] sm:$0xff]  ;;  %v139_v31 = vld [vmem:[%s14981_s0 + $0x350] sm:$0xff] }
  0x26   :  { %1574 = vmatmul.bf16.gmra.mxu0 %v14990_v19  ;;  %1906 = vmatmul.bf16.gmra.mxu1 %v14990_v19  ;;  %v1201_v36 = vunpack.c.l.b16 %v945_v34  ;;  %v1202_v37 = vunpack.c.l.b16 %v946_v35  ;;  %v140_v34 = vld [vmem:[%s14981_s0 + $0x358] sm:$0xff] }
  0x28   :  { %v9717_v38 = vpack.c.b16 %v1202_v37, %v1201_v36  ;;  %v586_v36 = vmax.f32 %v106_v26, %v138_v30 }
  0x2b   :  { %8335 = vmatmul.msk.bf16.gmra.mxu3 %vm1380_vm1, %v9508_v23 }
  0x2f   :  { %2230 = vmatmul.bf16.vlgmr.msrb.gmra.mxu2 %v14990_v19 }
  0x36   :  { %1579 = vmatmul.bf16.gmra.mxu0 %v14990_v19  ;;  %1911 = vmatmul.bf16.gmra.mxu1 %v14990_v19 }
  0x3b   :  { %8336 = vmatmul.msk.bf16.gmra.mxu3 %vm1380_vm1, %v9539_v43 }
  0x3f   :  { %2235 = vmatmul.bf16.gmra.mxu2 %v14990_v19 }
  0x46   :  { %1584 = vmatmul.bf16.gmra.mxu0 %v14990_v19  ;;  %1916 = vmatmul.bf16.gmra.mxu1 %v14990_v19 }
  0x4b   :  { %8337 = vmatmul.msk.bf16.gmra.mxu3 %vm1380_vm1, %v9570_v63 }
  0x4f   :  { %2240 = vmatmul.bf16.gmra.mxu2 %v14990_v19 }
  0x56   :  { %1589 = vmatmul.bf16.gmra.mxu0 %v14990_v19  ;;  %1921 = vmatmul.bf16.gmra.mxu1 %v14990_v19 }
  0x5b   :  { %8338 = vmatmul.msk.bf16.gmra.mxu3 %vm1380_vm1, %v9601_v20 }
  0x5f   :  { %2245 = vmatmul.bf16.gmra.mxu2 %v14990_v19 }
  0x66   :  { %1594 = vmatmul.bf16.gmra.mxu0 %v14990_v19  ;;  %1926 = vmatmul.bf16.gmra.mxu1 %v14990_v19 }
  0x6b   :  { %8339 = vmatmul.msk.bf16.gmra.mxu3 %vm1380_vm1, %v9632_v40 }
  0x6f   :  { %2250 = vmatmul.bf16.gmra.mxu2 %v14990_v19 }
  0x76   :  { %1599 = vmatmul.bf16.gmra.mxu0 %v14990_v19  ;;  %1931 = vmatmul.bf16.gmra.mxu1 %v14990_v19 }
  0x7b   :  { %8340 = vmatmul.msk.bf16.gmra.mxu3 %vm1380_vm1, %v9663_v62 }
  0x7f   :  { %2255 = vmatmul.bf16.gmra.mxu2 %v14990_v19 }
  0x83   :  { %v1565_v0 = vpop.f32.mrf.mxu0  ;;  %v1897_v1 = vpop.f32.mrf.mxu1 }
  0x84   :  { %v9667_v2 = vadd.f32 %v1897_v1, %v1565_v0  ;;  %v819_v1 = vmax.f32 %v581_v55, %v583_v57 }
  0x86   :  { %8178 = vmatmul.msk.bf16.gmra.mxu0 %vm1380_vm1, %v9477_v3  ;;  %1936 = vmatmul.bf16.gmra.mxu1 %v14990_v19 }
  0x8b   :  { %v1567_v4 = vpop.f32.mrf.mxu0  ;;  %v1899_v5 = vpop.f32.mrf.mxu1  ;;  %2753 = vmatmul.bf16.gmra.mxu3 %v14990_v19 }
  0x8c   :  { %v9672_v6 = vadd.f32 %v1899_v5, %v1567_v4  ;;  %v820_v4 = vmax.f32 %v582_v56, %v584_v58 }
  0x8e   :  { %v9680_v11 = vpop.f32.mrf.mxu3 }
  0x8f   :  { %2260 = vmatmul.bf16.gmra.mxu2 %v14990_v19 }
  0x92   :  { %v9675_v7 = vpop.f32.mrf.mxu2 }
  0x93   :  { %15096 = vst [vmem:[#allocation4_spill] sm:$0xff] %v9675_v7  ;;  %v1570_v8 = vpop.f32.mrf.mxu0  ;;  %v1902_v9 = vpop.f32.mrf.mxu1 }
  0x94   :  { %v9678_v10 = vadd.f32 %v1902_v9, %v1570_v8  ;;  %v947_v8 = vpack.c.bf16 %v819_v1, %v819_v1  ;;  %v948_v9 = vpack.c.bf16 %v820_v4, %v820_v4 }
  0x96   :  { %8179 = vmatmul.msk.bf16.gmra.mxu0 %vm1380_vm1, %v9508_v23  ;;  %8234 = vmatmul.msk.bf16.gmra.mxu1 %vm1380_vm1, %v9477_v3  ;;  %v9714_v33 = vpop.f32.mrf.mxu3  ;;  %v1203_v13 = vunpack.c.l.b16 %v947_v8  ;;  %v1204_v14 = vunpack.c.l.b16 %v948_v9 }
  0x98   :  { %v9763_v15 = vpack.c.b16 %v1204_v14, %v1203_v13  ;;  %v110_v13 = vld [vmem:[%s14981_s0 + $0x268] sm:$0xff]  ;;  %v112_v14 = vld [vmem:[%s14981_s0 + $0x278] sm:$0xff] }
  0x9a   :  { %v9710_v27 = vpop.f32.mrf.mxu2 }
  0x9b   :  { %15097 = vst [vmem:[#allocation5_spill] sm:$0xff] %v9710_v27  ;;  %v1572_v28 = vpop.f32.mrf.mxu0  ;;  %v1904_v29 = vpop.f32.mrf.mxu1  ;;  %8341 = vmatmul.msk.bf16.gmra.mxu3 %vm1380_vm1, %v9717_v38 }
  0x9c   :  { %v9712_v32 = vadd.f32 %v1904_v29, %v1572_v28  ;;  %v108_v28 = vld [vmem:[%s14981_s0 + $0x258] sm:$0xff]  ;;  %v137_v29 = vld [vmem:[%s14981_s0 + $0x340] sm:$0xff] }
  0x9e   :  { %v9729_v46 = vpop.f32.mrf.mxu3 }
  0x9f   :  { %2265 = vmatmul.bf16.gmra.mxu2 %v14990_v19 }
  0xa2   :  { %v9719_v39 = vpop.f32.mrf.mxu2 }
  0xa3   :  { %15098 = vst [vmem:[#allocation6_spill] sm:$0xff] %v9719_v39  ;;  %v1575_v42 = vpop.f32.mrf.mxu0  ;;  %v1907_v44 = vpop.f32.mrf.mxu1 }
  0xa4   :  { %v9723_v45 = vadd.f32 %v1907_v44, %v1575_v42  ;;  %v588_v42 = vmax.f32 %v108_v28, %v140_v34 }
  0xa6   :  { %8180 = vmatmul.msk.bf16.gmra.mxu0 %vm1380_vm1, %v9539_v43  ;;  %8235 = vmatmul.msk.bf16.gmra.mxu1 %vm1380_vm1, %v9508_v23  ;;  %v9759_v12 = vpop.f32.mrf.mxu3  ;;  %v822_v51 = vmax.f32 %v586_v36, %v588_v42 }
  0xa8   :  { %v950_v55 = vpack.c.bf16 %v822_v51, %v822_v51 }
  0xaa   :  { %v9755_v59 = vpop.f32.mrf.mxu2  ;;  %v1206_v58 = vunpack.c.l.b16 %v950_v55 }
  0xab   :  { %15099 = vst [vmem:[#allocation7_spill] sm:$0xff] %v9755_v59  ;;  %v1577_v61 = vpop.f32.mrf.mxu0  ;;  %v1909_v0 = vpop.f32.mrf.mxu1  ;;  %8342 = vmatmul.msk.bf16.gmra.mxu3 %vm1380_vm1, %v9763_v15 }
  0xac   :  { %v9757_v5 = vadd.f32 %v1909_v0, %v1577_v61 }
  0xae   :  { %v9777_v25 = vpop.f32.mrf.mxu3 }
  0xaf   :  { %8284 = vmatmul.msk.bf16.gmra.mxu2 %vm1380_vm1, %v9508_v23 }
  0xb2   :  { %v2231_v16 = vpop.f32.mrf.mxu2 }
  0xb3   :  { %v2551_v17 = vadd.f32 %v2231_v16, %v9667_v2  ;;  %v1580_v18 = vpop.f32.mrf.mxu0  ;;  %v1912_v21 = vpop.f32.mrf.mxu1  ;;  %v105_v2 = vld [vmem:[%s14981_s0 + $0x240] sm:$0xff] }
  0xb4   :  { %v9768_v22 = vadd.f32 %v1912_v21, %v1580_v18  ;;  %v585_v35 = vmax.f32 %v105_v2, %v137_v29  ;;  %v141_v16 = vld [vmem:[%s14981_s0 + $0x360] sm:$0xff]  ;;  %v143_v18 = vld [vmem:[%s14981_s0 + $0x370] sm:$0xff]  ;;  %v144_v21 = vld [vmem:[%s14981_s0 + $0x378] sm:$0xff] }
  0xb5   :  { %v9771_v24 = vadd.f32 %v9680_v11, %v2551_v17  ;;  %v107_v11 = vld [vmem:[%s14981_s0 + $0x250] sm:$0xff]  ;;  %v142_v17 = vld [vmem:[%s14981_s0 + $0x368] sm:$0xff]  ;;  %v592_v28 = vmax.f32 %v112_v14, %v144_v21 }
  0xb6   :  { %8181 = vmatmul.msk.bf16.gmra.mxu0 %vm1380_vm1, %v9570_v63  ;;  %8236 = vmatmul.msk.bf16.gmra.mxu1 %vm1380_vm1, %v9539_v43  ;;  %v587_v37 = vmax.f32 %v107_v11, %v139_v31  ;;  %v9809_v56 = vpop.f32.mrf.mxu3  ;;  %v590_v26 = vmax.f32 %v110_v13, %v142_v17  ;;  %v147_v13 = vld [vmem:[%s14981_s0 + $0x390] sm:$0xff] }
  0xb8   :  { %v821_v50 = vmax.f32 %v585_v35, %v587_v37  ;;  %v824_v36 = vmax.f32 %v590_v26, %v592_v28 }
  0xba   :  { %v2233_v44 = vpop.f32.mrf.mxu2  ;;  %v949_v54 = vpack.c.bf16 %v821_v50, %v821_v50 }
  0xbb   :  { %v2552_v47 = vadd.f32 %v2233_v44, %v9672_v6  ;;  %v1582_v48 = vpop.f32.mrf.mxu0  ;;  %v1914_v49 = vpop.f32.mrf.mxu1 }
  0xbc   :  { %v9804_v52 = vadd.f32 %v1914_v49, %v1582_v48  ;;  %v1205_v57 = vunpack.c.l.b16 %v949_v54 }
  0xbd   :  { %v9807_v53 = vadd.f32 %v9714_v33, %v2552_v47  ;;  %v952_v47 = vpack.c.bf16 %v824_v36, %v824_v36 }
  0xbe   :  { %v9813_v61 = vpack.c.b16 %v1206_v58, %v1205_v57  ;;  %v9827_v9 = vpop.f32.mrf.mxu3 }
  0xbf   :  { %8285 = vmatmul.msk.bf16.gmra.mxu2 %vm1380_vm1, %v9539_v43  ;;  %v1208_v50 = vunpack.c.l.b16 %v952_v47  ;;  %v64_v47 = vld [vmem:[%s14981_s0 + $0xf8] sm:$0xff] }
  0xc0   :  { %8343 = vmatmul.msk.bf16.gmra.mxu3 %vm1380_vm1, %v9813_v61 }
  0xc2   :  { %v2236_v6 = vpop.f32.mrf.mxu2 }
  0xc3   :  { %v2553_v0 = vadd.f32 %v2236_v6, %v9678_v10  ;;  %v1585_v1 = vpop.f32.mrf.mxu0  ;;  %v1917_v4 = vpop.f32.mrf.mxu1  ;;  %v109_v10 = vld [vmem:[%s14981_s0 + $0x260] sm:$0xff] }
  0xc4   :  { %v9818_v33 = vadd.f32 %v1917_v4, %v1585_v1  ;;  %v589_v2 = vmax.f32 %v109_v10, %v141_v16  ;;  %v116_v1 = vld [vmem:[%s14981_s0 + $0x298] sm:$0xff]  ;;  %v145_v4 = vld [vmem:[%s14981_s0 + $0x380] sm:$0xff]  ;;  %v146_v10 = vld [vmem:[%s14981_s0 + $0x388] sm:$0xff] }
  0xc5   :  { %v9821_v8 = vadd.f32 %v9729_v46, %v2553_v0  ;;  %v111_v46 = vld [vmem:[%s14981_s0 + $0x270] sm:$0xff]  ;;  %v114_v0 = vld [vmem:[%s14981_s0 + $0x288] sm:$0xff] }
  0xc6   :  { %8182 = vmatmul.msk.bf16.gmra.mxu0 %vm1380_vm1, %v9601_v20  ;;  %8237 = vmatmul.msk.bf16.gmra.mxu1 %vm1380_vm1, %v9570_v63  ;;  %v591_v11 = vmax.f32 %v111_v46, %v143_v18  ;;  %v9859_v48 = vpop.f32.mrf.mxu3  ;;  %v148_v46 = vld [vmem:[%s14981_s0 + $0x398] sm:$0xff]  ;;  %v594_v16 = vmax.f32 %v114_v0, %v146_v10 }
  0xc7   :  { %v596_v18 = vmax.f32 %v116_v1, %v148_v46 }
  0xc8   :  { %v823_v35 = vmax.f32 %v589_v2, %v591_v11 }
  0xca   :  { %v2238_v29 = vpop.f32.mrf.mxu2  ;;  %v951_v44 = vpack.c.bf16 %v823_v35, %v823_v35  ;;  %v62_v35 = vld [vmem:[%s14981_s0 + $0xe8] sm:$0xff] }
  0xcb   :  { %v2554_v30 = vadd.f32 %v2238_v29, %v9712_v32  ;;  %v1587_v31 = vpop.f32.mrf.mxu0  ;;  %v1919_v34 = vpop.f32.mrf.mxu1  ;;  %v826_v29 = vmax.f32 %v594_v16, %v596_v18 }
  0xcc   :  { %v9854_v37 = vadd.f32 %v1919_v34, %v1587_v31  ;;  %v1207_v49 = vunpack.c.l.b16 %v951_v44  ;;  %v61_v34 = vld [vmem:[%s14981_s0 + $0xe0] sm:$0xff] }
  0xcd   :  { %v9857_v42 = vadd.f32 %v9759_v12, %v2554_v30  ;;  %v954_v44 = vpack.c.bf16 %v826_v29, %v826_v29  ;;  %v150_v29 = vld [vmem:[%s14981_s0 + $0x3a8] sm:$0xff] }
  0xce   :  { %v9863_v51 = vpack.c.b16 %v1208_v50, %v1207_v49  ;;  %v9877_v6 = vpop.f32.mrf.mxu3  ;;  %v94_v50 = vld [vmem:[%s14981_s0 + $0x1e8] sm:$0xff] }
  0xcf   :  { %15100 = vst [vmem:[#allocation8_spill] sm:$0xff] %v9857_v42  ;;  %8286 = vmatmul.msk.bf16.gmra.mxu2 %vm1380_vm1, %v9570_v63  ;;  %v574_v1 = vmax.f32 %v62_v35, %v94_v50  ;;  %v152_v35 = vld [vmem:[%s14981_s0 + $0x3b8] sm:$0xff] }
  0xd0   :  { %8344 = vmatmul.msk.bf16.gmra.mxu3 %vm1380_vm1, %v9863_v51 }
  0xd2   :  { %v2241_v32 = vpop.f32.mrf.mxu2 }
  0xd3   :  { %v2555_v54 = vadd.f32 %v2241_v32, %v9723_v45  ;;  %v1590_v55 = vpop.f32.mrf.mxu0  ;;  %v1922_v57 = vpop.f32.mrf.mxu1  ;;  %v113_v45 = vld [vmem:[%s14981_s0 + $0x280] sm:$0xff]  ;;  %v95_v32 = vld [vmem:[%s14981_s0 + $0x1f0] sm:$0xff] }
  0xd4   :  { %v9868_v12 = vadd.f32 %v1922_v57, %v1590_v55  ;;  %v593_v14 = vmax.f32 %v113_v45, %v145_v4  ;;  %v1210_v57 = vunpack.c.l.b16 %v954_v44 }
  0xd5   :  { %v9871_v58 = vadd.f32 %v9777_v25, %v2555_v54  ;;  %v115_v25 = vld [vmem:[%s14981_s0 + $0x290] sm:$0xff]  ;;  %v96_v54 = vld [vmem:[%s14981_s0 + $0x1f8] sm:$0xff] }
  0xd6   :  { %8183 = vmatmul.msk.bf16.gmra.mxu0 %vm1380_vm1, %v9632_v40  ;;  %8238 = vmatmul.msk.bf16.gmra.mxu1 %vm1380_vm1, %v9601_v20  ;;  %v595_v17 = vmax.f32 %v115_v25, %v147_v13  ;;  %v9924_v49 = vpop.f32.mrf.mxu3  ;;  %v576_v10 = vmax.f32 %v64_v47, %v96_v54 }
  0xd7   :  { %15101 = vst [vmem:[#allocation9_spill] sm:$0xff] %v9871_v58 }
  0xd8   :  { %v825_v28 = vmax.f32 %v593_v14, %v595_v17 }
  0xda   :  { %v2243_v21 = vpop.f32.mrf.mxu2  ;;  %v953_v36 = vpack.c.bf16 %v825_v28, %v825_v28  ;;  %v149_v28 = vld [vmem:[%s14981_s0 + $0x3a0] sm:$0xff] }
  0xdb   :  { %v2556_v2 = vadd.f32 %v2243_v21, %v9757_v5  ;;  %v1592_v26 = vpop.f32.mrf.mxu0  ;;  %v1924_v11 = vpop.f32.mrf.mxu1  ;;  %v63_v5 = vld [vmem:[%s14981_s0 + $0xf0] sm:$0xff]  ;;  %v816_v21 = vmax.f32 %v574_v1, %v576_v10 }
  0xdc   :  { %v9904_v30 = vadd.f32 %v1924_v11, %v1592_v26  ;;  %v1209_v55 = vunpack.c.l.b16 %v953_v36  ;;  %v575_v4 = vmax.f32 %v63_v5, %v95_v32  ;;  %v118_v26 = vld [vmem:[%s14981_s0 + $0x2a8] sm:$0xff]  ;;  %v120_v11 = vld [vmem:[%s14981_s0 + $0x2b8] sm:$0xff] }
  0xdd   :  { %v9907_v31 = vadd.f32 %v9809_v56, %v2556_v2  ;;  %v93_v56 = vld [vmem:[%s14981_s0 + $0x1e0] sm:$0xff]  ;;  %v598_v44 = vmax.f32 %v118_v26, %v150_v29  ;;  %v600_v47 = vmax.f32 %v120_v11, %v152_v35  ;;  %v944_v32 = vpack.c.bf16 %v816_v21, %v816_v21 }
  0xde   :  { %v9937_v45 = vpack.c.b16 %v1210_v57, %v1209_v55  ;;  %v573_v25 = vmax.f32 %v61_v34, %v93_v56  ;;  %v9951_v2 = vpop.f32.mrf.mxu3  ;;  %v151_v34 = vld [vmem:[%s14981_s0 + $0x3b0] sm:$0xff] }
  0xdf   :  { %15102 = vst [vmem:[#allocation10_spill] sm:$0xff] %v9907_v31  ;;  %8287 = vmatmul.msk.bf16.gmra.mxu2 %vm1380_vm1, %v9601_v20 }
  0xe0   :  { %15103 = vst [vmem:[#allocation11_spill] sm:$0xff] %v9937_v45  ;;  %8345 = vmatmul.msk.bf16.gmra.mxu3 %vm1380_vm1, %v9937_v45  ;;  %v815_v18 = vmax.f32 %v573_v25, %v575_v4  ;;  %v828_v25 = vmax.f32 %v598_v44, %v600_v47  ;;  %v124_v44 = vld [vmem:[%s14981_s0 + $0x2d8] sm:$0xff]  ;;  %v154_v47 = vld [vmem:[%s14981_s0 + $0x3c8] sm:$0xff] }
  0xe2   :  { %v2246_v0 = vpop.f32.mrf.mxu2  ;;  %v943_v50 = vpack.c.bf16 %v815_v18, %v815_v18 }
  0xe3   :  { %v2557_v13 = vadd.f32 %v2246_v0, %v9768_v22  ;;  %v1595_v46 = vpop.f32.mrf.mxu0  ;;  %v1927_v14 = vpop.f32.mrf.mxu1  ;;  %v117_v22 = vld [vmem:[%s14981_s0 + $0x2a0] sm:$0xff] }
  0xe4   :  { %v9942_v16 = vadd.f32 %v1927_v14, %v1595_v46  ;;  %v597_v36 = vmax.f32 %v117_v22, %v149_v28  ;;  %v1199_v46 = vunpack.c.l.b16 %v943_v50  ;;  %v1200_v14 = vunpack.c.l.b16 %v944_v32  ;;  %v156_v50 = vld [vmem:[%s14981_s0 + $0x3d8] sm:$0xff] }
  0xe5   :  { %v9945_v17 = vadd.f32 %v9827_v9, %v2557_v13  ;;  %v119_v9 = vld [vmem:[%s14981_s0 + $0x2b0] sm:$0xff]  ;;  %v956_v13 = vpack.c.bf16 %v828_v25, %v828_v25 }
  0xe6   :  { %8184 = vmatmul.msk.bf16.gmra.mxu0 %vm1380_vm1, %v9663_v62  ;;  %8239 = vmatmul.msk.bf16.gmra.mxu1 %vm1380_vm1, %v9632_v40  ;;  %v599_v5 = vmax.f32 %v119_v9, %v151_v34  ;;  %v2741_v22 = vpop.f32.mrf.mxu3  ;;  %v9987_v9 = vpack.c.b16 %v1200_v14, %v1199_v46 }
  0xe7   :  { %15104 = vst [vmem:[#allocation12_spill] sm:$0xff] %v9945_v17  ;;  %v1212_v21 = vunpack.c.l.b16 %v956_v13 }
  0xe8   :  { %v827_v0 = vmax.f32 %v597_v36, %v599_v5  ;;  %v122_v36 = vld [vmem:[%s14981_s0 + $0x2c8] sm:$0xff]  ;;  %v153_v5 = vld [vmem:[%s14981_s0 + $0x3c0] sm:$0xff] }
  0xea   :  { %v2248_v56 = vpop.f32.mrf.mxu2  ;;  %v955_v10 = vpack.c.bf16 %v827_v0, %v827_v0 }
  0xeb   :  { %v2558_v54 = vadd.f32 %v2248_v56, %v9804_v52  ;;  %v1597_v55 = vpop.f32.mrf.mxu0  ;;  %v1929_v57 = vpop.f32.mrf.mxu1  ;;  %v155_v56 = vld [vmem:[%s14981_s0 + $0x3d0] sm:$0xff] }
  0xec   :  { %v9978_v1 = vadd.f32 %v1929_v57, %v1597_v55  ;;  %v1211_v18 = vunpack.c.l.b16 %v955_v10  ;;  %v604_v57 = vmax.f32 %v124_v44, %v156_v50 }
  0xed   :  { %v9981_v4 = vadd.f32 %v9859_v48, %v2558_v54  ;;  %v602_v54 = vmax.f32 %v122_v36, %v154_v47 }
  0xee   :  { %v9985_v52 = vpack.c.b16 %v1212_v21, %v1211_v18  ;;  %v2744_v35 = vpop.f32.mrf.mxu3 }
  0xef   :  { %15105 = vst [vmem:[#allocation13_spill] sm:$0xff] %v9981_v4  ;;  %8288 = vmatmul.msk.bf16.gmra.mxu2 %vm1380_vm1, %v9632_v40  ;;  %v830_v14 = vmax.f32 %v602_v54, %v604_v57 }
  0xf0   :  { %15106 = vst [vmem:[#allocation14_spill] sm:$0xff] %v9985_v52  ;;  %8346 = vmatmul.msk.bf16.gmra.mxu3 %vm1380_vm1, %v9985_v52 }
  0xf2   :  { %v2251_v26 = vpop.f32.mrf.mxu2 }
  0xf3   :  { %v2559_v11 = vadd.f32 %v2251_v26, %v9818_v33  ;;  %v1600_v28 = vpop.f32.mrf.mxu0  ;;  %v1932_v48 = vpop.f32.mrf.mxu1  ;;  %v121_v33 = vld [vmem:[%s14981_s0 + $0x2c0] sm:$0xff] }
  0xf4   :  { %v9992_v29 = vadd.f32 %v1932_v48, %v1600_v28  ;;  %v601_v32 = vmax.f32 %v121_v33, %v153_v5 }
  0xf5   :  { %v9995_v34 = vadd.f32 %v9877_v6, %v2559_v11  ;;  %v123_v6 = vld [vmem:[%s14981_s0 + $0x2d0] sm:$0xff]  ;;  %v958_v11 = vpack.c.bf16 %v830_v14, %v830_v14  ;;  %v162_v14 = vld [vmem:[%s14981_s0 + $0x408] sm:$0xff] }
  0xf6   :  { %8185 = vmatmul.msk.bf16.gmra.mxu0 %vm1380_vm1, %v9987_v9  ;;  %8240 = vmatmul.msk.bf16.gmra.mxu1 %vm1380_vm1, %v9663_v62  ;;  %v603_v55 = vmax.f32 %v123_v6, %v155_v56  ;;  %v2746_v28 = vpop.f32.mrf.mxu3 }
  0xf7   :  { %15107 = vst [vmem:[#allocation15_spill] sm:$0xff] %v9995_v34  ;;  %v1214_v33 = vunpack.c.l.b16 %v958_v11  ;;  %v193_v11 = vld [vmem:[%s14981_s0 + $0x500] sm:$0xff] }
  0xf8   :  { %v829_v46 = vmax.f32 %v601_v32, %v603_v55 }
  0xfa   :  { %v2253_v0 = vpop.f32.mrf.mxu2  ;;  %v957_v26 = vpack.c.bf16 %v829_v46, %v829_v46 }
  0xfb   :  { %v2560_v25 = vadd.f32 %v2253_v0, %v9854_v37  ;;  %v1602_v10 = vpop.f32.mrf.mxu0  ;;  %v1934_v13 = vpop.f32.mrf.mxu1 }
  0xfc   :  { %v10026_v18 = vadd.f32 %v1934_v13, %v1602_v10  ;;  %v1213_v48 = vunpack.c.l.b16 %v957_v26  ;;  %v164_v26 = vld [vmem:[%s14981_s0 + $0x418] sm:$0xff] }
  0xfd   :  { %v10029_v21 = vadd.f32 %v9924_v49, %v2560_v25 }
  0xfe   :  { %v10033_v36 = vpack.c.b16 %v1214_v33, %v1213_v48  ;;  %v2749_v56 = vpop.f32.mrf.mxu3  ;;  %v194_v48 = vld [vmem:[%s14981_s0 + $0x508] sm:$0xff]  ;;  %v195_v33 = vld [vmem:[%s14981_s0 + $0x510] sm:$0xff] }
  0xff   :  { %15108 = vst [vmem:[#allocation16_spill] sm:$0xff] %v10029_v21  ;;  %8289 = vmatmul.msk.bf16.gmra.mxu2 %vm1380_vm1, %v9663_v62  ;;  %v15114_v21 = vmov 0  }
 0x100   :  { %15109 = vst [vmem:[#allocation17_spill] sm:$0xff] %v10033_v36  ;;  %8347 = vmatmul.msk.bf16.gmra.mxu3 %vm1380_vm1, %v10033_v36 }
 0x102   :  { %v2256_v37 = vpop.f32.mrf.mxu2 }
 0x103   :  { %v2561_v6 = vadd.f32 %v2256_v37, %v9868_v12  ;;  %v1605_v44 = vpop.f32.mrf.mxu0  ;;  %v1937_v5 = vpop.f32.mrf.mxu1  ;;  %v196_v37 = vld [vmem:[%s14981_s0 + $0x518] sm:$0xff] }
 0x104   :  { %v10038_v49 = vadd.f32 %v1937_v5, %v1605_v44  ;;  %v610_v44 = vmax.f32 %v162_v14, %v194_v48 }
 0x105   :  { %v10041_v47 = vadd.f32 %v9951_v2, %v2561_v6 }
 0x106   :  { %8186 = vmatmul.msk.bf16.gmra.mxu0 %vm1380_vm1, %v9717_v38  ;;  %1976 = vmatmul.bf16.gmra.mxu1 %v14990_v19  ;;  %v10051_v0 = vpop.f32.mrf.mxu3 }
 0x107   :  { %15110 = vst [vmem:[#allocation18_spill] sm:$0xff] %v10041_v47 }
 0x10a   :  { %v2258_v50 = vpop.f32.mrf.mxu2 }
 0x10b   :  { %v2562_v32 = vadd.f32 %v2258_v50, %v9904_v30  ;;  %v1607_v12 = vpop.f32.mrf.mxu0  ;;  %v1939_v54 = vpop.f32.mrf.mxu1  ;;  %v612_v50 = vmax.f32 %v164_v26, %v196_v37  ;;  %v168_v37 = vld [vmem:[%s14981_s0 + $0x438] sm:$0xff] }
 0x10c   :  { %v10047_v55 = vadd.f32 %v1939_v54, %v1607_v12 }
 0x10d   :  { %v10049_v57 = vadd.f32 %v2741_v22, %v2562_v32 }
 0x10e   :  { %v10065_v22 = vpop.f32.mrf.mxu3 }
 0x10f   :  { %15111 = vst [vmem:[#allocation19_spill] sm:$0xff] %v10049_v57  ;;  %8290 = vmatmul.msk.bf16.gmra.mxu2 %vm1380_vm1, %v9987_v9 }
 0x110   :  { %2793 = vmatmul.bf16.gmra.mxu3 %v14990_v19 }
 0x112   :  { %v2261_v2 = vpop.f32.mrf.mxu2 }
 0x113   :  { %v2563_v25 = vadd.f32 %v2261_v2, %v9942_v16  ;;  %v1610_v10 = vpop.f32.mrf.mxu0  ;;  %v1942_v13 = vpop.f32.mrf.mxu1  ;;  %v161_v16 = vld [vmem:[%s14981_s0 + $0x400] sm:$0xff] }
 0x114   :  { %v10057_v46 = vadd.f32 %v1942_v13, %v1610_v10  ;;  %v609_v6 = vmax.f32 %v161_v16, %v193_v11  ;;  %v834_v10 = vmax.f32 %v610_v44, %v612_v50  ;;  %v198_v44 = vld [vmem:[%s14981_s0 + $0x528] sm:$0xff]  ;;  %v200_v50 = vld [vmem:[%s14981_s0 + $0x538] sm:$0xff] }
 0x115   :  { %v10059_v30 = vadd.f32 %v2744_v35, %v2563_v25  ;;  %v163_v35 = vld [vmem:[%s14981_s0 + $0x410] sm:$0xff] }
 0x116   :  { %8187 = vmatmul.msk.bf16.gmra.mxu0 %vm1380_vm1, %v9763_v15  ;;  %8241 = vmatmul.msk.bf16.gmra.mxu1 %vm1380_vm1, %v9717_v38  ;;  %v611_v5 = vmax.f32 %v163_v35, %v195_v33  ;;  %v962_v57 = vpack.c.bf16 %v834_v10, %v834_v10  ;;  %v10096_v47 = vpop.f32.mrf.mxu3 }
 0x117   :  { %15112 = vst [vmem:[#allocation20_spill] sm:$0xff] %v10059_v30 }
 0x118   :  { %v833_v25 = vmax.f32 %v609_v6, %v611_v5  ;;  %v1218_v14 = vunpack.c.l.b16 %v962_v57  ;;  %v197_v6 = vld [vmem:[%s14981_s0 + $0x520] sm:$0xff]  ;;  %v199_v5 = vld [vmem:[%s14981_s0 + $0x530] sm:$0xff] }
 0x11a   :  { %v2263_v32 = vpop.f32.mrf.mxu2  ;;  %v961_v30 = vpack.c.bf16 %v833_v25, %v833_v25 }
 0x11b   :  { %v2564_v12 = vadd.f32 %v2263_v32, %v9978_v1  ;;  %v1612_v54 = vpop.f32.mrf.mxu0  ;;  %v1944_v2 = vpop.f32.mrf.mxu1 }
 0x11c   :  { %v10092_v13 = vadd.f32 %v1944_v2, %v1612_v54  ;;  %v1217_v16 = vunpack.c.l.b16 %v961_v30  ;;  %v166_v30 = vld [vmem:[%s14981_s0 + $0x428] sm:$0xff]  ;;  %v616_v2 = vmax.f32 %v168_v37, %v200_v50  ;;  %v172_v50 = vld [vmem:[%s14981_s0 + $0x458] sm:$0xff] }
 0x11d   :  { %v10094_v19 = vadd.f32 %v2746_v28, %v2564_v12  ;;  %v614_v12 = vmax.f32 %v166_v30, %v198_v44 }
 0x11e   :  { %v10099_v35 = vpack.c.b16 %v1218_v14, %v1217_v16  ;;  %v10112_v57 = vpop.f32.mrf.mxu3 }
 0x11f   :  { %15113 = vst [vmem:[#allocation21_spill] sm:$0xff] %v10094_v19  ;;  %2305 = vmatmul.bf16.gmra.mxu2 %v15114_v21 }
 0x120   :  { %15115 = vst [vmem:[#allocation22_spill] sm:$0xff] %v10099_v35  ;;  %8348 = vmatmul.msk.bf16.gmra.mxu3 %vm1380_vm1, %v10099_v35 }
 0x122   :  { %v2266_v26 = vpop.f32.mrf.mxu2 }
 0x123   :  { %v2565_v1 = vadd.f32 %v2266_v26, %v9992_v29  ;;  %v1615_v11 = vpop.f32.mrf.mxu0  ;;  %v1947_v48 = vpop.f32.mrf.mxu1  ;;  %v165_v29 = vld [vmem:[%s14981_s0 + $0x420] sm:$0xff] }
 0x124   :  { %v10104_v28 = vadd.f32 %v1947_v48, %v1615_v11  ;;  %v613_v32 = vmax.f32 %v165_v29, %v197_v6 }
 0x125   :  { %v10106_v33 = vadd.f32 %v2749_v56, %v2565_v1  ;;  %v167_v56 = vld [vmem:[%s14981_s0 + $0x430] sm:$0xff]  ;;  %v836_v1 = vmax.f32 %v614_v12, %v616_v2  ;;  %v202_v12 = vld [vmem:[%s14981_s0 + $0x548] sm:$0xff]  ;;  %v204_v2 = vld [vmem:[%s14981_s0 + $0x558] sm:$0xff] }
 0x126   :  { %8188 = vmatmul.msk.bf16.gmra.mxu0 %vm1380_vm1, %v9813_v61  ;;  %8242 = vmatmul.msk.bf16.gmra.mxu1 %vm1380_vm1, %v9763_v15  ;;  %v615_v54 = vmax.f32 %v167_v56, %v199_v5  ;;  %v10144_v59 = vpop.f32.mrf.mxu3 }
 0x127   :  { %15116 = vst [vmem:[#allocation23_spill] sm:$0xff] %v10106_v33  ;;  %v964_v19 = vpack.c.bf16 %v836_v1, %v836_v1 }
 0x128   :  { %v835_v26 = vmax.f32 %v613_v32, %v615_v54  ;;  %v201_v32 = vld [vmem:[%s14981_s0 + $0x540] sm:$0xff]  ;;  %v203_v54 = vld [vmem:[%s14981_s0 + $0x550] sm:$0xff] }
 0x129   :  { %v1220_v30 = vunpack.c.l.b16 %v964_v19 }
 0x12a   :  { %v2268_v25 = vpop.f32.mrf.mxu2  ;;  %v963_v33 = vpack.c.bf16 %v835_v26, %v835_v26 }
 0x12b   :  { %v2566_v10 = vadd.f32 %v2268_v25, %v10026_v18  ;;  %v1617_v16 = vpop.f32.mrf.mxu0  ;;  %v1949_v14 = vpop.f32.mrf.mxu1 }
 0x12c   :  { %v10139_v11 = vadd.f32 %v1949_v14, %v1617_v16  ;;  %v1219_v29 = vunpack.c.l.b16 %v963_v33  ;;  %v170_v33 = vld [vmem:[%s14981_s0 + $0x448] sm:$0xff]  ;;  %v620_v14 = vmax.f32 %v172_v50, %v204_v2  ;;  %v176_v2 = vld [vmem:[%s14981_s0 + $0x478] sm:$0xff] }
 0x12d   :  { %v10142_v48 = vadd.f32 %v10051_v0, %v2566_v10  ;;  %v618_v10 = vmax.f32 %v170_v33, %v202_v12 }
 0x12e   :  { %v10148_v56 = vpack.c.b16 %v1220_v30, %v1219_v29  ;;  %v10162_v19 = vpop.f32.mrf.mxu3 }
 0x12f   :  { %15117 = vst [vmem:[#allocation24_spill] sm:$0xff] %v10142_v48  ;;  %8291 = vmatmul.msk.bf16.gmra.mxu2 %vm1380_vm1, %v9763_v15 }
 0x130   :  { %15118 = vst [vmem:[#allocation25_spill] sm:$0xff] %v10148_v56  ;;  %8349 = vmatmul.msk.bf16.gmra.mxu3 %vm1380_vm1, %v10148_v56 }
 0x132   :  { %v2271_v18 = vpop.f32.mrf.mxu2 }
 0x133   :  { %v2567_v37 = vadd.f32 %v2271_v18, %v10038_v49  ;;  %v1620_v6 = vpop.f32.mrf.mxu0  ;;  %v1952_v44 = vpop.f32.mrf.mxu1  ;;  %v169_v49 = vld [vmem:[%s14981_s0 + $0x440] sm:$0xff] }
 0x134   :  { %v10153_v0 = vadd.f32 %v1952_v44, %v1620_v6  ;;  %v617_v25 = vmax.f32 %v169_v49, %v201_v32 }
 0x135   :  { %v10156_v5 = vadd.f32 %v10065_v22, %v2567_v37  ;;  %v171_v22 = vld [vmem:[%s14981_s0 + $0x450] sm:$0xff]  ;;  %v838_v37 = vmax.f32 %v618_v10, %v620_v14  ;;  %v206_v10 = vld [vmem:[%s14981_s0 + $0x568] sm:$0xff]  ;;  %v208_v14 = vld [vmem:[%s14981_s0 + $0x578] sm:$0xff] }
 0x136   :  { %8189 = vmatmul.msk.bf16.gmra.mxu0 %vm1380_vm1, %v9863_v51  ;;  %8243 = vmatmul.msk.bf16.gmra.mxu1 %vm1380_vm1, %v9813_v61  ;;  %v619_v16 = vmax.f32 %v171_v22, %v203_v54  ;;  %v10194_v34 = vpop.f32.mrf.mxu3 }
 0x137   :  { %15119 = vst [vmem:[#allocation26_spill] sm:$0xff] %v10156_v5  ;;  %v966_v48 = vpack.c.bf16 %v838_v37, %v838_v37 }
 0x138   :  { %v837_v18 = vmax.f32 %v617_v25, %v619_v16  ;;  %v205_v25 = vld [vmem:[%s14981_s0 + $0x560] sm:$0xff]  ;;  %v207_v16 = vld [vmem:[%s14981_s0 + $0x570] sm:$0xff] }
 0x139   :  { %v1222_v33 = vunpack.c.l.b16 %v966_v48 }
 0x13a   :  { %v2273_v26 = vpop.f32.mrf.mxu2  ;;  %v965_v5 = vpack.c.bf16 %v837_v18, %v837_v18 }
 0x13b   :  { %v2568_v1 = vadd.f32 %v2273_v26, %v10047_v55  ;;  %v1622_v29 = vpop.f32.mrf.mxu0  ;;  %v1954_v30 = vpop.f32.mrf.mxu1 }
 0x13c   :  { %v10189_v6 = vadd.f32 %v1954_v30, %v1622_v29  ;;  %v1221_v49 = vunpack.c.l.b16 %v965_v5  ;;  %v174_v5 = vld [vmem:[%s14981_s0 + $0x468] sm:$0xff]  ;;  %v624_v30 = vmax.f32 %v176_v2, %v208_v14  ;;  %v180_v14 = vld [vmem:[%s14981_s0 + $0x498] sm:$0xff] }
 0x13d   :  { %v10192_v44 = vadd.f32 %v10096_v47, %v2568_v1  ;;  %v622_v1 = vmax.f32 %v174_v5, %v206_v10 }
 0x13e   :  { %v10198_v22 = vpack.c.b16 %v1222_v33, %v1221_v49 }
 0x13f   :  { %15120 = vst [vmem:[#allocation27_spill] sm:$0xff] %v10192_v44  ;;  %8292 = vmatmul.msk.bf16.gmra.mxu2 %vm1380_vm1, %v9813_v61 }
 0x140   :  { %15121 = vst [vmem:[#allocation28_spill] sm:$0xff] %v10198_v22  ;;  %8350 = vmatmul.msk.bf16.gmra.mxu3 %vm1380_vm1, %v10198_v22 }
 0x142   :  { %v2276_v55 = vpop.f32.mrf.mxu2 }
 0x143   :  { %v2569_v50 = vadd.f32 %v2276_v55, %v10057_v46  ;;  %v1625_v32 = vpop.f32.mrf.mxu0  ;;  %v1957_v12 = vpop.f32.mrf.mxu1  ;;  %v173_v46 = vld [vmem:[%s14981_s0 + $0x460] sm:$0xff] }
 0x144   :  { %v10203_v47 = vadd.f32 %v1957_v12, %v1625_v32  ;;  %v10212_v48 = vpop.f32.mrf.mxu3  ;;  %v621_v26 = vmax.f32 %v173_v46, %v205_v25 }
 0x145   :  { %v10206_v54 = vadd.f32 %v10112_v57, %v2569_v50  ;;  %v175_v57 = vld [vmem:[%s14981_s0 + $0x470] sm:$0xff]  ;;  %v840_v50 = vmax.f32 %v622_v1, %v624_v30  ;;  %v210_v1 = vld [vmem:[%s14981_s0 + $0x588] sm:$0xff]  ;;  %v212_v30 = vld [vmem:[%s14981_s0 + $0x598] sm:$0xff] }
 0x146   :  { %8190 = vmatmul.msk.bf16.gmra.mxu0 %vm1380_vm1, %v9937_v45  ;;  %8244 = vmatmul.msk.bf16.gmra.mxu1 %vm1380_vm1, %v9863_v51  ;;  %v623_v29 = vmax.f32 %v175_v57, %v207_v16 }
 0x147   :  { %15122 = vst [vmem:[#allocation29_spill] sm:$0xff] %v10206_v54  ;;  %v968_v44 = vpack.c.bf16 %v840_v50, %v840_v50 }
 0x148   :  { %v839_v55 = vmax.f32 %v621_v26, %v623_v29  ;;  %v209_v26 = vld [vmem:[%s14981_s0 + $0x580] sm:$0xff]  ;;  %v211_v29 = vld [vmem:[%s14981_s0 + $0x590] sm:$0xff] }
 0x149   :  { %v1224_v5 = vunpack.c.l.b16 %v968_v44 }
 0x14a   :  { %v2278_v18 = vpop.f32.mrf.mxu2  ;;  %v967_v54 = vpack.c.bf16 %v839_v55, %v839_v55 }
 0x14b   :  { %v2570_v37 = vadd.f32 %v2278_v18, %v10092_v13  ;;  %v1627_v49 = vpop.f32.mrf.mxu0  ;;  %v1959_v33 = vpop.f32.mrf.mxu1 }
 0x14c   :  { %v10239_v32 = vadd.f32 %v1959_v33, %v1627_v49  ;;  %v10244_v39 = vpop.f32.mrf.mxu3  ;;  %v1223_v46 = vunpack.c.l.b16 %v967_v54  ;;  %v178_v54 = vld [vmem:[%s14981_s0 + $0x488] sm:$0xff]  ;;  %v628_v33 = vmax.f32 %v180_v14, %v212_v30  ;;  %v128_v14 = vld [vmem:[%s14981_s0 + $0x2f8] sm:$0xff] }
 0x14d   :  { %v10242_v12 = vadd.f32 %v10144_v59, %v2570_v37  ;;  %v626_v37 = vmax.f32 %v178_v54, %v210_v1  ;;  %v158_v1 = vld [vmem:[%s14981_s0 + $0x3e8] sm:$0xff]  ;;  %v160_v30 = vld [vmem:[%s14981_s0 + $0x3f8] sm:$0xff] }
 0x14e   :  { %v10248_v57 = vpack.c.b16 %v1224_v5, %v1223_v46 }
 0x14f   :  { %15123 = vst [vmem:[#allocation30_spill] sm:$0xff] %v10242_v12  ;;  %8293 = vmatmul.msk.bf16.gmra.mxu2 %vm1380_vm1, %v9863_v51 }
 0x150   :  { %15124 = vst [vmem:[#allocation31_spill] sm:$0xff] %v10248_v57  ;;  %8351 = vmatmul.msk.bf16.gmra.mxu3 %vm1380_vm1, %v10248_v57 }
 0x152   :  { %v2281_v13 = vpop.f32.mrf.mxu2 }
 0x153   :  { %v2571_v2 = vadd.f32 %v2281_v13, %v10104_v28  ;;  %v1630_v25 = vpop.f32.mrf.mxu0  ;;  %v1962_v10 = vpop.f32.mrf.mxu1  ;;  %v177_v28 = vld [vmem:[%s14981_s0 + $0x480] sm:$0xff] }
 0x154   :  { %v10253_v59 = vadd.f32 %v1962_v10, %v1630_v25  ;;  %v10262_v44 = vpop.f32.mrf.mxu3  ;;  %v625_v18 = vmax.f32 %v177_v28, %v209_v26  ;;  %v126_v28 = vld [vmem:[%s14981_s0 + $0x2e8] sm:$0xff] }
 0x155   :  { %v10256_v16 = vadd.f32 %v10162_v19, %v2571_v2  ;;  %v179_v19 = vld [vmem:[%s14981_s0 + $0x490] sm:$0xff]  ;;  %v842_v2 = vmax.f32 %v626_v37, %v628_v33 }
 0x156   :  { %8191 = vmatmul.msk.bf16.gmra.mxu0 %vm1380_vm1, %v9985_v52  ;;  %8245 = vmatmul.msk.bf16.gmra.mxu1 %vm1380_vm1, %v9937_v45  ;;  %v627_v49 = vmax.f32 %v179_v19, %v211_v29  ;;  %v159_v29 = vld [vmem:[%s14981_s0 + $0x3f0] sm:$0xff] }
 0x157   :  { %15125 = vst [vmem:[#allocation32_spill] sm:$0xff] %v10256_v16  ;;  %v125_v16 = vld [vmem:[%s14981_s0 + $0x2e0] sm:$0xff]  ;;  %v970_v19 = vpack.c.bf16 %v842_v2, %v842_v2 }
 0x158   :  { %v841_v13 = vmax.f32 %v625_v18, %v627_v49 }
 0x159   :  { %v1226_v37 = vunpack.c.l.b16 %v970_v19  ;;  %v184_v19 = vld [vmem:[%s14981_s0 + $0x4b8] sm:$0xff] }
 0x15a   :  { %v2283_v55 = vpop.f32.mrf.mxu2  ;;  %v969_v54 = vpack.c.bf16 %v841_v13, %v841_v13 }
 0x15b   :  { %v2572_v50 = vadd.f32 %v2283_v55, %v10139_v11  ;;  %v1632_v46 = vpop.f32.mrf.mxu0  ;;  %v1964_v5 = vpop.f32.mrf.mxu1  ;;  %v127_v11 = vld [vmem:[%s14981_s0 + $0x2f0] sm:$0xff] }
 0x15c   :  { %v10289_v25 = vadd.f32 %v1964_v5, %v1632_v46  ;;  %v10309_v26 = vpop.f32.mrf.mxu3  ;;  %v1225_v18 = vunpack.c.l.b16 %v969_v54  ;;  %v607_v46 = vmax.f32 %v127_v11, %v159_v29  ;;  %v608_v5 = vmax.f32 %v128_v14, %v160_v30  ;;  %v213_v11 = vld [vmem:[%s14981_s0 + $0x5a0] sm:$0xff]  ;;  %v214_v14 = vld [vmem:[%s14981_s0 + $0x5a8] sm:$0xff] }
 0x15d   :  { %v10292_v10 = vadd.f32 %v10194_v34, %v2572_v50  ;;  %v157_v34 = vld [vmem:[%s14981_s0 + $0x3e0] sm:$0xff]  ;;  %v606_v50 = vmax.f32 %v126_v28, %v158_v1  ;;  %v216_v1 = vld [vmem:[%s14981_s0 + $0x5b8] sm:$0xff] }
 0x15e   :  { %v10322_v49 = vpack.c.b16 %v1226_v37, %v1225_v18  ;;  %v605_v55 = vmax.f32 %v125_v16, %v157_v34  ;;  %v215_v34 = vld [vmem:[%s14981_s0 + $0x5b0] sm:$0xff]  ;;  %v632_v37 = vmax.f32 %v184_v19, %v216_v1 }
 0x15f   :  { %15126 = vst [vmem:[#allocation33_spill] sm:$0xff] %v10292_v10  ;;  %8294 = vmatmul.msk.bf16.gmra.mxu2 %vm1380_vm1, %v9937_v45  ;;  %v832_v28 = vmax.f32 %v606_v50, %v608_v5 }
 0x160   :  { %15127 = vst [vmem:[#allocation34_spill] sm:$0xff] %v10322_v49  ;;  %8352 = vmatmul.msk.bf16.gmra.mxu3 %vm1380_vm1, %v10322_v49  ;;  %v831_v16 = vmax.f32 %v605_v55, %v607_v46 }
 0x161   :  { %v960_v50 = vpack.c.bf16 %v832_v28, %v832_v28 }
 0x162   :  { %v2286_v33 = vpop.f32.mrf.mxu2  ;;  %v959_v55 = vpack.c.bf16 %v831_v16, %v831_v16 }
 0x163   :  { %v2573_v13 = vadd.f32 %v2286_v33, %v10153_v0  ;;  %v1635_v2 = vpop.f32.mrf.mxu0  ;;  %v1967_v10 = vpop.f32.mrf.mxu1  ;;  %v181_v0 = vld [vmem:[%s14981_s0 + $0x4a0] sm:$0xff] }
 0x164   :  { %v10327_v12 = vadd.f32 %v1967_v10, %v1635_v2  ;;  %v10336_v54 = vpop.f32.mrf.mxu3  ;;  %v182_v10 = vld [vmem:[%s14981_s0 + $0x4a8] sm:$0xff]  ;;  %v629_v29 = vmax.f32 %v181_v0, %v213_v11  ;;  %v1215_v0 = vunpack.c.l.b16 %v959_v55 }
 0x165   :  { %v10330_v4 = vadd.f32 %v10212_v48, %v2573_v13  ;;  %v183_v48 = vld [vmem:[%s14981_s0 + $0x4b0] sm:$0xff]  ;;  %v630_v30 = vmax.f32 %v182_v10, %v214_v14  ;;  %v1216_v10 = vunpack.c.l.b16 %v960_v50 }
 0x166   :  { %8192 = vmatmul.msk.bf16.gmra.mxu0 %vm1380_vm1, %v10033_v36  ;;  %8246 = vmatmul.msk.bf16.gmra.mxu1 %vm1380_vm1, %v9985_v52  ;;  %v631_v18 = vmax.f32 %v183_v48, %v215_v34 }
 0x167   :  { %15128 = vst [vmem:[#allocation35_spill] sm:$0xff] %v10330_v4  ;;  %v844_v4 = vmax.f32 %v630_v30, %v632_v37  ;;  %v10372_v11 = vpack.c.b16 %v1216_v10, %v1215_v0  ;;  %v217_v30 = vld [vmem:[%s14981_s0 + $0x5c0] sm:$0xff]  ;;  %v219_v37 = vld [vmem:[%s14981_s0 + $0x5d0] sm:$0xff] }
 0x168   :  { %v843_v2 = vmax.f32 %v629_v29, %v631_v18  ;;  %v188_v29 = vld [vmem:[%s14981_s0 + $0x4d8] sm:$0xff]  ;;  %v218_v18 = vld [vmem:[%s14981_s0 + $0x5c8] sm:$0xff] }
 0x169   :  { %v972_v31 = vpack.c.bf16 %v844_v4, %v844_v4  ;;  %15131 = vst [vmem:[#allocation38_spill] sm:$0xff] %v10372_v11 }
 0x16a   :  { %v2288_v33 = vpop.f32.mrf.mxu2  ;;  %v971_v7 = vpack.c.bf16 %v843_v2, %v843_v2 }
 0x16b   :  { %v2574_v46 = vadd.f32 %v2288_v33, %v10189_v6  ;;  %v1637_v5 = vpop.f32.mrf.mxu0  ;;  %v1969_v13 = vpop.f32.mrf.mxu1  ;;  %v1228_v28 = vunpack.c.l.b16 %v972_v31  ;;  %v185_v31 = vld [vmem:[%s14981_s0 + $0x4c0] sm:$0xff]  ;;  %v220_v33 = vld [vmem:[%s14981_s0 + $0x5d8] sm:$0xff] }
 0x16c   :  { %v10363_v27 = vadd.f32 %v1969_v13, %v1637_v5  ;;  %v2781_v48 = vpop.f32.mrf.mxu3  ;;  %v1227_v16 = vunpack.c.l.b16 %v971_v7  ;;  %v633_v55 = vmax.f32 %v185_v31, %v217_v30  ;;  %v636_v5 = vmax.f32 %v188_v29, %v220_v33 }
 0x16d   :  { %v10366_v17 = vadd.f32 %v10244_v39, %v2574_v46 }
 0x16e   :  { %v10370_v6 = vpack.c.b16 %v1228_v28, %v1227_v16 }
 0x16f   :  { %15129 = vst [vmem:[#allocation36_spill] sm:$0xff] %v10366_v17  ;;  %8295 = vmatmul.msk.bf16.gmra.mxu2 %vm1380_vm1, %v9985_v52 }
 0x170   :  { %15130 = vst [vmem:[#allocation37_spill] sm:$0xff] %v10370_v6  ;;  %8353 = vmatmul.msk.bf16.gmra.mxu3 %vm1380_vm1, %v10370_v6 }
 0x172   :  { %v2291_v19 = vpop.f32.mrf.mxu2 }
 0x173   :  { %v2575_v14 = vadd.f32 %v2291_v19, %v10203_v47  ;;  %v1640_v34 = vpop.f32.mrf.mxu0  ;;  %v1972_v39 = vpop.f32.mrf.mxu1  ;;  %v186_v47 = vld [vmem:[%s14981_s0 + $0x4c8] sm:$0xff] }
 0x174   :  { %v10377_v4 = vadd.f32 %v1972_v39, %v1640_v34  ;;  %v2784_v7 = vpop.f32.mrf.mxu3  ;;  %v634_v50 = vmax.f32 %v186_v47, %v218_v18 }
 0x175   :  { %v10380_v1 = vadd.f32 %v10262_v44, %v2575_v14  ;;  %v187_v44 = vld [vmem:[%s14981_s0 + $0x4d0] sm:$0xff] }
 0x176   :  { %8193 = vmatmul.msk.bf16.gmra.mxu0 %vm1380_vm1, %v10372_v11  ;;  %8247 = vmatmul.msk.bf16.gmra.mxu1 %vm1380_vm1, %v10033_v36  ;;  %v635_v46 = vmax.f32 %v187_v44, %v219_v37  ;;  %v846_v28 = vmax.f32 %v634_v50, %v636_v5 }
 0x177   :  { %15132 = vst [vmem:[#allocation39_spill] sm:$0xff] %v10380_v1 }
 0x178   :  { %v845_v16 = vmax.f32 %v633_v55, %v635_v46  ;;  %v974_v39 = vpack.c.bf16 %v846_v28, %v846_v28 }
 0x17a   :  { %v2293_v13 = vpop.f32.mrf.mxu2  ;;  %v973_v34 = vpack.c.bf16 %v845_v16, %v845_v16  ;;  %v1230_v47 = vunpack.c.l.b16 %v974_v39  ;;  %v228_v39 = vld [vmem:[%s14981_s0 + $0x618] sm:$0xff] }
 0x17b   :  { %v2576_v2 = vadd.f32 %v2293_v13, %v10239_v32  ;;  %v1642_v0 = vpop.f32.mrf.mxu0  ;;  %v1974_v10 = vpop.f32.mrf.mxu1 }
 0x17c   :  { %v10411_v19 = vadd.f32 %v1974_v10, %v1642_v0  ;;  %v2786_v1 = vpop.f32.mrf.mxu3  ;;  %v1229_v31 = vunpack.c.l.b16 %v973_v34  ;;  %v226_v34 = vld [vmem:[%s14981_s0 + $0x608] sm:$0xff] }
 0x17d   :  { %v10414_v14 = vadd.f32 %v10309_v26, %v2576_v2 }
 0x17e   :  { %v10418_v44 = vpack.c.b16 %v1230_v47, %v1229_v31  ;;  %v257_v31 = vld [vmem:[%s14981_s0 + $0x700] sm:$0xff]  ;;  %v258_v47 = vld [vmem:[%s14981_s0 + $0x708] sm:$0xff] }
 0x17f   :  { %15133 = vst [vmem:[#allocation40_spill] sm:$0xff] %v10414_v14  ;;  %8296 = vmatmul.msk.bf16.gmra.mxu2 %vm1380_vm1, %v10033_v36 }
 0x180   :  { %15134 = vst [vmem:[#allocation41_spill] sm:$0xff] %v10418_v44  ;;  %8354 = vmatmul.msk.bf16.gmra.mxu3 %vm1380_vm1, %v10418_v44 }
 0x182   :  { %v2296_v32 = vpop.f32.mrf.mxu2 }
 0x183   :  { %v2577_v29 = vadd.f32 %v2296_v32, %v10253_v59  ;;  %v1645_v30 = vpop.f32.mrf.mxu0  ;;  %v1977_v18 = vpop.f32.mrf.mxu1  ;;  %v259_v32 = vld [vmem:[%s14981_s0 + $0x710] sm:$0xff] }
 0x184   :  { %v10423_v26 = vadd.f32 %v1977_v18, %v1645_v30  ;;  %v2789_v33 = vpop.f32.mrf.mxu3  ;;  %v642_v18 = vmax.f32 %v226_v34, %v258_v47 }
 0x185   :  { %v10426_v37 = vadd.f32 %v10336_v54, %v2577_v29  ;;  %v260_v29 = vld [vmem:[%s14981_s0 + $0x718] sm:$0xff] }
 0x186   :  { %8194 = vmatmul.msk.bf16.gmra.mxu0 %vm1380_vm1, %v10099_v35  ;;  %2016 = vmatmul.bf16.gmra.mxu1 %v15114_v21 }
 0x187   :  { %15135 = vst [vmem:[#allocation42_spill] sm:$0xff] %v10426_v37 }
 0x18a   :  { %v2298_v55 = vpop.f32.mrf.mxu2 }
 0x18b   :  { %v2578_v50 = vadd.f32 %v2298_v55, %v10289_v25  ;;  %v1647_v59 = vpop.f32.mrf.mxu0  ;;  %v1979_v46 = vpop.f32.mrf.mxu1 }
 0x18c   :  { %v10432_v5 = vadd.f32 %v1979_v46, %v1647_v59  ;;  %v10436_v2 = vpop.f32.mrf.mxu3 }
 0x18d   :  { %v10434_v13 = vadd.f32 %v2781_v48, %v2578_v50  ;;  %v644_v50 = vmax.f32 %v228_v39, %v260_v29  ;;  %v232_v29 = vld [vmem:[%s14981_s0 + $0x638] sm:$0xff] }
 0x18f   :  { %15136 = vst [vmem:[#allocation43_spill] sm:$0xff] %v10434_v13  ;;  %8297 = vmatmul.msk.bf16.gmra.mxu2 %vm1380_vm1, %v10372_v11 }
 0x190   :  { %2833 = vmatmul.bf16.gmra.mxu3 %v15114_v21 }
 0x192   :  { %v2301_v54 = vpop.f32.mrf.mxu2 }
 0x193   :  { %v2579_v0 = vadd.f32 %v2301_v54, %v10327_v12  ;;  %v1650_v10 = vpop.f32.mrf.mxu0  ;;  %v1982_v16 = vpop.f32.mrf.mxu1  ;;  %v225_v12 = vld [vmem:[%s14981_s0 + $0x600] sm:$0xff] }
 0x194   :  { %v10442_v28 = vadd.f32 %v1982_v16, %v1650_v10  ;;  %v10450_v48 = vpop.f32.mrf.mxu3  ;;  %v641_v30 = vmax.f32 %v225_v12, %v257_v31  ;;  %v850_v16 = vmax.f32 %v642_v18, %v644_v50  ;;  %v262_v18 = vld [vmem:[%s14981_s0 + $0x728] sm:$0xff]  ;;  %v264_v50 = vld [vmem:[%s14981_s0 + $0x738] sm:$0xff] }
 0x195   :  { %v10444_v25 = vadd.f32 %v2784_v7, %v2579_v0  ;;  %v227_v7 = vld [vmem:[%s14981_s0 + $0x610] sm:$0xff] }
 0x196   :  { %8195 = vmatmul.msk.bf16.gmra.mxu0 %vm1380_vm1, %v10148_v56  ;;  %8248 = vmatmul.msk.bf16.gmra.mxu1 %vm1380_vm1, %v10099_v35  ;;  %v643_v55 = vmax.f32 %v227_v7, %v259_v32  ;;  %v978_v14 = vpack.c.bf16 %v850_v16, %v850_v16 }
 0x197   :  { %15137 = vst [vmem:[#allocation44_spill] sm:$0xff] %v10444_v25 }
 0x198   :  { %v849_v10 = vmax.f32 %v641_v30, %v643_v55  ;;  %v1234_v34 = vunpack.c.l.b16 %v978_v14  ;;  %v261_v30 = vld [vmem:[%s14981_s0 + $0x720] sm:$0xff]  ;;  %v263_v55 = vld [vmem:[%s14981_s0 + $0x730] sm:$0xff] }
 0x19a   :  { %v2303_v59 = vpop.f32.mrf.mxu2  ;;  %v977_v37 = vpack.c.bf16 %v849_v10, %v849_v10 }
 0x19b   :  { %v2580_v46 = vadd.f32 %v2303_v59, %v10363_v27  ;;  %v1652_v54 = vpop.f32.mrf.mxu0  ;;  %v1984_v0 = vpop.f32.mrf.mxu1 }
 0x19c   :  { %v10477_v25 = vadd.f32 %v1984_v0, %v1652_v54  ;;  %v10481_v17 = vpop.f32.mrf.mxu3  ;;  %v1233_v12 = vunpack.c.l.b16 %v977_v37  ;;  %v230_v37 = vld [vmem:[%s14981_s0 + $0x628] sm:$0xff]  ;;  %v648_v0 = vmax.f32 %v232_v29, %v264_v50  ;;  %v236_v50 = vld [vmem:[%s14981_s0 + $0x658] sm:$0xff] }
 0x19d   :  { %v10479_v13 = vadd.f32 %v2786_v1, %v2580_v46  ;;  %v646_v46 = vmax.f32 %v230_v37, %v262_v18 }
 0x19e   :  { %v10484_v7 = vpack.c.b16 %v1234_v34, %v1233_v12 }
 0x19f   :  { %15138 = vst [vmem:[#allocation45_spill] sm:$0xff] %v10479_v13  ;;  %2345 = vmatmul.bf16.gmra.mxu2 %v15114_v21 }
 0x1a0   :  { %15139 = vst [vmem:[#allocation46_spill] sm:$0xff] %v10484_v7  ;;  %8355 = vmatmul.msk.bf16.gmra.mxu3 %vm1380_vm1, %v10484_v7 }
 0x1a2   :  { %v2306_v39 = vpop.f32.mrf.mxu2 }
 0x1a3   :  { %v2581_v27 = vadd.f32 %v2306_v39, %v10377_v4  ;;  %v1655_v31 = vpop.f32.mrf.mxu0  ;;  %v1987_v47 = vpop.f32.mrf.mxu1  ;;  %v229_v4 = vld [vmem:[%s14981_s0 + $0x620] sm:$0xff] }
 0x1a4   :  { %v10489_v1 = vadd.f32 %v1987_v47, %v1655_v31  ;;  %v10497_v14 = vpop.f32.mrf.mxu3  ;;  %v645_v59 = vmax.f32 %v229_v4, %v261_v30 }
 0x1a5   :  { %v10491_v32 = vadd.f32 %v2789_v33, %v2581_v27  ;;  %v231_v33 = vld [vmem:[%s14981_s0 + $0x630] sm:$0xff]  ;;  %v852_v27 = vmax.f32 %v646_v46, %v648_v0  ;;  %v266_v46 = vld [vmem:[%s14981_s0 + $0x748] sm:$0xff]  ;;  %v268_v0 = vld [vmem:[%s14981_s0 + $0x758] sm:$0xff] }
 0x1a6   :  { %8196 = vmatmul.msk.bf16.gmra.mxu0 %vm1380_vm1, %v10198_v22  ;;  %8249 = vmatmul.msk.bf16.gmra.mxu1 %vm1380_vm1, %v10148_v56  ;;  %v647_v54 = vmax.f32 %v231_v33, %v263_v55 }
 0x1a7   :  { %15140 = vst [vmem:[#allocation47_spill] sm:$0xff] %v10491_v32  ;;  %v980_v13 = vpack.c.bf16 %v852_v27, %v852_v27 }
 0x1a8   :  { %v851_v39 = vmax.f32 %v645_v59, %v647_v54  ;;  %v265_v59 = vld [vmem:[%s14981_s0 + $0x740] sm:$0xff]  ;;  %v267_v54 = vld [vmem:[%s14981_s0 + $0x750] sm:$0xff] }
 0x1a9   :  { %v1236_v37 = vunpack.c.l.b16 %v980_v13 }
 0x1aa   :  { %v2308_v10 = vpop.f32.mrf.mxu2  ;;  %v979_v32 = vpack.c.bf16 %v851_v39, %v851_v39 }
 0x1ab   :  { %v2582_v16 = vadd.f32 %v2308_v10, %v10411_v19  ;;  %v1657_v12 = vpop.f32.mrf.mxu0  ;;  %v1989_v34 = vpop.f32.mrf.mxu1 }
 0x1ac   :  { %v10524_v31 = vadd.f32 %v1989_v34, %v1657_v12  ;;  %v10529_v35 = vpop.f32.mrf.mxu3  ;;  %v1235_v4 = vunpack.c.l.b16 %v979_v32  ;;  %v234_v32 = vld [vmem:[%s14981_s0 + $0x648] sm:$0xff]  ;;  %v652_v34 = vmax.f32 %v236_v50, %v268_v0  ;;  %v240_v0 = vld [vmem:[%s14981_s0 + $0x678] sm:$0xff] }
 0x1ad   :  { %v10527_v47 = vadd.f32 %v10436_v2, %v2582_v16  ;;  %v650_v16 = vmax.f32 %v234_v32, %v266_v46 }
 0x1ae   :  { %v10533_v33 = vpack.c.b16 %v1236_v37, %v1235_v4 }
 0x1af   :  { %15141 = vst [vmem:[#allocation48_spill] sm:$0xff] %v10527_v47  ;;  %8298 = vmatmul.msk.bf16.gmra.mxu2 %vm1380_vm1, %v10148_v56 }
 0x1b0   :  { %15142 = vst [vmem:[#allocation49_spill] sm:$0xff] %v10533_v33  ;;  %8356 = vmatmul.msk.bf16.gmra.mxu3 %vm1380_vm1, %v10533_v33 }
 0x1b2   :  { %v2311_v19 = vpop.f32.mrf.mxu2 }
 0x1b3   :  { %v2583_v29 = vadd.f32 %v2311_v19, %v10423_v26  ;;  %v1660_v30 = vpop.f32.mrf.mxu0  ;;  %v1992_v18 = vpop.f32.mrf.mxu1  ;;  %v233_v26 = vld [vmem:[%s14981_s0 + $0x640] sm:$0xff] }
 0x1b4   :  { %v10538_v2 = vadd.f32 %v1992_v18, %v1660_v30  ;;  %v10547_v13 = vpop.f32.mrf.mxu3  ;;  %v649_v10 = vmax.f32 %v233_v26, %v265_v59 }
 0x1b5   :  { %v10541_v55 = vadd.f32 %v10450_v48, %v2583_v29  ;;  %v235_v48 = vld [vmem:[%s14981_s0 + $0x650] sm:$0xff]  ;;  %v854_v29 = vmax.f32 %v650_v16, %v652_v34  ;;  %v270_v16 = vld [vmem:[%s14981_s0 + $0x768] sm:$0xff]  ;;  %v272_v34 = vld [vmem:[%s14981_s0 + $0x778] sm:$0xff] }
 0x1b6   :  { %8197 = vmatmul.msk.bf16.gmra.mxu0 %vm1380_vm1, %v10248_v57  ;;  %8250 = vmatmul.msk.bf16.gmra.mxu1 %vm1380_vm1, %v10198_v22  ;;  %v651_v12 = vmax.f32 %v235_v48, %v267_v54 }
 0x1b7   :  { %15143 = vst [vmem:[#allocation50_spill] sm:$0xff] %v10541_v55  ;;  %v982_v47 = vpack.c.bf16 %v854_v29, %v854_v29 }
 0x1b8   :  { %v853_v19 = vmax.f32 %v649_v10, %v651_v12  ;;  %v269_v10 = vld [vmem:[%s14981_s0 + $0x760] sm:$0xff]  ;;  %v271_v12 = vld [vmem:[%s14981_s0 + $0x770] sm:$0xff] }
 0x1b9   :  { %v1238_v32 = vunpack.c.l.b16 %v982_v47 }
 0x1ba   :  { %v2313_v39 = vpop.f32.mrf.mxu2  ;;  %v981_v55 = vpack.c.bf16 %v853_v19, %v853_v19 }
 0x1bb   :  { %v2584_v27 = vadd.f32 %v2313_v39, %v10432_v5  ;;  %v1662_v4 = vpop.f32.mrf.mxu0  ;;  %v1994_v37 = vpop.f32.mrf.mxu1 }
 0x1bc   :  { %v10574_v30 = vadd.f32 %v1994_v37, %v1662_v4  ;;  %v10579_v56 = vpop.f32.mrf.mxu3  ;;  %v1237_v26 = vunpack.c.l.b16 %v981_v55  ;;  %v238_v55 = vld [vmem:[%s14981_s0 + $0x668] sm:$0xff]  ;;  %v656_v37 = vmax.f32 %v240_v0, %v272_v34  ;;  %v244_v34 = vld [vmem:[%s14981_s0 + $0x698] sm:$0xff] }
 0x1bd   :  { %v10577_v18 = vadd.f32 %v10481_v17, %v2584_v27  ;;  %v654_v27 = vmax.f32 %v238_v55, %v270_v16 }
 0x1be   :  { %v10583_v48 = vpack.c.b16 %v1238_v32, %v1237_v26 }
 0x1bf   :  { %15144 = vst [vmem:[#allocation51_spill] sm:$0xff] %v10577_v18  ;;  %8299 = vmatmul.msk.bf16.gmra.mxu2 %vm1380_vm1, %v10198_v22 }
 0x1c0   :  { %15145 = vst [vmem:[#allocation52_spill] sm:$0xff] %v10583_v48  ;;  %8357 = vmatmul.msk.bf16.gmra.mxu3 %vm1380_vm1, %v10583_v48 }
 0x1c2   :  { %v2316_v5 = vpop.f32.mrf.mxu2 }
 0x1c3   :  { %v2585_v50 = vadd.f32 %v2316_v5, %v10442_v28  ;;  %v1665_v59 = vpop.f32.mrf.mxu0  ;;  %v1997_v46 = vpop.f32.mrf.mxu1  ;;  %v237_v28 = vld [vmem:[%s14981_s0 + $0x660] sm:$0xff] }
 0x1c4   :  { %v10588_v17 = vadd.f32 %v1997_v46, %v1665_v59  ;;  %v10597_v47 = vpop.f32.mrf.mxu3  ;;  %v653_v39 = vmax.f32 %v237_v28, %v269_v10 }
 0x1c5   :  { %v10591_v54 = vadd.f32 %v10497_v14, %v2585_v50  ;;  %v239_v14 = vld [vmem:[%s14981_s0 + $0x670] sm:$0xff]  ;;  %v856_v50 = vmax.f32 %v654_v27, %v656_v37  ;;  %v274_v27 = vld [vmem:[%s14981_s0 + $0x788] sm:$0xff]  ;;  %v276_v37 = vld [vmem:[%s14981_s0 + $0x798] sm:$0xff] }
 0x1c6   :  { %8198 = vmatmul.msk.bf16.gmra.mxu0 %vm1380_vm1, %v10322_v49  ;;  %8251 = vmatmul.msk.bf16.gmra.mxu1 %vm1380_vm1, %v10248_v57  ;;  %v655_v4 = vmax.f32 %v239_v14, %v271_v12 }
 0x1c7   :  { %15146 = vst [vmem:[#allocation53_spill] sm:$0xff] %v10591_v54  ;;  %v984_v18 = vpack.c.bf16 %v856_v50, %v856_v50 }
 0x1c8   :  { %v855_v5 = vmax.f32 %v653_v39, %v655_v4  ;;  %v273_v39 = vld [vmem:[%s14981_s0 + $0x780] sm:$0xff]  ;;  %v275_v4 = vld [vmem:[%s14981_s0 + $0x790] sm:$0xff] }
 0x1c9   :  { %v1240_v55 = vunpack.c.l.b16 %v984_v18 }
 0x1ca   :  { %v2318_v19 = vpop.f32.mrf.mxu2  ;;  %v983_v54 = vpack.c.bf16 %v855_v5, %v855_v5 }
 0x1cb   :  { %v2586_v29 = vadd.f32 %v2318_v19, %v10477_v25  ;;  %v1667_v26 = vpop.f32.mrf.mxu0  ;;  %v1999_v32 = vpop.f32.mrf.mxu1 }
 0x1cc   :  { %v10624_v59 = vadd.f32 %v1999_v32, %v1667_v26  ;;  %v10629_v22 = vpop.f32.mrf.mxu3  ;;  %v1239_v28 = vunpack.c.l.b16 %v983_v54  ;;  %v242_v54 = vld [vmem:[%s14981_s0 + $0x688] sm:$0xff]  ;;  %v660_v32 = vmax.f32 %v244_v34, %v276_v37  ;;  %v192_v34 = vld [vmem:[%s14981_s0 + $0x4f8] sm:$0xff] }
 0x1cd   :  { %v10627_v46 = vadd.f32 %v10529_v35, %v2586_v29  ;;  %v658_v29 = vmax.f32 %v242_v54, %v274_v27  ;;  %v222_v27 = vld [vmem:[%s14981_s0 + $0x5e8] sm:$0xff]  ;;  %v224_v37 = vld [vmem:[%s14981_s0 + $0x5f8] sm:$0xff] }
 0x1ce   :  { %v10633_v14 = vpack.c.b16 %v1240_v55, %v1239_v28 }
 0x1cf   :  { %15147 = vst [vmem:[#allocation54_spill] sm:$0xff] %v10627_v46  ;;  %8300 = vmatmul.msk.bf16.gmra.mxu2 %vm1380_vm1, %v10248_v57 }
 0x1d0   :  { %15148 = vst [vmem:[#allocation55_spill] sm:$0xff] %v10633_v14  ;;  %8358 = vmatmul.msk.bf16.gmra.mxu3 %vm1380_vm1, %v10633_v14 }
 0x1d2   :  { %v2321_v25 = vpop.f32.mrf.mxu2 }
 0x1d3   :  { %v2587_v0 = vadd.f32 %v2321_v25, %v10489_v1  ;;  %v1670_v10 = vpop.f32.mrf.mxu0  ;;  %v2002_v16 = vpop.f32.mrf.mxu1  ;;  %v241_v1 = vld [vmem:[%s14981_s0 + $0x680] sm:$0xff] }
 0x1d4   :  { %v10638_v35 = vadd.f32 %v2002_v16, %v1670_v10  ;;  %v10647_v18 = vpop.f32.mrf.mxu3  ;;  %v657_v19 = vmax.f32 %v241_v1, %v273_v39  ;;  %v190_v1 = vld [vmem:[%s14981_s0 + $0x4e8] sm:$0xff] }
 0x1d5   :  { %v10641_v12 = vadd.f32 %v10547_v13, %v2587_v0  ;;  %v243_v13 = vld [vmem:[%s14981_s0 + $0x690] sm:$0xff]  ;;  %v858_v0 = vmax.f32 %v658_v29, %v660_v32 }
 0x1d6   :  { %8199 = vmatmul.msk.bf16.gmra.mxu0 %vm1380_vm1, %v10370_v6  ;;  %8252 = vmatmul.msk.bf16.gmra.mxu1 %vm1380_vm1, %v10322_v49  ;;  %v659_v26 = vmax.f32 %v243_v13, %v275_v4  ;;  %v223_v4 = vld [vmem:[%s14981_s0 + $0x5f0] sm:$0xff] }
 0x1d7   :  { %15149 = vst [vmem:[#allocation56_spill] sm:$0xff] %v10641_v12  ;;  %v189_v12 = vld [vmem:[%s14981_s0 + $0x4e0] sm:$0xff]  ;;  %v986_v13 = vpack.c.bf16 %v858_v0, %v858_v0 }
 0x1d8   :  { %v857_v25 = vmax.f32 %v657_v19, %v659_v26 }
 0x1d9   :  { %v1242_v29 = vunpack.c.l.b16 %v986_v13  ;;  %v248_v13 = vld [vmem:[%s14981_s0 + $0x6b8] sm:$0xff] }
 0x1da   :  { %v2323_v5 = vpop.f32.mrf.mxu2  ;;  %v985_v54 = vpack.c.bf16 %v857_v25, %v857_v25 }
 0x1db   :  { %v2588_v50 = vadd.f32 %v2323_v5, %v10524_v31  ;;  %v1672_v28 = vpop.f32.mrf.mxu0  ;;  %v2004_v55 = vpop.f32.mrf.mxu1  ;;  %v191_v31 = vld [vmem:[%s14981_s0 + $0x4f0] sm:$0xff] }
 0x1dc   :  { %v10674_v10 = vadd.f32 %v2004_v55, %v1672_v28  ;;  %v10694_v39 = vpop.f32.mrf.mxu3  ;;  %v1241_v19 = vunpack.c.l.b16 %v985_v54  ;;  %v639_v28 = vmax.f32 %v191_v31, %v223_v4  ;;  %v640_v55 = vmax.f32 %v192_v34, %v224_v37  ;;  %v277_v31 = vld [vmem:[%s14981_s0 + $0x7a0] sm:$0xff]  ;;  %v278_v34 = vld [vmem:[%s14981_s0 + $0x7a8] sm:$0xff] }
 0x1dd   :  { %v10677_v16 = vadd.f32 %v10579_v56, %v2588_v50  ;;  %v221_v56 = vld [vmem:[%s14981_s0 + $0x5e0] sm:$0xff]  ;;  %v638_v50 = vmax.f32 %v190_v1, %v222_v27  ;;  %v280_v27 = vld [vmem:[%s14981_s0 + $0x7b8] sm:$0xff] }
 0x1de   :  { %v10707_v26 = vpack.c.b16 %v1242_v29, %v1241_v19  ;;  %v637_v5 = vmax.f32 %v189_v12, %v221_v56  ;;  %v279_v56 = vld [vmem:[%s14981_s0 + $0x7b0] sm:$0xff]  ;;  %v664_v29 = vmax.f32 %v248_v13, %v280_v27 }
 0x1df   :  { %15150 = vst [vmem:[#allocation57_spill] sm:$0xff] %v10677_v16  ;;  %8301 = vmatmul.msk.bf16.gmra.mxu2 %vm1380_vm1, %v10322_v49  ;;  %v848_v1 = vmax.f32 %v638_v50, %v640_v55 }
 0x1e0   :  { %15151 = vst [vmem:[#allocation58_spill] sm:$0xff] %v10707_v26  ;;  %8359 = vmatmul.msk.bf16.gmra.mxu3 %vm1380_vm1, %v10707_v26  ;;  %v847_v12 = vmax.f32 %v637_v5, %v639_v28 }
 0x1e1   :  { %v976_v50 = vpack.c.bf16 %v848_v1, %v848_v1 }
 0x1e2   :  { %v2326_v32 = vpop.f32.mrf.mxu2  ;;  %v975_v5 = vpack.c.bf16 %v847_v12, %v847_v12 }
 0x1e3   :  { %v2589_v25 = vadd.f32 %v2326_v32, %v10538_v2  ;;  %v1675_v0 = vpop.f32.mrf.mxu0  ;;  %v2007_v16 = vpop.f32.mrf.mxu1  ;;  %v245_v2 = vld [vmem:[%s14981_s0 + $0x6a0] sm:$0xff] }
 0x1e4   :  { %v10712_v46 = vadd.f32 %v2007_v16, %v1675_v0  ;;  %v10721_v54 = vpop.f32.mrf.mxu3  ;;  %v246_v16 = vld [vmem:[%s14981_s0 + $0x6a8] sm:$0xff]  ;;  %v661_v4 = vmax.f32 %v245_v2, %v277_v31  ;;  %v1231_v2 = vunpack.c.l.b16 %v975_v5 }
 0x1e5   :  { %v10715_v49 = vadd.f32 %v10597_v47, %v2589_v25  ;;  %v247_v47 = vld [vmem:[%s14981_s0 + $0x6b0] sm:$0xff]  ;;  %v662_v37 = vmax.f32 %v246_v16, %v278_v34  ;;  %v1232_v16 = vunpack.c.l.b16 %v976_v50 }
 0x1e6   :  { %8200 = vmatmul.msk.bf16.gmra.mxu0 %vm1380_vm1, %v10418_v44  ;;  %8253 = vmatmul.msk.bf16.gmra.mxu1 %vm1380_vm1, %v10370_v6  ;;  %v663_v19 = vmax.f32 %v247_v47, %v279_v56 }
 0x1e7   :  { %15152 = vst [vmem:[#allocation59_spill] sm:$0xff] %v10715_v49  ;;  %v860_v49 = vmax.f32 %v662_v37, %v664_v29  ;;  %v10757_v31 = vpack.c.b16 %v1232_v16, %v1231_v2  ;;  %v281_v37 = vld [vmem:[%s14981_s0 + $0x7c0] sm:$0xff]  ;;  %v283_v29 = vld [vmem:[%s14981_s0 + $0x7d0] sm:$0xff] }
 0x1e8   :  { %v859_v0 = vmax.f32 %v661_v4, %v663_v19  ;;  %v252_v4 = vld [vmem:[%s14981_s0 + $0x6d8] sm:$0xff]  ;;  %v282_v19 = vld [vmem:[%s14981_s0 + $0x7c8] sm:$0xff] }
 0x1e9   :  { %v988_v42 = vpack.c.bf16 %v860_v49, %v860_v49  ;;  %15155 = vst [vmem:[#allocation62_spill] sm:$0xff] %v10757_v31 }
 0x1ea   :  { %v2328_v32 = vpop.f32.mrf.mxu2  ;;  %v987_v11 = vpack.c.bf16 %v859_v0, %v859_v0 }
 0x1eb   :  { %v2590_v28 = vadd.f32 %v2328_v32, %v10574_v30  ;;  %v1677_v55 = vpop.f32.mrf.mxu0  ;;  %v2009_v25 = vpop.f32.mrf.mxu1  ;;  %v1244_v1 = vunpack.c.l.b16 %v988_v42  ;;  %v284_v32 = vld [vmem:[%s14981_s0 + $0x7d8] sm:$0xff] }
 0x1ec   :  { %v10748_v57 = vadd.f32 %v2009_v25, %v1677_v55  ;;  %v2821_v47 = vpop.f32.mrf.mxu3  ;;  %v1243_v12 = vunpack.c.l.b16 %v987_v11  ;;  %v249_v11 = vld [vmem:[%s14981_s0 + $0x6c0] sm:$0xff]  ;;  %v668_v55 = vmax.f32 %v252_v4, %v284_v32 }
 0x1ed   :  { %v10751_v58 = vadd.f32 %v10629_v22, %v2590_v28  ;;  %v665_v5 = vmax.f32 %v249_v11, %v281_v37 }
 0x1ee   :  { %v10755_v30 = vpack.c.b16 %v1244_v1, %v1243_v12 }
 0x1ef   :  { %15153 = vst [vmem:[#allocation60_spill] sm:$0xff] %v10751_v58  ;;  %8302 = vmatmul.msk.bf16.gmra.mxu2 %vm1380_vm1, %v10370_v6 }
 0x1f0   :  { %15154 = vst [vmem:[#allocation61_spill] sm:$0xff] %v10755_v30  ;;  %8360 = vmatmul.msk.bf16.gmra.mxu3 %vm1380_vm1, %v10755_v30 }
 0x1f2   :  { %v2331_v13 = vpop.f32.mrf.mxu2 }
 0x1f3   :  { %v2591_v34 = vadd.f32 %v2331_v13, %v10588_v17  ;;  %v1680_v56 = vpop.f32.mrf.mxu0  ;;  %v2012_v22 = vpop.f32.mrf.mxu1  ;;  %v250_v17 = vld [vmem:[%s14981_s0 + $0x6c8] sm:$0xff] }
 0x1f4   :  { %v10762_v49 = vadd.f32 %v2012_v22, %v1680_v56  ;;  %v2824_v42 = vpop.f32.mrf.mxu3  ;;  %v666_v50 = vmax.f32 %v250_v17, %v282_v19 }
 0x1f5   :  { %v10765_v27 = vadd.f32 %v10647_v18, %v2591_v34  ;;  %v251_v18 = vld [vmem:[%s14981_s0 + $0x6d0] sm:$0xff] }
 0x1f6   :  { %8201 = vmatmul.msk.bf16.gmra.mxu0 %vm1380_vm1, %v10757_v31  ;;  %8254 = vmatmul.msk.bf16.gmra.mxu1 %vm1380_vm1, %v10418_v44  ;;  %v667_v28 = vmax.f32 %v251_v18, %v283_v29  ;;  %v862_v1 = vmax.f32 %v666_v50, %v668_v55 }
 0x1f7   :  { %15156 = vst [vmem:[#allocation63_spill] sm:$0xff] %v10765_v27 }
 0x1f8   :  { %v861_v12 = vmax.f32 %v665_v5, %v667_v28  ;;  %v990_v22 = vpack.c.bf16 %v862_v1, %v862_v1 }
 0x1fa   :  { %v2333_v25 = vpop.f32.mrf.mxu2  ;;  %v989_v56 = vpack.c.bf16 %v861_v12, %v861_v12  ;;  %v1246_v17 = vunpack.c.l.b16 %v990_v22  ;;  %v292_v22 = vld [vmem:[%s14981_s0 + $0x818] sm:$0xff] }
 0x1fb   :  { %v2592_v0 = vadd.f32 %v2333_v25, %v10624_v59  ;;  %v1682_v2 = vpop.f32.mrf.mxu0  ;;  %v2014_v16 = vpop.f32.mrf.mxu1 }
 0x1fc   :  { %v10796_v13 = vadd.f32 %v2014_v16, %v1682_v2  ;;  %v2826_v27 = vpop.f32.mrf.mxu3  ;;  %v1245_v11 = vunpack.c.l.b16 %v989_v56  ;;  %v290_v56 = vld [vmem:[%s14981_s0 + $0x808] sm:$0xff] }
 0x1fd   :  { %v10799_v34 = vadd.f32 %v10694_v39, %v2592_v0 }
 0x1fe   :  { %v10803_v18 = vpack.c.b16 %v1246_v17, %v1245_v11  ;;  %v321_v11 = vld [vmem:[%s14981_s0 + $0x900] sm:$0xff]  ;;  %v322_v17 = vld [vmem:[%s14981_s0 + $0x908] sm:$0xff] }
 0x1ff   :  { %15157 = vst [vmem:[#allocation64_spill] sm:$0xff] %v10799_v34  ;;  %8303 = vmatmul.msk.bf16.gmra.mxu2 %vm1380_vm1, %v10418_v44 }
 0x200   :  { %15158 = vst [vmem:[#allocation65_spill] sm:$0xff] %v10803_v18  ;;  %8361 = vmatmul.msk.bf16.gmra.mxu3 %vm1380_vm1, %v10803_v18 }
 0x202   :  { %v2336_v59 = vpop.f32.mrf.mxu2 }
 0x203   :  { %v2593_v4 = vadd.f32 %v2336_v59, %v10638_v35  ;;  %v1685_v37 = vpop.f32.mrf.mxu0  ;;  %v2017_v19 = vpop.f32.mrf.mxu1  ;;  %v323_v59 = vld [vmem:[%s14981_s0 + $0x910] sm:$0xff] }
 0x204   :  { %v10808_v39 = vadd.f32 %v2017_v19, %v1685_v37  ;;  %v2829_v32 = vpop.f32.mrf.mxu3  ;;  %v674_v19 = vmax.f32 %v290_v56, %v322_v17 }
 0x205   :  { %v10811_v29 = vadd.f32 %v10721_v54, %v2593_v4  ;;  %v324_v4 = vld [vmem:[%s14981_s0 + $0x918] sm:$0xff] }
 0x206   :  { %8202 = vmatmul.msk.bf16.gmra.mxu0 %vm1380_vm1, %v10484_v7  ;;  %2056 = vmatmul.bf16.gmra.mxu1 %v15114_v21 }
 0x207   :  { %15159 = vst [vmem:[#allocation66_spill] sm:$0xff] %v10811_v29 }
 0x20a   :  { %v2338_v5 = vpop.f32.mrf.mxu2 }
 0x20b   :  { %v2594_v50 = vadd.f32 %v2338_v5, %v10674_v10  ;;  %v1687_v35 = vpop.f32.mrf.mxu0  ;;  %v2019_v28 = vpop.f32.mrf.mxu1 }
 0x20c   :  { %v10817_v55 = vadd.f32 %v2019_v28, %v1687_v35  ;;  %v10821_v0 = vpop.f32.mrf.mxu3 }
 0x20d   :  { %v10819_v25 = vadd.f32 %v2821_v47, %v2594_v50  ;;  %v676_v50 = vmax.f32 %v292_v22, %v324_v4  ;;  %v296_v4 = vld [vmem:[%s14981_s0 + $0x838] sm:$0xff] }
 0x20f   :  { %15160 = vst [vmem:[#allocation67_spill] sm:$0xff] %v10819_v25  ;;  %8304 = vmatmul.msk.bf16.gmra.mxu2 %vm1380_vm1, %v10757_v31 }
 0x210   :  { %2873 = vmatmul.bf16.gmra.mxu3 %v15114_v21 }
 0x212   :  { %v2341_v54 = vpop.f32.mrf.mxu2 }
 0x213   :  { %v2595_v2 = vadd.f32 %v2341_v54, %v10712_v46  ;;  %v1690_v16 = vpop.f32.mrf.mxu0  ;;  %v2022_v12 = vpop.f32.mrf.mxu1  ;;  %v289_v46 = vld [vmem:[%s14981_s0 + $0x800] sm:$0xff] }
 0x214   :  { %v10827_v1 = vadd.f32 %v2022_v12, %v1690_v16  ;;  %v10835_v47 = vpop.f32.mrf.mxu3  ;;  %v673_v37 = vmax.f32 %v289_v46, %v321_v11  ;;  %v866_v12 = vmax.f32 %v674_v19, %v676_v50  ;;  %v326_v19 = vld [vmem:[%s14981_s0 + $0x928] sm:$0xff]  ;;  %v328_v50 = vld [vmem:[%s14981_s0 + $0x938] sm:$0xff] }
 0x215   :  { %v10829_v10 = vadd.f32 %v2824_v42, %v2595_v2  ;;  %v291_v42 = vld [vmem:[%s14981_s0 + $0x810] sm:$0xff] }
 0x216   :  { %8203 = vmatmul.msk.bf16.gmra.mxu0 %vm1380_vm1, %v10533_v33  ;;  %8255 = vmatmul.msk.bf16.gmra.mxu1 %vm1380_vm1, %v10484_v7  ;;  %v675_v5 = vmax.f32 %v291_v42, %v323_v59  ;;  %v994_v34 = vpack.c.bf16 %v866_v12, %v866_v12 }
 0x217   :  { %15161 = vst [vmem:[#allocation68_spill] sm:$0xff] %v10829_v10 }
 0x218   :  { %v865_v16 = vmax.f32 %v673_v37, %v675_v5  ;;  %v1250_v56 = vunpack.c.l.b16 %v994_v34  ;;  %v325_v37 = vld [vmem:[%s14981_s0 + $0x920] sm:$0xff]  ;;  %v327_v5 = vld [vmem:[%s14981_s0 + $0x930] sm:$0xff] }
 0x21a   :  { %v2343_v35 = vpop.f32.mrf.mxu2  ;;  %v993_v29 = vpack.c.bf16 %v865_v16, %v865_v16 }
 0x21b   :  { %v2596_v28 = vadd.f32 %v2343_v35, %v10748_v57  ;;  %v1692_v54 = vpop.f32.mrf.mxu0  ;;  %v2024_v2 = vpop.f32.mrf.mxu1 }
 0x21c   :  { %v10862_v10 = vadd.f32 %v2024_v2, %v1692_v54  ;;  %v10866_v58 = vpop.f32.mrf.mxu3  ;;  %v1249_v46 = vunpack.c.l.b16 %v993_v29  ;;  %v294_v29 = vld [vmem:[%s14981_s0 + $0x828] sm:$0xff]  ;;  %v680_v2 = vmax.f32 %v296_v4, %v328_v50  ;;  %v300_v50 = vld [vmem:[%s14981_s0 + $0x858] sm:$0xff] }
 0x21d   :  { %v10864_v25 = vadd.f32 %v2826_v27, %v2596_v28  ;;  %v678_v28 = vmax.f32 %v294_v29, %v326_v19 }
 0x21e   :  { %v10869_v42 = vpack.c.b16 %v1250_v56, %v1249_v46 }
 0x21f   :  { %15162 = vst [vmem:[#allocation69_spill] sm:$0xff] %v10864_v25  ;;  %2385 = vmatmul.bf16.gmra.mxu2 %v15114_v21 }
 0x220   :  { %15163 = vst [vmem:[#allocation70_spill] sm:$0xff] %v10869_v42  ;;  %8362 = vmatmul.msk.bf16.gmra.mxu3 %vm1380_vm1, %v10869_v42 }
 0x222   :  { %v2346_v22 = vpop.f32.mrf.mxu2 }
 0x223   :  { %v2597_v57 = vadd.f32 %v2346_v22, %v10762_v49  ;;  %v1695_v11 = vpop.f32.mrf.mxu0  ;;  %v2027_v17 = vpop.f32.mrf.mxu1  ;;  %v293_v49 = vld [vmem:[%s14981_s0 + $0x820] sm:$0xff] }
 0x224   :  { %v10874_v27 = vadd.f32 %v2027_v17, %v1695_v11  ;;  %v10882_v34 = vpop.f32.mrf.mxu3  ;;  %v677_v35 = vmax.f32 %v293_v49, %v325_v37 }
 0x225   :  { %v10876_v59 = vadd.f32 %v2829_v32, %v2597_v57  ;;  %v295_v32 = vld [vmem:[%s14981_s0 + $0x830] sm:$0xff]  ;;  %v868_v57 = vmax.f32 %v678_v28, %v680_v2  ;;  %v330_v28 = vld [vmem:[%s14981_s0 + $0x948] sm:$0xff]  ;;  %v332_v2 = vld [vmem:[%s14981_s0 + $0x958] sm:$0xff] }
 0x226   :  { %8204 = vmatmul.msk.bf16.gmra.mxu0 %vm1380_vm1, %v10583_v48  ;;  %8256 = vmatmul.msk.bf16.gmra.mxu1 %vm1380_vm1, %v10533_v33  ;;  %v679_v54 = vmax.f32 %v295_v32, %v327_v5 }
 0x227   :  { %15164 = vst [vmem:[#allocation71_spill] sm:$0xff] %v10876_v59  ;;  %v996_v25 = vpack.c.bf16 %v868_v57, %v868_v57 }
 0x228   :  { %v867_v22 = vmax.f32 %v677_v35, %v679_v54  ;;  %v329_v35 = vld [vmem:[%s14981_s0 + $0x940] sm:$0xff]  ;;  %v331_v54 = vld [vmem:[%s14981_s0 + $0x950] sm:$0xff] }
 0x229   :  { %v1252_v29 = vunpack.c.l.b16 %v996_v25 }
 0x22a   :  { %v2348_v16 = vpop.f32.mrf.mxu2  ;;  %v995_v59 = vpack.c.bf16 %v867_v22, %v867_v22 }
 0x22b   :  { %v2598_v12 = vadd.f32 %v2348_v16, %v10796_v13  ;;  %v1697_v46 = vpop.f32.mrf.mxu0  ;;  %v2029_v56 = vpop.f32.mrf.mxu1 }
 0x22c   :  { %v10909_v11 = vadd.f32 %v2029_v56, %v1697_v46  ;;  %v10914_v7 = vpop.f32.mrf.mxu3  ;;  %v1251_v49 = vunpack.c.l.b16 %v995_v59  ;;  %v298_v59 = vld [vmem:[%s14981_s0 + $0x848] sm:$0xff]  ;;  %v684_v56 = vmax.f32 %v300_v50, %v332_v2  ;;  %v304_v2 = vld [vmem:[%s14981_s0 + $0x878] sm:$0xff] }
 0x22d   :  { %v10912_v17 = vadd.f32 %v10821_v0, %v2598_v12  ;;  %v682_v12 = vmax.f32 %v298_v59, %v330_v28 }
 0x22e   :  { %v10918_v32 = vpack.c.b16 %v1252_v29, %v1251_v49 }
 0x22f   :  { %15165 = vst [vmem:[#allocation72_spill] sm:$0xff] %v10912_v17  ;;  %8305 = vmatmul.msk.bf16.gmra.mxu2 %vm1380_vm1, %v10533_v33 }
 0x230   :  { %15166 = vst [vmem:[#allocation73_spill] sm:$0xff] %v10918_v32  ;;  %8363 = vmatmul.msk.bf16.gmra.mxu3 %vm1380_vm1, %v10918_v32 }
 0x232   :  { %v2351_v13 = vpop.f32.mrf.mxu2 }
 0x233   :  { %v2599_v4 = vadd.f32 %v2351_v13, %v10808_v39  ;;  %v1700_v37 = vpop.f32.mrf.mxu0  ;;  %v2032_v19 = vpop.f32.mrf.mxu1  ;;  %v297_v39 = vld [vmem:[%s14981_s0 + $0x840] sm:$0xff] }
 0x234   :  { %v10923_v0 = vadd.f32 %v2032_v19, %v1700_v37  ;;  %v10932_v25 = vpop.f32.mrf.mxu3  ;;  %v681_v16 = vmax.f32 %v297_v39, %v329_v35 }
 0x235   :  { %v10926_v5 = vadd.f32 %v10835_v47, %v2599_v4  ;;  %v299_v47 = vld [vmem:[%s14981_s0 + $0x850] sm:$0xff]  ;;  %v870_v4 = vmax.f32 %v682_v12, %v684_v56  ;;  %v334_v12 = vld [vmem:[%s14981_s0 + $0x968] sm:$0xff]  ;;  %v336_v56 = vld [vmem:[%s14981_s0 + $0x978] sm:$0xff] }
 0x236   :  { %8205 = vmatmul.msk.bf16.gmra.mxu0 %vm1380_vm1, %v10633_v14  ;;  %8257 = vmatmul.msk.bf16.gmra.mxu1 %vm1380_vm1, %v10583_v48  ;;  %v683_v46 = vmax.f32 %v299_v47, %v331_v54 }
 0x237   :  { %15167 = vst [vmem:[#allocation74_spill] sm:$0xff] %v10926_v5  ;;  %v998_v17 = vpack.c.bf16 %v870_v4, %v870_v4 }
 0x238   :  { %v869_v13 = vmax.f32 %v681_v16, %v683_v46  ;;  %v333_v16 = vld [vmem:[%s14981_s0 + $0x960] sm:$0xff]  ;;  %v335_v46 = vld [vmem:[%s14981_s0 + $0x970] sm:$0xff] }
 0x239   :  { %v1254_v59 = vunpack.c.l.b16 %v998_v17 }
 0x23a   :  { %v2353_v22 = vpop.f32.mrf.mxu2  ;;  %v997_v5 = vpack.c.bf16 %v869_v13, %v869_v13 }
 0x23b   :  { %v2600_v57 = vadd.f32 %v2353_v22, %v10817_v55  ;;  %v1702_v49 = vpop.f32.mrf.mxu0  ;;  %v2034_v29 = vpop.f32.mrf.mxu1 }
 0x23c   :  { %v10959_v37 = vadd.f32 %v2034_v29, %v1702_v49  ;;  %v10964_v33 = vpop.f32.mrf.mxu3  ;;  %v1253_v39 = vunpack.c.l.b16 %v997_v5  ;;  %v302_v5 = vld [vmem:[%s14981_s0 + $0x868] sm:$0xff]  ;;  %v688_v29 = vmax.f32 %v304_v2, %v336_v56  ;;  %v308_v56 = vld [vmem:[%s14981_s0 + $0x898] sm:$0xff] }
 0x23d   :  { %v10962_v19 = vadd.f32 %v10866_v58, %v2600_v57  ;;  %v686_v57 = vmax.f32 %v302_v5, %v334_v12 }
 0x23e   :  { %v10968_v47 = vpack.c.b16 %v1254_v59, %v1253_v39 }
 0x23f   :  { %15168 = vst [vmem:[#allocation75_spill] sm:$0xff] %v10962_v19  ;;  %8306 = vmatmul.msk.bf16.gmra.mxu2 %vm1380_vm1, %v10583_v48 }
 0x240   :  { %15169 = vst [vmem:[#allocation76_spill] sm:$0xff] %v10968_v47  ;;  %8364 = vmatmul.msk.bf16.gmra.mxu3 %vm1380_vm1, %v10968_v47 }
 0x242   :  { %v2356_v55 = vpop.f32.mrf.mxu2 }
 0x243   :  { %v2601_v50 = vadd.f32 %v2356_v55, %v10827_v1  ;;  %v1705_v35 = vpop.f32.mrf.mxu0  ;;  %v2037_v28 = vpop.f32.mrf.mxu1  ;;  %v301_v1 = vld [vmem:[%s14981_s0 + $0x860] sm:$0xff] }
 0x244   :  { %v10973_v58 = vadd.f32 %v2037_v28, %v1705_v35  ;;  %v10982_v17 = vpop.f32.mrf.mxu3  ;;  %v685_v22 = vmax.f32 %v301_v1, %v333_v16 }
 0x245   :  { %v10976_v54 = vadd.f32 %v10882_v34, %v2601_v50  ;;  %v303_v34 = vld [vmem:[%s14981_s0 + $0x870] sm:$0xff]  ;;  %v872_v50 = vmax.f32 %v686_v57, %v688_v29  ;;  %v338_v57 = vld [vmem:[%s14981_s0 + $0x988] sm:$0xff]  ;;  %v340_v29 = vld [vmem:[%s14981_s0 + $0x998] sm:$0xff] }
 0x246   :  { %8206 = vmatmul.msk.bf16.gmra.mxu0 %vm1380_vm1, %v10707_v26  ;;  %8258 = vmatmul.msk.bf16.gmra.mxu1 %vm1380_vm1, %v10633_v14  ;;  %v687_v49 = vmax.f32 %v303_v34, %v335_v46 }
 0x247   :  { %15170 = vst [vmem:[#allocation77_spill] sm:$0xff] %v10976_v54  ;;  %v1000_v19 = vpack.c.bf16 %v872_v50, %v872_v50 }
 0x248   :  { %v871_v55 = vmax.f32 %v685_v22, %v687_v49  ;;  %v337_v22 = vld [vmem:[%s14981_s0 + $0x980] sm:$0xff]  ;;  %v339_v49 = vld [vmem:[%s14981_s0 + $0x990] sm:$0xff] }
 0x249   :  { %v1256_v5 = vunpack.c.l.b16 %v1000_v19 }
 0x24a   :  { %v2358_v13 = vpop.f32.mrf.mxu2  ;;  %v999_v54 = vpack.c.bf16 %v871_v55, %v871_v55 }
 0x24b   :  { %v2602_v4 = vadd.f32 %v2358_v13, %v10862_v10  ;;  %v1707_v39 = vpop.f32.mrf.mxu0  ;;  %v2039_v59 = vpop.f32.mrf.mxu1 }
 0x24c   :  { %v11009_v35 = vadd.f32 %v2039_v59, %v1707_v39  ;;  %v11014_v48 = vpop.f32.mrf.mxu3  ;;  %v1255_v1 = vunpack.c.l.b16 %v999_v54  ;;  %v306_v54 = vld [vmem:[%s14981_s0 + $0x888] sm:$0xff]  ;;  %v692_v59 = vmax.f32 %v308_v56, %v340_v29  ;;  %v256_v56 = vld [vmem:[%s14981_s0 + $0x6f8] sm:$0xff] }
 0x24d   :  { %v11012_v28 = vadd.f32 %v10914_v7, %v2602_v4  ;;  %v690_v4 = vmax.f32 %v306_v54, %v338_v57  ;;  %v286_v57 = vld [vmem:[%s14981_s0 + $0x7e8] sm:$0xff]  ;;  %v288_v29 = vld [vmem:[%s14981_s0 + $0x7f8] sm:$0xff] }
 0x24e   :  { %v11018_v34 = vpack.c.b16 %v1256_v5, %v1255_v1 }
 0x24f   :  { %15171 = vst [vmem:[#allocation78_spill] sm:$0xff] %v11012_v28  ;;  %8307 = vmatmul.msk.bf16.gmra.mxu2 %vm1380_vm1, %v10633_v14 }
 0x250   :  { %15172 = vst [vmem:[#allocation79_spill] sm:$0xff] %v11018_v34  ;;  %8365 = vmatmul.msk.bf16.gmra.mxu3 %vm1380_vm1, %v11018_v34 }
 0x252   :  { %v2361_v10 = vpop.f32.mrf.mxu2 }
 0x253   :  { %v2603_v2 = vadd.f32 %v2361_v10, %v10874_v27  ;;  %v1710_v16 = vpop.f32.mrf.mxu0  ;;  %v2042_v12 = vpop.f32.mrf.mxu1  ;;  %v305_v27 = vld [vmem:[%s14981_s0 + $0x880] sm:$0xff] }
 0x254   :  { %v11023_v7 = vadd.f32 %v2042_v12, %v1710_v16  ;;  %v11032_v19 = vpop.f32.mrf.mxu3  ;;  %v689_v13 = vmax.f32 %v305_v27, %v337_v22  ;;  %v254_v27 = vld [vmem:[%s14981_s0 + $0x6e8] sm:$0xff] }
 0x255   :  { %v11026_v46 = vadd.f32 %v10932_v25, %v2603_v2  ;;  %v307_v25 = vld [vmem:[%s14981_s0 + $0x890] sm:$0xff]  ;;  %v874_v2 = vmax.f32 %v690_v4, %v692_v59 }
 0x256   :  { %8207 = vmatmul.msk.bf16.gmra.mxu0 %vm1380_vm1, %v10755_v30  ;;  %8259 = vmatmul.msk.bf16.gmra.mxu1 %vm1380_vm1, %v10707_v26  ;;  %v691_v39 = vmax.f32 %v307_v25, %v339_v49  ;;  %v287_v49 = vld [vmem:[%s14981_s0 + $0x7f0] sm:$0xff] }
 0x257   :  { %15173 = vst [vmem:[#allocation80_spill] sm:$0xff] %v11026_v46  ;;  %v253_v46 = vld [vmem:[%s14981_s0 + $0x6e0] sm:$0xff]  ;;  %v1002_v25 = vpack.c.bf16 %v874_v2, %v874_v2 }
 0x258   :  { %v873_v10 = vmax.f32 %v689_v13, %v691_v39 }
 0x259   :  { %v1258_v4 = vunpack.c.l.b16 %v1002_v25  ;;  %v312_v25 = vld [vmem:[%s14981_s0 + $0x8b8] sm:$0xff] }
 0x25a   :  { %v2363_v55 = vpop.f32.mrf.mxu2  ;;  %v1001_v54 = vpack.c.bf16 %v873_v10, %v873_v10 }
 0x25b   :  { %v2604_v50 = vadd.f32 %v2363_v55, %v10909_v11  ;;  %v1712_v1 = vpop.f32.mrf.mxu0  ;;  %v2044_v5 = vpop.f32.mrf.mxu1  ;;  %v255_v11 = vld [vmem:[%s14981_s0 + $0x6f0] sm:$0xff] }
 0x25c   :  { %v11059_v16 = vadd.f32 %v2044_v5, %v1712_v1  ;;  %v11079_v22 = vpop.f32.mrf.mxu3  ;;  %v1257_v13 = vunpack.c.l.b16 %v1001_v54  ;;  %v671_v1 = vmax.f32 %v255_v11, %v287_v49  ;;  %v672_v5 = vmax.f32 %v256_v56, %v288_v29  ;;  %v341_v11 = vld [vmem:[%s14981_s0 + $0x9a0] sm:$0xff]  ;;  %v342_v56 = vld [vmem:[%s14981_s0 + $0x9a8] sm:$0xff] }
 0x25d   :  { %v11062_v12 = vadd.f32 %v10964_v33, %v2604_v50  ;;  %v285_v33 = vld [vmem:[%s14981_s0 + $0x7e0] sm:$0xff]  ;;  %v670_v50 = vmax.f32 %v254_v27, %v286_v57  ;;  %v344_v57 = vld [vmem:[%s14981_s0 + $0x9b8] sm:$0xff] }
 0x25e   :  { %v11092_v39 = vpack.c.b16 %v1258_v4, %v1257_v13  ;;  %v669_v55 = vmax.f32 %v253_v46, %v285_v33  ;;  %v343_v33 = vld [vmem:[%s14981_s0 + $0x9b0] sm:$0xff]  ;;  %v696_v4 = vmax.f32 %v312_v25, %v344_v57 }
 0x25f   :  { %15174 = vst [vmem:[#allocation81_spill] sm:$0xff] %v11062_v12  ;;  %8308 = vmatmul.msk.bf16.gmra.mxu2 %vm1380_vm1, %v10707_v26  ;;  %v864_v27 = vmax.f32 %v670_v50, %v672_v5 }
 0x260   :  { %15175 = vst [vmem:[#allocation82_spill] sm:$0xff] %v11092_v39  ;;  %8366 = vmatmul.msk.bf16.gmra.mxu3 %vm1380_vm1, %v11092_v39  ;;  %v863_v46 = vmax.f32 %v669_v55, %v671_v1 }
 0x261   :  { %v992_v50 = vpack.c.bf16 %v864_v27, %v864_v27 }
 0x262   :  { %v2366_v59 = vpop.f32.mrf.mxu2  ;;  %v991_v55 = vpack.c.bf16 %v863_v46, %v863_v46 }
 0x263   :  { %v2605_v10 = vadd.f32 %v2366_v59, %v10923_v0  ;;  %v1715_v2 = vpop.f32.mrf.mxu0  ;;  %v2047_v12 = vpop.f32.mrf.mxu1  ;;  %v309_v0 = vld [vmem:[%s14981_s0 + $0x8a0] sm:$0xff]  ;;  %v1248_v46 = vunpack.c.l.b16 %v992_v50 }
 0x264   :  { %v11097_v28 = vadd.f32 %v2047_v12, %v1715_v2  ;;  %v11106_v54 = vpop.f32.mrf.mxu3  ;;  %v310_v12 = vld [vmem:[%s14981_s0 + $0x8a8] sm:$0xff]  ;;  %v693_v49 = vmax.f32 %v309_v0, %v341_v11  ;;  %v1247_v25 = vunpack.c.l.b16 %v991_v55 }
 0x265   :  { %v11100_v26 = vadd.f32 %v10982_v17, %v2605_v10  ;;  %v311_v17 = vld [vmem:[%s14981_s0 + $0x8b0] sm:$0xff]  ;;  %v694_v29 = vmax.f32 %v310_v12, %v342_v56  ;;  %v8512_v0 = vld [vmem:[%s14980_s1 + $0xc] sm:$0x3] }
 0x266   :  { %8208 = vmatmul.msk.bf16.gmra.mxu0 %vm1380_vm1, %v10803_v18  ;;  %8260 = vmatmul.msk.bf16.gmra.mxu1 %vm1380_vm1, %v10755_v30  ;;  %v695_v13 = vmax.f32 %v311_v17, %v343_v33  ;;  %v8455_v33 = vld [vmem:[%s14980_s1 + $0xa] sm:$0x3] }
 0x267   :  { %15176 = vst [vmem:[#allocation83_spill] sm:$0xff] %v11100_v26  ;;  %v876_v26 = vmax.f32 %v694_v29, %v696_v4  ;;  %v3630_v57 = vsel %vm1552_vm0, %v8455_v33, 0 }
 0x268   :  { %v875_v2 = vmax.f32 %v693_v49, %v695_v13  ;;  %3639 = vmatpush.bf16.msrb.mxu1 %v3630_v57  ;;  %v11156_v13 = vpack.c.b16 %v1248_v46, %v1247_v25  ;;  %v348_v25 = vld [vmem:[%s14981_s0 + $0x9d8] sm:$0xff] }
 0x269   :  { %v1004_v17 = vpack.c.bf16 %v876_v26, %v876_v26 }
 0x26a   :  { %v2368_v59 = vpop.f32.mrf.mxu2  ;;  %v1003_v12 = vpack.c.bf16 %v875_v2, %v875_v2  ;;  %15179 = vst [vmem:[#allocation86_spill] sm:$0xff] %v11156_v13  ;;  %v316_v2 = vld [vmem:[%s14981_s0 + $0x8d8] sm:$0xff] }
 0x26b   :  { %v2606_v1 = vadd.f32 %v2368_v59, %v10959_v37  ;;  %v1717_v5 = vpop.f32.mrf.mxu0  ;;  %v2049_v10 = vpop.f32.mrf.mxu1  ;;  %v4092_v37 = vsel %vm1552_vm0, %v8512_v0, 0  ;;  %v1260_v56 = vunpack.c.l.b16 %v1004_v17  ;;  %v345_v0 = vld [vmem:[%s14981_s0 + $0x9c0] sm:$0xff]  ;;  %v347_v17 = vld [vmem:[%s14981_s0 + $0x9d0] sm:$0xff] }
 0x26c   :  { %v11133_v14 = vadd.f32 %v2049_v10, %v1717_v5  ;;  %v11141_v27 = vpop.f32.mrf.mxu3  ;;  %v1259_v11 = vunpack.c.l.b16 %v1003_v12  ;;  %4101 = vmatpush.bf16.msra.mxu2 %v4092_v37  ;;  %v314_v10 = vld [vmem:[%s14981_s0 + $0x8c8] sm:$0xff] }
 0x26d   :  { %v11136_v31 = vadd.f32 %v11014_v48, %v2606_v1  ;;  %v8562_v48 = vld [vmem:[%s14980_s1 + $0xe] sm:$0x3] }
 0x26e   :  { %v4554_v26 = vsel %vm1552_vm0, %v8562_v48, 0  ;;  %v11154_v49 = vpack.c.b16 %v1260_v56, %v1259_v11  ;;  %v346_v12 = vld [vmem:[%s14981_s0 + $0x9c8] sm:$0xff]  ;;  %v700_v11 = vmax.f32 %v316_v2, %v348_v25 }
 0x26f   :  { %15177 = vst [vmem:[#allocation84_spill] sm:$0xff] %v11136_v31  ;;  %8309 = vmatmul.msk.bf16.gmra.mxu2 %vm1380_vm1, %v10755_v30  ;;  %4563 = vmatpush.bf16.msrb.mxu3 %v4554_v26  ;;  %v698_v37 = vmax.f32 %v314_v10, %v346_v12 }
 0x270   :  { %15178 = vst [vmem:[#allocation85_spill] sm:$0xff] %v11154_v49  ;;  %8367 = vmatmul.msk.bf16.gmra.mxu3 %vm1380_vm1, %v11154_v49 }
 0x272   :  { %v2371_v29 = vpop.f32.mrf.mxu2 }
 0x273   :  { %v2607_v4 = vadd.f32 %v2371_v29, %v10973_v58  ;;  %v1720_v59 = vpop.f32.mrf.mxu0  ;;  %v2052_v55 = vpop.f32.mrf.mxu1  ;;  %v313_v58 = vld [vmem:[%s14981_s0 + $0x8c0] sm:$0xff] }
 0x274   :  { %v11161_v50 = vadd.f32 %v2052_v55, %v1720_v59  ;;  %v2864_v5 = vpop.f32.mrf.mxu3  ;;  %v697_v46 = vmax.f32 %v313_v58, %v345_v0 }
 0x275   :  { %v11164_v1 = vadd.f32 %v11032_v19, %v2607_v4  ;;  %v315_v19 = vld [vmem:[%s14981_s0 + $0x8d0] sm:$0xff]  ;;  %v878_v4 = vmax.f32 %v698_v37, %v700_v11 }
 0x276   :  { %8209 = vmatmul.msk.bf16.gmra.mxu0 %vm1380_vm1, %v11156_v13  ;;  %8261 = vmatmul.msk.bf16.gmra.mxu1 %vm1380_vm1, %v10803_v18  ;;  %v699_v48 = vmax.f32 %v315_v19, %v347_v17 }
 0x277   :  { %15180 = vst [vmem:[#allocation87_spill] sm:$0xff] %v11164_v1  ;;  %v1006_v31 = vpack.c.bf16 %v878_v4, %v878_v4  ;;  %v356_v4 = vld [vmem:[%s14981_s0 + $0xa18] sm:$0xff] }
 0x278   :  { %v877_v29 = vmax.f32 %v697_v46, %v699_v48 }
 0x279   :  { %v1262_v10 = vunpack.c.l.b16 %v1006_v31 }
 0x27a   :  { %v2373_v56 = vpop.f32.mrf.mxu2  ;;  %v1005_v1 = vpack.c.bf16 %v877_v29, %v877_v29  ;;  %v354_v29 = vld [vmem:[%s14981_s0 + $0xa08] sm:$0xff] }
 0x27b   :  { %v2608_v33 = vadd.f32 %v2373_v56, %v11009_v35  ;;  %v1722_v26 = vpop.f32.mrf.mxu0  ;;  %v2054_v57 = vpop.f32.mrf.mxu1 }
 0x27c   :  { %v11195_v59 = vadd.f32 %v2054_v57, %v1722_v26  ;;  %v2866_v30 = vpop.f32.mrf.mxu3  ;;  %v1261_v58 = vunpack.c.l.b16 %v1005_v1 }
 0x27d   :  { %v11198_v55 = vadd.f32 %v11079_v22, %v2608_v33 }
 0x27e   :  { %v11202_v19 = vpack.c.b16 %v1262_v10, %v1261_v58  ;;  %v385_v58 = vld [vmem:[%s14981_s0 + $0xb00] sm:$0xff]  ;;  %v386_v10 = vld [vmem:[%s14981_s0 + $0xb08] sm:$0xff] }
 0x27f   :  { %15181 = vst [vmem:[#allocation88_spill] sm:$0xff] %v11198_v55  ;;  %8310 = vmatmul.msk.bf16.gmra.mxu2 %vm1380_vm1, %v10803_v18 }
 0x280   :  { %15182 = vst [vmem:[#allocation89_spill] sm:$0xff] %v11202_v19  ;;  %8368 = vmatmul.msk.bf16.gmra.mxu3 %vm1380_vm1, %v11202_v19 }
 0x282   :  { %v2376_v35 = vpop.f32.mrf.mxu2 }
 0x283   :  { %v2609_v2 = vadd.f32 %v2376_v35, %v11023_v7  ;;  %v1725_v0 = vpop.f32.mrf.mxu0  ;;  %v2057_v12 = vpop.f32.mrf.mxu1  ;;  %v387_v35 = vld [vmem:[%s14981_s0 + $0xb10] sm:$0xff] }
 0x284   :  { %v11207_v22 = vadd.f32 %v2057_v12, %v1725_v0  ;;  %v2869_v31 = vpop.f32.mrf.mxu3  ;;  %v706_v12 = vmax.f32 %v354_v29, %v386_v10 }
 0x285   :  { %v11210_v17 = vadd.f32 %v11106_v54, %v2609_v2  ;;  %v388_v2 = vld [vmem:[%s14981_s0 + $0xb18] sm:$0xff] }
 0x286   :  { %8210 = vmatmul.msk.bf16.gmra.mxu0 %vm1380_vm1, %v10869_v42  ;;  %2096 = vmatmul.bf16.gmra.mxu1 %v15114_v21 }
 0x287   :  { %15183 = vst [vmem:[#allocation90_spill] sm:$0xff] %v11210_v17 }
 0x28a   :  { %v2378_v1 = vpop.f32.mrf.mxu2 }
 0x28b   :  { %v2610_v25 = vadd.f32 %v2378_v1, %v11059_v16  ;;  %v1727_v7 = vpop.f32.mrf.mxu0  ;;  %v2059_v46 = vpop.f32.mrf.mxu1 }
 0x28c   :  { %v11216_v37 = vadd.f32 %v2059_v46, %v1727_v7  ;;  %v11221_v11 = vpop.f32.mrf.mxu3 }
 0x28d   :  { %v11219_v48 = vadd.f32 %v11141_v27, %v2610_v25  ;;  %v708_v25 = vmax.f32 %v356_v4, %v388_v2  ;;  %v360_v2 = vld [vmem:[%s14981_s0 + $0xa38] sm:$0xff] }
 0x28f   :  { %15184 = vst [vmem:[#allocation91_spill] sm:$0xff] %v11219_v48  ;;  %8311 = vmatmul.msk.bf16.gmra.mxu2 %vm1380_vm1, %v11156_v13 }
 0x290   :  { %2913 = vmatmul.bf16.gmra.mxu3 %v15114_v21 }
 0x292   :  { %v2381_v54 = vpop.f32.mrf.mxu2 }
 0x293   :  { %v2611_v56 = vadd.f32 %v2381_v54, %v11097_v28  ;;  %v1730_v33 = vpop.f32.mrf.mxu0  ;;  %v2062_v26 = vpop.f32.mrf.mxu1  ;;  %v353_v28 = vld [vmem:[%s14981_s0 + $0xa00] sm:$0xff] }
 0x294   :  { %v11227_v16 = vadd.f32 %v2062_v26, %v1730_v33  ;;  %v11235_v27 = vpop.f32.mrf.mxu3  ;;  %v705_v0 = vmax.f32 %v353_v28, %v385_v58  ;;  %v882_v26 = vmax.f32 %v706_v12, %v708_v25  ;;  %v390_v12 = vld [vmem:[%s14981_s0 + $0xb28] sm:$0xff]  ;;  %v392_v25 = vld [vmem:[%s14981_s0 + $0xb38] sm:$0xff] }
 0x295   :  { %v11229_v57 = vadd.f32 %v2864_v5, %v2611_v56  ;;  %v355_v5 = vld [vmem:[%s14981_s0 + $0xa10] sm:$0xff] }
 0x296   :  { %8211 = vmatmul.msk.bf16.gmra.mxu0 %vm1380_vm1, %v10918_v32  ;;  %8262 = vmatmul.msk.bf16.gmra.mxu1 %vm1380_vm1, %v10869_v42  ;;  %v707_v1 = vmax.f32 %v355_v5, %v387_v35  ;;  %v1010_v55 = vpack.c.bf16 %v882_v26, %v882_v26 }
 0x297   :  { %15185 = vst [vmem:[#allocation92_spill] sm:$0xff] %v11229_v57 }
 0x298   :  { %v881_v33 = vmax.f32 %v705_v0, %v707_v1  ;;  %v1266_v29 = vunpack.c.l.b16 %v1010_v55  ;;  %v389_v0 = vld [vmem:[%s14981_s0 + $0xb20] sm:$0xff]  ;;  %v391_v1 = vld [vmem:[%s14981_s0 + $0xb30] sm:$0xff] }
 0x29a   :  { %v2383_v7 = vpop.f32.mrf.mxu2  ;;  %v1009_v17 = vpack.c.bf16 %v881_v33, %v881_v33 }
 0x29b   :  { %v2612_v46 = vadd.f32 %v2383_v7, %v11133_v14  ;;  %v1732_v54 = vpop.f32.mrf.mxu0  ;;  %v2064_v56 = vpop.f32.mrf.mxu1 }
 0x29c   :  { %v11262_v57 = vadd.f32 %v2064_v56, %v1732_v54  ;;  %v11266_v42 = vpop.f32.mrf.mxu3  ;;  %v1265_v28 = vunpack.c.l.b16 %v1009_v17  ;;  %v358_v17 = vld [vmem:[%s14981_s0 + $0xa28] sm:$0xff]  ;;  %v712_v56 = vmax.f32 %v360_v2, %v392_v25  ;;  %v364_v25 = vld [vmem:[%s14981_s0 + $0xa58] sm:$0xff] }
 0x29d   :  { %v11264_v48 = vadd.f32 %v2866_v30, %v2612_v46  ;;  %v710_v46 = vmax.f32 %v358_v17, %v390_v12 }
 0x29e   :  { %v11269_v5 = vpack.c.b16 %v1266_v29, %v1265_v28 }
 0x29f   :  { %15186 = vst [vmem:[#allocation93_spill] sm:$0xff] %v11264_v48  ;;  %2425 = vmatmul.bf16.gmra.mxu2 %v15114_v21 }
 0x2a0   :  { %15187 = vst [vmem:[#allocation94_spill] sm:$0xff] %v11269_v5  ;;  %8369 = vmatmul.msk.bf16.gmra.mxu3 %vm1380_vm1, %v11269_v5 }
 0x2a2   :  { %v2386_v4 = vpop.f32.mrf.mxu2 }
 0x2a3   :  { %v2613_v14 = vadd.f32 %v2386_v4, %v11161_v50  ;;  %v1735_v58 = vpop.f32.mrf.mxu0  ;;  %v2067_v10 = vpop.f32.mrf.mxu1  ;;  %v357_v50 = vld [vmem:[%s14981_s0 + $0xa20] sm:$0xff] }
 0x2a4   :  { %v11274_v30 = vadd.f32 %v2067_v10, %v1735_v58  ;;  %v11282_v55 = vpop.f32.mrf.mxu3  ;;  %v709_v7 = vmax.f32 %v357_v50, %v389_v0 }
 0x2a5   :  { %v11276_v35 = vadd.f32 %v2869_v31, %v2613_v14  ;;  %v359_v31 = vld [vmem:[%s14981_s0 + $0xa30] sm:$0xff]  ;;  %v884_v14 = vmax.f32 %v710_v46, %v712_v56  ;;  %v394_v46 = vld [vmem:[%s14981_s0 + $0xb48] sm:$0xff]  ;;  %v396_v56 = vld [vmem:[%s14981_s0 + $0xb58] sm:$0xff] }
 0x2a6   :  { %8212 = vmatmul.msk.bf16.gmra.mxu0 %vm1380_vm1, %v10968_v47  ;;  %8263 = vmatmul.msk.bf16.gmra.mxu1 %vm1380_vm1, %v10918_v32  ;;  %v711_v54 = vmax.f32 %v359_v31, %v391_v1 }
 0x2a7   :  { %15188 = vst [vmem:[#allocation95_spill] sm:$0xff] %v11276_v35  ;;  %v1012_v48 = vpack.c.bf16 %v884_v14, %v884_v14 }
 0x2a8   :  { %v883_v4 = vmax.f32 %v709_v7, %v711_v54  ;;  %v393_v7 = vld [vmem:[%s14981_s0 + $0xb40] sm:$0xff]  ;;  %v395_v54 = vld [vmem:[%s14981_s0 + $0xb50] sm:$0xff] }
 0x2a9   :  { %v1268_v17 = vunpack.c.l.b16 %v1012_v48 }
 0x2aa   :  { %v2388_v33 = vpop.f32.mrf.mxu2  ;;  %v1011_v35 = vpack.c.bf16 %v883_v4, %v883_v4 }
 0x2ab   :  { %v2614_v26 = vadd.f32 %v2388_v33, %v11195_v59  ;;  %v1737_v28 = vpop.f32.mrf.mxu0  ;;  %v2069_v29 = vpop.f32.mrf.mxu1 }
 0x2ac   :  { %v11309_v58 = vadd.f32 %v2069_v29, %v1737_v28  ;;  %v11314_v13 = vpop.f32.mrf.mxu3  ;;  %v1267_v50 = vunpack.c.l.b16 %v1011_v35  ;;  %v362_v35 = vld [vmem:[%s14981_s0 + $0xa48] sm:$0xff]  ;;  %v716_v29 = vmax.f32 %v364_v25, %v396_v56  ;;  %v368_v56 = vld [vmem:[%s14981_s0 + $0xa78] sm:$0xff] }
 0x2ad   :  { %v11312_v10 = vadd.f32 %v11221_v11, %v2614_v26  ;;  %v714_v26 = vmax.f32 %v362_v35, %v394_v46 }
 0x2ae   :  { %v11318_v31 = vpack.c.b16 %v1268_v17, %v1267_v50 }
 0x2af   :  { %15189 = vst [vmem:[#allocation96_spill] sm:$0xff] %v11312_v10  ;;  %8312 = vmatmul.msk.bf16.gmra.mxu2 %vm1380_vm1, %v10918_v32 }
 0x2b0   :  { %15190 = vst [vmem:[#allocation97_spill] sm:$0xff] %v11318_v31  ;;  %8370 = vmatmul.msk.bf16.gmra.mxu3 %vm1380_vm1, %v11318_v31 }
 0x2b2   :  { %v2391_v59 = vpop.f32.mrf.mxu2 }
 0x2b3   :  { %v2615_v2 = vadd.f32 %v2391_v59, %v11207_v22  ;;  %v1740_v0 = vpop.f32.mrf.mxu0  ;;  %v2072_v12 = vpop.f32.mrf.mxu1  ;;  %v361_v22 = vld [vmem:[%s14981_s0 + $0xa40] sm:$0xff] }
 0x2b4   :  { %v11323_v11 = vadd.f32 %v2072_v12, %v1740_v0  ;;  %v11332_v48 = vpop.f32.mrf.mxu3  ;;  %v713_v33 = vmax.f32 %v361_v22, %v393_v7 }
 0x2b5   :  { %v11326_v1 = vadd.f32 %v11235_v27, %v2615_v2  ;;  %v363_v27 = vld [vmem:[%s14981_s0 + $0xa50] sm:$0xff]  ;;  %v886_v2 = vmax.f32 %v714_v26, %v716_v29  ;;  %v398_v26 = vld [vmem:[%s14981_s0 + $0xb68] sm:$0xff]  ;;  %v400_v29 = vld [vmem:[%s14981_s0 + $0xb78] sm:$0xff] }
 0x2b6   :  { %8213 = vmatmul.msk.bf16.gmra.mxu0 %vm1380_vm1, %v11018_v34  ;;  %8264 = vmatmul.msk.bf16.gmra.mxu1 %vm1380_vm1, %v10968_v47  ;;  %v715_v28 = vmax.f32 %v363_v27, %v395_v54 }
 0x2b7   :  { %15191 = vst [vmem:[#allocation98_spill] sm:$0xff] %v11326_v1  ;;  %v1014_v10 = vpack.c.bf16 %v886_v2, %v886_v2 }
 0x2b8   :  { %v885_v59 = vmax.f32 %v713_v33, %v715_v28  ;;  %v397_v33 = vld [vmem:[%s14981_s0 + $0xb60] sm:$0xff]  ;;  %v399_v28 = vld [vmem:[%s14981_s0 + $0xb70] sm:$0xff] }
 0x2b9   :  { %v1270_v35 = vunpack.c.l.b16 %v1014_v10 }
 0x2ba   :  { %v2393_v4 = vpop.f32.mrf.mxu2  ;;  %v1013_v1 = vpack.c.bf16 %v885_v59, %v885_v59 }
 0x2bb   :  { %v2616_v14 = vadd.f32 %v2393_v4, %v11216_v37  ;;  %v1742_v50 = vpop.f32.mrf.mxu0  ;;  %v2074_v17 = vpop.f32.mrf.mxu1 }
 0x2bc   :  { %v11359_v0 = vadd.f32 %v2074_v17, %v1742_v50  ;;  %v11364_v32 = vpop.f32.mrf.mxu3  ;;  %v1269_v22 = vunpack.c.l.b16 %v1013_v1  ;;  %v366_v1 = vld [vmem:[%s14981_s0 + $0xa68] sm:$0xff]  ;;  %v720_v17 = vmax.f32 %v368_v56, %v400_v29  ;;  %v372_v29 = vld [vmem:[%s14981_s0 + $0xa98] sm:$0xff] }
 0x2bd   :  { %v11362_v12 = vadd.f32 %v11266_v42, %v2616_v14  ;;  %v718_v14 = vmax.f32 %v366_v1, %v398_v26 }
 0x2be   :  { %v11368_v27 = vpack.c.b16 %v1270_v35, %v1269_v22 }
 0x2bf   :  { %15192 = vst [vmem:[#allocation99_spill] sm:$0xff] %v11362_v12  ;;  %8313 = vmatmul.msk.bf16.gmra.mxu2 %vm1380_vm1, %v10968_v47 }
 0x2c0   :  { %15193 = vst [vmem:[#allocation100_spill] sm:$0xff] %v11368_v27  ;;  %8371 = vmatmul.msk.bf16.gmra.mxu3 %vm1380_vm1, %v11368_v27 }
 0x2c2   :  { %v2396_v37 = vpop.f32.mrf.mxu2 }
 0x2c3   :  { %v2617_v25 = vadd.f32 %v2396_v37, %v11227_v16  ;;  %v1745_v7 = vpop.f32.mrf.mxu0  ;;  %v2077_v46 = vpop.f32.mrf.mxu1  ;;  %v365_v16 = vld [vmem:[%s14981_s0 + $0xa60] sm:$0xff] }
 0x2c4   :  { %v11373_v42 = vadd.f32 %v2077_v46, %v1745_v7  ;;  %v11382_v10 = vpop.f32.mrf.mxu3  ;;  %v717_v4 = vmax.f32 %v365_v16, %v397_v33 }
 0x2c5   :  { %v11376_v54 = vadd.f32 %v11282_v55, %v2617_v25  ;;  %v367_v55 = vld [vmem:[%s14981_s0 + $0xa70] sm:$0xff]  ;;  %v888_v25 = vmax.f32 %v718_v14, %v720_v17  ;;  %v402_v14 = vld [vmem:[%s14981_s0 + $0xb88] sm:$0xff]  ;;  %v404_v17 = vld [vmem:[%s14981_s0 + $0xb98] sm:$0xff] }
 0x2c6   :  { %8214 = vmatmul.msk.bf16.gmra.mxu0 %vm1380_vm1, %v11092_v39  ;;  %8265 = vmatmul.msk.bf16.gmra.mxu1 %vm1380_vm1, %v11018_v34  ;;  %v719_v50 = vmax.f32 %v367_v55, %v399_v28 }
 0x2c7   :  { %15194 = vst [vmem:[#allocation101_spill] sm:$0xff] %v11376_v54  ;;  %v1016_v12 = vpack.c.bf16 %v888_v25, %v888_v25 }
 0x2c8   :  { %v887_v37 = vmax.f32 %v717_v4, %v719_v50  ;;  %v401_v4 = vld [vmem:[%s14981_s0 + $0xb80] sm:$0xff]  ;;  %v403_v50 = vld [vmem:[%s14981_s0 + $0xb90] sm:$0xff] }
 0x2c9   :  { %v1272_v1 = vunpack.c.l.b16 %v1016_v12 }
 0x2ca   :  { %v2398_v59 = vpop.f32.mrf.mxu2  ;;  %v1015_v54 = vpack.c.bf16 %v887_v37, %v887_v37 }
 0x2cb   :  { %v2618_v2 = vadd.f32 %v2398_v59, %v11262_v57  ;;  %v1747_v22 = vpop.f32.mrf.mxu0  ;;  %v2079_v35 = vpop.f32.mrf.mxu1 }
 0x2cc   :  { %v11409_v7 = vadd.f32 %v2079_v35, %v1747_v22  ;;  %v11414_v47 = vpop.f32.mrf.mxu3  ;;  %v1271_v16 = vunpack.c.l.b16 %v1015_v54  ;;  %v370_v54 = vld [vmem:[%s14981_s0 + $0xa88] sm:$0xff]  ;;  %v724_v35 = vmax.f32 %v372_v29, %v404_v17  ;;  %v320_v29 = vld [vmem:[%s14981_s0 + $0x8f8] sm:$0xff] }
 0x2cd   :  { %v11412_v46 = vadd.f32 %v11314_v13, %v2618_v2  ;;  %v722_v2 = vmax.f32 %v370_v54, %v402_v14  ;;  %v350_v14 = vld [vmem:[%s14981_s0 + $0x9e8] sm:$0xff]  ;;  %v352_v17 = vld [vmem:[%s14981_s0 + $0x9f8] sm:$0xff] }
 0x2ce   :  { %v11418_v55 = vpack.c.b16 %v1272_v1, %v1271_v16 }
 0x2cf   :  { %15195 = vst [vmem:[#allocation102_spill] sm:$0xff] %v11412_v46  ;;  %8314 = vmatmul.msk.bf16.gmra.mxu2 %vm1380_vm1, %v11018_v34 }
 0x2d0   :  { %15196 = vst [vmem:[#allocation103_spill] sm:$0xff] %v11418_v55  ;;  %8372 = vmatmul.msk.bf16.gmra.mxu3 %vm1380_vm1, %v11418_v55 }
 0x2d2   :  { %v2401_v57 = vpop.f32.mrf.mxu2 }
 0x2d3   :  { %v2619_v56 = vadd.f32 %v2401_v57, %v11274_v30  ;;  %v1750_v33 = vpop.f32.mrf.mxu0  ;;  %v2082_v26 = vpop.f32.mrf.mxu1  ;;  %v369_v30 = vld [vmem:[%s14981_s0 + $0xa80] sm:$0xff] }
 0x2d4   :  { %v11423_v13 = vadd.f32 %v2082_v26, %v1750_v33  ;;  %v11432_v12 = vpop.f32.mrf.mxu3  ;;  %v721_v59 = vmax.f32 %v369_v30, %v401_v4  ;;  %v318_v30 = vld [vmem:[%s14981_s0 + $0x8e8] sm:$0xff] }
 0x2d5   :  { %v11426_v28 = vadd.f32 %v11332_v48, %v2619_v56  ;;  %v371_v48 = vld [vmem:[%s14981_s0 + $0xa90] sm:$0xff]  ;;  %v890_v56 = vmax.f32 %v722_v2, %v724_v35 }
 0x2d6   :  { %8215 = vmatmul.msk.bf16.gmra.mxu0 %vm1380_vm1, %v11154_v49  ;;  %8266 = vmatmul.msk.bf16.gmra.mxu1 %vm1380_vm1, %v11092_v39  ;;  %v723_v22 = vmax.f32 %v371_v48, %v403_v50  ;;  %v351_v50 = vld [vmem:[%s14981_s0 + $0x9f0] sm:$0xff] }
 0x2d7   :  { %15197 = vst [vmem:[#allocation104_spill] sm:$0xff] %v11426_v28  ;;  %v317_v28 = vld [vmem:[%s14981_s0 + $0x8e0] sm:$0xff]  ;;  %v1018_v48 = vpack.c.bf16 %v890_v56, %v890_v56 }
 0x2d8   :  { %v889_v57 = vmax.f32 %v721_v59, %v723_v22 }
 0x2d9   :  { %v1274_v2 = vunpack.c.l.b16 %v1018_v48  ;;  %v376_v48 = vld [vmem:[%s14981_s0 + $0xab8] sm:$0xff] }
 0x2da   :  { %v2403_v37 = vpop.f32.mrf.mxu2  ;;  %v1017_v54 = vpack.c.bf16 %v889_v57, %v889_v57 }
 0x2db   :  { %v2620_v25 = vadd.f32 %v2403_v37, %v11309_v58  ;;  %v1752_v16 = vpop.f32.mrf.mxu0  ;;  %v2084_v1 = vpop.f32.mrf.mxu1  ;;  %v319_v58 = vld [vmem:[%s14981_s0 + $0x8f0] sm:$0xff] }
 0x2dc   :  { %v11459_v33 = vadd.f32 %v2084_v1, %v1752_v16  ;;  %v11479_v4 = vpop.f32.mrf.mxu3  ;;  %v1273_v59 = vunpack.c.l.b16 %v1017_v54  ;;  %v703_v16 = vmax.f32 %v319_v58, %v351_v50  ;;  %v704_v1 = vmax.f32 %v320_v29, %v352_v17  ;;  %v405_v58 = vld [vmem:[%s14981_s0 + $0xba0] sm:$0xff]  ;;  %v406_v29 = vld [vmem:[%s14981_s0 + $0xba8] sm:$0xff] }
 0x2dd   :  { %v11462_v26 = vadd.f32 %v11364_v32, %v2620_v25  ;;  %v349_v32 = vld [vmem:[%s14981_s0 + $0x9e0] sm:$0xff]  ;;  %v702_v25 = vmax.f32 %v318_v30, %v350_v14  ;;  %v408_v14 = vld [vmem:[%s14981_s0 + $0xbb8] sm:$0xff] }
 0x2de   :  { %v11492_v22 = vpack.c.b16 %v1274_v2, %v1273_v59  ;;  %v701_v37 = vmax.f32 %v317_v28, %v349_v32  ;;  %v407_v32 = vld [vmem:[%s14981_s0 + $0xbb0] sm:$0xff]  ;;  %v728_v2 = vmax.f32 %v376_v48, %v408_v14 }
 0x2df   :  { %15198 = vst [vmem:[#allocation105_spill] sm:$0xff] %v11462_v26  ;;  %8315 = vmatmul.msk.bf16.gmra.mxu2 %vm1380_vm1, %v11092_v39  ;;  %v880_v30 = vmax.f32 %v702_v25, %v704_v1 }
 0x2e0   :  { %15199 = vst [vmem:[#allocation106_spill] sm:$0xff] %v11492_v22  ;;  %8373 = vmatmul.msk.bf16.gmra.mxu3 %vm1380_vm1, %v11492_v22  ;;  %v879_v28 = vmax.f32 %v701_v37, %v703_v16 }
 0x2e1   :  { %v1008_v25 = vpack.c.bf16 %v880_v30, %v880_v30 }
 0x2e2   :  { %v2406_v35 = vpop.f32.mrf.mxu2  ;;  %v1007_v37 = vpack.c.bf16 %v879_v28, %v879_v28 }
 0x2e3   :  { %v2621_v57 = vadd.f32 %v2406_v35, %v11323_v11  ;;  %v1755_v56 = vpop.f32.mrf.mxu0  ;;  %v2087_v26 = vpop.f32.mrf.mxu1  ;;  %v373_v11 = vld [vmem:[%s14981_s0 + $0xaa0] sm:$0xff] }
 0x2e4   :  { %v11497_v46 = vadd.f32 %v2087_v26, %v1755_v56  ;;  %v11506_v54 = vpop.f32.mrf.mxu3  ;;  %v374_v26 = vld [vmem:[%s14981_s0 + $0xaa8] sm:$0xff]  ;;  %v725_v50 = vmax.f32 %v373_v11, %v405_v58  ;;  %v1263_v11 = vunpack.c.l.b16 %v1007_v37 }
 0x2e5   :  { %v11500_v39 = vadd.f32 %v11382_v10, %v2621_v57  ;;  %v375_v10 = vld [vmem:[%s14981_s0 + $0xab0] sm:$0xff]  ;;  %v726_v17 = vmax.f32 %v374_v26, %v406_v29  ;;  %v1264_v26 = vunpack.c.l.b16 %v1008_v25 }
 0x2e6   :  { %8216 = vmatmul.msk.bf16.gmra.mxu0 %vm1380_vm1, %v11202_v19  ;;  %8267 = vmatmul.msk.bf16.gmra.mxu1 %vm1380_vm1, %v11154_v49  ;;  %v727_v59 = vmax.f32 %v375_v10, %v407_v32 }
 0x2e7   :  { %15200 = vst [vmem:[#allocation107_spill] sm:$0xff] %v11500_v39  ;;  %v892_v39 = vmax.f32 %v726_v17, %v728_v2  ;;  %v11542_v58 = vpack.c.b16 %v1264_v26, %v1263_v11  ;;  %v409_v17 = vld [vmem:[%s14981_s0 + $0xbc0] sm:$0xff]  ;;  %v411_v2 = vld [vmem:[%s14981_s0 + $0xbd0] sm:$0xff] }
 0x2e8   :  { %v891_v56 = vmax.f32 %v725_v50, %v727_v59  ;;  %v380_v50 = vld [vmem:[%s14981_s0 + $0xad8] sm:$0xff]  ;;  %v410_v59 = vld [vmem:[%s14981_s0 + $0xbc8] sm:$0xff] }
 0x2e9   :  { %v1020_v6 = vpack.c.bf16 %v892_v39, %v892_v39  ;;  %15203 = vst [vmem:[#allocation110_spill] sm:$0xff] %v11542_v58 }
 0x2ea   :  { %v2408_v35 = vpop.f32.mrf.mxu2  ;;  %v1019_v44 = vpack.c.bf16 %v891_v56, %v891_v56 }
 0x2eb   :  { %v2622_v16 = vadd.f32 %v2408_v35, %v11359_v0  ;;  %v1757_v1 = vpop.f32.mrf.mxu0  ;;  %v2089_v57 = vpop.f32.mrf.mxu1  ;;  %v1276_v30 = vunpack.c.l.b16 %v1020_v6  ;;  %v412_v35 = vld [vmem:[%s14981_s0 + $0xbd8] sm:$0xff] }
 0x2ec   :  { %v11533_v34 = vadd.f32 %v2089_v57, %v1757_v1  ;;  %v2901_v10 = vpop.f32.mrf.mxu3  ;;  %v1275_v28 = vunpack.c.l.b16 %v1019_v44  ;;  %v377_v44 = vld [vmem:[%s14981_s0 + $0xac0] sm:$0xff]  ;;  %v732_v1 = vmax.f32 %v380_v50, %v412_v35 }
 0x2ed   :  { %v11536_v18 = vadd.f32 %v11414_v47, %v2622_v16  ;;  %v729_v37 = vmax.f32 %v377_v44, %v409_v17 }
 0x2ee   :  { %v11540_v0 = vpack.c.b16 %v1276_v30, %v1275_v28 }
 0x2ef   :  { %15201 = vst [vmem:[#allocation108_spill] sm:$0xff] %v11536_v18  ;;  %8316 = vmatmul.msk.bf16.gmra.mxu2 %vm1380_vm1, %v11154_v49 }
 0x2f0   :  { %15202 = vst [vmem:[#allocation109_spill] sm:$0xff] %v11540_v0  ;;  %8374 = vmatmul.msk.bf16.gmra.mxu3 %vm1380_vm1, %v11540_v0 }
 0x2f2   :  { %v2411_v48 = vpop.f32.mrf.mxu2 }
 0x2f3   :  { %v2623_v29 = vadd.f32 %v2411_v48, %v11373_v42  ;;  %v1760_v32 = vpop.f32.mrf.mxu0  ;;  %v2092_v47 = vpop.f32.mrf.mxu1  ;;  %v378_v42 = vld [vmem:[%s14981_s0 + $0xac8] sm:$0xff] }
 0x2f4   :  { %v11547_v39 = vadd.f32 %v2092_v47, %v1760_v32  ;;  %v2904_v6 = vpop.f32.mrf.mxu3  ;;  %v730_v25 = vmax.f32 %v378_v42, %v410_v59 }
 0x2f5   :  { %v11550_v14 = vadd.f32 %v11432_v12, %v2623_v29  ;;  %v379_v12 = vld [vmem:[%s14981_s0 + $0xad0] sm:$0xff] }
 0x2f6   :  { %8217 = vmatmul.msk.bf16.gmra.mxu0 %vm1380_vm1, %v11542_v58  ;;  %8268 = vmatmul.msk.bf16.gmra.mxu1 %vm1380_vm1, %v11202_v19  ;;  %v731_v16 = vmax.f32 %v379_v12, %v411_v2  ;;  %v894_v30 = vmax.f32 %v730_v25, %v732_v1 }
 0x2f7   :  { %15204 = vst [vmem:[#allocation111_spill] sm:$0xff] %v11550_v14 }
 0x2f8   :  { %v893_v28 = vmax.f32 %v729_v37, %v731_v16  ;;  %v1022_v47 = vpack.c.bf16 %v894_v30, %v894_v30 }
 0x2fa   :  { %v2413_v57 = vpop.f32.mrf.mxu2  ;;  %v1021_v32 = vpack.c.bf16 %v893_v28, %v893_v28  ;;  %v1278_v42 = vunpack.c.l.b16 %v1022_v47  ;;  %v420_v47 = vld [vmem:[%s14981_s0 + $0xc18] sm:$0xff] }
 0x2fb   :  { %v2624_v56 = vadd.f32 %v2413_v57, %v11409_v7  ;;  %v1762_v11 = vpop.f32.mrf.mxu0  ;;  %v2094_v26 = vpop.f32.mrf.mxu1 }
 0x2fc   :  { %v11581_v48 = vadd.f32 %v2094_v26, %v1762_v11  ;;  %v2906_v14 = vpop.f32.mrf.mxu3  ;;  %v1277_v44 = vunpack.c.l.b16 %v1021_v32  ;;  %v418_v32 = vld [vmem:[%s14981_s0 + $0xc08] sm:$0xff] }
 0x2fd   :  { %v11584_v29 = vadd.f32 %v11479_v4, %v2624_v56 }
 0x2fe   :  { %v11588_v12 = vpack.c.b16 %v1278_v42, %v1277_v44  ;;  %v449_v44 = vld [vmem:[%s14981_s0 + $0xd00] sm:$0xff]  ;;  %v450_v42 = vld [vmem:[%s14981_s0 + $0xd08] sm:$0xff] }
 0x2ff   :  { %15205 = vst [vmem:[#allocation112_spill] sm:$0xff] %v11584_v29  ;;  %8317 = vmatmul.msk.bf16.gmra.mxu2 %vm1380_vm1, %v11202_v19 }
 0x300   :  { %15206 = vst [vmem:[#allocation113_spill] sm:$0xff] %v11588_v12  ;;  %8375 = vmatmul.msk.bf16.gmra.mxu3 %vm1380_vm1, %v11588_v12 }
 0x302   :  { %v2416_v7 = vpop.f32.mrf.mxu2 }
 0x303   :  { %v2625_v50 = vadd.f32 %v2416_v7, %v11423_v13  ;;  %v1765_v17 = vpop.f32.mrf.mxu0  ;;  %v2097_v59 = vpop.f32.mrf.mxu1  ;;  %v451_v7 = vld [vmem:[%s14981_s0 + $0xd10] sm:$0xff] }
 0x304   :  { %v11593_v4 = vadd.f32 %v2097_v59, %v1765_v17  ;;  %v2909_v35 = vpop.f32.mrf.mxu3  ;;  %v738_v59 = vmax.f32 %v418_v32, %v450_v42 }
 0x305   :  { %v11596_v2 = vadd.f32 %v11506_v54, %v2625_v50  ;;  %v452_v50 = vld [vmem:[%s14981_s0 + $0xd18] sm:$0xff] }
 0x306   :  { %8218 = vmatmul.msk.bf16.gmra.mxu0 %vm1380_vm1, %v11269_v5  ;;  %2136 = vmatmul.bf16.gmra.mxu1 %v15114_v21 }
 0x307   :  { %15207 = vst [vmem:[#allocation114_spill] sm:$0xff] %v11596_v2 }
 0x30a   :  { %v2418_v37 = vpop.f32.mrf.mxu2 }
 0x30b   :  { %v2626_v25 = vadd.f32 %v2418_v37, %v11459_v33  ;;  %v1767_v13 = vpop.f32.mrf.mxu0  ;;  %v2099_v16 = vpop.f32.mrf.mxu1 }
 0x30c   :  { %v11602_v1 = vadd.f32 %v2099_v16, %v1767_v13  ;;  %v11606_v56 = vpop.f32.mrf.mxu3 }
 0x30d   :  { %v11604_v57 = vadd.f32 %v2901_v10, %v2626_v25  ;;  %v740_v25 = vmax.f32 %v420_v47, %v452_v50  ;;  %v424_v50 = vld [vmem:[%s14981_s0 + $0xc38] sm:$0xff] }
 0x30f   :  { %15208 = vst [vmem:[#allocation115_spill] sm:$0xff] %v11604_v57  ;;  %8318 = vmatmul.msk.bf16.gmra.mxu2 %vm1380_vm1, %v11542_v58 }
 0x310   :  { %2953 = vmatmul.bf16.gmra.mxu3 %v15114_v21 }
 0x312   :  { %v2421_v54 = vpop.f32.mrf.mxu2 }
 0x313   :  { %v2627_v11 = vadd.f32 %v2421_v54, %v11497_v46  ;;  %v1770_v26 = vpop.f32.mrf.mxu0  ;;  %v2102_v28 = vpop.f32.mrf.mxu1  ;;  %v417_v46 = vld [vmem:[%s14981_s0 + $0xc00] sm:$0xff] }
 0x314   :  { %v11612_v30 = vadd.f32 %v2102_v28, %v1770_v26  ;;  %v11620_v10 = vpop.f32.mrf.mxu3  ;;  %v737_v17 = vmax.f32 %v417_v46, %v449_v44  ;;  %v898_v28 = vmax.f32 %v738_v59, %v740_v25  ;;  %v454_v59 = vld [vmem:[%s14981_s0 + $0xd28] sm:$0xff]  ;;  %v456_v25 = vld [vmem:[%s14981_s0 + $0xd38] sm:$0xff] }
 0x315   :  { %v11614_v33 = vadd.f32 %v2904_v6, %v2627_v11  ;;  %v419_v6 = vld [vmem:[%s14981_s0 + $0xc10] sm:$0xff] }
 0x316   :  { %8219 = vmatmul.msk.bf16.gmra.mxu0 %vm1380_vm1, %v11318_v31  ;;  %8269 = vmatmul.msk.bf16.gmra.mxu1 %vm1380_vm1, %v11269_v5  ;;  %v739_v37 = vmax.f32 %v419_v6, %v451_v7  ;;  %v1026_v29 = vpack.c.bf16 %v898_v28, %v898_v28 }
 0x317   :  { %15209 = vst [vmem:[#allocation116_spill] sm:$0xff] %v11614_v33 }
 0x318   :  { %v897_v26 = vmax.f32 %v737_v17, %v739_v37  ;;  %v1282_v32 = vunpack.c.l.b16 %v1026_v29  ;;  %v453_v17 = vld [vmem:[%s14981_s0 + $0xd20] sm:$0xff]  ;;  %v455_v37 = vld [vmem:[%s14981_s0 + $0xd30] sm:$0xff] }
 0x31a   :  { %v2423_v13 = vpop.f32.mrf.mxu2  ;;  %v1025_v2 = vpack.c.bf16 %v897_v26, %v897_v26 }
 0x31b   :  { %v2628_v16 = vadd.f32 %v2423_v13, %v11533_v34  ;;  %v1772_v54 = vpop.f32.mrf.mxu0  ;;  %v2104_v11 = vpop.f32.mrf.mxu1 }
 0x31c   :  { %v11647_v33 = vadd.f32 %v2104_v11, %v1772_v54  ;;  %v11651_v18 = vpop.f32.mrf.mxu3  ;;  %v1281_v46 = vunpack.c.l.b16 %v1025_v2  ;;  %v422_v2 = vld [vmem:[%s14981_s0 + $0xc28] sm:$0xff]  ;;  %v744_v11 = vmax.f32 %v424_v50, %v456_v25  ;;  %v428_v25 = vld [vmem:[%s14981_s0 + $0xc58] sm:$0xff] }
 0x31d   :  { %v11649_v57 = vadd.f32 %v2906_v14, %v2628_v16  ;;  %v742_v16 = vmax.f32 %v422_v2, %v454_v59 }
 0x31e   :  { %v11654_v6 = vpack.c.b16 %v1282_v32, %v1281_v46 }
 0x31f   :  { %15210 = vst [vmem:[#allocation117_spill] sm:$0xff] %v11649_v57  ;;  %2465 = vmatmul.bf16.gmra.mxu2 %v15114_v21 }
 0x320   :  { %8376 = vmatmul.msk.bf16.gmra.mxu3 %vm1380_vm1, %v11654_v6 }
 0x322   :  { %v2426_v47 = vpop.f32.mrf.mxu2 }
 0x323   :  { %v2629_v34 = vadd.f32 %v2426_v47, %v11547_v39  ;;  %v1775_v44 = vpop.f32.mrf.mxu0  ;;  %v2107_v42 = vpop.f32.mrf.mxu1  ;;  %v421_v39 = vld [vmem:[%s14981_s0 + $0xc20] sm:$0xff] }
 0x324   :  { %v11659_v14 = vadd.f32 %v2107_v42, %v1775_v44  ;;  %v11667_v29 = vpop.f32.mrf.mxu3  ;;  %v741_v13 = vmax.f32 %v421_v39, %v453_v17 }
 0x325   :  { %v11661_v7 = vadd.f32 %v2909_v35, %v2629_v34  ;;  %v423_v35 = vld [vmem:[%s14981_s0 + $0xc30] sm:$0xff]  ;;  %v900_v34 = vmax.f32 %v742_v16, %v744_v11  ;;  %v458_v16 = vld [vmem:[%s14981_s0 + $0xd48] sm:$0xff]  ;;  %v460_v11 = vld [vmem:[%s14981_s0 + $0xd58] sm:$0xff] }
 0x326   :  { %8220 = vmatmul.msk.bf16.gmra.mxu0 %vm1380_vm1, %v11368_v27  ;;  %8270 = vmatmul.msk.bf16.gmra.mxu1 %vm1380_vm1, %v11318_v31  ;;  %v743_v54 = vmax.f32 %v423_v35, %v455_v37 }
 0x327   :  { %15211 = vst [vmem:[#allocation118_spill] sm:$0xff] %v11661_v7  ;;  %v1028_v57 = vpack.c.bf16 %v900_v34, %v900_v34 }
 0x328   :  { %v899_v47 = vmax.f32 %v741_v13, %v743_v54  ;;  %v457_v13 = vld [vmem:[%s14981_s0 + $0xd40] sm:$0xff]  ;;  %v459_v54 = vld [vmem:[%s14981_s0 + $0xd50] sm:$0xff] }
 0x329   :  { %v1284_v2 = vunpack.c.l.b16 %v1028_v57 }
 0x32a   :  { %v2428_v26 = vpop.f32.mrf.mxu2  ;;  %v1027_v7 = vpack.c.bf16 %v899_v47, %v899_v47 }
 0x32b   :  { %v2630_v28 = vadd.f32 %v2428_v26, %v11581_v48  ;;  %v1777_v46 = vpop.f32.mrf.mxu0  ;;  %v2109_v32 = vpop.f32.mrf.mxu1 }
 0x32c   :  { %v11694_v44 = vadd.f32 %v2109_v32, %v1777_v46  ;;  %v11699_v5 = vpop.f32.mrf.mxu3  ;;  %v1283_v39 = vunpack.c.l.b16 %v1027_v7  ;;  %v426_v7 = vld [vmem:[%s14981_s0 + $0xc48] sm:$0xff]  ;;  %v748_v32 = vmax.f32 %v428_v25, %v460_v11  ;;  %v432_v11 = vld [vmem:[%s14981_s0 + $0xc78] sm:$0xff] }
 0x32d   :  { %v11697_v42 = vadd.f32 %v11606_v56, %v2630_v28  ;;  %v746_v28 = vmax.f32 %v426_v7, %v458_v16 }
 0x32e   :  { %v11703_v35 = vpack.c.b16 %v1284_v2, %v1283_v39 }
 0x32f   :  { %15212 = vst [vmem:[#allocation119_spill] sm:$0xff] %v11697_v42  ;;  %8319 = vmatmul.msk.bf16.gmra.mxu2 %vm1380_vm1, %v11318_v31 }
 0x330   :  { %15213 = vst [vmem:[#allocation120_spill] sm:$0xff] %v11703_v35  ;;  %8377 = vmatmul.msk.bf16.gmra.mxu3 %vm1380_vm1, %v11703_v35 }
 0x332   :  { %v2431_v48 = vpop.f32.mrf.mxu2 }
 0x333   :  { %v2631_v50 = vadd.f32 %v2431_v48, %v11593_v4  ;;  %v1780_v17 = vpop.f32.mrf.mxu0  ;;  %v2112_v59 = vpop.f32.mrf.mxu1  ;;  %v425_v4 = vld [vmem:[%s14981_s0 + $0xc40] sm:$0xff] }
 0x334   :  { %v11708_v56 = vadd.f32 %v2112_v59, %v1780_v17  ;;  %v11717_v57 = vpop.f32.mrf.mxu3  ;;  %v745_v26 = vmax.f32 %v425_v4, %v457_v13 }
 0x335   :  { %v11711_v37 = vadd.f32 %v11620_v10, %v2631_v50  ;;  %v427_v10 = vld [vmem:[%s14981_s0 + $0xc50] sm:$0xff]  ;;  %v902_v50 = vmax.f32 %v746_v28, %v748_v32  ;;  %v462_v28 = vld [vmem:[%s14981_s0 + $0xd68] sm:$0xff]  ;;  %v464_v32 = vld [vmem:[%s14981_s0 + $0xd78] sm:$0xff] }
 0x336   :  { %8221 = vmatmul.msk.bf16.gmra.mxu0 %vm1380_vm1, %v11418_v55  ;;  %8271 = vmatmul.msk.bf16.gmra.mxu1 %vm1380_vm1, %v11368_v27  ;;  %v747_v46 = vmax.f32 %v427_v10, %v459_v54 }
 0x337   :  { %15214 = vst [vmem:[#allocation121_spill] sm:$0xff] %v11711_v37  ;;  %v1030_v42 = vpack.c.bf16 %v902_v50, %v902_v50 }
 0x338   :  { %v901_v48 = vmax.f32 %v745_v26, %v747_v46  ;;  %v461_v26 = vld [vmem:[%s14981_s0 + $0xd60] sm:$0xff]  ;;  %v463_v46 = vld [vmem:[%s14981_s0 + $0xd70] sm:$0xff] }
 0x339   :  { %v1286_v7 = vunpack.c.l.b16 %v1030_v42 }
 0x33a   :  { %v2433_v47 = vpop.f32.mrf.mxu2  ;;  %v1029_v37 = vpack.c.bf16 %v901_v48, %v901_v48 }
 0x33b   :  { %v2632_v34 = vadd.f32 %v2433_v47, %v11602_v1  ;;  %v1782_v39 = vpop.f32.mrf.mxu0  ;;  %v2114_v2 = vpop.f32.mrf.mxu1 }
 0x33c   :  { %v11744_v17 = vadd.f32 %v2114_v2, %v1782_v39  ;;  %v11749_v31 = vpop.f32.mrf.mxu3  ;;  %v1285_v4 = vunpack.c.l.b16 %v1029_v37  ;;  %v430_v37 = vld [vmem:[%s14981_s0 + $0xc68] sm:$0xff]  ;;  %v752_v2 = vmax.f32 %v432_v11, %v464_v32  ;;  %v436_v32 = vld [vmem:[%s14981_s0 + $0xc98] sm:$0xff] }
 0x33d   :  { %v11747_v59 = vadd.f32 %v11651_v18, %v2632_v34  ;;  %v750_v34 = vmax.f32 %v430_v37, %v462_v28 }
 0x33e   :  { %v11753_v10 = vpack.c.b16 %v1286_v7, %v1285_v4 }
 0x33f   :  { %15215 = vst [vmem:[#allocation122_spill] sm:$0xff] %v11747_v59  ;;  %8320 = vmatmul.msk.bf16.gmra.mxu2 %vm1380_vm1, %v11368_v27 }
 0x340   :  { %15216 = vst [vmem:[#allocation123_spill] sm:$0xff] %v11753_v10  ;;  %8378 = vmatmul.msk.bf16.gmra.mxu3 %vm1380_vm1, %v11753_v10 }
 0x342   :  { %v2436_v1 = vpop.f32.mrf.mxu2 }
 0x343   :  { %v2633_v25 = vadd.f32 %v2436_v1, %v11612_v30  ;;  %v1785_v13 = vpop.f32.mrf.mxu0  ;;  %v2117_v16 = vpop.f32.mrf.mxu1  ;;  %v429_v30 = vld [vmem:[%s14981_s0 + $0xc60] sm:$0xff] }
 0x344   :  { %v11758_v18 = vadd.f32 %v2117_v16, %v1785_v13  ;;  %v11767_v42 = vpop.f32.mrf.mxu3  ;;  %v749_v47 = vmax.f32 %v429_v30, %v461_v26 }
 0x345   :  { %v11761_v54 = vadd.f32 %v11667_v29, %v2633_v25  ;;  %v431_v29 = vld [vmem:[%s14981_s0 + $0xc70] sm:$0xff]  ;;  %v904_v25 = vmax.f32 %v750_v34, %v752_v2  ;;  %v466_v34 = vld [vmem:[%s14981_s0 + $0xd88] sm:$0xff]  ;;  %v468_v2 = vld [vmem:[%s14981_s0 + $0xd98] sm:$0xff] }
 0x346   :  { %8222 = vmatmul.msk.bf16.gmra.mxu0 %vm1380_vm1, %v11492_v22  ;;  %8272 = vmatmul.msk.bf16.gmra.mxu1 %vm1380_vm1, %v11418_v55  ;;  %v751_v39 = vmax.f32 %v431_v29, %v463_v46 }
 0x347   :  { %15217 = vst [vmem:[#allocation124_spill] sm:$0xff] %v11761_v54  ;;  %v1032_v59 = vpack.c.bf16 %v904_v25, %v904_v25 }
 0x348   :  { %v903_v1 = vmax.f32 %v749_v47, %v751_v39  ;;  %v465_v47 = vld [vmem:[%s14981_s0 + $0xd80] sm:$0xff]  ;;  %v467_v39 = vld [vmem:[%s14981_s0 + $0xd90] sm:$0xff] }
 0x349   :  { %v1288_v37 = vunpack.c.l.b16 %v1032_v59 }
 0x34a   :  { %v2438_v48 = vpop.f32.mrf.mxu2  ;;  %v1031_v54 = vpack.c.bf16 %v903_v1, %v903_v1 }
 0x34b   :  { %v2634_v50 = vadd.f32 %v2438_v48, %v11647_v33  ;;  %v1787_v4 = vpop.f32.mrf.mxu0  ;;  %v2119_v7 = vpop.f32.mrf.mxu1 }
 0x34c   :  { %v11794_v13 = vadd.f32 %v2119_v7, %v1787_v4  ;;  %v11799_v27 = vpop.f32.mrf.mxu3  ;;  %v1287_v30 = vunpack.c.l.b16 %v1031_v54  ;;  %v434_v54 = vld [vmem:[%s14981_s0 + $0xc88] sm:$0xff]  ;;  %v756_v7 = vmax.f32 %v436_v32, %v468_v2  ;;  %v384_v32 = vld [vmem:[%s14981_s0 + $0xaf8] sm:$0xff] }
 0x34d   :  { %v11797_v16 = vadd.f32 %v11699_v5, %v2634_v50  ;;  %v754_v50 = vmax.f32 %v434_v54, %v466_v34  ;;  %v414_v34 = vld [vmem:[%s14981_s0 + $0xbe8] sm:$0xff]  ;;  %v416_v2 = vld [vmem:[%s14981_s0 + $0xbf8] sm:$0xff] }
 0x34e   :  { %v11803_v29 = vpack.c.b16 %v1288_v37, %v1287_v30 }
 0x34f   :  { %15218 = vst [vmem:[#allocation125_spill] sm:$0xff] %v11797_v16  ;;  %8321 = vmatmul.msk.bf16.gmra.mxu2 %vm1380_vm1, %v11418_v55 }
 0x350   :  { %15219 = vst [vmem:[#allocation126_spill] sm:$0xff] %v11803_v29  ;;  %8379 = vmatmul.msk.bf16.gmra.mxu3 %vm1380_vm1, %v11803_v29 }
 0x352   :  { %v2441_v33 = vpop.f32.mrf.mxu2 }
 0x353   :  { %v2635_v11 = vadd.f32 %v2441_v33, %v11659_v14  ;;  %v1790_v26 = vpop.f32.mrf.mxu0  ;;  %v2122_v28 = vpop.f32.mrf.mxu1  ;;  %v433_v14 = vld [vmem:[%s14981_s0 + $0xc80] sm:$0xff] }
 0x354   :  { %v11808_v5 = vadd.f32 %v2122_v28, %v1790_v26  ;;  %v11817_v59 = vpop.f32.mrf.mxu3  ;;  %v753_v48 = vmax.f32 %v433_v14, %v465_v47  ;;  %v382_v14 = vld [vmem:[%s14981_s0 + $0xae8] sm:$0xff] }
 0x355   :  { %v11811_v46 = vadd.f32 %v11717_v57, %v2635_v11  ;;  %v435_v57 = vld [vmem:[%s14981_s0 + $0xc90] sm:$0xff]  ;;  %v906_v11 = vmax.f32 %v754_v50, %v756_v7 }
 0x356   :  { %8223 = vmatmul.msk.bf16.gmra.mxu0 %vm1380_vm1, %v11540_v0  ;;  %8273 = vmatmul.msk.bf16.gmra.mxu1 %vm1380_vm1, %v11492_v22  ;;  %v755_v4 = vmax.f32 %v435_v57, %v467_v39  ;;  %v415_v39 = vld [vmem:[%s14981_s0 + $0xbf0] sm:$0xff] }
 0x357   :  { %15220 = vst [vmem:[#allocation127_spill] sm:$0xff] %v11811_v46  ;;  %v381_v46 = vld [vmem:[%s14981_s0 + $0xae0] sm:$0xff]  ;;  %v1034_v57 = vpack.c.bf16 %v906_v11, %v906_v11 }
 0x358   :  { %v905_v33 = vmax.f32 %v753_v48, %v755_v4 }
 0x359   :  { %v1290_v50 = vunpack.c.l.b16 %v1034_v57  ;;  %v440_v57 = vld [vmem:[%s14981_s0 + $0xcb8] sm:$0xff] }
 0x35a   :  { %v2443_v1 = vpop.f32.mrf.mxu2  ;;  %v1033_v54 = vpack.c.bf16 %v905_v33, %v905_v33 }
 0x35b   :  { %v2636_v25 = vadd.f32 %v2443_v1, %v11694_v44  ;;  %v1792_v30 = vpop.f32.mrf.mxu0  ;;  %v2124_v37 = vpop.f32.mrf.mxu1  ;;  %v383_v44 = vld [vmem:[%s14981_s0 + $0xaf0] sm:$0xff] }
 0x35c   :  { %v11844_v26 = vadd.f32 %v2124_v37, %v1792_v30  ;;  %v11864_v47 = vpop.f32.mrf.mxu3  ;;  %v1289_v48 = vunpack.c.l.b16 %v1033_v54  ;;  %v735_v30 = vmax.f32 %v383_v44, %v415_v39  ;;  %v736_v37 = vmax.f32 %v384_v32, %v416_v2  ;;  %v469_v44 = vld [vmem:[%s14981_s0 + $0xda0] sm:$0xff]  ;;  %v470_v32 = vld [vmem:[%s14981_s0 + $0xda8] sm:$0xff] }
 0x35d   :  { %v11847_v28 = vadd.f32 %v11749_v31, %v2636_v25  ;;  %v413_v31 = vld [vmem:[%s14981_s0 + $0xbe0] sm:$0xff]  ;;  %v734_v25 = vmax.f32 %v382_v14, %v414_v34  ;;  %v472_v34 = vld [vmem:[%s14981_s0 + $0xdb8] sm:$0xff] }
 0x35e   :  { %v11877_v4 = vpack.c.b16 %v1290_v50, %v1289_v48  ;;  %v733_v1 = vmax.f32 %v381_v46, %v413_v31  ;;  %v471_v31 = vld [vmem:[%s14981_s0 + $0xdb0] sm:$0xff]  ;;  %v760_v50 = vmax.f32 %v440_v57, %v472_v34 }
 0x35f   :  { %15221 = vst [vmem:[#allocation128_spill] sm:$0xff] %v11847_v28  ;;  %8322 = vmatmul.msk.bf16.gmra.mxu2 %vm1380_vm1, %v11492_v22  ;;  %v896_v14 = vmax.f32 %v734_v25, %v736_v37 }
 0x360   :  { %15222 = vst [vmem:[#allocation129_spill] sm:$0xff] %v11877_v4  ;;  %8380 = vmatmul.msk.bf16.gmra.mxu3 %vm1380_vm1, %v11877_v4  ;;  %v895_v46 = vmax.f32 %v733_v1, %v735_v30 }
 0x361   :  { %v1024_v25 = vpack.c.bf16 %v896_v14, %v896_v14 }
 0x362   :  { %v2446_v7 = vpop.f32.mrf.mxu2  ;;  %v1023_v1 = vpack.c.bf16 %v895_v46, %v895_v46 }
 0x363   :  { %v2637_v33 = vadd.f32 %v2446_v7, %v11708_v56  ;;  %v1795_v11 = vpop.f32.mrf.mxu0  ;;  %v2127_v28 = vpop.f32.mrf.mxu1  ;;  %v437_v56 = vld [vmem:[%s14981_s0 + $0xca0] sm:$0xff] }
 0x364   :  { %v11882_v16 = vadd.f32 %v2127_v28, %v1795_v11  ;;  %v2939_v54 = vpop.f32.mrf.mxu3  ;;  %v438_v28 = vld [vmem:[%s14981_s0 + $0xca8] sm:$0xff]  ;;  %v757_v39 = vmax.f32 %v437_v56, %v469_v44  ;;  %v1279_v56 = vunpack.c.l.b16 %v1023_v1 }
 0x365   :  { %v11885_v22 = vadd.f32 %v11767_v42, %v2637_v33  ;;  %v439_v42 = vld [vmem:[%s14981_s0 + $0xcb0] sm:$0xff]  ;;  %v758_v2 = vmax.f32 %v438_v28, %v470_v32  ;;  %v1280_v28 = vunpack.c.l.b16 %v1024_v25 }
 0x366   :  { %8224 = vmatmul.msk.bf16.gmra.mxu0 %vm1380_vm1, %v11588_v12  ;;  %8274 = vmatmul.msk.bf16.gmra.mxu1 %vm1380_vm1, %v11540_v0  ;;  %v759_v48 = vmax.f32 %v439_v42, %v471_v31 }
 0x367   :  { %15223 = vst [vmem:[#allocation130_spill] sm:$0xff] %v11885_v22  ;;  %v908_v22 = vmax.f32 %v758_v2, %v760_v50  ;;  %v11925_v44 = vpack.c.b16 %v1280_v28, %v1279_v56 }
 0x368   :  { %v907_v11 = vmax.f32 %v757_v39, %v759_v48 }
 0x369   :  { %v1036_v49 = vpack.c.bf16 %v908_v22, %v908_v22  ;;  %15226 = vst [vmem:[#allocation133_spill] sm:$0xff] %v11925_v44 }
 0x36a   :  { %v2448_v7 = vpop.f32.mrf.mxu2  ;;  %v1035_v19 = vpack.c.bf16 %v907_v11, %v907_v11 }
 0x36b   :  { %v2638_v30 = vadd.f32 %v2448_v7, %v11744_v17  ;;  %v1797_v37 = vpop.f32.mrf.mxu0  ;;  %v2129_v33 = vpop.f32.mrf.mxu1  ;;  %v1292_v14 = vunpack.c.l.b16 %v1036_v49 }
 0x36c   :  { %v11916_v55 = vadd.f32 %v2129_v33, %v1797_v37  ;;  %v2941_v42 = vpop.f32.mrf.mxu3  ;;  %v1291_v46 = vunpack.c.l.b16 %v1035_v19 }
 0x36d   :  { %v11919_v58 = vadd.f32 %v11799_v27, %v2638_v30 }
 0x36e   :  { %v11923_v17 = vpack.c.b16 %v1292_v14, %v1291_v46 }
 0x36f   :  { %15224 = vst [vmem:[#allocation131_spill] sm:$0xff] %v11919_v58  ;;  %8323 = vmatmul.msk.bf16.gmra.mxu2 %vm1380_vm1, %v11540_v0 }
 0x370   :  { %15225 = vst [vmem:[#allocation132_spill] sm:$0xff] %v11923_v17  ;;  %8381 = vmatmul.msk.bf16.gmra.mxu3 %vm1380_vm1, %v11923_v17 }
 0x372   :  { %v2451_v57 = vpop.f32.mrf.mxu2 }
 0x373   :  { %v2639_v32 = vadd.f32 %v2451_v57, %v11758_v18  ;;  %v1800_v31 = vpop.f32.mrf.mxu0  ;;  %v2132_v27 = vpop.f32.mrf.mxu1 }
 0x374   :  { %v11930_v22 = vadd.f32 %v2132_v27, %v1800_v31  ;;  %v2944_v49 = vpop.f32.mrf.mxu3 }
 0x375   :  { %v11933_v34 = vadd.f32 %v11817_v59, %v2639_v32 }
 0x376   :  { %8225 = vmatmul.msk.bf16.gmra.mxu0 %vm1380_vm1, %v11925_v44  ;;  %8275 = vmatmul.msk.bf16.gmra.mxu1 %vm1380_vm1, %v11588_v12 }
 0x377   :  { %15227 = vst [vmem:[#allocation134_spill] sm:$0xff] %v11933_v34 }
 0x37a   :  { %v2453_v19 = vpop.f32.mrf.mxu2 }
 0x37b   :  { %v2640_v18 = vadd.f32 %v2453_v19, %v11794_v13  ;;  %v1802_v39 = vpop.f32.mrf.mxu0  ;;  %v2134_v2 = vpop.f32.mrf.mxu1  ;;  %v482_v19 = vld [vmem:[%s14981_s0 + $0xe08] sm:$0xff] }
 0x37c   :  { %v11940_v48 = vadd.f32 %v2134_v2, %v1802_v39  ;;  %v2946_v7 = vpop.f32.mrf.mxu3  ;;  %v513_v39 = vld [vmem:[%s14981_s0 + $0xf00] sm:$0xff]  ;;  %v514_v2 = vld [vmem:[%s14981_s0 + $0xf08] sm:$0xff] }
 0x37d   :  { %v11943_v50 = vadd.f32 %v11864_v47, %v2640_v18  ;;  %v484_v18 = vld [vmem:[%s14981_s0 + $0xe18] sm:$0xff] }
 0x37f   :  { %15228 = vst [vmem:[#allocation135_spill] sm:$0xff] %v11943_v50  ;;  %8324 = vmatmul.msk.bf16.gmra.mxu2 %vm1380_vm1, %v11588_v12 }
 0x380   :  { %8382 = vmatmul.msk.bf16.gmra.mxu3 %vm1380_vm1, %v9443_v41 }
 0x382   :  { %v2456_v59 = vpop.f32.mrf.mxu2 }
 0x383   :  { %v2641_v1 = vadd.f32 %v2456_v59, %v11808_v5  ;;  %v1805_v25 = vpop.f32.mrf.mxu0  ;;  %v2137_v30 = vpop.f32.mrf.mxu1  ;;  %v515_v59 = vld [vmem:[%s14981_s0 + $0xf10] sm:$0xff] }
 0x384   :  { %v11950_v13 = vadd.f32 %v2137_v30, %v1805_v25  ;;  %v2949_v47 = vpop.f32.mrf.mxu3  ;;  %v770_v30 = vmax.f32 %v482_v19, %v514_v2 }
 0x385   :  { %v11952_v37 = vadd.f32 %v2939_v54, %v2641_v1  ;;  %v516_v1 = vld [vmem:[%s14981_s0 + $0xf18] sm:$0xff] }
 0x386   :  { %8226 = vmatmul.msk.bf16.gmra.mxu0 %vm1380_vm1, %v11654_v6  ;;  %2176 = vmatmul.bf16.gmra.mxu1 %v15114_v21 }
 0x387   :  { %15229 = vst [vmem:[#allocation136_spill] sm:$0xff] %v11952_v37 }
 0x38a   :  { %v2458_v33 = vpop.f32.mrf.mxu2 }
 0x38b   :  { %v2642_v11 = vadd.f32 %v2458_v33, %v11844_v26  ;;  %v1807_v56 = vpop.f32.mrf.mxu0  ;;  %v2139_v5 = vpop.f32.mrf.mxu1 }
 0x38c   :  { %v11958_v28 = vadd.f32 %v2139_v5, %v1807_v56  ;;  %v11962_v14 = vpop.f32.mrf.mxu3 }
 0x38d   :  { %v11960_v46 = vadd.f32 %v2941_v42, %v2642_v11  ;;  %v772_v11 = vmax.f32 %v484_v18, %v516_v1  ;;  %v488_v1 = vld [vmem:[%s14981_s0 + $0xe38] sm:$0xff] }
 0x38f   :  { %15230 = vst [vmem:[#allocation137_spill] sm:$0xff] %v11960_v46  ;;  %8325 = vmatmul.msk.bf16.gmra.mxu2 %vm1380_vm1, %v11925_v44 }
 0x390   :  { %2993 = vmatmul.bf16.gmra.mxu3 %v15114_v21 }
 0x392   :  { %v2461_v54 = vpop.f32.mrf.mxu2 }
 0x393   :  { %v2643_v57 = vadd.f32 %v2461_v54, %v11882_v16  ;;  %v1810_v32 = vpop.f32.mrf.mxu0  ;;  %v2142_v31 = vpop.f32.mrf.mxu1  ;;  %v481_v16 = vld [vmem:[%s14981_s0 + $0xe00] sm:$0xff] }
 0x394   :  { %v11968_v27 = vadd.f32 %v2142_v31, %v1810_v32  ;;  %v11976_v42 = vpop.f32.mrf.mxu3  ;;  %v769_v25 = vmax.f32 %v481_v16, %v513_v39  ;;  %v914_v31 = vmax.f32 %v770_v30, %v772_v11  ;;  %v518_v30 = vld [vmem:[%s14981_s0 + $0xf28] sm:$0xff]  ;;  %v520_v11 = vld [vmem:[%s14981_s0 + $0xf38] sm:$0xff] }
 0x395   :  { %v11970_v26 = vadd.f32 %v2944_v49, %v2643_v57  ;;  %v483_v49 = vld [vmem:[%s14981_s0 + $0xe10] sm:$0xff] }
 0x396   :  { %8227 = vmatmul.msk.bf16.gmra.mxu0 %vm1380_vm1, %v11703_v35  ;;  %8276 = vmatmul.msk.bf16.gmra.mxu1 %vm1380_vm1, %v11654_v6  ;;  %v771_v33 = vmax.f32 %v483_v49, %v515_v59  ;;  %v1042_v50 = vpack.c.bf16 %v914_v31, %v914_v31 }
 0x397   :  { %15231 = vst [vmem:[#allocation138_spill] sm:$0xff] %v11970_v26 }
 0x398   :  { %v913_v32 = vmax.f32 %v769_v25, %v771_v33  ;;  %v1298_v19 = vunpack.c.l.b16 %v1042_v50  ;;  %v517_v25 = vld [vmem:[%s14981_s0 + $0xf20] sm:$0xff]  ;;  %v519_v33 = vld [vmem:[%s14981_s0 + $0xf30] sm:$0xff] }
 0x39a   :  { %v2463_v56 = vpop.f32.mrf.mxu2  ;;  %v1041_v37 = vpack.c.bf16 %v913_v32, %v913_v32 }
 0x39b   :  { %v2644_v5 = vadd.f32 %v2463_v56, %v11916_v55  ;;  %v1812_v54 = vpop.f32.mrf.mxu0  ;;  %v2144_v57 = vpop.f32.mrf.mxu1 }
 0x39c   :  { %v12003_v26 = vadd.f32 %v2144_v57, %v1812_v54  ;;  %v12007_v34 = vpop.f32.mrf.mxu3  ;;  %v1297_v16 = vunpack.c.l.b16 %v1041_v37  ;;  %v486_v37 = vld [vmem:[%s14981_s0 + $0xe28] sm:$0xff]  ;;  %v776_v57 = vmax.f32 %v488_v1, %v520_v11  ;;  %v492_v11 = vld [vmem:[%s14981_s0 + $0xe58] sm:$0xff] }
 0x39d   :  { %v12005_v46 = vadd.f32 %v2946_v7, %v2644_v5  ;;  %v774_v5 = vmax.f32 %v486_v37, %v518_v30 }
 0x39e   :  { %v12010_v49 = vpack.c.b16 %v1298_v19, %v1297_v16 }
 0x39f   :  { %15232 = vst [vmem:[#allocation139_spill] sm:$0xff] %v12005_v46  ;;  %2505 = vmatmul.bf16.gmra.mxu2 %v15114_v21 }
 0x3a0   :  { %8383 = vmatmul.msk.bf16.gmra.mxu3 %vm1380_vm1, %v12010_v49 }
 0x3a2   :  { %v2466_v18 = vpop.f32.mrf.mxu2 }
 0x3a3   :  { %v2645_v55 = vadd.f32 %v2466_v18, %v11930_v22  ;;  %v1815_v39 = vpop.f32.mrf.mxu0  ;;  %v2147_v2 = vpop.f32.mrf.mxu1  ;;  %v485_v22 = vld [vmem:[%s14981_s0 + $0xe20] sm:$0xff] }
 0x3a4   :  { %v12015_v7 = vadd.f32 %v2147_v2, %v1815_v39  ;;  %v12023_v50 = vpop.f32.mrf.mxu3  ;;  %v773_v56 = vmax.f32 %v485_v22, %v517_v25 }
 0x3a5   :  { %v12017_v59 = vadd.f32 %v2949_v47, %v2645_v55  ;;  %v487_v47 = vld [vmem:[%s14981_s0 + $0xe30] sm:$0xff]  ;;  %v916_v55 = vmax.f32 %v774_v5, %v776_v57  ;;  %v522_v5 = vld [vmem:[%s14981_s0 + $0xf48] sm:$0xff]  ;;  %v524_v57 = vld [vmem:[%s14981_s0 + $0xf58] sm:$0xff] }
 0x3a6   :  { %8228 = vmatmul.msk.bf16.gmra.mxu0 %vm1380_vm1, %v11753_v10  ;;  %8277 = vmatmul.msk.bf16.gmra.mxu1 %vm1380_vm1, %v11703_v35  ;;  %v775_v54 = vmax.f32 %v487_v47, %v519_v33 }
 0x3a7   :  { %15233 = vst [vmem:[#allocation140_spill] sm:$0xff] %v12017_v59  ;;  %v1044_v46 = vpack.c.bf16 %v916_v55, %v916_v55 }
 0x3a8   :  { %v915_v18 = vmax.f32 %v773_v56, %v775_v54  ;;  %v521_v56 = vld [vmem:[%s14981_s0 + $0xf40] sm:$0xff]  ;;  %v523_v54 = vld [vmem:[%s14981_s0 + $0xf50] sm:$0xff] }
 0x3a9   :  { %v1300_v37 = vunpack.c.l.b16 %v1044_v46 }
 0x3aa   :  { %v2468_v32 = vpop.f32.mrf.mxu2  ;;  %v1043_v59 = vpack.c.bf16 %v915_v18, %v915_v18 }
 0x3ab   :  { %v2646_v31 = vadd.f32 %v2468_v32, %v11940_v48  ;;  %v1817_v16 = vpop.f32.mrf.mxu0  ;;  %v2149_v19 = vpop.f32.mrf.mxu1 }
 0x3ac   :  { %v12050_v39 = vadd.f32 %v2149_v19, %v1817_v16  ;;  %v12055_v58 = vpop.f32.mrf.mxu3  ;;  %v1299_v22 = vunpack.c.l.b16 %v1043_v59  ;;  %v490_v59 = vld [vmem:[%s14981_s0 + $0xe48] sm:$0xff]  ;;  %v780_v19 = vmax.f32 %v492_v11, %v524_v57 }
 0x3ad   :  { %v12053_v2 = vadd.f32 %v11962_v14, %v2646_v31  ;;  %v778_v31 = vmax.f32 %v490_v59, %v522_v5 }
 0x3ae   :  { %v12059_v47 = vpack.c.b16 %v1300_v37, %v1299_v22 }
 0x3af   :  { %15234 = vst [vmem:[#allocation141_spill] sm:$0xff] %v12053_v2  ;;  %8326 = vmatmul.msk.bf16.gmra.mxu2 %vm1380_vm1, %v11703_v35 }
 0x3b0   :  { %15235 = vst [vmem:[#allocation142_spill] sm:$0xff] %v12059_v47  ;;  %8384 = vmatmul.msk.bf16.gmra.mxu3 %vm1380_vm1, %v12059_v47 }
 0x3b2   :  { %v2471_v48 = vpop.f32.mrf.mxu2 }
 0x3b3   :  { %v2647_v1 = vadd.f32 %v2471_v48, %v11950_v13  ;;  %v1820_v25 = vpop.f32.mrf.mxu0  ;;  %v2152_v30 = vpop.f32.mrf.mxu1  ;;  %v489_v13 = vld [vmem:[%s14981_s0 + $0xe40] sm:$0xff] }
 0x3b4   :  { %v12064_v14 = vadd.f32 %v2152_v30, %v1820_v25  ;;  %v12073_v46 = vpop.f32.mrf.mxu3  ;;  %v777_v32 = vmax.f32 %v489_v13, %v521_v56 }
 0x3b5   :  { %v12067_v33 = vadd.f32 %v11976_v42, %v2647_v1  ;;  %v491_v42 = vld [vmem:[%s14981_s0 + $0xe50] sm:$0xff]  ;;  %v918_v1 = vmax.f32 %v778_v31, %v780_v19  ;;  %v496_v31 = vld [vmem:[%s14981_s0 + $0xe78] sm:$0xff]  ;;  %v526_v19 = vld [vmem:[%s14981_s0 + $0xf68] sm:$0xff] }
 0x3b6   :  { %8229 = vmatmul.msk.bf16.gmra.mxu0 %vm1380_vm1, %v11803_v29  ;;  %8278 = vmatmul.msk.bf16.gmra.mxu1 %vm1380_vm1, %v11753_v10  ;;  %v779_v16 = vmax.f32 %v491_v42, %v523_v54 }
 0x3b7   :  { %15236 = vst [vmem:[#allocation143_spill] sm:$0xff] %v12067_v33  ;;  %v1046_v2 = vpack.c.bf16 %v918_v1, %v918_v1 }
 0x3b8   :  { %v917_v48 = vmax.f32 %v777_v32, %v779_v16  ;;  %v495_v32 = vld [vmem:[%s14981_s0 + $0xe70] sm:$0xff]  ;;  %v525_v16 = vld [vmem:[%s14981_s0 + $0xf60] sm:$0xff] }
 0x3b9   :  { %v1302_v59 = vunpack.c.l.b16 %v1046_v2 }
 0x3ba   :  { %v2473_v18 = vpop.f32.mrf.mxu2  ;;  %v1045_v33 = vpack.c.bf16 %v917_v48, %v917_v48 }
 0x3bb   :  { %v2648_v55 = vadd.f32 %v2473_v18, %v11958_v28  ;;  %v1822_v22 = vpop.f32.mrf.mxu0  ;;  %v2154_v37 = vpop.f32.mrf.mxu1  ;;  %v527_v18 = vld [vmem:[%s14981_s0 + $0xf70] sm:$0xff] }
 0x3bc   :  { %v12100_v25 = vadd.f32 %v2154_v37, %v1822_v22  ;;  %v12105_v47 = vpop.f32.mrf.mxu3  ;;  %v1301_v13 = vunpack.c.l.b16 %v1045_v33  ;;  %v493_v33 = vld [vmem:[%s14981_s0 + $0xe60] sm:$0xff]  ;;  %v783_v48 = vmax.f32 %v495_v32, %v527_v18 }
 0x3bd   :  { %v12103_v30 = vadd.f32 %v12007_v34, %v2648_v55  ;;  %v528_v55 = vld [vmem:[%s14981_s0 + $0xf78] sm:$0xff]  ;;  %v781_v22 = vmax.f32 %v493_v33, %v525_v16 }
 0x3be   :  { %v12109_v42 = vpack.c.b16 %v1302_v59, %v1301_v13  ;;  %v784_v1 = vmax.f32 %v496_v31, %v528_v55  ;;  %v500_v55 = vld [vmem:[%s14981_s0 + $0xe98] sm:$0xff] }
 0x3bf   :  { %15237 = vst [vmem:[#allocation144_spill] sm:$0xff] %v12103_v30  ;;  %8327 = vmatmul.msk.bf16.gmra.mxu2 %vm1380_vm1, %v11753_v10 }
 0x3c0   :  { %15238 = vst [vmem:[#allocation145_spill] sm:$0xff] %v12109_v42  ;;  %8385 = vmatmul.msk.bf16.gmra.mxu3 %vm1380_vm1, %v12109_v42 }
 0x3c2   :  { %v2476_v28 = vpop.f32.mrf.mxu2 }
 0x3c3   :  { %v2649_v11 = vadd.f32 %v2476_v28, %v11968_v27  ;;  %v1825_v56 = vpop.f32.mrf.mxu0  ;;  %v2157_v5 = vpop.f32.mrf.mxu1  ;;  %v8619_v27 = vld [vmem:[%s14980_s1 + $0x10] sm:$0x3] }
 0x3c4   :  { %v12114_v34 = vadd.f32 %v2157_v5, %v1825_v56  ;;  %v12123_v2 = vpop.f32.mrf.mxu3  ;;  %v5016_v57 = vsel %vm1552_vm0, %v8619_v27, 0  ;;  %v919_v56 = vmax.f32 %v781_v22, %v783_v48  ;;  %v529_v22 = vld [vmem:[%s14981_s0 + $0xf80] sm:$0xff]  ;;  %v531_v48 = vld [vmem:[%s14981_s0 + $0xf90] sm:$0xff] }
 0x3c5   :  { %v12117_v54 = vadd.f32 %v12023_v50, %v2649_v11  ;;  %v494_v50 = vld [vmem:[%s14981_s0 + $0xe68] sm:$0xff]  ;;  %5025 = vmatpush.bf16.msra.mxu0 %v5016_v57 }
 0x3c6   :  { %8230 = vmatmul.msk.bf16.gmra.mxu0 %vm1380_vm1, %v11877_v4  ;;  %8279 = vmatmul.msk.bf16.gmra.mxu1 %vm1380_vm1, %v11803_v29  ;;  %v782_v37 = vmax.f32 %v494_v50, %v526_v19 }
 0x3c7   :  { %15239 = vst [vmem:[#allocation146_spill] sm:$0xff] %v12117_v54  ;;  %v1047_v54 = vpack.c.bf16 %v919_v56, %v919_v56 }
 0x3c8   :  { %v920_v5 = vmax.f32 %v782_v37, %v784_v1  ;;  %v530_v37 = vld [vmem:[%s14981_s0 + $0xf88] sm:$0xff]  ;;  %v532_v1 = vld [vmem:[%s14981_s0 + $0xf98] sm:$0xff] }
 0x3c9   :  { %v1303_v33 = vunpack.c.l.b16 %v1047_v54  ;;  %v498_v54 = vld [vmem:[%s14981_s0 + $0xe88] sm:$0xff] }
 0x3ca   :  { %v2478_v13 = vpop.f32.mrf.mxu2  ;;  %v1048_v30 = vpack.c.bf16 %v920_v5, %v920_v5 }
 0x3cb   :  { %v2650_v59 = vadd.f32 %v2478_v13, %v12003_v26  ;;  %v1827_v28 = vpop.f32.mrf.mxu0  ;;  %v2159_v11 = vpop.f32.mrf.mxu1 }
 0x3cc   :  { %v12154_v27 = vadd.f32 %v2159_v11, %v1827_v28  ;;  %v12159_v42 = vpop.f32.mrf.mxu3  ;;  %v1304_v50 = vunpack.c.l.b16 %v1048_v30  ;;  %v788_v11 = vmax.f32 %v500_v55, %v532_v1  ;;  %v504_v1 = vld [vmem:[%s14981_s0 + $0xeb8] sm:$0xff] }
 0x3cd   :  { %v12157_v57 = vadd.f32 %v12055_v58, %v2650_v59  ;;  %v786_v59 = vmax.f32 %v498_v54, %v530_v37 }
 0x3ce   :  { %v12163_v32 = vpack.c.b16 %v1304_v50, %v1303_v33 }
 0x3cf   :  { %15240 = vst [vmem:[#allocation147_spill] sm:$0xff] %v12157_v57  ;;  %8328 = vmatmul.msk.bf16.gmra.mxu2 %vm1380_vm1, %v11803_v29 }
 0x3d0   :  { %15241 = vst [vmem:[#allocation148_spill] sm:$0xff] %v12163_v32  ;;  %8386 = vmatmul.msk.bf16.gmra.mxu3 %vm1380_vm1, %v12163_v32 }
 0x3d2   :  { %v2481_v26 = vpop.f32.mrf.mxu2 }
 0x3d3   :  { %v2651_v31 = vadd.f32 %v2481_v26, %v12015_v7  ;;  %v1830_v16 = vpop.f32.mrf.mxu0  ;;  %v2162_v19 = vpop.f32.mrf.mxu1  ;;  %v497_v7 = vld [vmem:[%s14981_s0 + $0xe80] sm:$0xff] }
 0x3d4   :  { %v12168_v58 = vadd.f32 %v2162_v19, %v1830_v16  ;;  %v12177_v30 = vpop.f32.mrf.mxu3  ;;  %v785_v13 = vmax.f32 %v497_v7, %v529_v22 }
 0x3d5   :  { %v12171_v18 = vadd.f32 %v12073_v46, %v2651_v31  ;;  %v499_v46 = vld [vmem:[%s14981_s0 + $0xe90] sm:$0xff]  ;;  %v922_v31 = vmax.f32 %v786_v59, %v788_v11 }
 0x3d6   :  { %8231 = vmatmul.msk.bf16.gmra.mxu0 %vm1380_vm1, %v11923_v17  ;;  %8280 = vmatmul.msk.bf16.gmra.mxu1 %vm1380_vm1, %v11877_v4  ;;  %v787_v28 = vmax.f32 %v499_v46, %v531_v48  ;;  %v535_v59 = vld [vmem:[%s14981_s0 + $0xfb0] sm:$0xff] }
 0x3d7   :  { %15242 = vst [vmem:[#allocation149_spill] sm:$0xff] %v12171_v18  ;;  %v1050_v57 = vpack.c.bf16 %v922_v31, %v922_v31 }
 0x3d8   :  { %v921_v26 = vmax.f32 %v785_v13, %v787_v28  ;;  %v534_v13 = vld [vmem:[%s14981_s0 + $0xfa8] sm:$0xff]  ;;  %v536_v28 = vld [vmem:[%s14981_s0 + $0xfb8] sm:$0xff] }
 0x3d9   :  { %v1306_v54 = vunpack.c.l.b16 %v1050_v57 }
 0x3da   :  { %v2483_v56 = vpop.f32.mrf.mxu2  ;;  %v1049_v18 = vpack.c.bf16 %v921_v26, %v921_v26 }
 0x3db   :  { %v2652_v5 = vadd.f32 %v2483_v56, %v12050_v39  ;;  %v1832_v33 = vpop.f32.mrf.mxu0  ;;  %v2164_v50 = vpop.f32.mrf.mxu1 }
 0x3dc   :  { %v12204_v16 = vadd.f32 %v2164_v50, %v1832_v33  ;;  %v12209_v32 = vpop.f32.mrf.mxu3  ;;  %v1305_v7 = vunpack.c.l.b16 %v1049_v18  ;;  %v502_v18 = vld [vmem:[%s14981_s0 + $0xea8] sm:$0xff]  ;;  %v792_v33 = vmax.f32 %v504_v1, %v536_v28 }
 0x3dd   :  { %v12207_v19 = vadd.f32 %v12105_v47, %v2652_v5  ;;  %v790_v56 = vmax.f32 %v502_v18, %v534_v13  ;;  %v506_v28 = vld [vmem:[%s14981_s0 + $0xec8] sm:$0xff] }
 0x3de   :  { %v12213_v46 = vpack.c.b16 %v1306_v54, %v1305_v7 }
 0x3df   :  { %15243 = vst [vmem:[#allocation150_spill] sm:$0xff] %v12207_v19  ;;  %8329 = vmatmul.msk.bf16.gmra.mxu2 %vm1380_vm1, %v11877_v4 }
 0x3e0   :  { %8387 = vmatmul.msk.bf16.gmra.mxu3 %vm1380_vm1, %v12213_v46 }
 0x3e2   :  { %v2486_v39 = vpop.f32.mrf.mxu2 }
 0x3e3   :  { %v2653_v55 = vadd.f32 %v2486_v39, %v12064_v14  ;;  %v1835_v22 = vpop.f32.mrf.mxu0  ;;  %v2167_v37 = vpop.f32.mrf.mxu1  ;;  %v501_v14 = vld [vmem:[%s14981_s0 + $0xea0] sm:$0xff]  ;;  %v924_v39 = vmax.f32 %v790_v56, %v792_v33  ;;  %v539_v33 = vld [vmem:[%s14981_s0 + $0xfd0] sm:$0xff] }
 0x3e4   :  { %v12218_v47 = vadd.f32 %v2167_v37, %v1835_v22  ;;  %v12227_v57 = vpop.f32.mrf.mxu3  ;;  %v537_v56 = vld [vmem:[%s14981_s0 + $0xfc0] sm:$0xff] }
 0x3e5   :  { %v12221_v48 = vadd.f32 %v12123_v2, %v2653_v55  ;;  %v503_v2 = vld [vmem:[%s14981_s0 + $0xeb0] sm:$0xff] }
 0x3e6   :  { %8281 = vmatmul.msk.bf16.gmra.mxu1 %vm1380_vm1, %v11923_v17  ;;  %8391 = vmatmul.msk.bf16.vlgmr.msrb.gmra.mxu0 %vm1380_vm1, %v9477_v3  ;;  %v533_v3 = vld [vmem:[%s14981_s0 + $0xfa0] sm:$0xff]  ;;  %v791_v5 = vmax.f32 %v503_v2, %v535_v59 }
 0x3e7   :  { %15244 = vst [vmem:[#allocation151_spill] sm:$0xff] %v12221_v48  ;;  %v789_v11 = vmax.f32 %v501_v14, %v533_v3  ;;  %v1052_v48 = vpack.c.bf16 %v924_v39, %v924_v39 }
 0x3e9   :  { %v923_v54 = vmax.f32 %v789_v11, %v791_v5  ;;  %v1308_v18 = vunpack.c.l.b16 %v1052_v48  ;;  %v508_v11 = vld [vmem:[%s14981_s0 + $0xed8] sm:$0xff]  ;;  %v538_v5 = vld [vmem:[%s14981_s0 + $0xfc8] sm:$0xff] }
 0x3ea   :  { %v2488_v50 = vpop.f32.mrf.mxu2 }
 0x3eb   :  { %v2654_v26 = vadd.f32 %v2488_v50, %v12100_v25  ;;  %v1837_v31 = vpop.f32.mrf.mxu0  ;;  %v2169_v7 = vpop.f32.mrf.mxu1  ;;  %v1051_v37 = vpack.c.bf16 %v923_v54, %v923_v54  ;;  %v540_v50 = vld [vmem:[%s14981_s0 + $0xfd8] sm:$0xff] }
 0x3ec   :  { %v12254_v55 = vadd.f32 %v2169_v7, %v1837_v31  ;;  %v2981_v19 = vpop.f32.mrf.mxu3  ;;  %v794_v31 = vmax.f32 %v506_v28, %v538_v5  ;;  %v796_v54 = vmax.f32 %v508_v11, %v540_v50 }
 0x3ed   :  { %v12257_v22 = vadd.f32 %v12159_v42, %v2654_v26  ;;  %v1307_v14 = vunpack.c.l.b16 %v1051_v37 }
 0x3ef   :  { %15245 = vst [vmem:[#allocation152_spill] sm:$0xff] %v12257_v22  ;;  %8330 = vmatmul.msk.bf16.gmra.mxu2 %vm1380_vm1, %v11923_v17  ;;  %v12261_v2 = vpack.c.b16 %v1308_v18, %v1307_v14 }
 0x3f1   :  { %15246 = vst [vmem:[#allocation153_spill] sm:$0xff] %v12261_v2  ;;  %8388 = vmatmul.msk.bf16.gmra.mxu3 %vm1380_vm1, %v12261_v2 }
 0x3f2   :  { %v2491_v25 = vpop.f32.mrf.mxu2 }
 0x3f3   :  { %v2655_v1 = vadd.f32 %v2491_v25, %v12114_v34  ;;  %v1840_v3 = vpop.f32.mrf.mxu0  ;;  %v2172_v13 = vpop.f32.mrf.mxu1  ;;  %v505_v34 = vld [vmem:[%s14981_s0 + $0xec0] sm:$0xff] }
 0x3f4   :  { %v12266_v42 = vadd.f32 %v2172_v13, %v1840_v3  ;;  %v2984_v48 = vpop.f32.mrf.mxu3  ;;  %v793_v26 = vmax.f32 %v505_v34, %v537_v56 }
 0x3f5   :  { %v12269_v59 = vadd.f32 %v12177_v30, %v2655_v1  ;;  %v507_v30 = vld [vmem:[%s14981_s0 + $0xed0] sm:$0xff]  ;;  %v926_v1 = vmax.f32 %v794_v31, %v796_v54 }
 0x3f6   :  { %8282 = vmatmul.msk.bf16.gmra.mxu1 %vm1380_vm1, %v9443_v41  ;;  %8392 = vmatmul.msk.bf16.gmra.mxu0 %vm1380_vm1, %v9508_v23  ;;  %v795_v7 = vmax.f32 %v507_v30, %v539_v33 }
 0x3f7   :  { %15247 = vst [vmem:[#allocation154_spill] sm:$0xff] %v12269_v59  ;;  %v1054_v22 = vpack.c.bf16 %v926_v1, %v926_v1 }
 0x3f8   :  { %v925_v25 = vmax.f32 %v793_v26, %v795_v7 }
 0x3f9   :  { %v1310_v28 = vunpack.c.l.b16 %v1054_v22 }
 0x3fa   :  { %v2493_v39 = vpop.f32.mrf.mxu2  ;;  %v1053_v59 = vpack.c.bf16 %v925_v25, %v925_v25 }
 0x3fb   :  { %v2656_v37 = vadd.f32 %v2493_v39, %v12154_v27  ;;  %v1842_v14 = vpop.f32.mrf.mxu0  ;;  %v2174_v18 = vpop.f32.mrf.mxu1 }
 0x3fc   :  { %v2175_v3 = vadd.f32 %v2174_v18, %v1842_v14  ;;  %v2986_v2 = vpop.f32.mrf.mxu3  ;;  %v1309_v34 = vunpack.c.l.b16 %v1053_v59 }
 0x3fd   :  { %v12301_v13 = vadd.f32 %v12209_v32, %v2656_v37 }
 0x3fe   :  { %v12305_v30 = vpack.c.b16 %v1310_v28, %v1309_v34 }
 0x3ff   :  { %8331 = vmatmul.msk.bf16.gmra.mxu2 %vm1380_vm1, %v9443_v41 }
 0x401   :  { %8389 = vmatmul.msk.bf16.gmra.mxu3 %vm1380_vm1, %v12305_v30 }
 0x402   :  { %v2496_v11 = vpop.f32.mrf.mxu2 }
 0x403   :  { %v2657_v27 = vadd.f32 %v2496_v11, %v12168_v58  ;;  %v1845_v56 = vpop.f32.mrf.mxu0  ;;  %v2177_v5 = vpop.f32.mrf.mxu1 }
 0x404   :  { %v2178_v32 = vadd.f32 %v2177_v5, %v1845_v56  ;;  %v2989_v22 = vpop.f32.mrf.mxu3 }
 0x405   :  { %v12311_v33 = vadd.f32 %v12227_v57, %v2657_v27 }
 0x406   :  { %8393 = vmatmul.msk.bf16.gmra.mxu0 %vm1380_vm1, %v9539_v43  ;;  %8456 = vmatmul.msk.bf16.vlgmr.msrb.gmra.mxu1 %vm1380_vm1, %v9508_v23 }
 0x40a   :  { %v2498_v59 = vpop.f32.mrf.mxu2 }
 0x40b   :  { %v2658_v50 = vadd.f32 %v2498_v59, %v12204_v16  ;;  %v1847_v58 = vpop.f32.mrf.mxu0  ;;  %v2179_v26 = vpop.f32.mrf.mxu1 }
 0x40c   :  { %v2180_v31 = vadd.f32 %v2179_v26, %v1847_v58  ;;  %v2991_v54 = vpop.f32.mrf.mxu3 }
 0x40d   :  { %v12318_v7 = vadd.f32 %v2981_v19, %v2658_v50 }
 0x40f   :  { %8332 = vmatmul.msk.bf16.gmra.mxu2 %vm1380_vm1, %v9473_v60 }
 0x411   :  { %8563 = vmatmul.msk.bf16.vlgmr.msrb.gmra.mxu3 %vm1380_vm1, %v9717_v38 }
 0x412   :  { %v2501_v57 = vpop.f32.mrf.mxu2 }
 0x413   :  { %v2659_v39 = vadd.f32 %v2501_v57, %v12218_v47  ;;  %v1850_v37 = vpop.f32.mrf.mxu0  ;;  %v2182_v14 = vpop.f32.mrf.mxu1 }
 0x414   :  { %v2183_v23 = vadd.f32 %v2182_v14, %v1850_v37  ;;  %v2994_v16 = vpop.f32.mrf.mxu3 }
 0x415   :  { %v12325_v18 = vadd.f32 %v2984_v48, %v2659_v39 }
 0x416   :  { %8394 = vmatmul.msk.bf16.gmra.mxu0 %vm1380_vm1, %v9570_v63  ;;  %8457 = vmatmul.msk.bf16.gmra.mxu1 %vm1380_vm1, %v9539_v43 }
 0x41a   :  { %v2503_v19 = vpop.f32.mrf.mxu2 }
 0x41b   :  { %v2660_v25 = vadd.f32 %v2503_v19, %v12254_v55  ;;  %v1852_v1 = vpop.f32.mrf.mxu0  ;;  %v2184_v47 = vpop.f32.mrf.mxu1 }
 0x41c   :  { %v2185_v34 = vadd.f32 %v2184_v47, %v1852_v1  ;;  %v2996_v11 = vpop.f32.mrf.mxu3 }
 0x41d   :  { %v12332_v28 = vadd.f32 %v2986_v2, %v2660_v25 }
 0x41f   :  { %2545 = vmatmul.bf16.gmra.mxu2 %v15114_v21 }
 0x421   :  { %8564 = vmatmul.msk.bf16.gmra.mxu3 %vm1380_vm1, %v9763_v15 }
 0x422   :  { %v2506_v48 = vpop.f32.mrf.mxu2 }
 0x423   :  { %v2661_v27 = vadd.f32 %v2506_v48, %v12266_v42  ;;  %v1855_v56 = vpop.f32.mrf.mxu0  ;;  %v2187_v5 = vpop.f32.mrf.mxu1 }
 0x424   :  { %v2188_v43 = vadd.f32 %v2187_v5, %v1855_v56  ;;  %v2999_v55 = vpop.f32.mrf.mxu3 }
 0x425   :  { %v12338_v59 = vadd.f32 %v2989_v22, %v2661_v27 }
 0x426   :  { %8395 = vmatmul.msk.bf16.gmra.mxu0 %vm1380_vm1, %v9601_v20  ;;  %8458 = vmatmul.msk.bf16.gmra.mxu1 %vm1380_vm1, %v9570_v63 }
 0x42a   :  { %v2508_v2 = vpop.f32.mrf.mxu2 }
 0x42b   :  { %v2662_v50 = vadd.f32 %v2508_v2, %v2175_v3  ;;  %v1857_v58 = vpop.f32.mrf.mxu0  ;;  %v2189_v26 = vpop.f32.mrf.mxu1 }
 0x42c   :  { %v2190_v42 = vadd.f32 %v2189_v26, %v1857_v58  ;;  %v3001_v39 = vpop.f32.mrf.mxu3 }
 0x42d   :  { %v12344_v57 = vadd.f32 %v2991_v54, %v2662_v50 }
 0x42f   :  { %4102 = vmatmul.bf16.vlgmr.msra.gmra.mxu2 %v15114_v21 }
 0x431   :  { %8565 = vmatmul.msk.bf16.gmra.mxu3 %vm1380_vm1, %v9813_v61 }
 0x432   :  { %v2511_v37 = vpop.f32.mrf.mxu2 }
 0x433   :  { %v2663_v22 = vadd.f32 %v2511_v37, %v2178_v32  ;;  %v1860_v14 = vpop.f32.mrf.mxu0  ;;  %v2192_v19 = vpop.f32.mrf.mxu1 }
 0x434   :  { %v2193_v25 = vadd.f32 %v2192_v19, %v1860_v14  ;;  %v3004_v3 = vpop.f32.mrf.mxu3 }
 0x435   :  { %v12349_v63 = vadd.f32 %v2994_v16, %v2663_v22 }
 0x436   :  { %8396 = vmatmul.msk.bf16.gmra.mxu0 %vm1380_vm1, %v9632_v40  ;;  %8459 = vmatmul.msk.bf16.gmra.mxu1 %vm1380_vm1, %v9601_v20 }
 0x43a   :  { %v2513_v54 = vpop.f32.mrf.mxu2 }
 0x43b   :  { %v2664_v1 = vadd.f32 %v2513_v54, %v2180_v31  ;;  %v1862_v47 = vpop.f32.mrf.mxu0  ;;  %v2194_v48 = vpop.f32.mrf.mxu1 }
 0x43c   :  { %v2195_v32 = vadd.f32 %v2194_v48, %v1862_v47  ;;  %v3006_v56 = vpop.f32.mrf.mxu3 }
 0x43d   :  { %v12355_v27 = vadd.f32 %v2996_v11, %v2664_v1 }
 0x43f   :  { %8513 = vmatmul.msk.bf16.gmra.mxu2 %vm1380_vm1, %v9717_v38 }
 0x441   :  { %8566 = vmatmul.msk.bf16.gmra.mxu3 %vm1380_vm1, %v9863_v51 }
 0x442   :  { %v2516_v16 = vpop.f32.mrf.mxu2 }
 0x443   :  { %v2665_v5 = vadd.f32 %v2516_v16, %v2183_v23  ;;  %v1865_v2 = vpop.f32.mrf.mxu0  ;;  %v2197_v50 = vpop.f32.mrf.mxu1 }
 0x444   :  { %v2198_v20 = vadd.f32 %v2197_v50, %v1865_v2  ;;  %v3009_v31 = vpop.f32.mrf.mxu3 }
 0x445   :  { %v12361_v58 = vadd.f32 %v2999_v55, %v2665_v5 }
 0x446   :  { %8397 = vmatmul.msk.bf16.gmra.mxu0 %vm1380_vm1, %v9663_v62  ;;  %8460 = vmatmul.msk.bf16.gmra.mxu1 %vm1380_vm1, %v9632_v40 }
 0x44a   :  { %v2518_v11 = vpop.f32.mrf.mxu2 }
 0x44b   :  { %v2666_v26 = vadd.f32 %v2518_v11, %v2185_v34  ;;  %v1867_v37 = vpop.f32.mrf.mxu0  ;;  %v2199_v22 = vpop.f32.mrf.mxu1 }
 0x44c   :  { %v2200_v23 = vadd.f32 %v2199_v22, %v1867_v37  ;;  %v3011_v19 = vpop.f32.mrf.mxu3 }
 0x44d   :  { %v12367_v14 = vadd.f32 %v3001_v39, %v2666_v26 }
 0x44f   :  { %15248 = vst [vmem:[#allocation155_spill] sm:$0xff] %v12367_v14  ;;  %8514 = vmatmul.msk.bf16.gmra.mxu2 %vm1380_vm1, %v9763_v15 }
 0x451   :  { %8567 = vmatmul.msk.bf16.gmra.mxu3 %vm1380_vm1, %v9937_v45 }
 0x452   :  { %v2521_v55 = vpop.f32.mrf.mxu2 }
 0x453   :  { %v2667_v54 = vadd.f32 %v2521_v55, %v2188_v43  ;;  %v1870_v1 = vpop.f32.mrf.mxu0  ;;  %v2202_v47 = vpop.f32.mrf.mxu1 }
 0x454   :  { %v2203_v40 = vadd.f32 %v2202_v47, %v1870_v1  ;;  %v3014_v34 = vpop.f32.mrf.mxu3 }
 0x455   :  { %v12373_v48 = vadd.f32 %v3004_v3, %v2667_v54 }
 0x456   :  { %8398 = vmatmul.msk.bf16.gmra.mxu0 %vm1380_vm1, %v9987_v9  ;;  %8461 = vmatmul.msk.bf16.gmra.mxu1 %vm1380_vm1, %v9663_v62 }
 0x457   :  { %15249 = vst [vmem:[#allocation156_spill] sm:$0xff] %v12373_v48 }
 0x45a   :  { %v2523_v39 = vpop.f32.mrf.mxu2 }
 0x45b   :  { %v2668_v16 = vadd.f32 %v2523_v39, %v2190_v42  ;;  %v1872_v5 = vpop.f32.mrf.mxu0  ;;  %v2204_v2 = vpop.f32.mrf.mxu1 }
 0x45c   :  { %v2205_v43 = vadd.f32 %v2204_v2, %v1872_v5  ;;  %v3016_v11 = vpop.f32.mrf.mxu3 }
 0x45d   :  { %v12379_v50 = vadd.f32 %v3006_v56, %v2668_v16 }
 0x45f   :  { %15250 = vst [vmem:[#allocation157_spill] sm:$0xff] %v12379_v50  ;;  %8515 = vmatmul.msk.bf16.gmra.mxu2 %vm1380_vm1, %v9813_v61  ;;  %v15262_v50 = vld [vmem:[#allocation22_spill] sm:$0xff] }
 0x461   :  { %8568 = vmatmul.msk.bf16.gmra.mxu3 %vm1380_vm1, %v9985_v52 }
 0x462   :  { %v2526_v3 = vpop.f32.mrf.mxu2 }
 0x463   :  { %v2669_v26 = vadd.f32 %v2526_v3, %v2193_v25  ;;  %v2207_v37 = vpop.f32.mrf.mxu1  ;;  %v3179_v22 = vpop.f32.mrf.mxu0 }
 0x464   :  { %v3499_v62 = vadd.f32 %v3179_v22, %v9771_v24  ;;  %v3019_v42 = vpop.f32.mrf.mxu3 }
 0x465   :  { %v12386_v55 = vadd.f32 %v3009_v31, %v2669_v26 }
 0x466   :  { %8399 = vmatmul.msk.bf16.gmra.mxu0 %vm1380_vm1, %v9717_v38  ;;  %8462 = vmatmul.msk.bf16.gmra.mxu1 %vm1380_vm1, %v9987_v9 }
 0x467   :  { %15251 = vst [vmem:[#allocation158_spill] sm:$0xff] %v12386_v55 }
 0x46a   :  { %v2528_v56 = vpop.f32.mrf.mxu2 }
 0x46b   :  { %v2670_v54 = vadd.f32 %v2528_v56, %v2195_v32  ;;  %v2209_v1 = vpop.f32.mrf.mxu1  ;;  %v3181_v25 = vpop.f32.mrf.mxu0 }
 0x46c   :  { %v3500_v47 = vadd.f32 %v3181_v25, %v9807_v53  ;;  %v3021_v16 = vpop.f32.mrf.mxu3 }
 0x46d   :  { %v12393_v39 = vadd.f32 %v3011_v19, %v2670_v54 }
 0x46f   :  { %15252 = vst [vmem:[#allocation159_spill] sm:$0xff] %v12393_v39  ;;  %8516 = vmatmul.msk.bf16.gmra.mxu2 %vm1380_vm1, %v9863_v51 }
 0x471   :  { %8569 = vmatmul.msk.bf16.gmra.mxu3 %vm1380_vm1, %v10033_v36 }
 0x472   :  { %v2531_v24 = vpop.f32.mrf.mxu2 }
 0x473   :  { %v2671_v31 = vadd.f32 %v2531_v24, %v2198_v20  ;;  %v2212_v5 = vpop.f32.mrf.mxu1  ;;  %v3184_v38 = vpop.f32.mrf.mxu0  ;;  %v15254_v20 = vld [vmem:[#allocation8_spill] sm:$0xff] }
 0x474   :  { %v3501_v9 = vadd.f32 %v3184_v38, %v9821_v8  ;;  %v3024_v53 = vpop.f32.mrf.mxu3  ;;  %v15257_v38 = vld [vmem:[#allocation9_spill] sm:$0xff] }
 0x475   :  { %v12400_v32 = vadd.f32 %v3014_v34, %v2671_v31  ;;  %v15256_v31 = vld [vmem:[#allocation38_spill] sm:$0xff] }
 0x476   :  { %8400 = vmatmul.msk.bf16.gmra.mxu0 %vm1380_vm1, %v9763_v15  ;;  %3675 = vmatmul.bf16.gmra.mxu1 %v15114_v21 }
 0x477   :  { %15253 = vst [vmem:[#allocation160_spill] sm:$0xff] %v12400_v32 }
 0x47a   :  { %v2533_v19 = vpop.f32.mrf.mxu2 }
 0x47b   :  { %v2672_v2 = vadd.f32 %v2533_v19, %v2200_v23  ;;  %v2214_v3 = vpop.f32.mrf.mxu1  ;;  %v3186_v26 = vpop.f32.mrf.mxu0 }
 0x47c   :  { %v3502_v22 = vadd.f32 %v3186_v26, %v15254_v20  ;;  %v3026_v54 = vpop.f32.mrf.mxu3 }
 0x47d   :  { %v12406_v56 = vadd.f32 %v3016_v11, %v2672_v2 }
 0x47f   :  { %15255 = vst [vmem:[#allocation8_spill] sm:$0xff] %v12406_v56  ;;  %8517 = vmatmul.msk.bf16.gmra.mxu2 %vm1380_vm1, %v9937_v45 }
 0x481   :  { %8570 = vmatmul.msk.bf16.gmra.mxu3 %vm1380_vm1, %v15256_v31 }
 0x482   :  { %v2536_v8 = vpop.f32.mrf.mxu2 }
 0x483   :  { %v2673_v34 = vadd.f32 %v2536_v8, %v2203_v40  ;;  %v3189_v25 = vpop.f32.mrf.mxu0  ;;  %v3641_v24 = vpop.f32.mrf.mxu1  ;;  %v15259_v8 = vld [vmem:[#allocation10_spill] sm:$0xff] }
 0x484   :  { %v3503_v32 = vadd.f32 %v3189_v25, %v15257_v38  ;;  %v3961_v23 = vadd.f32 %v3641_v24, %v3499_v62  ;;  %v3029_v11 = vpop.f32.mrf.mxu3  ;;  %v15261_v62 = vld [vmem:[#allocation4_spill] sm:$0xff] }
 0x485   :  { %v12413_v19 = vadd.f32 %v3019_v42, %v2673_v34  ;;  %v2208_v42 = vadd.f32 %v2207_v37, %v15261_v62  ;;  %v15265_v37 = vld [vmem:[#allocation5_spill] sm:$0xff] }
 0x486   :  { %8401 = vmatmul.msk.bf16.gmra.mxu0 %vm1380_vm1, %v9813_v61  ;;  %8463 = vmatmul.msk.bf16.gmra.mxu1 %vm1380_vm1, %v9763_v15 }
 0x487   :  { %15258 = vst [vmem:[#allocation9_spill] sm:$0xff] %v12413_v19 }
 0x48a   :  { %v2538_v2 = vpop.f32.mrf.mxu2 }
 0x48b   :  { %v2674_v26 = vadd.f32 %v2538_v2, %v2205_v43  ;;  %v3191_v40 = vpop.f32.mrf.mxu0  ;;  %v3643_v20 = vpop.f32.mrf.mxu1  ;;  %v15263_v43 = vld [vmem:[#allocation12_spill] sm:$0xff] }
 0x48c   :  { %v3504_v56 = vadd.f32 %v3191_v40, %v15259_v8  ;;  %v3962_v39 = vadd.f32 %v3643_v20, %v3500_v47  ;;  %v3031_v25 = vpop.f32.mrf.mxu3 }
 0x48d   :  { %v12420_v55 = vadd.f32 %v3021_v16, %v2674_v26  ;;  %v2210_v16 = vadd.f32 %v2209_v1, %v15265_v37  ;;  %v15269_v1 = vld [vmem:[#allocation25_spill] sm:$0xff]  ;;  %v15270_v37 = vld [vmem:[#allocation15_spill] sm:$0xff] }
 0x48f   :  { %15260 = vst [vmem:[#allocation10_spill] sm:$0xff] %v12420_v55  ;;  %8518 = vmatmul.msk.bf16.gmra.mxu2 %vm1380_vm1, %v9985_v52 }
 0x491   :  { %8571 = vmatmul.msk.bf16.gmra.mxu3 %vm1380_vm1, %v15262_v50 }
 0x492   :  { %v2541_v34 = vpop.f32.mrf.mxu2 }
 0x493   :  { %v2675_v24 = vadd.f32 %v2541_v34, %v2208_v42  ;;  %v3194_v38 = vpop.f32.mrf.mxu0  ;;  %v3646_v19 = vpop.f32.mrf.mxu1  ;;  %v15266_v42 = vld [vmem:[#allocation13_spill] sm:$0xff] }
 0x494   :  { %v3505_v2 = vadd.f32 %v3194_v38, %v15263_v43  ;;  %v3963_v48 = vadd.f32 %v3646_v19, %v3501_v9  ;;  %v4565_v47 = vpop.f32.mrf.mxu3 }
 0x495   :  { %v12428_v40 = vadd.f32 %v3024_v53, %v2675_v24  ;;  %v15268_v53 = vld [vmem:[#allocation6_spill] sm:$0xff] }
 0x496   :  { %8402 = vmatmul.msk.bf16.gmra.mxu0 %vm1380_vm1, %v9863_v51  ;;  %8464 = vmatmul.msk.bf16.gmra.mxu1 %vm1380_vm1, %v9813_v61  ;;  %v2213_v19 = vadd.f32 %v2212_v5, %v15268_v53  ;;  %v15272_v5 = vld [vmem:[#allocation7_spill] sm:$0xff] }
 0x497   :  { %15264 = vst [vmem:[#allocation4_spill] sm:$0xff] %v12428_v40 }
 0x49a   :  { %v2543_v26 = vpop.f32.mrf.mxu2 }
 0x49b   :  { %v2676_v20 = vadd.f32 %v2543_v26, %v2210_v16  ;;  %v3196_v8 = vpop.f32.mrf.mxu0  ;;  %v3648_v62 = vpop.f32.mrf.mxu1 }
 0x49c   :  { %v3506_v34 = vadd.f32 %v3196_v8, %v15266_v42  ;;  %v3964_v55 = vadd.f32 %v3648_v62, %v3502_v22  ;;  %v4567_v9 = vpop.f32.mrf.mxu3 }
 0x49d   :  { %v12436_v38 = vadd.f32 %v3026_v54, %v2676_v20  ;;  %v2215_v54 = vadd.f32 %v2214_v3, %v15272_v5  ;;  %v15276_v3 = vld [vmem:[#allocation18_spill] sm:$0xff] }
 0x49f   :  { %15267 = vst [vmem:[#allocation22_spill] sm:$0xff] %v12436_v38  ;;  %8519 = vmatmul.msk.bf16.gmra.mxu2 %vm1380_vm1, %v10033_v36 }
 0x4a1   :  { %8572 = vmatmul.msk.bf16.gmra.mxu3 %vm1380_vm1, %v15269_v1 }
 0x4a2   :  { %v2546_v24 = vpop.f32.mrf.mxu2 }
 0x4a3   :  { %v2677_v43 = vadd.f32 %v2546_v24, %v2213_v19  ;;  %v3199_v40 = vpop.f32.mrf.mxu0  ;;  %v3651_v14 = vpop.f32.mrf.mxu1  ;;  %v15273_v19 = vld [vmem:[#allocation16_spill] sm:$0xff] }
 0x4a4   :  { %v3507_v16 = vadd.f32 %v3199_v40, %v15270_v37  ;;  %v3965_v26 = vadd.f32 %v3651_v14, %v3503_v32  ;;  %v4570_v22 = vpop.f32.mrf.mxu3 }
 0x4a5   :  { %v12444_v8 = vadd.f32 %v3029_v11, %v2677_v43 }
 0x4a6   :  { %8403 = vmatmul.msk.bf16.gmra.mxu0 %vm1380_vm1, %v9937_v45  ;;  %8465 = vmatmul.msk.bf16.gmra.mxu1 %vm1380_vm1, %v9863_v51 }
 0x4a7   :  { %15271 = vst [vmem:[#allocation12_spill] sm:$0xff] %v12444_v8  ;;  %v15275_v8 = vld [vmem:[#allocation28_spill] sm:$0xff] }
 0x4aa   :  { %v2548_v20 = vpop.f32.mrf.mxu2 }
 0x4ab   :  { %v2678_v62 = vadd.f32 %v2548_v20, %v2215_v54  ;;  %v3201_v42 = vpop.f32.mrf.mxu0  ;;  %v3653_v53 = vpop.f32.mrf.mxu1 }
 0x4ac   :  { %v3508_v24 = vadd.f32 %v3201_v42, %v15273_v19  ;;  %v3966_v38 = vadd.f32 %v3653_v53, %v3504_v56  ;;  %v4572_v14 = vpop.f32.mrf.mxu3  ;;  %v15278_v53 = vld [vmem:[#allocation19_spill] sm:$0xff] }
 0x4ad   :  { %v12452_v40 = vadd.f32 %v3031_v25, %v2678_v62 }
 0x4af   :  { %15274 = vst [vmem:[#allocation5_spill] sm:$0xff] %v12452_v40  ;;  %4142 = vmatmul.bf16.gmra.mxu2 %v15114_v21 }
 0x4b1   :  { %8573 = vmatmul.msk.bf16.gmra.mxu3 %vm1380_vm1, %v15275_v8 }
 0x4b2   :  { %v4103_v32 = vpop.f32.mrf.mxu2 }
 0x4b3   :  { %v4423_v11 = vadd.f32 %v4103_v32, %v3961_v23  ;;  %v3204_v43 = vpop.f32.mrf.mxu0  ;;  %v3656_v37 = vpop.f32.mrf.mxu1 }
 0x4b4   :  { %v3509_v5 = vadd.f32 %v3204_v43, %v15276_v3  ;;  %v3967_v54 = vadd.f32 %v3656_v37, %v3505_v2  ;;  %v4575_v56 = vpop.f32.mrf.mxu3  ;;  %v15280_v3 = vld [vmem:[#allocation31_spill] sm:$0xff] }
 0x4b5   :  { %v12458_v20 = vadd.f32 %v4565_v47, %v4423_v11 }
 0x4b6   :  { %8404 = vmatmul.msk.bf16.gmra.mxu0 %vm1380_vm1, %v9985_v52  ;;  %8466 = vmatmul.msk.bf16.gmra.mxu1 %vm1380_vm1, %v9937_v45 }
 0x4b7   :  { %15277 = vst [vmem:[#allocation13_spill] sm:$0xff] %v12458_v20  ;;  %v15281_v20 = vld [vmem:[#allocation20_spill] sm:$0xff] }
 0x4ba   :  { %v4105_v25 = vpop.f32.mrf.mxu2 }
 0x4bb   :  { %v4424_v62 = vadd.f32 %v4105_v25, %v3962_v39  ;;  %v3206_v23 = vpop.f32.mrf.mxu0  ;;  %v3658_v42 = vpop.f32.mrf.mxu1 }
 0x4bc   :  { %v3510_v19 = vadd.f32 %v3206_v23, %v15278_v53  ;;  %v3968_v32 = vadd.f32 %v3658_v42, %v3506_v34  ;;  %v4577_v43 = vpop.f32.mrf.mxu3  ;;  %v15283_v42 = vld [vmem:[#allocation21_spill] sm:$0xff] }
 0x4bd   :  { %v12465_v40 = vadd.f32 %v4567_v9, %v4424_v62 }
 0x4bf   :  { %15279 = vst [vmem:[#allocation6_spill] sm:$0xff] %v12465_v40  ;;  %8520 = vmatmul.msk.bf16.gmra.mxu2 %vm1380_vm1, %v15262_v50 }
 0x4c1   :  { %8574 = vmatmul.msk.bf16.gmra.mxu3 %vm1380_vm1, %v15280_v3 }
 0x4c2   :  { %v4108_v2 = vpop.f32.mrf.mxu2 }
 0x4c3   :  { %v4425_v47 = vadd.f32 %v4108_v2, %v3963_v48  ;;  %v3209_v11 = vpop.f32.mrf.mxu0  ;;  %v3661_v37 = vpop.f32.mrf.mxu1 }
 0x4c4   :  { %v3511_v39 = vadd.f32 %v3209_v11, %v15281_v20  ;;  %v3969_v25 = vadd.f32 %v3661_v37, %v3507_v16  ;;  %v4580_v34 = vpop.f32.mrf.mxu3  ;;  %v15285_v37 = vld [vmem:[#allocation34_spill] sm:$0xff] }
 0x4c5   :  { %v12472_v45 = vadd.f32 %v4570_v22, %v4425_v47 }
 0x4c6   :  { %8405 = vmatmul.msk.bf16.gmra.mxu0 %vm1380_vm1, %v10033_v36  ;;  %8467 = vmatmul.msk.bf16.gmra.mxu1 %vm1380_vm1, %v9985_v52 }
 0x4c7   :  { %15282 = vst [vmem:[#allocation15_spill] sm:$0xff] %v12472_v45  ;;  %v15286_v45 = vld [vmem:[#allocation23_spill] sm:$0xff] }
 0x4ca   :  { %v4110_v9 = vpop.f32.mrf.mxu2 }
 0x4cb   :  { %v4426_v62 = vadd.f32 %v4110_v9, %v3964_v55  ;;  %v3211_v48 = vpop.f32.mrf.mxu0  ;;  %v3663_v23 = vpop.f32.mrf.mxu1 }
 0x4cc   :  { %v3512_v53 = vadd.f32 %v3211_v48, %v15283_v42  ;;  %v3970_v2 = vadd.f32 %v3663_v23, %v3508_v24  ;;  %v4582_v20 = vpop.f32.mrf.mxu3  ;;  %v15288_v23 = vld [vmem:[#allocation24_spill] sm:$0xff] }
 0x4cd   :  { %v12479_v40 = vadd.f32 %v4572_v14, %v4426_v62 }
 0x4cf   :  { %15284 = vst [vmem:[#allocation7_spill] sm:$0xff] %v12479_v40  ;;  %8521 = vmatmul.msk.bf16.gmra.mxu2 %vm1380_vm1, %v15269_v1 }
 0x4d1   :  { %8575 = vmatmul.msk.bf16.gmra.mxu3 %vm1380_vm1, %v15285_v37 }
 0x4d2   :  { %v4113_v16 = vpop.f32.mrf.mxu2 }
 0x4d3   :  { %v4427_v22 = vadd.f32 %v4113_v16, %v3965_v26  ;;  %v3214_v47 = vpop.f32.mrf.mxu0  ;;  %v3666_v11 = vpop.f32.mrf.mxu1 }
 0x4d4   :  { %v3513_v55 = vadd.f32 %v3214_v47, %v15286_v45  ;;  %v3971_v9 = vadd.f32 %v3666_v11, %v3509_v5  ;;  %v4585_v24 = vpop.f32.mrf.mxu3  ;;  %v15290_v11 = vld [vmem:[#allocation37_spill] sm:$0xff] }
 0x4d5   :  { %v12486_v52 = vadd.f32 %v4575_v56, %v4427_v22 }
 0x4d6   :  { %8406 = vmatmul.msk.bf16.gmra.mxu0 %vm1380_vm1, %v15256_v31  ;;  %8468 = vmatmul.msk.bf16.gmra.mxu1 %vm1380_vm1, %v10033_v36 }
 0x4d7   :  { %15287 = vst [vmem:[#allocation16_spill] sm:$0xff] %v12486_v52  ;;  %v15291_v52 = vld [vmem:[#allocation26_spill] sm:$0xff] }
 0x4da   :  { %v4115_v14 = vpop.f32.mrf.mxu2 }
 0x4db   :  { %v4428_v62 = vadd.f32 %v4115_v14, %v3966_v38  ;;  %v3216_v26 = vpop.f32.mrf.mxu0  ;;  %v3668_v48 = vpop.f32.mrf.mxu1 }
 0x4dc   :  { %v3514_v42 = vadd.f32 %v3216_v26, %v15288_v23  ;;  %v3972_v16 = vadd.f32 %v3668_v48, %v3510_v19  ;;  %v4587_v45 = vpop.f32.mrf.mxu3  ;;  %v15293_v48 = vld [vmem:[#allocation27_spill] sm:$0xff] }
 0x4dd   :  { %v12493_v40 = vadd.f32 %v4577_v43, %v4428_v62 }
 0x4df   :  { %15289 = vst [vmem:[#allocation18_spill] sm:$0xff] %v12493_v40  ;;  %8522 = vmatmul.msk.bf16.gmra.mxu2 %vm1380_vm1, %v15275_v8 }
 0x4e1   :  { %8576 = vmatmul.msk.bf16.gmra.mxu3 %vm1380_vm1, %v15290_v11 }
 0x4e2   :  { %v4118_v5 = vpop.f32.mrf.mxu2 }
 0x4e3   :  { %v4429_v56 = vadd.f32 %v4118_v5, %v3967_v54  ;;  %v3219_v22 = vpop.f32.mrf.mxu0  ;;  %v3671_v47 = vpop.f32.mrf.mxu1 }
 0x4e4   :  { %v3515_v38 = vadd.f32 %v3219_v22, %v15291_v52  ;;  %v3973_v14 = vadd.f32 %v3671_v47, %v3511_v39  ;;  %v4590_v19 = vpop.f32.mrf.mxu3  ;;  %v15295_v22 = vld [vmem:[#allocation41_spill] sm:$0xff] }
 0x4e5   :  { %v12500_v36 = vadd.f32 %v4580_v34, %v4429_v56  ;;  %v15296_v47 = vld [vmem:[#allocation29_spill] sm:$0xff] }
 0x4e6   :  { %8407 = vmatmul.msk.bf16.gmra.mxu0 %vm1380_vm1, %v15262_v50  ;;  %8469 = vmatmul.msk.bf16.gmra.mxu1 %vm1380_vm1, %v15256_v31 }
 0x4e7   :  { %15292 = vst [vmem:[#allocation19_spill] sm:$0xff] %v12500_v36 }
 0x4ea   :  { %v4120_v43 = vpop.f32.mrf.mxu2 }
 0x4eb   :  { %v4430_v62 = vadd.f32 %v4120_v43, %v3968_v32  ;;  %v3221_v54 = vpop.f32.mrf.mxu0  ;;  %v3673_v26 = vpop.f32.mrf.mxu1 }
 0x4ec   :  { %v3516_v23 = vadd.f32 %v3221_v54, %v15293_v48  ;;  %v3974_v5 = vadd.f32 %v3673_v26, %v3512_v53  ;;  %v4592_v52 = vpop.f32.mrf.mxu3  ;;  %v15298_v26 = vld [vmem:[#allocation30_spill] sm:$0xff] }
 0x4ed   :  { %v12507_v40 = vadd.f32 %v4582_v20, %v4430_v62 }
 0x4ef   :  { %15294 = vst [vmem:[#allocation20_spill] sm:$0xff] %v12507_v40  ;;  %8523 = vmatmul.msk.bf16.gmra.mxu2 %vm1380_vm1, %v15280_v3 }
 0x4f1   :  { %8577 = vmatmul.msk.bf16.gmra.mxu3 %vm1380_vm1, %v15295_v22 }
 0x4f2   :  { %v4123_v39 = vpop.f32.mrf.mxu2 }
 0x4f3   :  { %v4431_v34 = vadd.f32 %v4123_v39, %v3969_v25  ;;  %v3224_v50 = vpop.f32.mrf.mxu0  ;;  %v3676_v56 = vpop.f32.mrf.mxu1 }
 0x4f4   :  { %v3517_v32 = vadd.f32 %v3224_v50, %v15296_v47  ;;  %v3975_v43 = vadd.f32 %v3676_v56, %v3513_v55  ;;  %v4595_v53 = vpop.f32.mrf.mxu3  ;;  %v15300_v56 = vld [vmem:[#allocation62_spill] sm:$0xff]  ;;  %v15301_v47 = vld [vmem:[#allocation32_spill] sm:$0xff] }
 0x4f5   :  { %v12514_v36 = vadd.f32 %v4585_v24, %v4431_v34 }
 0x4f6   :  { %8408 = vmatmul.msk.bf16.gmra.mxu0 %vm1380_vm1, %v15269_v1  ;;  %3715 = vmatmul.bf16.gmra.mxu1 %v15114_v21 }
 0x4f7   :  { %15297 = vst [vmem:[#allocation21_spill] sm:$0xff] %v12514_v36 }
 0x4fa   :  { %v4125_v20 = vpop.f32.mrf.mxu2 }
 0x4fb   :  { %v4432_v62 = vadd.f32 %v4125_v20, %v3970_v2  ;;  %v3226_v54 = vpop.f32.mrf.mxu0  ;;  %v3678_v25 = vpop.f32.mrf.mxu1 }
 0x4fc   :  { %v3518_v48 = vadd.f32 %v3226_v54, %v15298_v26  ;;  %v3976_v39 = vadd.f32 %v3678_v25, %v3514_v42  ;;  %v4597_v31 = vpop.f32.mrf.mxu3  ;;  %v15303_v25 = vld [vmem:[#allocation33_spill] sm:$0xff] }
 0x4fd   :  { %v12520_v40 = vadd.f32 %v4587_v45, %v4432_v62 }
 0x4ff   :  { %15299 = vst [vmem:[#allocation23_spill] sm:$0xff] %v12520_v40  ;;  %8524 = vmatmul.msk.bf16.gmra.mxu2 %vm1380_vm1, %v15285_v37 }
 0x501   :  { %8578 = vmatmul.msk.bf16.gmra.mxu3 %vm1380_vm1, %v15300_v56 }
 0x502   :  { %v4128_v55 = vpop.f32.mrf.mxu2 }
 0x503   :  { %v4433_v24 = vadd.f32 %v4128_v55, %v3971_v9  ;;  %v3229_v34 = vpop.f32.mrf.mxu0  ;;  %v3681_v50 = vpop.f32.mrf.mxu1 }
 0x504   :  { %v3519_v2 = vadd.f32 %v3229_v34, %v15301_v47  ;;  %v3977_v20 = vadd.f32 %v3681_v50, %v3515_v38  ;;  %v4600_v42 = vpop.f32.mrf.mxu3  ;;  %v15305_v47 = vld [vmem:[#allocation46_spill] sm:$0xff] }
 0x505   :  { %v12527_v36 = vadd.f32 %v4590_v19, %v4433_v24 }
 0x506   :  { %8409 = vmatmul.msk.bf16.gmra.mxu0 %vm1380_vm1, %v15275_v8  ;;  %8470 = vmatmul.msk.bf16.gmra.mxu1 %vm1380_vm1, %v15269_v1 }
 0x507   :  { %15302 = vst [vmem:[#allocation24_spill] sm:$0xff] %v12527_v36  ;;  %v15306_v36 = vld [vmem:[#allocation35_spill] sm:$0xff] }
 0x50a   :  { %v4130_v45 = vpop.f32.mrf.mxu2 }
 0x50b   :  { %v4434_v62 = vadd.f32 %v4130_v45, %v3972_v16  ;;  %v3231_v9 = vpop.f32.mrf.mxu0  ;;  %v3683_v54 = vpop.f32.mrf.mxu1 }
 0x50c   :  { %v3520_v26 = vadd.f32 %v3231_v9, %v15303_v25  ;;  %v3978_v55 = vadd.f32 %v3683_v54, %v3516_v23  ;;  %v4602_v34 = vpop.f32.mrf.mxu3  ;;  %v15308_v54 = vld [vmem:[#allocation36_spill] sm:$0xff] }
 0x50d   :  { %v12534_v40 = vadd.f32 %v4592_v52, %v4434_v62 }
 0x50f   :  { %15304 = vst [vmem:[#allocation26_spill] sm:$0xff] %v12534_v40  ;;  %8525 = vmatmul.msk.bf16.gmra.mxu2 %vm1380_vm1, %v15290_v11 }
 0x511   :  { %8579 = vmatmul.msk.bf16.gmra.mxu3 %vm1380_vm1, %v15305_v47 }
 0x512   :  { %v4133_v38 = vpop.f32.mrf.mxu2 }
 0x513   :  { %v4435_v19 = vadd.f32 %v4133_v38, %v3973_v14  ;;  %v3234_v24 = vpop.f32.mrf.mxu0  ;;  %v3686_v50 = vpop.f32.mrf.mxu1 }
 0x514   :  { %v3521_v16 = vadd.f32 %v3234_v24, %v15306_v36  ;;  %v3979_v45 = vadd.f32 %v3686_v50, %v3517_v32  ;;  %v4605_v23 = vpop.f32.mrf.mxu3  ;;  %v15310_v50 = vld [vmem:[#allocation49_spill] sm:$0xff] }
 0x515   :  { %v12541_v1 = vadd.f32 %v4595_v53, %v4435_v19 }
 0x516   :  { %8410 = vmatmul.msk.bf16.gmra.mxu0 %vm1380_vm1, %v15280_v3  ;;  %8471 = vmatmul.msk.bf16.gmra.mxu1 %vm1380_vm1, %v15275_v8 }
 0x517   :  { %15307 = vst [vmem:[#allocation27_spill] sm:$0xff] %v12541_v1  ;;  %v15311_v1 = vld [vmem:[#allocation39_spill] sm:$0xff] }
 0x51a   :  { %v4135_v52 = vpop.f32.mrf.mxu2 }
 0x51b   :  { %v4436_v62 = vadd.f32 %v4135_v52, %v3974_v5  ;;  %v3236_v14 = vpop.f32.mrf.mxu0  ;;  %v3688_v9 = vpop.f32.mrf.mxu1 }
 0x51c   :  { %v3522_v25 = vadd.f32 %v3236_v14, %v15308_v54  ;;  %v3980_v38 = vadd.f32 %v3688_v9, %v3518_v48  ;;  %v4607_v36 = vpop.f32.mrf.mxu3  ;;  %v15313_v9 = vld [vmem:[#allocation40_spill] sm:$0xff] }
 0x51d   :  { %v12548_v40 = vadd.f32 %v4597_v31, %v4436_v62 }
 0x51f   :  { %15309 = vst [vmem:[#allocation29_spill] sm:$0xff] %v12548_v40  ;;  %8526 = vmatmul.msk.bf16.gmra.mxu2 %vm1380_vm1, %v15295_v22 }
 0x521   :  { %8580 = vmatmul.msk.bf16.gmra.mxu3 %vm1380_vm1, %v15310_v50 }
 0x522   :  { %v4138_v32 = vpop.f32.mrf.mxu2 }
 0x523   :  { %v4437_v53 = vadd.f32 %v4138_v32, %v3975_v43  ;;  %v3239_v19 = vpop.f32.mrf.mxu0  ;;  %v3691_v24 = vpop.f32.mrf.mxu1 }
 0x524   :  { %v3523_v5 = vadd.f32 %v3239_v19, %v15311_v1  ;;  %v3981_v52 = vadd.f32 %v3691_v24, %v3519_v2  ;;  %v4610_v31 = vpop.f32.mrf.mxu3  ;;  %v15315_v24 = vld [vmem:[#allocation52_spill] sm:$0xff] }
 0x525   :  { %v12555_v8 = vadd.f32 %v4600_v42, %v4437_v53 }
 0x526   :  { %8411 = vmatmul.msk.bf16.gmra.mxu0 %vm1380_vm1, %v15285_v37  ;;  %8472 = vmatmul.msk.bf16.gmra.mxu1 %vm1380_vm1, %v15280_v3 }
 0x527   :  { %15312 = vst [vmem:[#allocation30_spill] sm:$0xff] %v12555_v8  ;;  %v15316_v8 = vld [vmem:[#allocation42_spill] sm:$0xff] }
 0x52a   :  { %v4140_v48 = vpop.f32.mrf.mxu2 }
 0x52b   :  { %v4438_v62 = vadd.f32 %v4140_v48, %v3976_v39  ;;  %v3241_v43 = vpop.f32.mrf.mxu0  ;;  %v3693_v14 = vpop.f32.mrf.mxu1 }
 0x52c   :  { %v3524_v54 = vadd.f32 %v3241_v43, %v15313_v9  ;;  %v3982_v32 = vadd.f32 %v3693_v14, %v3520_v26  ;;  %v4612_v1 = vpop.f32.mrf.mxu3  ;;  %v15318_v14 = vld [vmem:[#allocation43_spill] sm:$0xff] }
 0x52d   :  { %v12562_v40 = vadd.f32 %v4602_v34, %v4438_v62 }
 0x52f   :  { %15314 = vst [vmem:[#allocation32_spill] sm:$0xff] %v12562_v40  ;;  %4182 = vmatmul.bf16.gmra.mxu2 %v15114_v21 }
 0x531   :  { %8581 = vmatmul.msk.bf16.gmra.mxu3 %vm1380_vm1, %v15315_v24 }
 0x532   :  { %v4143_v2 = vpop.f32.mrf.mxu2 }
 0x533   :  { %v4439_v42 = vadd.f32 %v4143_v2, %v3977_v20  ;;  %v3244_v53 = vpop.f32.mrf.mxu0  ;;  %v3696_v19 = vpop.f32.mrf.mxu1 }
 0x534   :  { %v3525_v3 = vadd.f32 %v3244_v53, %v15316_v8  ;;  %v3983_v39 = vadd.f32 %v3696_v19, %v3521_v16  ;;  %v4615_v26 = vpop.f32.mrf.mxu3  ;;  %v15320_v19 = vld [vmem:[#allocation55_spill] sm:$0xff] }
 0x535   :  { %v12568_v48 = vadd.f32 %v4605_v23, %v4439_v42 }
 0x536   :  { %8412 = vmatmul.msk.bf16.gmra.mxu0 %vm1380_vm1, %v15290_v11  ;;  %8473 = vmatmul.msk.bf16.gmra.mxu1 %vm1380_vm1, %v15285_v37 }
 0x537   :  { %15317 = vst [vmem:[#allocation33_spill] sm:$0xff] %v12568_v48  ;;  %v15321_v48 = vld [vmem:[#allocation44_spill] sm:$0xff] }
 0x53a   :  { %v4145_v34 = vpop.f32.mrf.mxu2 }
 0x53b   :  { %v4440_v62 = vadd.f32 %v4145_v34, %v3978_v55  ;;  %v3246_v20 = vpop.f32.mrf.mxu0  ;;  %v3698_v43 = vpop.f32.mrf.mxu1 }
 0x53c   :  { %v3526_v9 = vadd.f32 %v3246_v20, %v15318_v14  ;;  %v3984_v2 = vadd.f32 %v3698_v43, %v3522_v25  ;;  %v4617_v8 = vpop.f32.mrf.mxu3  ;;  %v15323_v43 = vld [vmem:[#allocation45_spill] sm:$0xff] }
 0x53d   :  { %v12575_v40 = vadd.f32 %v4607_v36, %v4440_v62 }
 0x53f   :  { %15319 = vst [vmem:[#allocation46_spill] sm:$0xff] %v12575_v40  ;;  %8527 = vmatmul.msk.bf16.gmra.mxu2 %vm1380_vm1, %v15305_v47 }
 0x541   :  { %8582 = vmatmul.msk.bf16.gmra.mxu3 %vm1380_vm1, %v15320_v19 }
 0x542   :  { %v4148_v16 = vpop.f32.mrf.mxu2 }
 0x543   :  { %v4441_v23 = vadd.f32 %v4148_v16, %v3979_v45  ;;  %v3249_v42 = vpop.f32.mrf.mxu0  ;;  %v3701_v53 = vpop.f32.mrf.mxu1 }
 0x544   :  { %v3527_v55 = vadd.f32 %v3249_v42, %v15321_v48  ;;  %v3985_v34 = vadd.f32 %v3701_v53, %v3523_v5  ;;  %v4620_v25 = vpop.f32.mrf.mxu3  ;;  %v15325_v53 = vld [vmem:[#allocation58_spill] sm:$0xff] }
 0x545   :  { %v12582_v37 = vadd.f32 %v4610_v31, %v4441_v23 }
 0x546   :  { %8413 = vmatmul.msk.bf16.gmra.mxu0 %vm1380_vm1, %v15295_v22  ;;  %8474 = vmatmul.msk.bf16.gmra.mxu1 %vm1380_vm1, %v15290_v11 }
 0x547   :  { %15322 = vst [vmem:[#allocation35_spill] sm:$0xff] %v12582_v37  ;;  %v15326_v37 = vld [vmem:[#allocation47_spill] sm:$0xff] }
 0x54a   :  { %v4150_v36 = vpop.f32.mrf.mxu2 }
 0x54b   :  { %v4442_v62 = vadd.f32 %v4150_v36, %v3980_v38  ;;  %v3251_v45 = vpop.f32.mrf.mxu0  ;;  %v3703_v20 = vpop.f32.mrf.mxu1 }
 0x54c   :  { %v3528_v14 = vadd.f32 %v3251_v45, %v15323_v43  ;;  %v3986_v16 = vadd.f32 %v3703_v20, %v3524_v54  ;;  %v4622_v48 = vpop.f32.mrf.mxu3  ;;  %v15328_v20 = vld [vmem:[#allocation48_spill] sm:$0xff] }
 0x54d   :  { %v12589_v40 = vadd.f32 %v4612_v1, %v4442_v62 }
 0x54f   :  { %15324 = vst [vmem:[#allocation36_spill] sm:$0xff] %v12589_v40  ;;  %8528 = vmatmul.msk.bf16.gmra.mxu2 %vm1380_vm1, %v15310_v50 }
 0x551   :  { %8583 = vmatmul.msk.bf16.gmra.mxu3 %vm1380_vm1, %v15325_v53 }
 0x552   :  { %v4153_v5 = vpop.f32.mrf.mxu2 }
 0x553   :  { %v4443_v31 = vadd.f32 %v4153_v5, %v3981_v52  ;;  %v3254_v23 = vpop.f32.mrf.mxu0  ;;  %v3706_v42 = vpop.f32.mrf.mxu1 }
 0x554   :  { %v3529_v38 = vadd.f32 %v3254_v23, %v15326_v37  ;;  %v3987_v36 = vadd.f32 %v3706_v42, %v3525_v3  ;;  %v4625_v54 = vpop.f32.mrf.mxu3  ;;  %v15330_v42 = vld [vmem:[#allocation61_spill] sm:$0xff] }
 0x555   :  { %v12596_v11 = vadd.f32 %v4615_v26, %v4443_v31 }
 0x556   :  { %8414 = vmatmul.msk.bf16.gmra.mxu0 %vm1380_vm1, %v15300_v56  ;;  %8475 = vmatmul.msk.bf16.gmra.mxu1 %vm1380_vm1, %v15295_v22 }
 0x557   :  { %15327 = vst [vmem:[#allocation39_spill] sm:$0xff] %v12596_v11  ;;  %v15331_v11 = vld [vmem:[#allocation50_spill] sm:$0xff] }
 0x55a   :  { %v4155_v1 = vpop.f32.mrf.mxu2 }
 0x55b   :  { %v4444_v62 = vadd.f32 %v4155_v1, %v3982_v32  ;;  %v3256_v52 = vpop.f32.mrf.mxu0  ;;  %v3708_v45 = vpop.f32.mrf.mxu1 }
 0x55c   :  { %v3530_v43 = vadd.f32 %v3256_v52, %v15328_v20  ;;  %v3988_v5 = vadd.f32 %v3708_v45, %v3526_v9  ;;  %v4627_v37 = vpop.f32.mrf.mxu3  ;;  %v15333_v45 = vld [vmem:[#allocation51_spill] sm:$0xff] }
 0x55d   :  { %v12603_v40 = vadd.f32 %v4617_v8, %v4444_v62 }
 0x55f   :  { %15329 = vst [vmem:[#allocation40_spill] sm:$0xff] %v12603_v40  ;;  %8529 = vmatmul.msk.bf16.gmra.mxu2 %vm1380_vm1, %v15315_v24 }
 0x561   :  { %8584 = vmatmul.msk.bf16.gmra.mxu3 %vm1380_vm1, %v15330_v42 }
 0x562   :  { %v4158_v3 = vpop.f32.mrf.mxu2 }
 0x563   :  { %v4445_v26 = vadd.f32 %v4158_v3, %v3983_v39  ;;  %v3259_v31 = vpop.f32.mrf.mxu0  ;;  %v3711_v23 = vpop.f32.mrf.mxu1 }
 0x564   :  { %v3531_v32 = vadd.f32 %v3259_v31, %v15331_v11  ;;  %v3989_v1 = vadd.f32 %v3711_v23, %v3527_v55  ;;  %v4630_v9 = vpop.f32.mrf.mxu3  ;;  %v15335_v31 = vld [vmem:[#allocation65_spill] sm:$0xff] }
 0x565   :  { %v12610_v22 = vadd.f32 %v4620_v25, %v4445_v26  ;;  %v15336_v23 = vld [vmem:[#allocation53_spill] sm:$0xff] }
 0x566   :  { %8415 = vmatmul.msk.bf16.gmra.mxu0 %vm1380_vm1, %v15305_v47  ;;  %8476 = vmatmul.msk.bf16.gmra.mxu1 %vm1380_vm1, %v15300_v56 }
 0x567   :  { %15332 = vst [vmem:[#allocation42_spill] sm:$0xff] %v12610_v22 }
 0x56a   :  { %v4160_v8 = vpop.f32.mrf.mxu2 }
 0x56b   :  { %v4446_v62 = vadd.f32 %v4160_v8, %v3984_v2  ;;  %v3261_v39 = vpop.f32.mrf.mxu0  ;;  %v3713_v52 = vpop.f32.mrf.mxu1 }
 0x56c   :  { %v3532_v20 = vadd.f32 %v3261_v39, %v15333_v45  ;;  %v3990_v3 = vadd.f32 %v3713_v52, %v3528_v14  ;;  %v4632_v11 = vpop.f32.mrf.mxu3  ;;  %v15338_v52 = vld [vmem:[#allocation54_spill] sm:$0xff] }
 0x56d   :  { %v12617_v40 = vadd.f32 %v4622_v48, %v4446_v62 }
 0x56f   :  { %15334 = vst [vmem:[#allocation43_spill] sm:$0xff] %v12617_v40  ;;  %8530 = vmatmul.msk.bf16.gmra.mxu2 %vm1380_vm1, %v15320_v19 }
 0x571   :  { %8585 = vmatmul.msk.bf16.gmra.mxu3 %vm1380_vm1, %v15335_v31 }
 0x572   :  { %v4163_v55 = vpop.f32.mrf.mxu2 }
 0x573   :  { %v4447_v25 = vadd.f32 %v4163_v55, %v3985_v34  ;;  %v3264_v47 = vpop.f32.mrf.mxu0  ;;  %v3716_v26 = vpop.f32.mrf.mxu1 }
 0x574   :  { %v3533_v2 = vadd.f32 %v3264_v47, %v15336_v23  ;;  %v3991_v8 = vadd.f32 %v3716_v26, %v3529_v38  ;;  %v4635_v14 = vpop.f32.mrf.mxu3  ;;  %v15340_v26 = vld [vmem:[#allocation86_spill] sm:$0xff]  ;;  %v15341_v23 = vld [vmem:[#allocation56_spill] sm:$0xff] }
 0x575   :  { %v12624_v22 = vadd.f32 %v4625_v54, %v4447_v25 }
 0x576   :  { %8416 = vmatmul.msk.bf16.gmra.mxu0 %vm1380_vm1, %v15310_v50  ;;  %3755 = vmatmul.bf16.gmra.mxu1 %v15114_v21 }
 0x577   :  { %15337 = vst [vmem:[#allocation44_spill] sm:$0xff] %v12624_v22 }
 0x57a   :  { %v4165_v48 = vpop.f32.mrf.mxu2 }
 0x57b   :  { %v4448_v62 = vadd.f32 %v4165_v48, %v3986_v16  ;;  %v3266_v39 = vpop.f32.mrf.mxu0  ;;  %v3718_v34 = vpop.f32.mrf.mxu1 }
 0x57c   :  { %v3534_v45 = vadd.f32 %v3266_v39, %v15338_v52  ;;  %v3992_v55 = vadd.f32 %v3718_v34, %v3530_v43  ;;  %v4637_v56 = vpop.f32.mrf.mxu3  ;;  %v15343_v34 = vld [vmem:[#allocation57_spill] sm:$0xff] }
 0x57d   :  { %v12630_v40 = vadd.f32 %v4627_v37, %v4448_v62 }
 0x57f   :  { %15339 = vst [vmem:[#allocation45_spill] sm:$0xff] %v12630_v40  ;;  %8531 = vmatmul.msk.bf16.gmra.mxu2 %vm1380_vm1, %v15325_v53 }
 0x581   :  { %8586 = vmatmul.msk.bf16.gmra.mxu3 %vm1380_vm1, %v15340_v26 }
 0x582   :  { %v4168_v38 = vpop.f32.mrf.mxu2 }
 0x583   :  { %v4449_v54 = vadd.f32 %v4168_v38, %v3987_v36  ;;  %v3269_v25 = vpop.f32.mrf.mxu0  ;;  %v3721_v47 = vpop.f32.mrf.mxu1 }
 0x584   :  { %v3535_v16 = vadd.f32 %v3269_v25, %v15341_v23  ;;  %v3993_v48 = vadd.f32 %v3721_v47, %v3531_v32  ;;  %v4640_v43 = vpop.f32.mrf.mxu3  ;;  %v15345_v23 = vld [vmem:[#allocation70_spill] sm:$0xff] }
 0x585   :  { %v12637_v22 = vadd.f32 %v4630_v9, %v4449_v54 }
 0x586   :  { %8417 = vmatmul.msk.bf16.gmra.mxu0 %vm1380_vm1, %v15315_v24  ;;  %8477 = vmatmul.msk.bf16.gmra.mxu1 %vm1380_vm1, %v15310_v50 }
 0x587   :  { %15342 = vst [vmem:[#allocation47_spill] sm:$0xff] %v12637_v22  ;;  %v15346_v22 = vld [vmem:[#allocation59_spill] sm:$0xff] }
 0x58a   :  { %v4170_v37 = vpop.f32.mrf.mxu2 }
 0x58b   :  { %v4450_v62 = vadd.f32 %v4170_v37, %v3988_v5  ;;  %v3271_v36 = vpop.f32.mrf.mxu0  ;;  %v3723_v39 = vpop.f32.mrf.mxu1 }
 0x58c   :  { %v3536_v52 = vadd.f32 %v3271_v36, %v15343_v34  ;;  %v3994_v38 = vadd.f32 %v3723_v39, %v3532_v20  ;;  %v4642_v25 = vpop.f32.mrf.mxu3  ;;  %v15348_v39 = vld [vmem:[#allocation60_spill] sm:$0xff] }
 0x58d   :  { %v12644_v40 = vadd.f32 %v4632_v11, %v4450_v62 }
 0x58f   :  { %15344 = vst [vmem:[#allocation48_spill] sm:$0xff] %v12644_v40  ;;  %8532 = vmatmul.msk.bf16.gmra.mxu2 %vm1380_vm1, %v15330_v42 }
 0x591   :  { %8587 = vmatmul.msk.bf16.gmra.mxu3 %vm1380_vm1, %v15345_v23 }
 0x592   :  { %v4173_v32 = vpop.f32.mrf.mxu2 }
 0x593   :  { %v4451_v9 = vadd.f32 %v4173_v32, %v3989_v1  ;;  %v3274_v54 = vpop.f32.mrf.mxu0  ;;  %v3726_v47 = vpop.f32.mrf.mxu1 }
 0x594   :  { %v3537_v5 = vadd.f32 %v3274_v54, %v15346_v22  ;;  %v3995_v37 = vadd.f32 %v3726_v47, %v3533_v2  ;;  %v4645_v20 = vpop.f32.mrf.mxu3  ;;  %v15350_v47 = vld [vmem:[#allocation73_spill] sm:$0xff] }
 0x595   :  { %v12651_v50 = vadd.f32 %v4635_v14, %v4451_v9 }
 0x596   :  { %8418 = vmatmul.msk.bf16.gmra.mxu0 %vm1380_vm1, %v15320_v19  ;;  %8478 = vmatmul.msk.bf16.gmra.mxu1 %vm1380_vm1, %v15315_v24 }
 0x597   :  { %15347 = vst [vmem:[#allocation50_spill] sm:$0xff] %v12651_v50  ;;  %v15351_v50 = vld [vmem:[#allocation63_spill] sm:$0xff] }
 0x59a   :  { %v4175_v11 = vpop.f32.mrf.mxu2 }
 0x59b   :  { %v4452_v62 = vadd.f32 %v4175_v11, %v3990_v3  ;;  %v3276_v1 = vpop.f32.mrf.mxu0  ;;  %v3728_v36 = vpop.f32.mrf.mxu1 }
 0x59c   :  { %v3538_v34 = vadd.f32 %v3276_v1, %v15348_v39  ;;  %v3996_v32 = vadd.f32 %v3728_v36, %v3534_v45  ;;  %v4647_v22 = vpop.f32.mrf.mxu3  ;;  %v15353_v36 = vld [vmem:[#allocation64_spill] sm:$0xff] }
 0x59d   :  { %v12658_v40 = vadd.f32 %v4637_v56, %v4452_v62 }
 0x59f   :  { %15349 = vst [vmem:[#allocation51_spill] sm:$0xff] %v12658_v40  ;;  %8533 = vmatmul.msk.bf16.gmra.mxu2 %vm1380_vm1, %v15335_v31 }
 0x5a1   :  { %8588 = vmatmul.msk.bf16.gmra.mxu3 %vm1380_vm1, %v15350_v47 }
 0x5a2   :  { %v4178_v2 = vpop.f32.mrf.mxu2 }
 0x5a3   :  { %v4453_v14 = vadd.f32 %v4178_v2, %v3991_v8  ;;  %v3279_v9 = vpop.f32.mrf.mxu0  ;;  %v3731_v54 = vpop.f32.mrf.mxu1 }
 0x5a4   :  { %v3539_v3 = vadd.f32 %v3279_v9, %v15351_v50  ;;  %v3997_v11 = vadd.f32 %v3731_v54, %v3535_v16  ;;  %v4650_v56 = vpop.f32.mrf.mxu3  ;;  %v15355_v54 = vld [vmem:[#allocation76_spill] sm:$0xff] }
 0x5a5   :  { %v12665_v24 = vadd.f32 %v4640_v43, %v4453_v14 }
 0x5a6   :  { %8419 = vmatmul.msk.bf16.gmra.mxu0 %vm1380_vm1, %v15325_v53  ;;  %8479 = vmatmul.msk.bf16.gmra.mxu1 %vm1380_vm1, %v15320_v19 }
 0x5a7   :  { %15352 = vst [vmem:[#allocation53_spill] sm:$0xff] %v12665_v24  ;;  %v15356_v24 = vld [vmem:[#allocation66_spill] sm:$0xff] }
 0x5aa   :  { %v4180_v45 = vpop.f32.mrf.mxu2 }
 0x5ab   :  { %v4454_v62 = vadd.f32 %v4180_v45, %v3992_v55  ;;  %v3281_v8 = vpop.f32.mrf.mxu0  ;;  %v3733_v1 = vpop.f32.mrf.mxu1 }
 0x5ac   :  { %v3540_v39 = vadd.f32 %v3281_v8, %v15353_v36  ;;  %v3998_v2 = vadd.f32 %v3733_v1, %v3536_v52  ;;  %v4652_v50 = vpop.f32.mrf.mxu3  ;;  %v15358_v1 = vld [vmem:[#allocation67_spill] sm:$0xff] }
 0x5ad   :  { %v12672_v40 = vadd.f32 %v4642_v25, %v4454_v62 }
 0x5af   :  { %15354 = vst [vmem:[#allocation54_spill] sm:$0xff] %v12672_v40  ;;  %4222 = vmatmul.bf16.gmra.mxu2 %v15114_v21 }
 0x5b1   :  { %8589 = vmatmul.msk.bf16.gmra.mxu3 %vm1380_vm1, %v15355_v54 }
 0x5b2   :  { %v4183_v16 = vpop.f32.mrf.mxu2 }
 0x5b3   :  { %v4455_v43 = vadd.f32 %v4183_v16, %v3993_v48  ;;  %v3284_v14 = vpop.f32.mrf.mxu0  ;;  %v3736_v9 = vpop.f32.mrf.mxu1 }
 0x5b4   :  { %v3541_v19 = vadd.f32 %v3284_v14, %v15356_v24  ;;  %v3999_v55 = vadd.f32 %v3736_v9, %v3537_v5  ;;  %v4655_v52 = vpop.f32.mrf.mxu3  ;;  %v15360_v9 = vld [vmem:[#allocation79_spill] sm:$0xff] }
 0x5b5   :  { %v12678_v45 = vadd.f32 %v4645_v20, %v4455_v43 }
 0x5b6   :  { %8420 = vmatmul.msk.bf16.gmra.mxu0 %vm1380_vm1, %v15330_v42  ;;  %8480 = vmatmul.msk.bf16.gmra.mxu1 %vm1380_vm1, %v15325_v53 }
 0x5b7   :  { %15357 = vst [vmem:[#allocation56_spill] sm:$0xff] %v12678_v45  ;;  %v15361_v45 = vld [vmem:[#allocation68_spill] sm:$0xff] }
 0x5ba   :  { %v4185_v25 = vpop.f32.mrf.mxu2 }
 0x5bb   :  { %v4456_v62 = vadd.f32 %v4185_v25, %v3994_v38  ;;  %v3286_v48 = vpop.f32.mrf.mxu0  ;;  %v3738_v8 = vpop.f32.mrf.mxu1 }
 0x5bc   :  { %v3542_v36 = vadd.f32 %v3286_v48, %v15358_v1  ;;  %v4000_v16 = vadd.f32 %v3738_v8, %v3538_v34  ;;  %v4657_v24 = vpop.f32.mrf.mxu3  ;;  %v15363_v8 = vld [vmem:[#allocation69_spill] sm:$0xff] }
 0x5bd   :  { %v12685_v40 = vadd.f32 %v4647_v22, %v4456_v62 }
 0x5bf   :  { %15359 = vst [vmem:[#allocation57_spill] sm:$0xff] %v12685_v40  ;;  %8534 = vmatmul.msk.bf16.gmra.mxu2 %vm1380_vm1, %v15345_v23 }
 0x5c1   :  { %8590 = vmatmul.msk.bf16.gmra.mxu3 %vm1380_vm1, %v15360_v9 }
 0x5c2   :  { %v4188_v5 = vpop.f32.mrf.mxu2 }
 0x5c3   :  { %v4457_v20 = vadd.f32 %v4188_v5, %v3995_v37  ;;  %v3289_v43 = vpop.f32.mrf.mxu0  ;;  %v3741_v14 = vpop.f32.mrf.mxu1 }
 0x5c4   :  { %v3543_v38 = vadd.f32 %v3289_v43, %v15361_v45  ;;  %v4001_v25 = vadd.f32 %v3741_v14, %v3539_v3  ;;  %v4660_v34 = vpop.f32.mrf.mxu3  ;;  %v15365_v14 = vld [vmem:[#allocation82_spill] sm:$0xff] }
 0x5c5   :  { %v12692_v53 = vadd.f32 %v4650_v56, %v4457_v20 }
 0x5c6   :  { %8421 = vmatmul.msk.bf16.gmra.mxu0 %vm1380_vm1, %v15335_v31  ;;  %8481 = vmatmul.msk.bf16.gmra.mxu1 %vm1380_vm1, %v15330_v42 }
 0x5c7   :  { %15362 = vst [vmem:[#allocation70_spill] sm:$0xff] %v12692_v53  ;;  %v15366_v53 = vld [vmem:[#allocation71_spill] sm:$0xff] }
 0x5ca   :  { %v4190_v22 = vpop.f32.mrf.mxu2 }
 0x5cb   :  { %v4458_v62 = vadd.f32 %v4190_v22, %v3996_v32  ;;  %v3291_v37 = vpop.f32.mrf.mxu0  ;;  %v3743_v48 = vpop.f32.mrf.mxu1 }
 0x5cc   :  { %v3544_v1 = vadd.f32 %v3291_v37, %v15363_v8  ;;  %v4002_v5 = vadd.f32 %v3743_v48, %v3540_v39  ;;  %v4662_v45 = vpop.f32.mrf.mxu3  ;;  %v15368_v48 = vld [vmem:[#allocation72_spill] sm:$0xff] }
 0x5cd   :  { %v12699_v40 = vadd.f32 %v4652_v50, %v4458_v62 }
 0x5cf   :  { %15364 = vst [vmem:[#allocation59_spill] sm:$0xff] %v12699_v40  ;;  %8535 = vmatmul.msk.bf16.gmra.mxu2 %vm1380_vm1, %v15350_v47 }
 0x5d1   :  { %8591 = vmatmul.msk.bf16.gmra.mxu3 %vm1380_vm1, %v15365_v14 }
 0x5d2   :  { %v4193_v3 = vpop.f32.mrf.mxu2 }
 0x5d3   :  { %v4459_v56 = vadd.f32 %v4193_v3, %v3997_v11  ;;  %v3294_v20 = vpop.f32.mrf.mxu0  ;;  %v3746_v43 = vpop.f32.mrf.mxu1 }
 0x5d4   :  { %v3545_v32 = vadd.f32 %v3294_v20, %v15366_v53  ;;  %v4003_v22 = vadd.f32 %v3746_v43, %v3541_v19  ;;  %v4665_v39 = vpop.f32.mrf.mxu3  ;;  %v15370_v43 = vld [vmem:[#allocation85_spill] sm:$0xff] }
 0x5d5   :  { %v12706_v42 = vadd.f32 %v4655_v52, %v4459_v56 }
 0x5d6   :  { %8422 = vmatmul.msk.bf16.gmra.mxu0 %vm1380_vm1, %v15340_v26  ;;  %8482 = vmatmul.msk.bf16.gmra.mxu1 %vm1380_vm1, %v15335_v31 }
 0x5d7   :  { %15367 = vst [vmem:[#allocation60_spill] sm:$0xff] %v12706_v42  ;;  %v15371_v42 = vld [vmem:[#allocation74_spill] sm:$0xff] }
 0x5da   :  { %v4195_v50 = vpop.f32.mrf.mxu2 }
 0x5db   :  { %v4460_v62 = vadd.f32 %v4195_v50, %v3998_v2  ;;  %v3296_v11 = vpop.f32.mrf.mxu0  ;;  %v3748_v37 = vpop.f32.mrf.mxu1 }
 0x5dc   :  { %v3546_v8 = vadd.f32 %v3296_v11, %v15368_v48  ;;  %v4004_v3 = vadd.f32 %v3748_v37, %v3542_v36  ;;  %v4667_v53 = vpop.f32.mrf.mxu3  ;;  %v15373_v37 = vld [vmem:[#allocation75_spill] sm:$0xff] }
 0x5dd   :  { %v12713_v40 = vadd.f32 %v4657_v24, %v4460_v62 }
 0x5df   :  { %15369 = vst [vmem:[#allocation63_spill] sm:$0xff] %v12713_v40  ;;  %8536 = vmatmul.msk.bf16.gmra.mxu2 %vm1380_vm1, %v15355_v54 }
 0x5e1   :  { %8592 = vmatmul.msk.bf16.gmra.mxu3 %vm1380_vm1, %v15370_v43 }
 0x5e2   :  { %v4198_v19 = vpop.f32.mrf.mxu2 }
 0x5e3   :  { %v4461_v52 = vadd.f32 %v4198_v19, %v3999_v55  ;;  %v3299_v56 = vpop.f32.mrf.mxu0  ;;  %v3751_v20 = vpop.f32.mrf.mxu1 }
 0x5e4   :  { %v3547_v2 = vadd.f32 %v3299_v56, %v15371_v42  ;;  %v4005_v50 = vadd.f32 %v3751_v20, %v3543_v38  ;;  %v4670_v36 = vpop.f32.mrf.mxu3  ;;  %v15375_v56 = vld [vmem:[#allocation89_spill] sm:$0xff] }
 0x5e5   :  { %v12720_v31 = vadd.f32 %v4660_v34, %v4461_v52  ;;  %v15376_v20 = vld [vmem:[#allocation77_spill] sm:$0xff] }
 0x5e6   :  { %8423 = vmatmul.msk.bf16.gmra.mxu0 %vm1380_vm1, %v15345_v23  ;;  %8483 = vmatmul.msk.bf16.gmra.mxu1 %vm1380_vm1, %v15340_v26 }
 0x5e7   :  { %15372 = vst [vmem:[#allocation64_spill] sm:$0xff] %v12720_v31 }
 0x5ea   :  { %v4200_v24 = vpop.f32.mrf.mxu2 }
 0x5eb   :  { %v4462_v62 = vadd.f32 %v4200_v24, %v4000_v16  ;;  %v3301_v55 = vpop.f32.mrf.mxu0  ;;  %v3753_v11 = vpop.f32.mrf.mxu1 }
 0x5ec   :  { %v3548_v48 = vadd.f32 %v3301_v55, %v15373_v37  ;;  %v4006_v19 = vadd.f32 %v3753_v11, %v3544_v1  ;;  %v4672_v42 = vpop.f32.mrf.mxu3  ;;  %v15378_v11 = vld [vmem:[#allocation78_spill] sm:$0xff] }
 0x5ed   :  { %v12727_v40 = vadd.f32 %v4662_v45, %v4462_v62 }
 0x5ef   :  { %15374 = vst [vmem:[#allocation66_spill] sm:$0xff] %v12727_v40  ;;  %8537 = vmatmul.msk.bf16.gmra.mxu2 %vm1380_vm1, %v15360_v9 }
 0x5f1   :  { %8593 = vmatmul.msk.bf16.gmra.mxu3 %vm1380_vm1, %v15375_v56 }
 0x5f2   :  { %v4203_v38 = vpop.f32.mrf.mxu2 }
 0x5f3   :  { %v4463_v34 = vadd.f32 %v4203_v38, %v4001_v25  ;;  %v3304_v23 = vpop.f32.mrf.mxu0  ;;  %v3756_v52 = vpop.f32.mrf.mxu1 }
 0x5f4   :  { %v3549_v16 = vadd.f32 %v3304_v23, %v15376_v20  ;;  %v4007_v24 = vadd.f32 %v3756_v52, %v3545_v32  ;;  %v4675_v1 = vpop.f32.mrf.mxu3  ;;  %v15380_v52 = vld [vmem:[#allocation110_spill] sm:$0xff]  ;;  %v15381_v20 = vld [vmem:[#allocation80_spill] sm:$0xff] }
 0x5f5   :  { %v12734_v31 = vadd.f32 %v4665_v39, %v4463_v34 }
 0x5f6   :  { %8424 = vmatmul.msk.bf16.gmra.mxu0 %vm1380_vm1, %v15350_v47  ;;  %3795 = vmatmul.bf16.gmra.mxu1 %v15114_v21 }
 0x5f7   :  { %15377 = vst [vmem:[#allocation67_spill] sm:$0xff] %v12734_v31 }
 0x5fa   :  { %v4205_v45 = vpop.f32.mrf.mxu2 }
 0x5fb   :  { %v4464_v62 = vadd.f32 %v4205_v45, %v4002_v5  ;;  %v3306_v55 = vpop.f32.mrf.mxu0  ;;  %v3758_v25 = vpop.f32.mrf.mxu1 }
 0x5fc   :  { %v3550_v37 = vadd.f32 %v3306_v55, %v15378_v11  ;;  %v4008_v38 = vadd.f32 %v3758_v25, %v3546_v8  ;;  %v4677_v26 = vpop.f32.mrf.mxu3  ;;  %v15383_v25 = vld [vmem:[#allocation81_spill] sm:$0xff] }
 0x5fd   :  { %v12740_v40 = vadd.f32 %v4667_v53, %v4464_v62 }
 0x5ff   :  { %15379 = vst [vmem:[#allocation68_spill] sm:$0xff] %v12740_v40  ;;  %8538 = vmatmul.msk.bf16.gmra.mxu2 %vm1380_vm1, %v15365_v14 }
 0x601   :  { %8594 = vmatmul.msk.bf16.gmra.mxu3 %vm1380_vm1, %v15380_v52 }
 0x602   :  { %v4208_v32 = vpop.f32.mrf.mxu2 }
 0x603   :  { %v4465_v39 = vadd.f32 %v4208_v32, %v4003_v22  ;;  %v3309_v34 = vpop.f32.mrf.mxu0  ;;  %v3761_v23 = vpop.f32.mrf.mxu1 }
 0x604   :  { %v3551_v5 = vadd.f32 %v3309_v34, %v15381_v20  ;;  %v4009_v45 = vadd.f32 %v3761_v23, %v3547_v2  ;;  %v4680_v8 = vpop.f32.mrf.mxu3  ;;  %v15385_v20 = vld [vmem:[#allocation94_spill] sm:$0xff] }
 0x605   :  { %v12747_v31 = vadd.f32 %v4670_v36, %v4465_v39 }
 0x606   :  { %8425 = vmatmul.msk.bf16.gmra.mxu0 %vm1380_vm1, %v15355_v54  ;;  %8484 = vmatmul.msk.bf16.gmra.mxu1 %vm1380_vm1, %v15350_v47 }
 0x607   :  { %15382 = vst [vmem:[#allocation69_spill] sm:$0xff] %v12747_v31  ;;  %v15386_v31 = vld [vmem:[#allocation83_spill] sm:$0xff] }
 0x60a   :  { %v4210_v53 = vpop.f32.mrf.mxu2 }
 0x60b   :  { %v4466_v62 = vadd.f32 %v4210_v53, %v4004_v3  ;;  %v3311_v22 = vpop.f32.mrf.mxu0  ;;  %v3763_v55 = vpop.f32.mrf.mxu1 }
 0x60c   :  { %v3552_v11 = vadd.f32 %v3311_v22, %v15383_v25  ;;  %v4010_v32 = vadd.f32 %v3763_v55, %v3548_v48  ;;  %v4682_v34 = vpop.f32.mrf.mxu3  ;;  %v15388_v55 = vld [vmem:[#allocation84_spill] sm:$0xff] }
 0x60d   :  { %v12754_v40 = vadd.f32 %v4672_v42, %v4466_v62 }
 0x60f   :  { %15384 = vst [vmem:[#allocation71_spill] sm:$0xff] %v12754_v40  ;;  %8539 = vmatmul.msk.bf16.gmra.mxu2 %vm1380_vm1, %v15370_v43 }
 0x611   :  { %8595 = vmatmul.msk.bf16.gmra.mxu3 %vm1380_vm1, %v15385_v20 }
 0x612   :  { %v4213_v2 = vpop.f32.mrf.mxu2 }
 0x613   :  { %v4467_v36 = vadd.f32 %v4213_v2, %v4005_v50  ;;  %v3314_v39 = vpop.f32.mrf.mxu0  ;;  %v3766_v23 = vpop.f32.mrf.mxu1 }
 0x614   :  { %v3553_v3 = vadd.f32 %v3314_v39, %v15386_v31  ;;  %v4011_v53 = vadd.f32 %v3766_v23, %v3549_v16  ;;  %v4685_v48 = vpop.f32.mrf.mxu3  ;;  %v15390_v23 = vld [vmem:[#allocation97_spill] sm:$0xff] }
 0x615   :  { %v12761_v47 = vadd.f32 %v4675_v1, %v4467_v36 }
 0x616   :  { %8426 = vmatmul.msk.bf16.gmra.mxu0 %vm1380_vm1, %v15360_v9  ;;  %8485 = vmatmul.msk.bf16.gmra.mxu1 %vm1380_vm1, %v15355_v54 }
 0x617   :  { %15387 = vst [vmem:[#allocation72_spill] sm:$0xff] %v12761_v47  ;;  %v15391_v47 = vld [vmem:[#allocation87_spill] sm:$0xff] }
 0x61a   :  { %v4215_v42 = vpop.f32.mrf.mxu2 }
 0x61b   :  { %v4468_v62 = vadd.f32 %v4215_v42, %v4006_v19  ;;  %v3316_v50 = vpop.f32.mrf.mxu0  ;;  %v3768_v22 = vpop.f32.mrf.mxu1 }
 0x61c   :  { %v3554_v25 = vadd.f32 %v3316_v50, %v15388_v55  ;;  %v4012_v2 = vadd.f32 %v3768_v22, %v3550_v37  ;;  %v4687_v31 = vpop.f32.mrf.mxu3  ;;  %v15393_v22 = vld [vmem:[#allocation88_spill] sm:$0xff] }
 0x61d   :  { %v12768_v40 = vadd.f32 %v4677_v26, %v4468_v62 }
 0x61f   :  { %15389 = vst [vmem:[#allocation74_spill] sm:$0xff] %v12768_v40  ;;  %8540 = vmatmul.msk.bf16.gmra.mxu2 %vm1380_vm1, %v15375_v56 }
 0x621   :  { %8596 = vmatmul.msk.bf16.gmra.mxu3 %vm1380_vm1, %v15390_v23 }
 0x622   :  { %v4218_v16 = vpop.f32.mrf.mxu2 }
 0x623   :  { %v4469_v1 = vadd.f32 %v4218_v16, %v4007_v24  ;;  %v3319_v36 = vpop.f32.mrf.mxu0  ;;  %v3771_v39 = vpop.f32.mrf.mxu1 }
 0x624   :  { %v3555_v19 = vadd.f32 %v3319_v36, %v15391_v47  ;;  %v4013_v42 = vadd.f32 %v3771_v39, %v3551_v5  ;;  %v4690_v26 = vpop.f32.mrf.mxu3  ;;  %v15395_v39 = vld [vmem:[#allocation100_spill] sm:$0xff] }
 0x625   :  { %v12775_v54 = vadd.f32 %v4680_v8, %v4469_v1 }
 0x626   :  { %8427 = vmatmul.msk.bf16.gmra.mxu0 %vm1380_vm1, %v15365_v14  ;;  %8486 = vmatmul.msk.bf16.gmra.mxu1 %vm1380_vm1, %v15360_v9 }
 0x627   :  { %15392 = vst [vmem:[#allocation75_spill] sm:$0xff] %v12775_v54  ;;  %v15396_v54 = vld [vmem:[#allocation90_spill] sm:$0xff] }
 0x62a   :  { %v4220_v37 = vpop.f32.mrf.mxu2 }
 0x62b   :  { %v4470_v62 = vadd.f32 %v4220_v37, %v4008_v38  ;;  %v3321_v24 = vpop.f32.mrf.mxu0  ;;  %v3773_v50 = vpop.f32.mrf.mxu1 }
 0x62c   :  { %v3556_v55 = vadd.f32 %v3321_v24, %v15393_v22  ;;  %v4014_v16 = vadd.f32 %v3773_v50, %v3552_v11  ;;  %v4692_v47 = vpop.f32.mrf.mxu3  ;;  %v15398_v50 = vld [vmem:[#allocation91_spill] sm:$0xff] }
 0x62d   :  { %v12782_v40 = vadd.f32 %v4682_v34, %v4470_v62 }
 0x62f   :  { %15394 = vst [vmem:[#allocation89_spill] sm:$0xff] %v12782_v40  ;;  %4262 = vmatmul.bf16.gmra.mxu2 %v15114_v21 }
 0x631   :  { %8597 = vmatmul.msk.bf16.gmra.mxu3 %vm1380_vm1, %v15395_v39 }
 0x632   :  { %v4223_v5 = vpop.f32.mrf.mxu2 }
 0x633   :  { %v4471_v8 = vadd.f32 %v4223_v5, %v4009_v45  ;;  %v3324_v1 = vpop.f32.mrf.mxu0  ;;  %v3776_v36 = vpop.f32.mrf.mxu1 }
 0x634   :  { %v3557_v9 = vadd.f32 %v3324_v1, %v15396_v54  ;;  %v4015_v38 = vadd.f32 %v3776_v36, %v3553_v3  ;;  %v4695_v11 = vpop.f32.mrf.mxu3  ;;  %v15400_v36 = vld [vmem:[#allocation103_spill] sm:$0xff] }
 0x635   :  { %v12788_v37 = vadd.f32 %v4685_v48, %v4471_v8 }
 0x636   :  { %8428 = vmatmul.msk.bf16.gmra.mxu0 %vm1380_vm1, %v15370_v43  ;;  %8487 = vmatmul.msk.bf16.gmra.mxu1 %vm1380_vm1, %v15365_v14 }
 0x637   :  { %15397 = vst [vmem:[#allocation77_spill] sm:$0xff] %v12788_v37  ;;  %v15401_v37 = vld [vmem:[#allocation92_spill] sm:$0xff] }
 0x63a   :  { %v4225_v34 = vpop.f32.mrf.mxu2 }
 0x63b   :  { %v4472_v62 = vadd.f32 %v4225_v34, %v4010_v32  ;;  %v3326_v45 = vpop.f32.mrf.mxu0  ;;  %v3778_v24 = vpop.f32.mrf.mxu1 }
 0x63c   :  { %v3558_v22 = vadd.f32 %v3326_v45, %v15398_v50  ;;  %v4016_v5 = vadd.f32 %v3778_v24, %v3554_v25  ;;  %v4697_v54 = vpop.f32.mrf.mxu3  ;;  %v15403_v24 = vld [vmem:[#allocation93_spill] sm:$0xff] }
 0x63d   :  { %v12795_v40 = vadd.f32 %v4687_v31, %v4472_v62 }
 0x63f   :  { %15399 = vst [vmem:[#allocation78_spill] sm:$0xff] %v12795_v40  ;;  %8541 = vmatmul.msk.bf16.gmra.mxu2 %vm1380_vm1, %v15385_v20 }
 0x641   :  { %8598 = vmatmul.msk.bf16.gmra.mxu3 %vm1380_vm1, %v15400_v36 }
 0x642   :  { %v4228_v3 = vpop.f32.mrf.mxu2 }
 0x643   :  { %v4473_v48 = vadd.f32 %v4228_v3, %v4011_v53  ;;  %v3329_v8 = vpop.f32.mrf.mxu0  ;;  %v3781_v1 = vpop.f32.mrf.mxu1 }
 0x644   :  { %v3559_v32 = vadd.f32 %v3329_v8, %v15401_v37  ;;  %v4017_v34 = vadd.f32 %v3781_v1, %v3555_v19  ;;  %v4700_v25 = vpop.f32.mrf.mxu3  ;;  %v15405_v1 = vld [vmem:[#allocation106_spill] sm:$0xff] }
 0x645   :  { %v12802_v14 = vadd.f32 %v4690_v26, %v4473_v48 }
 0x646   :  { %8429 = vmatmul.msk.bf16.gmra.mxu0 %vm1380_vm1, %v15375_v56  ;;  %8488 = vmatmul.msk.bf16.gmra.mxu1 %vm1380_vm1, %v15370_v43 }
 0x647   :  { %15402 = vst [vmem:[#allocation110_spill] sm:$0xff] %v12802_v14 }
 0x64a   :  { %v4230_v31 = vpop.f32.mrf.mxu2 }
 0x64b   :  { %v4474_v62 = vadd.f32 %v4230_v31, %v4012_v2  ;;  %v3331_v53 = vpop.f32.mrf.mxu0  ;;  %v3783_v45 = vpop.f32.mrf.mxu1  ;;  %v15406_v2 = vld [vmem:[#allocation95_spill] sm:$0xff] }
 0x64c   :  { %v3560_v50 = vadd.f32 %v3331_v53, %v15403_v24  ;;  %v12809_v3 = vadd.f32 %v3783_v45, %v3556_v55  ;;  %v4702_v19 = vpop.f32.mrf.mxu3  ;;  %v15408_v45 = vld [vmem:[#allocation96_spill] sm:$0xff] }
 0x64d   :  { %v12811_v40 = vadd.f32 %v4692_v47, %v4474_v62 }
 0x64f   :  { %15404 = vst [vmem:[#allocation80_spill] sm:$0xff] %v12811_v40  ;;  %8542 = vmatmul.msk.bf16.gmra.mxu2 %vm1380_vm1, %v15390_v23 }
 0x651   :  { %8599 = vmatmul.msk.bf16.gmra.mxu3 %vm1380_vm1, %v15405_v1 }
 0x652   :  { %v4233_v26 = vpop.f32.mrf.mxu2 }
 0x653   :  { %v4475_v37 = vadd.f32 %v4233_v26, %v4013_v42  ;;  %v3334_v48 = vpop.f32.mrf.mxu0  ;;  %v3786_v8 = vpop.f32.mrf.mxu1 }
 0x654   :  { %v3561_v31 = vadd.f32 %v3334_v48, %v15406_v2  ;;  %v4019_v14 = vadd.f32 %v3786_v8, %v3557_v9  ;;  %v4705_v55 = vpop.f32.mrf.mxu3 }
 0x655   :  { %v12818_v43 = vadd.f32 %v4695_v11, %v4475_v37 }
 0x656   :  { %8430 = vmatmul.msk.bf16.gmra.mxu0 %vm1380_vm1, %v15380_v52  ;;  %8489 = vmatmul.msk.bf16.gmra.mxu1 %vm1380_vm1, %v15375_v56 }
 0x657   :  { %15407 = vst [vmem:[#allocation81_spill] sm:$0xff] %v12818_v43 }
 0x65a   :  { %v4235_v47 = vpop.f32.mrf.mxu2 }
 0x65b   :  { %v4476_v62 = vadd.f32 %v4235_v47, %v4014_v16  ;;  %v3336_v42 = vpop.f32.mrf.mxu0  ;;  %v3788_v53 = vpop.f32.mrf.mxu1  ;;  %v15410_v16 = vld [vmem:[#allocation98_spill] sm:$0xff] }
 0x65c   :  { %v3562_v24 = vadd.f32 %v3336_v42, %v15408_v45  ;;  %v12825_v26 = vadd.f32 %v3788_v53, %v3558_v22  ;;  %v4707_v9 = vpop.f32.mrf.mxu3  ;;  %v15412_v53 = vld [vmem:[#allocation99_spill] sm:$0xff] }
 0x65d   :  { %v12827_v40 = vadd.f32 %v4697_v54, %v4476_v62 }
 0x65f   :  { %15409 = vst [vmem:[#allocation94_spill] sm:$0xff] %v12827_v40  ;;  %8543 = vmatmul.msk.bf16.gmra.mxu2 %vm1380_vm1, %v15395_v39 }
 0x661   :  { %8600 = vmatmul.msk.bf16.gmra.mxu3 %vm1380_vm1, %v11540_v0 }
 0x662   :  { %v4238_v11 = vpop.f32.mrf.mxu2 }
 0x663   :  { %v4477_v37 = vadd.f32 %v4238_v11, %v4015_v38  ;;  %v3339_v48 = vpop.f32.mrf.mxu0  ;;  %v3791_v8 = vpop.f32.mrf.mxu1 }
 0x664   :  { %v3563_v2 = vadd.f32 %v3339_v48, %v15410_v16  ;;  %v4021_v47 = vadd.f32 %v3791_v8, %v3559_v32  ;;  %v4710_v22 = vpop.f32.mrf.mxu3  ;;  %v9236_v32 = vld [vmem:[%s14982_s3 + $0x18] sm:$0xff] }
 0x665   :  { %v12834_v43 = vadd.f32 %v4700_v25, %v4477_v37  ;;  %6140 = vmatpush.bf16.msrb.mxu2 %v9236_v32  ;;  %v15414_v8 = vld [vmem:[#allocation101_spill] sm:$0xff] }
 0x666   :  { %8431 = vmatmul.msk.bf16.gmra.mxu0 %vm1380_vm1, %v15385_v20  ;;  %8490 = vmatmul.msk.bf16.gmra.mxu1 %vm1380_vm1, %v15380_v52  ;;  %v9244_v20 = vld [vmem:[%s14982_s3 + $0x58] sm:$0xff] }
 0x667   :  { %15411 = vst [vmem:[#allocation83_spill] sm:$0xff] %v12834_v43  ;;  %6262 = vmatpush.bf16.msra.mxu3 %v9244_v20  ;;  %v15416_v20 = vld [vmem:[#allocation102_spill] sm:$0xff] }
 0x66a   :  { %v4240_v54 = vpop.f32.mrf.mxu2 }
 0x66b   :  { %v4478_v62 = vadd.f32 %v4240_v54, %v4016_v5  ;;  %v3341_v38 = vpop.f32.mrf.mxu0  ;;  %v3793_v42 = vpop.f32.mrf.mxu1  ;;  %v9240_v5 = vld [vmem:[%s14982_s3 + $0x38] sm:$0xff] }
 0x66c   :  { %v3564_v45 = vadd.f32 %v3341_v38, %v15412_v53  ;;  %v4022_v11 = vadd.f32 %v3793_v42, %v3560_v50  ;;  %v4712_v25 = vpop.f32.mrf.mxu3  ;;  %6027 = vmatpush.bf16.msra.mxu1 %v9240_v5 }
 0x66d   :  { %v12841_v40 = vadd.f32 %v4702_v19, %v4478_v62 }
 0x66f   :  { %15413 = vst [vmem:[#allocation84_spill] sm:$0xff] %v12841_v40  ;;  %8544 = vmatmul.msk.bf16.gmra.mxu2 %vm1380_vm1, %v15400_v36 }
 0x671   :  { %8601 = vmatmul.msk.bf16.gmra.mxu3 %vm1380_vm1, %v11588_v12 }
 0x672   :  { %v4243_v50 = vpop.f32.mrf.mxu2 }
 0x673   :  { %v4479_v19 = vadd.f32 %v4243_v50, %v4017_v34  ;;  %v3344_v37 = vpop.f32.mrf.mxu0  ;;  %v3796_v48 = vpop.f32.mrf.mxu1 }
 0x674   :  { %v3565_v16 = vadd.f32 %v3344_v37, %v15414_v8  ;;  %v4023_v54 = vadd.f32 %v3796_v48, %v3561_v31  ;;  %v4715_v38 = vpop.f32.mrf.mxu3  ;;  %v15418_v8 = vld [vmem:[#allocation104_spill] sm:$0xff] }
 0x675   :  { %v12857_v62 = vadd.f32 %v4705_v55, %v4479_v19 }
 0x676   :  { %8432 = vmatmul.msk.bf16.gmra.mxu0 %vm1380_vm1, %v15390_v23  ;;  %3835 = vmatmul.bf16.gmra.mxu1 %v15114_v21 }
 0x677   :  { %15415 = vst [vmem:[#allocation97_spill] sm:$0xff] %v12857_v62 }
 0x67a   :  { %v4245_v42 = vpop.f32.mrf.mxu2 }
 0x67b   :  { %v4480_v53 = vadd.f32 %v4245_v42, %v12809_v3  ;;  %v3346_v34 = vpop.f32.mrf.mxu0  ;;  %v3798_v32 = vpop.f32.mrf.mxu1 }
 0x67c   :  { %v3566_v5 = vadd.f32 %v3346_v34, %v15416_v20  ;;  %v4024_v50 = vadd.f32 %v3798_v32, %v3562_v24  ;;  %v4717_v37 = vpop.f32.mrf.mxu3  ;;  %v15420_v32 = vld [vmem:[#allocation105_spill] sm:$0xff] }
 0x67d   :  { %v12864_v40 = vadd.f32 %v4707_v9, %v4480_v53 }
 0x67f   :  { %15417 = vst [vmem:[#allocation87_spill] sm:$0xff] %v12864_v40  ;;  %8545 = vmatmul.msk.bf16.gmra.mxu2 %vm1380_vm1, %v15405_v1 }
 0x681   :  { %8602 = vmatmul.msk.bf16.gmra.mxu3 %vm1380_vm1, %v11925_v44 }
 0x682   :  { %v4248_v31 = vpop.f32.mrf.mxu2 }
 0x683   :  { %v4481_v55 = vadd.f32 %v4248_v31, %v4019_v14  ;;  %v3349_v19 = vpop.f32.mrf.mxu0  ;;  %v3801_v48 = vpop.f32.mrf.mxu1 }
 0x684   :  { %v3567_v3 = vadd.f32 %v3349_v19, %v15418_v8  ;;  %v4025_v42 = vadd.f32 %v3801_v48, %v3563_v2  ;;  %v4720_v24 = vpop.f32.mrf.mxu3  ;;  %v15422_v8 = vld [vmem:[#allocation107_spill] sm:$0xff] }
 0x685   :  { %v12871_v62 = vadd.f32 %v4710_v22, %v4481_v55 }
 0x686   :  { %8433 = vmatmul.msk.bf16.gmra.mxu0 %vm1380_vm1, %v15395_v39  ;;  %8491 = vmatmul.msk.bf16.gmra.mxu1 %vm1380_vm1, %v15390_v23 }
 0x687   :  { %15419 = vst [vmem:[#allocation88_spill] sm:$0xff] %v12871_v62 }
 0x68a   :  { %v4250_v9 = vpop.f32.mrf.mxu2 }
 0x68b   :  { %v4482_v14 = vadd.f32 %v4250_v9, %v12825_v26  ;;  %v3351_v53 = vpop.f32.mrf.mxu0  ;;  %v3803_v34 = vpop.f32.mrf.mxu1 }
 0x68c   :  { %v3568_v20 = vadd.f32 %v3351_v53, %v15420_v32  ;;  %v4026_v31 = vadd.f32 %v3803_v34, %v3564_v45  ;;  %v4722_v2 = vpop.f32.mrf.mxu3  ;;  %v15424_v34 = vld [vmem:[#allocation108_spill] sm:$0xff] }
 0x68d   :  { %v12879_v40 = vadd.f32 %v4712_v25, %v4482_v14 }
 0x68f   :  { %15421 = vst [vmem:[#allocation100_spill] sm:$0xff] %v12879_v40  ;;  %8546 = vmatmul.msk.bf16.gmra.mxu2 %vm1380_vm1, %v11540_v0 }
 0x691   :  { %8603 = vmatmul.msk.bf16.gmra.mxu3 %vm1380_vm1, %v11654_v6 }
 0x692   :  { %v4253_v22 = vpop.f32.mrf.mxu2 }
 0x693   :  { %v4483_v55 = vadd.f32 %v4253_v22, %v4021_v47  ;;  %v3354_v19 = vpop.f32.mrf.mxu0  ;;  %v3806_v48 = vpop.f32.mrf.mxu1 }
 0x694   :  { %v3569_v26 = vadd.f32 %v3354_v19, %v15422_v8  ;;  %v4027_v9 = vadd.f32 %v3806_v48, %v3565_v16  ;;  %v4725_v45 = vpop.f32.mrf.mxu3  ;;  %v15426_v8 = vld [vmem:[#allocation111_spill] sm:$0xff] }
 0x695   :  { %v12886_v62 = vadd.f32 %v4715_v38, %v4483_v55 }
 0x696   :  { %8434 = vmatmul.msk.bf16.gmra.mxu0 %vm1380_vm1, %v15400_v36  ;;  %8492 = vmatmul.msk.bf16.gmra.mxu1 %vm1380_vm1, %v15395_v39 }
 0x697   :  { %15423 = vst [vmem:[#allocation90_spill] sm:$0xff] %v12886_v62 }
 0x69a   :  { %v4255_v25 = vpop.f32.mrf.mxu2 }
 0x69b   :  { %v4484_v14 = vadd.f32 %v4255_v25, %v4022_v11  ;;  %v3356_v47 = vpop.f32.mrf.mxu0  ;;  %v3808_v53 = vpop.f32.mrf.mxu1 }
 0x69c   :  { %v3570_v32 = vadd.f32 %v3356_v47, %v15424_v34  ;;  %v4028_v22 = vadd.f32 %v3808_v53, %v3566_v5  ;;  %v4727_v19 = vpop.f32.mrf.mxu3  ;;  %v15428_v53 = vld [vmem:[#allocation112_spill] sm:$0xff] }
 0x69d   :  { %v12893_v40 = vadd.f32 %v4717_v37, %v4484_v14 }
 0x69f   :  { %15425 = vst [vmem:[#allocation91_spill] sm:$0xff] %v12893_v40  ;;  %8547 = vmatmul.msk.bf16.gmra.mxu2 %vm1380_vm1, %v11588_v12 }
 0x6a1   :  { %8604 = vmatmul.msk.bf16.gmra.mxu3 %vm1380_vm1, %v11703_v35 }
 0x6a2   :  { %v4258_v16 = vpop.f32.mrf.mxu2 }
 0x6a3   :  { %v4485_v38 = vadd.f32 %v4258_v16, %v4023_v54  ;;  %v3359_v55 = vpop.f32.mrf.mxu0  ;;  %v3811_v48 = vpop.f32.mrf.mxu1 }
 0x6a4   :  { %v3571_v11 = vadd.f32 %v3359_v55, %v15426_v8  ;;  %v4029_v25 = vadd.f32 %v3811_v48, %v3567_v3  ;;  %v4730_v5 = vpop.f32.mrf.mxu3  ;;  %v15430_v8 = vld [vmem:[#allocation114_spill] sm:$0xff] }
 0x6a5   :  { %v12900_v62 = vadd.f32 %v4720_v24, %v4485_v38 }
 0x6a6   :  { %8435 = vmatmul.msk.bf16.gmra.mxu0 %vm1380_vm1, %v15405_v1  ;;  %8493 = vmatmul.msk.bf16.gmra.mxu1 %vm1380_vm1, %v15400_v36 }
 0x6a7   :  { %15427 = vst [vmem:[#allocation103_spill] sm:$0xff] %v12900_v62 }
 0x6aa   :  { %v4260_v37 = vpop.f32.mrf.mxu2 }
 0x6ab   :  { %v4486_v14 = vadd.f32 %v4260_v37, %v4024_v50  ;;  %v3361_v54 = vpop.f32.mrf.mxu0  ;;  %v3813_v47 = vpop.f32.mrf.mxu1 }
 0x6ac   :  { %v3572_v34 = vadd.f32 %v3361_v54, %v15428_v53  ;;  %v4030_v16 = vadd.f32 %v3813_v47, %v3568_v20  ;;  %v4732_v55 = vpop.f32.mrf.mxu3  ;;  %v15432_v47 = vld [vmem:[#allocation115_spill] sm:$0xff] }
 0x6ad   :  { %v12907_v40 = vadd.f32 %v4722_v2, %v4486_v14 }
 0x6af   :  { %15429 = vst [vmem:[#allocation92_spill] sm:$0xff] %v12907_v40  ;;  %4302 = vmatmul.bf16.gmra.mxu2 %v15114_v21 }
 0x6b1   :  { %8605 = vmatmul.msk.bf16.gmra.mxu3 %vm1380_vm1, %v11753_v10 }
 0x6b2   :  { %v4263_v3 = vpop.f32.mrf.mxu2 }
 0x6b3   :  { %v4487_v24 = vadd.f32 %v4263_v3, %v4025_v42  ;;  %v3364_v38 = vpop.f32.mrf.mxu0  ;;  %v3816_v48 = vpop.f32.mrf.mxu1 }
 0x6b4   :  { %v3573_v62 = vadd.f32 %v3364_v38, %v15430_v8  ;;  %v4031_v50 = vadd.f32 %v3816_v48, %v3569_v26  ;;  %v4735_v20 = vpop.f32.mrf.mxu3  ;;  %v15434_v8 = vld [vmem:[#allocation116_spill] sm:$0xff] }
 0x6b5   :  { %v12913_v37 = vadd.f32 %v4725_v45, %v4487_v24 }
 0x6b6   :  { %8436 = vmatmul.msk.bf16.gmra.mxu0 %vm1380_vm1, %v11540_v0  ;;  %8494 = vmatmul.msk.bf16.gmra.mxu1 %vm1380_vm1, %v15405_v1 }
 0x6b7   :  { %15431 = vst [vmem:[#allocation93_spill] sm:$0xff] %v12913_v37 }
 0x6ba   :  { %v4265_v2 = vpop.f32.mrf.mxu2 }
 0x6bb   :  { %v4488_v14 = vadd.f32 %v4265_v2, %v4026_v31  ;;  %v3366_v42 = vpop.f32.mrf.mxu0  ;;  %v3818_v54 = vpop.f32.mrf.mxu1 }
 0x6bc   :  { %v3574_v53 = vadd.f32 %v3366_v42, %v15432_v47  ;;  %v4032_v3 = vadd.f32 %v3818_v54, %v3570_v32  ;;  %v4737_v38 = vpop.f32.mrf.mxu3  ;;  %v15436_v54 = vld [vmem:[#allocation117_spill] sm:$0xff] }
 0x6bd   :  { %v12920_v40 = vadd.f32 %v4727_v19, %v4488_v14 }
 0x6bf   :  { %15433 = vst [vmem:[#allocation95_spill] sm:$0xff] %v12920_v40  ;;  %8548 = vmatmul.msk.bf16.gmra.mxu2 %vm1380_vm1, %v11654_v6 }
 0x6c1   :  { %8606 = vmatmul.msk.bf16.gmra.mxu3 %vm1380_vm1, %v11803_v29 }
 0x6c2   :  { %v4268_v26 = vpop.f32.mrf.mxu2 }
 0x6c3   :  { %v4489_v45 = vadd.f32 %v4268_v26, %v4027_v9  ;;  %v3369_v24 = vpop.f32.mrf.mxu0  ;;  %v3821_v48 = vpop.f32.mrf.mxu1 }
 0x6c4   :  { %v3575_v31 = vadd.f32 %v3369_v24, %v15434_v8  ;;  %v4033_v2 = vadd.f32 %v3821_v48, %v3571_v11  ;;  %v4740_v32 = vpop.f32.mrf.mxu3  ;;  %v15438_v8 = vld [vmem:[#allocation118_spill] sm:$0xff] }
 0x6c5   :  { %v12927_v37 = vadd.f32 %v4730_v5, %v4489_v45 }
 0x6c6   :  { %8437 = vmatmul.msk.bf16.gmra.mxu0 %vm1380_vm1, %v11588_v12  ;;  %8495 = vmatmul.msk.bf16.gmra.mxu1 %vm1380_vm1, %v11540_v0 }
 0x6c7   :  { %15435 = vst [vmem:[#allocation96_spill] sm:$0xff] %v12927_v37 }
 0x6ca   :  { %v4270_v19 = vpop.f32.mrf.mxu2 }
 0x6cb   :  { %v4490_v14 = vadd.f32 %v4270_v19, %v4028_v22  ;;  %v3371_v9 = vpop.f32.mrf.mxu0  ;;  %v3823_v42 = vpop.f32.mrf.mxu1 }
 0x6cc   :  { %v3576_v47 = vadd.f32 %v3371_v9, %v15436_v54  ;;  %v4034_v26 = vadd.f32 %v3823_v42, %v3572_v34  ;;  %v4742_v24 = vpop.f32.mrf.mxu3  ;;  %v15440_v42 = vld [vmem:[#allocation119_spill] sm:$0xff] }
 0x6cd   :  { %v12934_v40 = vadd.f32 %v4732_v55, %v4490_v14 }
 0x6cf   :  { %15437 = vst [vmem:[#allocation98_spill] sm:$0xff] %v12934_v40  ;;  %8549 = vmatmul.msk.bf16.gmra.mxu2 %vm1380_vm1, %v11703_v35 }
 0x6d1   :  { %8607 = vmatmul.msk.bf16.gmra.mxu3 %vm1380_vm1, %v11877_v4 }
 0x6d2   :  { %v4273_v11 = vpop.f32.mrf.mxu2 }
 0x6d3   :  { %v4491_v5 = vadd.f32 %v4273_v11, %v4029_v25  ;;  %v3374_v45 = vpop.f32.mrf.mxu0  ;;  %v3826_v48 = vpop.f32.mrf.mxu1 }
 0x6d4   :  { %v3577_v22 = vadd.f32 %v3374_v45, %v15438_v8  ;;  %v4035_v19 = vadd.f32 %v3826_v48, %v3573_v62  ;;  %v4745_v34 = vpop.f32.mrf.mxu3  ;;  %v15442_v8 = vld [vmem:[#allocation121_spill] sm:$0xff] }
 0x6d5   :  { %v12941_v37 = vadd.f32 %v4735_v20, %v4491_v5 }
 0x6d6   :  { %8438 = vmatmul.msk.bf16.gmra.mxu0 %vm1380_vm1, %v11925_v44  ;;  %8496 = vmatmul.msk.bf16.gmra.mxu1 %vm1380_vm1, %v11588_v12 }
 0x6d7   :  { %15439 = vst [vmem:[#allocation99_spill] sm:$0xff] %v12941_v37 }
 0x6da   :  { %v4275_v55 = vpop.f32.mrf.mxu2 }
 0x6db   :  { %v4492_v14 = vadd.f32 %v4275_v55, %v4030_v16  ;;  %v3376_v25 = vpop.f32.mrf.mxu0  ;;  %v3828_v9 = vpop.f32.mrf.mxu1 }
 0x6dc   :  { %v3578_v54 = vadd.f32 %v3376_v25, %v15440_v42  ;;  %v4036_v11 = vadd.f32 %v3828_v9, %v3574_v53  ;;  %v4747_v45 = vpop.f32.mrf.mxu3  ;;  %v15444_v9 = vld [vmem:[#allocation122_spill] sm:$0xff] }
 0x6dd   :  { %v12948_v40 = vadd.f32 %v4737_v38, %v4492_v14 }
 0x6df   :  { %15441 = vst [vmem:[#allocation101_spill] sm:$0xff] %v12948_v40  ;;  %8550 = vmatmul.msk.bf16.gmra.mxu2 %vm1380_vm1, %v11753_v10 }
 0x6e1   :  { %8608 = vmatmul.msk.bf16.gmra.mxu3 %vm1380_vm1, %v11923_v17 }
 0x6e2   :  { %v4278_v62 = vpop.f32.mrf.mxu2 }
 0x6e3   :  { %v4493_v20 = vadd.f32 %v4278_v62, %v4031_v50  ;;  %v3379_v5 = vpop.f32.mrf.mxu0  ;;  %v3831_v48 = vpop.f32.mrf.mxu1 }
 0x6e4   :  { %v3579_v16 = vadd.f32 %v3379_v5, %v15442_v8  ;;  %v4037_v55 = vadd.f32 %v3831_v48, %v3575_v31  ;;  %v4750_v53 = vpop.f32.mrf.mxu3  ;;  %v15446_v48 = vld [vmem:[#allocation124_spill] sm:$0xff] }
 0x6e5   :  { %v12955_v37 = vadd.f32 %v4740_v32, %v4493_v20 }
 0x6e6   :  { %8439 = vmatmul.msk.bf16.gmra.mxu0 %vm1380_vm1, %v11654_v6  ;;  %8497 = vmatmul.msk.bf16.gmra.mxu1 %vm1380_vm1, %v11925_v44 }
 0x6e7   :  { %15443 = vst [vmem:[#allocation102_spill] sm:$0xff] %v12955_v37 }
 0x6ea   :  { %v4280_v38 = vpop.f32.mrf.mxu2 }
 0x6eb   :  { %v4494_v14 = vadd.f32 %v4280_v38, %v4032_v3  ;;  %v3381_v50 = vpop.f32.mrf.mxu0  ;;  %v3833_v25 = vpop.f32.mrf.mxu1 }
 0x6ec   :  { %v3580_v42 = vadd.f32 %v3381_v50, %v15444_v9  ;;  %v4038_v62 = vadd.f32 %v3833_v25, %v3576_v47  ;;  %v4752_v5 = vpop.f32.mrf.mxu3  ;;  %v15448_v25 = vld [vmem:[#allocation125_spill] sm:$0xff] }
 0x6ed   :  { %v12962_v40 = vadd.f32 %v4742_v24, %v4494_v14 }
 0x6ef   :  { %15445 = vst [vmem:[#allocation104_spill] sm:$0xff] %v12962_v40  ;;  %8551 = vmatmul.msk.bf16.gmra.mxu2 %vm1380_vm1, %v11803_v29 }
 0x6f1   :  { %8609 = vmatmul.msk.bf16.gmra.mxu3 %vm1380_vm1, %v9443_v41 }
 0x6f2   :  { %v4283_v31 = vpop.f32.mrf.mxu2 }
 0x6f3   :  { %v4495_v32 = vadd.f32 %v4283_v31, %v4033_v2  ;;  %v3384_v6 = vpop.f32.mrf.mxu0  ;;  %v3836_v20 = vpop.f32.mrf.mxu1 }
 0x6f4   :  { %v3581_v3 = vadd.f32 %v3384_v6, %v15446_v48  ;;  %v4039_v8 = vadd.f32 %v3836_v20, %v3577_v22  ;;  %v4755_v47 = vpop.f32.mrf.mxu3  ;;  %v15450_v20 = vld [vmem:[#allocation127_spill] sm:$0xff] }
 0x6f5   :  { %v12969_v38 = vadd.f32 %v4745_v34, %v4495_v32 }
 0x6f6   :  { %8440 = vmatmul.msk.bf16.gmra.mxu0 %vm1380_vm1, %v11703_v35  ;;  %3875 = vmatmul.bf16.gmra.mxu1 %v15114_v21 }
 0x6f7   :  { %15447 = vst [vmem:[#allocation105_spill] sm:$0xff] %v12969_v38 }
 0x6fa   :  { %v4285_v24 = vpop.f32.mrf.mxu2 }
 0x6fb   :  { %v4496_v14 = vadd.f32 %v4285_v24, %v4034_v26  ;;  %v3386_v50 = vpop.f32.mrf.mxu0  ;;  %v3838_v2 = vpop.f32.mrf.mxu1 }
 0x6fc   :  { %v3582_v9 = vadd.f32 %v3386_v50, %v15448_v25  ;;  %v4040_v31 = vadd.f32 %v3838_v2, %v3578_v54  ;;  %v4757_v37 = vpop.f32.mrf.mxu3  ;;  %v15452_v2 = vld [vmem:[#allocation128_spill] sm:$0xff] }
 0x6fd   :  { %v12975_v40 = vadd.f32 %v4747_v45, %v4496_v14 }
 0x6ff   :  { %15449 = vst [vmem:[#allocation107_spill] sm:$0xff] %v12975_v40  ;;  %8552 = vmatmul.msk.bf16.gmra.mxu2 %vm1380_vm1, %v11877_v4 }
 0x701   :  { %8610 = vmatmul.msk.bf16.gmra.mxu3 %vm1380_vm1, %v9473_v60 }
 0x702   :  { %v4288_v22 = vpop.f32.mrf.mxu2 }
 0x703   :  { %v4497_v34 = vadd.f32 %v4288_v22, %v4035_v19  ;;  %v3389_v32 = vpop.f32.mrf.mxu0  ;;  %v3841_v6 = vpop.f32.mrf.mxu1 }
 0x704   :  { %v3583_v26 = vadd.f32 %v3389_v32, %v15450_v20  ;;  %v4041_v48 = vadd.f32 %v3841_v6, %v3579_v16  ;;  %v4760_v54 = vpop.f32.mrf.mxu3  ;;  %v15454_v20 = vld [vmem:[#allocation130_spill] sm:$0xff] }
 0x705   :  { %v12982_v24 = vadd.f32 %v4750_v53, %v4497_v34 }
 0x706   :  { %8441 = vmatmul.msk.bf16.gmra.mxu0 %vm1380_vm1, %v11753_v10  ;;  %8498 = vmatmul.msk.bf16.gmra.mxu1 %vm1380_vm1, %v11703_v35 }
 0x707   :  { %15451 = vst [vmem:[#allocation108_spill] sm:$0xff] %v12982_v24 }
 0x70a   :  { %v4290_v45 = vpop.f32.mrf.mxu2 }
 0x70b   :  { %v4498_v14 = vadd.f32 %v4290_v45, %v4036_v11  ;;  %v3391_v19 = vpop.f32.mrf.mxu0  ;;  %v3843_v50 = vpop.f32.mrf.mxu1 }
 0x70c   :  { %v3584_v25 = vadd.f32 %v3391_v19, %v15452_v2  ;;  %v4042_v22 = vadd.f32 %v3843_v50, %v3580_v42  ;;  %v4762_v32 = vpop.f32.mrf.mxu3  ;;  %v15456_v50 = vld [vmem:[#allocation131_spill] sm:$0xff] }
 0x70d   :  { %v12989_v40 = vadd.f32 %v4752_v5, %v4498_v14 }
 0x70f   :  { %15453 = vst [vmem:[#allocation111_spill] sm:$0xff] %v12989_v40  ;;  %8553 = vmatmul.msk.bf16.gmra.mxu2 %vm1380_vm1, %v11923_v17 }
 0x711   :  { %8611 = vmatmul.msk.bf16.gmra.mxu3 %vm1380_vm1, %v12010_v49 }
 0x712   :  { %v4293_v16 = vpop.f32.mrf.mxu2 }
 0x713   :  { %v4499_v53 = vadd.f32 %v4293_v16, %v4037_v55  ;;  %v3394_v34 = vpop.f32.mrf.mxu0  ;;  %v3846_v6 = vpop.f32.mrf.mxu1 }
 0x714   :  { %v3585_v11 = vadd.f32 %v3394_v34, %v15454_v20  ;;  %v4043_v45 = vadd.f32 %v3846_v6, %v3581_v3  ;;  %v4765_v42 = vpop.f32.mrf.mxu3  ;;  %v15458_v20 = vld [vmem:[#allocation142_spill] sm:$0xff] }
 0x715   :  { %v12996_v24 = vadd.f32 %v4755_v47, %v4499_v53 }
 0x716   :  { %8442 = vmatmul.msk.bf16.gmra.mxu0 %vm1380_vm1, %v11803_v29  ;;  %8499 = vmatmul.msk.bf16.gmra.mxu1 %vm1380_vm1, %v11753_v10  ;;  %v15484_v10 = vld [vmem:[#allocation147_spill] sm:$0xff] }
 0x717   :  { %15455 = vst [vmem:[#allocation112_spill] sm:$0xff] %v12996_v24  ;;  %v15459_v24 = vld [vmem:[#allocation134_spill] sm:$0xff] }
 0x71a   :  { %v4295_v5 = vpop.f32.mrf.mxu2 }
 0x71b   :  { %v4500_v14 = vadd.f32 %v4295_v5, %v4038_v62  ;;  %v3396_v55 = vpop.f32.mrf.mxu0  ;;  %v3848_v19 = vpop.f32.mrf.mxu1 }
 0x71c   :  { %v3586_v2 = vadd.f32 %v3396_v55, %v15456_v50  ;;  %v4044_v16 = vadd.f32 %v3848_v19, %v3582_v9  ;;  %v4767_v34 = vpop.f32.mrf.mxu3  ;;  %v15461_v19 = vld [vmem:[#allocation135_spill] sm:$0xff] }
 0x71d   :  { %v13003_v40 = vadd.f32 %v4757_v37, %v4500_v14 }
 0x71f   :  { %15457 = vst [vmem:[#allocation114_spill] sm:$0xff] %v13003_v40  ;;  %8554 = vmatmul.msk.bf16.gmra.mxu2 %vm1380_vm1, %v9443_v41 }
 0x721   :  { %8612 = vmatmul.msk.bf16.gmra.mxu3 %vm1380_vm1, %v15458_v20 }
 0x722   :  { %v4298_v3 = vpop.f32.mrf.mxu2 }
 0x723   :  { %v4501_v47 = vadd.f32 %v4298_v3, %v4039_v8  ;;  %v3399_v53 = vpop.f32.mrf.mxu0  ;;  %v3851_v6 = vpop.f32.mrf.mxu1 }
 0x724   :  { %v3587_v62 = vadd.f32 %v3399_v53, %v15459_v24  ;;  %v4045_v5 = vadd.f32 %v3851_v6, %v3583_v26  ;;  %v4770_v37 = vpop.f32.mrf.mxu3  ;;  %v15463_v6 = vld [vmem:[#allocation145_spill] sm:$0xff] }
 0x725   :  { %v13010_v38 = vadd.f32 %v4760_v54, %v4501_v47 }
 0x726   :  { %8443 = vmatmul.msk.bf16.gmra.mxu0 %vm1380_vm1, %v11877_v4  ;;  %8500 = vmatmul.msk.bf16.gmra.mxu1 %vm1380_vm1, %v11803_v29 }
 0x727   :  { %15460 = vst [vmem:[#allocation115_spill] sm:$0xff] %v13010_v38  ;;  %v15464_v38 = vld [vmem:[#allocation136_spill] sm:$0xff] }
 0x72a   :  { %v4300_v9 = vpop.f32.mrf.mxu2 }
 0x72b   :  { %v4502_v14 = vadd.f32 %v4300_v9, %v4040_v31  ;;  %v3401_v8 = vpop.f32.mrf.mxu0  ;;  %v3853_v55 = vpop.f32.mrf.mxu1 }
 0x72c   :  { %v3588_v50 = vadd.f32 %v3401_v8, %v15461_v19  ;;  %v4046_v3 = vadd.f32 %v3853_v55, %v3584_v25  ;;  %v4772_v24 = vpop.f32.mrf.mxu3  ;;  %v15466_v55 = vld [vmem:[#allocation137_spill] sm:$0xff] }
 0x72d   :  { %v13017_v40 = vadd.f32 %v4762_v32, %v4502_v14 }
 0x72f   :  { %15462 = vst [vmem:[#allocation116_spill] sm:$0xff] %v13017_v40  ;;  %4342 = vmatmul.bf16.gmra.mxu2 %v15114_v21 }
 0x731   :  { %8613 = vmatmul.msk.bf16.gmra.mxu3 %vm1380_vm1, %v15463_v6 }
 0x732   :  { %v4303_v26 = vpop.f32.mrf.mxu2 }
 0x733   :  { %v4503_v54 = vadd.f32 %v4303_v26, %v4041_v48  ;;  %v3404_v47 = vpop.f32.mrf.mxu0  ;;  %v3856_v53 = vpop.f32.mrf.mxu1 }
 0x734   :  { %v3589_v29 = vadd.f32 %v3404_v47, %v15464_v38  ;;  %v4047_v31 = vadd.f32 %v3856_v53, %v3585_v11  ;;  %v4775_v25 = vpop.f32.mrf.mxu3  ;;  %v15468_v53 = vld [vmem:[#allocation148_spill] sm:$0xff] }
 0x735   :  { %v13023_v9 = vadd.f32 %v4765_v42, %v4503_v54 }
 0x736   :  { %8444 = vmatmul.msk.bf16.gmra.mxu0 %vm1380_vm1, %v11923_v17  ;;  %8501 = vmatmul.msk.bf16.gmra.mxu1 %vm1380_vm1, %v11877_v4 }
 0x737   :  { %15465 = vst [vmem:[#allocation117_spill] sm:$0xff] %v13023_v9  ;;  %v15469_v9 = vld [vmem:[#allocation138_spill] sm:$0xff] }
 0x73a   :  { %v4305_v32 = vpop.f32.mrf.mxu2 }
 0x73b   :  { %v4504_v14 = vadd.f32 %v4305_v32, %v4042_v22  ;;  %v3406_v48 = vpop.f32.mrf.mxu0  ;;  %v3858_v8 = vpop.f32.mrf.mxu1 }
 0x73c   :  { %v3590_v19 = vadd.f32 %v3406_v48, %v15466_v55  ;;  %v4048_v26 = vadd.f32 %v3858_v8, %v3586_v2  ;;  %v4777_v38 = vpop.f32.mrf.mxu3  ;;  %v15471_v8 = vld [vmem:[#allocation139_spill] sm:$0xff] }
 0x73d   :  { %v13030_v40 = vadd.f32 %v4767_v34, %v4504_v14 }
 0x73f   :  { %15467 = vst [vmem:[#allocation118_spill] sm:$0xff] %v13030_v40  ;;  %8555 = vmatmul.msk.bf16.gmra.mxu2 %vm1380_vm1, %v12010_v49 }
 0x741   :  { %8614 = vmatmul.msk.bf16.gmra.mxu3 %vm1380_vm1, %v15468_v53 }
 0x742   :  { %v4308_v11 = vpop.f32.mrf.mxu2 }
 0x743   :  { %v4505_v42 = vadd.f32 %v4308_v11, %v4043_v45  ;;  %v3409_v54 = vpop.f32.mrf.mxu0  ;;  %v3861_v47 = vpop.f32.mrf.mxu1 }
 0x744   :  { %v3591_v22 = vadd.f32 %v3409_v54, %v15469_v9  ;;  %v4049_v32 = vadd.f32 %v3861_v47, %v3587_v62  ;;  %v4780_v2 = vpop.f32.mrf.mxu3 }
 0x745   :  { %v13037_v4 = vadd.f32 %v4770_v37, %v4505_v42 }
 0x746   :  { %8445 = vmatmul.msk.bf16.gmra.mxu0 %vm1380_vm1, %v9443_v41  ;;  %8502 = vmatmul.msk.bf16.gmra.mxu1 %vm1380_vm1, %v11923_v17 }
 0x747   :  { %15470 = vst [vmem:[#allocation119_spill] sm:$0xff] %v13037_v4 }
 0x74a   :  { %v4310_v34 = vpop.f32.mrf.mxu2 }
 0x74b   :  { %v4506_v14 = vadd.f32 %v4310_v34, %v4044_v16  ;;  %v3411_v45 = vpop.f32.mrf.mxu0  ;;  %v3863_v48 = vpop.f32.mrf.mxu1  ;;  %v15473_v16 = vld [vmem:[#allocation140_spill] sm:$0xff] }
 0x74c   :  { %v3592_v55 = vadd.f32 %v3411_v45, %v15471_v8  ;;  %v13044_v11 = vadd.f32 %v3863_v48, %v3588_v50  ;;  %v4782_v62 = vpop.f32.mrf.mxu3  ;;  %v15475_v8 = vld [vmem:[#allocation141_spill] sm:$0xff] }
 0x74d   :  { %v13046_v40 = vadd.f32 %v4772_v24, %v4506_v14 }
 0x74f   :  { %15472 = vst [vmem:[#allocation121_spill] sm:$0xff] %v13046_v40  ;;  %8556 = vmatmul.msk.bf16.gmra.mxu2 %vm1380_vm1, %v15458_v20 }
 0x751   :  { %8615 = vmatmul.msk.bf16.gmra.mxu3 %vm1380_vm1, %v12213_v46 }
 0x752   :  { %v4313_v37 = vpop.f32.mrf.mxu2 }
 0x753   :  { %v4507_v9 = vadd.f32 %v4313_v37, %v4045_v5  ;;  %v3414_v42 = vpop.f32.mrf.mxu0  ;;  %v3866_v54 = vpop.f32.mrf.mxu1 }
 0x754   :  { %v3593_v47 = vadd.f32 %v3414_v42, %v15473_v16  ;;  %v13053_v34 = vadd.f32 %v3866_v54, %v3589_v29  ;;  %v4785_v50 = vpop.f32.mrf.mxu3 }
 0x755   :  { %v13055_v45 = vadd.f32 %v4775_v25, %v4507_v9 }
 0x756   :  { %8446 = vmatmul.msk.bf16.gmra.mxu0 %vm1380_vm1, %v9473_v60  ;;  %8503 = vmatmul.msk.bf16.gmra.mxu1 %vm1380_vm1, %v9443_v41 }
 0x757   :  { %15474 = vst [vmem:[#allocation122_spill] sm:$0xff] %v13055_v45  ;;  %v15477_v45 = vld [vmem:[#allocation153_spill] sm:$0xff] }
 0x75a   :  { %v4315_v24 = vpop.f32.mrf.mxu2 }
 0x75b   :  { %v4508_v5 = vadd.f32 %v4315_v24, %v4046_v3  ;;  %v3416_v14 = vpop.f32.mrf.mxu0  ;;  %v3868_v48 = vpop.f32.mrf.mxu1  ;;  %v15478_v3 = vld [vmem:[#allocation143_spill] sm:$0xff] }
 0x75c   :  { %v3594_v37 = vadd.f32 %v3416_v14, %v15475_v8  ;;  %v13062_v40 = vadd.f32 %v3868_v48, %v3590_v19  ;;  %v4787_v29 = vpop.f32.mrf.mxu3  ;;  %v15480_v8 = vld [vmem:[#allocation144_spill] sm:$0xff] }
 0x75d   :  { %v13064_v42 = vadd.f32 %v4777_v38, %v4508_v5 }
 0x75f   :  { %15476 = vst [vmem:[#allocation124_spill] sm:$0xff] %v13064_v42  ;;  %8557 = vmatmul.msk.bf16.gmra.mxu2 %vm1380_vm1, %v15463_v6 }
 0x761   :  { %8616 = vmatmul.msk.bf16.gmra.mxu3 %vm1380_vm1, %v15477_v45 }
 0x762   :  { %v4318_v25 = vpop.f32.mrf.mxu2 }
 0x763   :  { %v4509_v9 = vadd.f32 %v4318_v25, %v4047_v31  ;;  %v3419_v54 = vpop.f32.mrf.mxu0  ;;  %v3871_v16 = vpop.f32.mrf.mxu1 }
 0x764   :  { %v13071_v24 = vadd.f32 %v3419_v54, %v15478_v3  ;;  %v13073_v4 = vadd.f32 %v3871_v16, %v3591_v22  ;;  %v4790_v38 = vpop.f32.mrf.mxu3 }
 0x765   :  { %v13075_v19 = vadd.f32 %v4780_v2, %v4509_v9  ;;  %v9235_v2 = vld [vmem:[%s14982_s3 + $0x10] sm:$0xff] }
 0x766   :  { %8447 = vmatmul.msk.bf16.gmra.mxu0 %vm1380_vm1, %v12010_v49  ;;  %8504 = vmatmul.msk.bf16.gmra.mxu1 %vm1380_vm1, %v9473_v60 }
 0x767   :  { %15479 = vst [vmem:[#allocation125_spill] sm:$0xff] %v13075_v19  ;;  %6141 = vmatpush.bf16.msrb.mxu2 %v9235_v2  ;;  %v510_v2 = vld [vmem:[%s14981_s0 + $0xee8] sm:$0xff] }
 0x76a   :  { %v4320_v31 = vpop.f32.mrf.mxu2 }
 0x76b   :  { %v4510_v5 = vadd.f32 %v4320_v31, %v4048_v26  ;;  %v3421_v14 = vpop.f32.mrf.mxu0  ;;  %v3873_v48 = vpop.f32.mrf.mxu1  ;;  %v9243_v26 = vld [vmem:[%s14982_s3 + $0x50] sm:$0xff]  ;;  %v15482_v31 = vld [vmem:[#allocation146_spill] sm:$0xff] }
 0x76c   :  { %v13082_v25 = vadd.f32 %v3421_v14, %v15480_v8  ;;  %v13084_v54 = vadd.f32 %v3873_v48, %v3592_v55  ;;  %v13091_v49 = vpop.f32.mrf.mxu3  ;;  %v9239_v55 = vld [vmem:[%s14982_s3 + $0x30] sm:$0xff]  ;;  %6263 = vmatpush.bf16.msra.mxu3 %v9243_v26  ;;  %v541_v26 = vld [vmem:[%s14981_s0 + $0xfe0] sm:$0xff] }
 0x76d   :  { %v13086_v22 = vadd.f32 %v4782_v62, %v4510_v5  ;;  %6028 = vmatpush.bf16.msra.mxu1 %v9239_v55  ;;  %v542_v55 = vld [vmem:[%s14981_s0 + $0xfe8] sm:$0xff] }
 0x76f   :  { %15481 = vst [vmem:[#allocation127_spill] sm:$0xff] %v13086_v22  ;;  %8558 = vmatmul.msk.bf16.gmra.mxu2 %vm1380_vm1, %v15468_v53 }
 0x771   :  { %8617 = vmatmul.msk.bf16.gmra.mxu3 %vm1380_vm1, %v12305_v30 }
 0x772   :  { %v4323_v62 = vpop.f32.mrf.mxu2 }
 0x773   :  { %v4511_v9 = vadd.f32 %v4323_v62, %v4049_v32  ;;  %v3424_v16 = vpop.f32.mrf.mxu0  ;;  %v3876_v3 = vpop.f32.mrf.mxu1  ;;  %v509_v32 = vld [vmem:[%s14981_s0 + $0xee0] sm:$0xff]  ;;  %v543_v62 = vld [vmem:[%s14981_s0 + $0xff0] sm:$0xff] }
 0x774   :  { %v3597_v5 = vadd.f32 %v3424_v16, %v15482_v31  ;;  %v13104_v14 = vadd.f32 %v3876_v3, %v3593_v47  ;;  %v4795_v8 = vpop.f32.mrf.mxu3  ;;  %v511_v47 = vld [vmem:[%s14981_s0 + $0xef0] sm:$0xff]  ;;  %v797_v16 = vmax.f32 %v509_v32, %v541_v26  ;;  %v798_v3 = vmax.f32 %v510_v2, %v542_v55 }
 0x775   :  { %v13106_v48 = vadd.f32 %v4785_v50, %v4511_v9  ;;  %v512_v50 = vld [vmem:[%s14981_s0 + $0xef8] sm:$0xff]  ;;  %v799_v31 = vmax.f32 %v511_v47, %v543_v62 }
 0x776   :  { %8448 = vmatmul.msk.bf16.gmra.mxu0 %vm1380_vm1, %v15458_v20  ;;  %3915 = vmatmul.bf16.gmra.mxu1 %v15114_v21  ;;  %v544_v9 = vld [vmem:[%s14981_s0 + $0xff8] sm:$0xff] }
 0x777   :  { %15483 = vst [vmem:[#allocation128_spill] sm:$0xff] %v13106_v48  ;;  %v800_v48 = vmax.f32 %v512_v50, %v544_v9  ;;  %v927_v41 = vmax.f32 %v797_v16, %v799_v31 }
 0x779   :  { %v928_v17 = vmax.f32 %v798_v3, %v800_v48  ;;  %v1055_v0 = vpack.c.bf16 %v927_v41, %v927_v41 }
 0x77a   :  { %v4325_v22 = vpop.f32.mrf.mxu2 }
 0x77b   :  { %v4512_v19 = vadd.f32 %v4325_v22, %v13044_v11  ;;  %v3426_v42 = vpop.f32.mrf.mxu0  ;;  %v3878_v60 = vpop.f32.mrf.mxu1  ;;  %v1056_v1 = vpack.c.bf16 %v928_v17, %v928_v17  ;;  %v1311_v32 = vunpack.c.l.b16 %v1055_v0 }
 0x77c   :  { %v3598_v35 = vadd.f32 %v3426_v42, %v15484_v10  ;;  %v4056_v44 = vadd.f32 %v3878_v60, %v3594_v37  ;;  %v4797_v43 = vpop.f32.mrf.mxu3  ;;  %v15485_v60 = vld [vmem:[#allocation149_spill] sm:$0xff] }
 0x77d   :  { %v13137_v12 = vadd.f32 %v4787_v29, %v4512_v19  ;;  %v1312_v2 = vunpack.c.l.b16 %v1056_v1  ;;  %v15486_v29 = vld [vmem:[#allocation150_spill] sm:$0xff] }
 0x77f   :  { %8559 = vmatmul.msk.bf16.gmra.mxu2 %vm1380_vm1, %v12213_v46  ;;  %v13141_v47 = vpack.c.b16 %v1312_v2, %v1311_v32 }
 0x781   :  { %8618 = vmatmul.msk.bf16.gmra.mxu3 %vm1380_vm1, %v13141_v47 }
 0x782   :  { %v4328_v11 = vpop.f32.mrf.mxu2 }
 0x783   :  { %v4513_v22 = vadd.f32 %v4328_v11, %v13053_v34  ;;  %v3429_v50 = vpop.f32.mrf.mxu0  ;;  %v3881_v48 = vpop.f32.mrf.mxu1 }
 0x784   :  { %v3599_v10 = vadd.f32 %v3429_v50, %v15485_v60  ;;  %v4057_v41 = vadd.f32 %v3881_v48, %v13071_v24  ;;  %v4800_v0 = vpop.f32.mrf.mxu3 }
 0x785   :  { %v13148_v17 = vadd.f32 %v4790_v38, %v4513_v22  ;;  %v15488_v22 = vld [vmem:[#allocation152_spill] sm:$0xff] }
 0x786   :  { %8449 = vmatmul.msk.bf16.gmra.mxu0 %vm1380_vm1, %v15463_v6  ;;  %8505 = vmatmul.msk.bf16.gmra.mxu1 %vm1380_vm1, %v15458_v20 }
 0x78a   :  { %v4330_v1 = vpop.f32.mrf.mxu2 }
 0x78b   :  { %v4514_v34 = vadd.f32 %v4330_v1, %v13062_v40  ;;  %v3431_v37 = vpop.f32.mrf.mxu0  ;;  %v3883_v42 = vpop.f32.mrf.mxu1  ;;  %v15487_v40 = vld [vmem:[#allocation151_spill] sm:$0xff] }
 0x78c   :  { %v3600_v19 = vadd.f32 %v3431_v37, %v15486_v29  ;;  %v4058_v26 = vadd.f32 %v3883_v42, %v13082_v25  ;;  %v4802_v38 = vpop.f32.mrf.mxu3  ;;  %v15489_v42 = vld [vmem:[#allocation154_spill] sm:$0xff] }
 0x78d   :  { %v13158_v24 = vadd.f32 %v13091_v49, %v4514_v34 }
 0x78f   :  { %8560 = vmatmul.msk.bf16.gmra.mxu2 %vm1380_vm1, %v15477_v45 }
 0x791   :  { %4844 = vmatmul.bf16.gmra.mxu3 %v15114_v21 }
 0x792   :  { %v4333_v55 = vpop.f32.mrf.mxu2 }
 0x793   :  { %v4515_v62 = vadd.f32 %v4333_v55, %v13073_v4  ;;  %v3434_v9 = vpop.f32.mrf.mxu0  ;;  %v3886_v16 = vpop.f32.mrf.mxu1 }
 0x794   :  { %v3601_v3 = vadd.f32 %v3434_v9, %v15487_v40  ;;  %v4059_v31 = vadd.f32 %v3886_v16, %v3597_v5  ;;  %v4805_v25 = vpop.f32.mrf.mxu3 }
 0x795   :  { %v13165_v32 = vadd.f32 %v4795_v8, %v4515_v62 }
 0x796   :  { %8450 = vmatmul.msk.bf16.gmra.mxu0 %vm1380_vm1, %v15468_v53  ;;  %8506 = vmatmul.msk.bf16.gmra.mxu1 %vm1380_vm1, %v15463_v6 }
 0x79a   :  { %v4335_v49 = vpop.f32.mrf.mxu2 }
 0x79b   :  { %v4516_v2 = vadd.f32 %v4335_v49, %v13084_v54  ;;  %v3436_v4 = vpop.f32.mrf.mxu0  ;;  %v3888_v11 = vpop.f32.mrf.mxu1 }
 0x79c   :  { %v3602_v50 = vadd.f32 %v3436_v4, %v15488_v22  ;;  %v4060_v48 = vadd.f32 %v3888_v11, %v3598_v35  ;;  %v4807_v5 = vpop.f32.mrf.mxu3 }
 0x79d   :  { %v13173_v60 = vadd.f32 %v4797_v43, %v4516_v2 }
 0x79f   :  { %8561 = vmatmul.msk.bf16.gmra.mxu2 %vm1380_vm1, %v12305_v30 }
 0x7a1   :  { %4849 = vmatmul.bf16.gmra.mxu3 %v15114_v21 }
 0x7a2   :  { %v4338_v8 = vpop.f32.mrf.mxu2 }
 0x7a3   :  { %v4517_v1 = vadd.f32 %v4338_v8, %v13104_v14  ;;  %v3439_v34 = vpop.f32.mrf.mxu0  ;;  %v3891_v37 = vpop.f32.mrf.mxu1 }
 0x7a4   :  { %v3603_v54 = vadd.f32 %v3439_v34, %v15489_v42  ;;  %v4061_v29 = vadd.f32 %v3891_v37, %v3599_v10  ;;  %v4810_v35 = vpop.f32.mrf.mxu3 }
 0x7a5   :  { %v13180_v55 = vadd.f32 %v4800_v0, %v4517_v1 }
 0x7a6   :  { %8451 = vmatmul.msk.bf16.gmra.mxu0 %vm1380_vm1, %v12213_v46  ;;  %8507 = vmatmul.msk.bf16.gmra.mxu1 %vm1380_vm1, %v15468_v53 }
 0x7aa   :  { %v4340_v43 = vpop.f32.mrf.mxu2 }
 0x7ab   :  { %v4518_v62 = vadd.f32 %v4340_v43, %v4056_v44  ;;  %v3441_v9 = vpop.f32.mrf.mxu0  ;;  %v3893_v14 = vpop.f32.mrf.mxu1 }
 0x7ac   :  { %v13187_v16 = vadd.f32 %v3441_v9, %v12301_v13  ;;  %v4062_v40 = vadd.f32 %v3893_v14, %v3600_v19  ;;  %v4812_v10 = vpop.f32.mrf.mxu3 }
 0x7ad   :  { %v13189_v49 = vadd.f32 %v4802_v38, %v4518_v62 }
 0x7ae   :  { %15490 = vst [vmem:[#allocation130_spill] sm:$0xff] %v13187_v16 }
 0x7af   :  { %4382 = vmatmul.bf16.gmra.mxu2 %v15114_v21 }
 0x7b1   :  { %4854 = vmatmul.bf16.gmra.mxu3 %v15114_v21 }
 0x7b2   :  { %v4343_v0 = vpop.f32.mrf.mxu2 }
 0x7b3   :  { %v4519_v2 = vadd.f32 %v4343_v0, %v4057_v41  ;;  %v3444_v4 = vpop.f32.mrf.mxu0  ;;  %v3896_v11 = vpop.f32.mrf.mxu1 }
 0x7b4   :  { %v3605_v22 = vadd.f32 %v3444_v4, %v12311_v33  ;;  %v4063_v44 = vadd.f32 %v3896_v11, %v3601_v3  ;;  %v4815_v13 = vpop.f32.mrf.mxu3 }
 0x7b5   :  { %v13194_v8 = vadd.f32 %v4805_v25, %v4519_v2 }
 0x7b6   :  { %8452 = vmatmul.msk.bf16.gmra.mxu0 %vm1380_vm1, %v15477_v45  ;;  %8508 = vmatmul.msk.bf16.gmra.mxu1 %vm1380_vm1, %v12213_v46 }
 0x7ba   :  { %v4345_v19 = vpop.f32.mrf.mxu2 }
 0x7bb   :  { %v4520_v38 = vadd.f32 %v4345_v19, %v4058_v26  ;;  %v3446_v1 = vpop.f32.mrf.mxu0  ;;  %v3898_v41 = vpop.f32.mrf.mxu1 }
 0x7bc   :  { %v13201_v34 = vadd.f32 %v3446_v1, %v12318_v7  ;;  %v4064_v37 = vadd.f32 %v3898_v41, %v3602_v50  ;;  %v4817_v33 = vpop.f32.mrf.mxu3 }
 0x7bd   :  { %v13203_v42 = vadd.f32 %v4807_v5, %v4520_v38 }
 0x7be   :  { %15491 = vst [vmem:[#allocation131_spill] sm:$0xff] %v13201_v34 }
 0x7bf   :  { %4387 = vmatmul.bf16.gmra.mxu2 %v15114_v21 }
 0x7c1   :  { %4859 = vmatmul.bf16.gmra.mxu3 %v15114_v21 }
 0x7c2   :  { %v4348_v3 = vpop.f32.mrf.mxu2 }
 0x7c3   :  { %v4521_v25 = vadd.f32 %v4348_v3, %v4059_v31  ;;  %v3449_v43 = vpop.f32.mrf.mxu0  ;;  %v3901_v62 = vpop.f32.mrf.mxu1 }
 0x7c4   :  { %v3607_v9 = vadd.f32 %v3449_v43, %v12325_v18  ;;  %v4065_v26 = vadd.f32 %v3901_v62, %v3603_v54  ;;  %v4820_v7 = vpop.f32.mrf.mxu3 }
 0x7c5   :  { %v13208_v14 = vadd.f32 %v4810_v35, %v4521_v25 }
 0x7c6   :  { %8453 = vmatmul.msk.bf16.gmra.mxu0 %vm1380_vm1, %v12305_v30  ;;  %8509 = vmatmul.msk.bf16.gmra.mxu1 %vm1380_vm1, %v15477_v45 }
 0x7ca   :  { %v4350_v50 = vpop.f32.mrf.mxu2 }
 0x7cb   :  { %v4522_v5 = vadd.f32 %v4350_v50, %v4060_v48  ;;  %v3451_v0 = vpop.f32.mrf.mxu0  ;;  %v13214_v31 = vpop.f32.mrf.mxu1 }
 0x7cc   :  { %15492 = vst [vmem:[#allocation142_spill] sm:$0xff] %v13214_v31  ;;  %v13217_v2 = vadd.f32 %v3451_v0, %v12332_v28  ;;  %v4822_v18 = vpop.f32.mrf.mxu3 }
 0x7cd   :  { %v13219_v4 = vadd.f32 %v4812_v10, %v4522_v5 }
 0x7ce   :  { %15493 = vst [vmem:[#allocation134_spill] sm:$0xff] %v13217_v2 }
 0x7cf   :  { %4392 = vmatmul.bf16.gmra.mxu2 %v15114_v21 }
 0x7d1   :  { %4864 = vmatmul.bf16.gmra.mxu3 %v15114_v21 }
 0x7d2   :  { %v4353_v54 = vpop.f32.mrf.mxu2 }
 0x7d3   :  { %v4523_v35 = vadd.f32 %v4353_v54, %v4061_v29  ;;  %v3454_v11 = vpop.f32.mrf.mxu0  ;;  %v3906_v19 = vpop.f32.mrf.mxu1 }
 0x7d4   :  { %v3609_v38 = vadd.f32 %v3454_v11, %v12338_v59  ;;  %v4067_v48 = vadd.f32 %v3906_v19, %v3605_v22  ;;  %v4825_v28 = vpop.f32.mrf.mxu3 }
 0x7d5   :  { %v13224_v1 = vadd.f32 %v4815_v13, %v4523_v35 }
 0x7d6   :  { %8454 = vmatmul.msk.bf16.gmra.mxu0 %vm1380_vm1, %v13141_v47  ;;  %8510 = vmatmul.msk.bf16.gmra.mxu1 %vm1380_vm1, %v12305_v30 }
 0x7da   :  { %v4355_v10 = vpop.f32.mrf.mxu2 }
 0x7db   :  { %v4524_v41 = vadd.f32 %v4355_v10, %v4062_v40  ;;  %v3456_v3 = vpop.f32.mrf.mxu0  ;;  %v13230_v29 = vpop.f32.mrf.mxu1 }
 0x7dc   :  { %15494 = vst [vmem:[#allocation135_spill] sm:$0xff] %v13230_v29  ;;  %v13233_v25 = vadd.f32 %v3456_v3, %v12344_v57  ;;  %v13237_v59 = vpop.f32.mrf.mxu3 }
 0x7dd   :  { %v13235_v43 = vadd.f32 %v4817_v33, %v4524_v41  ;;  %15496 = vst [vmem:[#allocation136_spill] sm:$0xff] %v13237_v59 }
 0x7de   :  { %15495 = vst [vmem:[#allocation145_spill] sm:$0xff] %v13233_v25  ;;  %v15523_v25 = vld [vmem:[#allocation14_spill] sm:$0xff] }
 0x7df   :  { %4397 = vmatmul.bf16.gmra.mxu2 %v15114_v21 }
 0x7e1   :  { %4869 = vmatmul.bf16.gmra.mxu3 %v15114_v21 }
 0x7e2   :  { %v4358_v22 = vpop.f32.mrf.mxu2 }
 0x7e3   :  { %v4525_v13 = vadd.f32 %v4358_v22, %v4063_v44  ;;  %v3459_v62 = vpop.f32.mrf.mxu0  ;;  %v3911_v50 = vpop.f32.mrf.mxu1 }
 0x7e4   :  { %v3611_v40 = vadd.f32 %v3459_v62, %v12349_v63  ;;  %v4069_v5 = vadd.f32 %v3911_v50, %v3607_v9  ;;  %v4830_v57 = vpop.f32.mrf.mxu3 }
 0x7e5   :  { %v13242_v0 = vadd.f32 %v4820_v7, %v4525_v13 }
 0x7e6   :  { %8511 = vmatmul.msk.bf16.gmra.mxu1 %vm1380_vm1, %v13141_v47  ;;  %8620 = vmatmul.msk.bf16.vlgmr.msra.gmra.mxu0 %vm1380_vm1, %v9763_v15 }
 0x7ea   :  { %v4360_v33 = vpop.f32.mrf.mxu2 }
 0x7eb   :  { %v4526_v54 = vadd.f32 %v4360_v33, %v4064_v37  ;;  %v3461_v35 = vpop.f32.mrf.mxu0  ;;  %v13248_v44 = vpop.f32.mrf.mxu1 }
 0x7ec   :  { %15497 = vst [vmem:[#allocation137_spill] sm:$0xff] %v13248_v44  ;;  %v13251_v11 = vadd.f32 %v3461_v35, %v12355_v27  ;;  %v13255_v63 = vpop.f32.mrf.mxu3 }
 0x7ed   :  { %v13253_v19 = vadd.f32 %v4822_v18, %v4526_v54  ;;  %15499 = vst [vmem:[#allocation138_spill] sm:$0xff] %v13255_v63 }
 0x7ee   :  { %15498 = vst [vmem:[#allocation148_spill] sm:$0xff] %v13251_v11  ;;  %v15515_v11 = vld [vmem:[#allocation11_spill] sm:$0xff] }
 0x7ef   :  { %4402 = vmatmul.bf16.gmra.mxu2 %v15114_v21 }
 0x7f1   :  { %4874 = vmatmul.bf16.gmra.mxu3 %v15114_v21 }
 0x7f2   :  { %v4363_v9 = vpop.f32.mrf.mxu2 }
 0x7f3   :  { %v4527_v7 = vadd.f32 %v4363_v9, %v4065_v26  ;;  %v3464_v10 = vpop.f32.mrf.mxu0  ;;  %v3916_v41 = vpop.f32.mrf.mxu1  ;;  %v15503_v26 = vld [vmem:[#allocation155_spill] sm:$0xff] }
 0x7f4   :  { %v3613_v15 = vadd.f32 %v3464_v10, %v12361_v58  ;;  %v4071_v37 = vadd.f32 %v3916_v41, %v3609_v38  ;;  %v4835_v27 = vpop.f32.mrf.mxu3 }
 0x7f5   :  { %v13260_v3 = vadd.f32 %v4825_v28, %v4527_v7 }
 0x7f6   :  { %3955 = vmatmul.bf16.gmra.mxu1 %v15114_v21  ;;  %8621 = vmatmul.msk.bf16.gmra.mxu0 %vm1380_vm1, %v9813_v61  ;;  %v15506_v61 = vld [vmem:[#allocation156_spill] sm:$0xff] }
 0x7f7   :  { %15500 = vst [vmem:[#allocation139_spill] sm:$0xff] %v13260_v3 }
 0x7fa   :  { %v13265_v18 = vpop.f32.mrf.mxu2 }
 0x7fb   :  { %15501 = vst [vmem:[#allocation140_spill] sm:$0xff] %v13265_v18  ;;  %v3466_v22 = vpop.f32.mrf.mxu0  ;;  %v13267_v13 = vpop.f32.mrf.mxu1 }
 0x7fc   :  { %15502 = vst [vmem:[#allocation141_spill] sm:$0xff] %v13267_v13  ;;  %v13270_v62 = vadd.f32 %v3466_v22, %v15503_v26  ;;  %v13272_v50 = vpop.f32.mrf.mxu3  ;;  %v15510_v26 = vld [vmem:[#allocation157_spill] sm:$0xff] }
 0x7fd   :  { %15505 = vst [vmem:[#allocation143_spill] sm:$0xff] %v13272_v50  ;;  %v15526_v50 = vld [vmem:[#allocation8_spill] sm:$0xff] }
 0x7fe   :  { %15504 = vst [vmem:[#allocation153_spill] sm:$0xff] %v13270_v62 }
 0x7ff   :  { %4407 = vmatmul.bf16.gmra.mxu2 %v15114_v21 }
 0x801   :  { %4879 = vmatmul.bf16.gmra.mxu3 %v15114_v21 }
 0x802   :  { %v4368_v58 = vpop.f32.mrf.mxu2 }
 0x803   :  { %v4529_v38 = vadd.f32 %v4368_v58, %v4067_v48  ;;  %v3469_v28 = vpop.f32.mrf.mxu0  ;;  %v3921_v33 = vpop.f32.mrf.mxu1 }
 0x804   :  { %v3615_v54 = vadd.f32 %v3469_v28, %v15506_v61  ;;  %v4073_v35 = vadd.f32 %v3921_v33, %v3611_v40  ;;  %v4840_v7 = vpop.f32.mrf.mxu3  ;;  %v15513_v33 = vld [vmem:[#allocation158_spill] sm:$0xff] }
 0x805   :  { %v13277_v9 = vadd.f32 %v4830_v57, %v4529_v38 }
 0x806   :  { %8622 = vmatmul.msk.bf16.gmra.mxu0 %vm1380_vm1, %v9863_v51 }
 0x807   :  { %15507 = vst [vmem:[#allocation144_spill] sm:$0xff] %v13277_v9  ;;  %v15589_v9 = vld [vmem:[#allocation46_spill] sm:$0xff] }
 0x80a   :  { %v13281_v10 = vpop.f32.mrf.mxu2 }
 0x80b   :  { %15508 = vst [vmem:[#allocation146_spill] sm:$0xff] %v13281_v10  ;;  %v3471_v41 = vpop.f32.mrf.mxu0  ;;  %v13283_v22 = vpop.f32.mrf.mxu1 }
 0x80c   :  { %15509 = vst [vmem:[#allocation147_spill] sm:$0xff] %v13283_v22  ;;  %v13286_v48 = vadd.f32 %v3471_v41, %v15510_v26  ;;  %v13288_v58 = vpop.f32.mrf.mxu3 }
 0x80d   :  { %15512 = vst [vmem:[#allocation150_spill] sm:$0xff] %v13288_v58 }
 0x80e   :  { %15511 = vst [vmem:[#allocation149_spill] sm:$0xff] %v13286_v48  ;;  %v15518_v48 = vld [vmem:[#allocation159_spill] sm:$0xff] }
 0x80f   :  { %4412 = vmatmul.bf16.gmra.mxu2 %v15114_v21 }
 0x812   :  { %v4373_v28 = vpop.f32.mrf.mxu2 }
 0x813   :  { %v4531_v40 = vadd.f32 %v4373_v28, %v4069_v5  ;;  %v3474_v57 = vpop.f32.mrf.mxu0  ;;  %v3926_v38 = vpop.f32.mrf.mxu1 }
 0x814   :  { %v3617_v61 = vadd.f32 %v3474_v57, %v15513_v33  ;;  %v4075_v51 = vadd.f32 %v3926_v38, %v3613_v15  ;;  %v4845_v22 = vpop.f32.mrf.mxu3  ;;  %v15521_v57 = vld [vmem:[#allocation160_spill] sm:$0xff] }
 0x815   :  { %v13292_v62 = vadd.f32 %v4835_v27, %v4531_v40 }
 0x816   :  { %8623 = vmatmul.msk.bf16.gmra.mxu0 %vm1380_vm1, %v15515_v11 }
 0x817   :  { %15514 = vst [vmem:[#allocation151_spill] sm:$0xff] %v13292_v62 }
 0x81a   :  { %v13296_v13 = vpop.f32.mrf.mxu2 }
 0x81b   :  { %15516 = vst [vmem:[#allocation152_spill] sm:$0xff] %v13296_v13  ;;  %v3476_v41 = vpop.f32.mrf.mxu0  ;;  %v13298_v26 = vpop.f32.mrf.mxu1 }
 0x81c   :  { %15517 = vst [vmem:[#allocation154_spill] sm:$0xff] %v13298_v26  ;;  %v13301_v58 = vadd.f32 %v3476_v41, %v15518_v48  ;;  %v13304_v5 = vpop.f32.mrf.mxu3 }
 0x81d   :  { %15520 = vst [vmem:[#allocation156_spill] sm:$0xff] %v13304_v5 }
 0x81e   :  { %15519 = vst [vmem:[#allocation155_spill] sm:$0xff] %v13301_v58 }
 0x81f   :  { %4417 = vmatmul.bf16.gmra.mxu2 %v15114_v21 }
 0x822   :  { %v4378_v28 = vpop.f32.mrf.mxu2 }
 0x823   :  { %v4533_v15 = vadd.f32 %v4378_v28, %v4071_v37  ;;  %v3479_v27 = vpop.f32.mrf.mxu0  ;;  %v3931_v40 = vpop.f32.mrf.mxu1 }
 0x824   :  { %v3619_v38 = vadd.f32 %v3479_v27, %v15521_v57  ;;  %v4077_v11 = vadd.f32 %v3931_v40, %v3615_v54  ;;  %v4850_v48 = vpop.f32.mrf.mxu3  ;;  %v15528_v27 = vld [vmem:[#allocation9_spill] sm:$0xff] }
 0x825   :  { %v13307_v33 = vadd.f32 %v4840_v7, %v4533_v15 }
 0x826   :  { %8624 = vmatmul.msk.bf16.gmra.mxu0 %vm1380_vm1, %v15523_v25  ;;  %v15531_v25 = vld [vmem:[#allocation17_spill] sm:$0xff] }
 0x827   :  { %15522 = vst [vmem:[#allocation157_spill] sm:$0xff] %v13307_v33 }
 0x82a   :  { %v13311_v26 = vpop.f32.mrf.mxu2 }
 0x82b   :  { %15524 = vst [vmem:[#allocation158_spill] sm:$0xff] %v13311_v26  ;;  %v3481_v41 = vpop.f32.mrf.mxu0  ;;  %v13313_v58 = vpop.f32.mrf.mxu1 }
 0x82c   :  { %15525 = vst [vmem:[#allocation11_spill] sm:$0xff] %v13313_v58  ;;  %v13316_v5 = vadd.f32 %v3481_v41, %v15526_v50  ;;  %v13319_v15 = vpop.f32.mrf.mxu3  ;;  %v15534_v50 = vld [vmem:[#allocation10_spill] sm:$0xff] }
 0x82d   :  { %15529 = vst [vmem:[#allocation160_spill] sm:$0xff] %v13319_v15  ;;  %v15538_v15 = vld [vmem:[#allocation38_spill] sm:$0xff] }
 0x82e   :  { %15527 = vst [vmem:[#allocation159_spill] sm:$0xff] %v13316_v5 }
 0x832   :  { %v4383_v37 = vpop.f32.mrf.mxu2 }
 0x833   :  { %v4535_v28 = vadd.f32 %v4383_v37, %v4073_v35  ;;  %v3484_v13 = vpop.f32.mrf.mxu0  ;;  %v3936_v62 = vpop.f32.mrf.mxu1 }
 0x834   :  { %v3621_v54 = vadd.f32 %v3484_v13, %v15528_v27  ;;  %v4079_v7 = vadd.f32 %v3936_v62, %v3617_v61  ;;  %v4855_v35 = vpop.f32.mrf.mxu3  ;;  %v15536_v61 = vld [vmem:[#allocation4_spill] sm:$0xff] }
 0x835   :  { %v13321_v40 = vadd.f32 %v4845_v22, %v4535_v28 }
 0x836   :  { %8625 = vmatmul.msk.bf16.gmra.mxu0 %vm1380_vm1, %v15531_v25 }
 0x837   :  { %15530 = vst [vmem:[#allocation14_spill] sm:$0xff] %v13321_v40 }
 0x83a   :  { %v13325_v57 = vpop.f32.mrf.mxu2 }
 0x83b   :  { %15532 = vst [vmem:[#allocation8_spill] sm:$0xff] %v13325_v57  ;;  %v3486_v58 = vpop.f32.mrf.mxu0  ;;  %v13327_v26 = vpop.f32.mrf.mxu1 }
 0x83c   :  { %15533 = vst [vmem:[#allocation9_spill] sm:$0xff] %v13327_v26  ;;  %v13330_v41 = vadd.f32 %v3486_v58, %v15534_v50  ;;  %v13337_v25 = vpop.f32.mrf.mxu3  ;;  %v15542_v50 = vld [vmem:[#allocation22_spill] sm:$0xff] }
 0x83d   :  { %15539 = vst [vmem:[#allocation4_spill] sm:$0xff] %v13337_v25 }
 0x83e   :  { %15535 = vst [vmem:[#allocation17_spill] sm:$0xff] %v13330_v41 }
 0x842   :  { %v4388_v37 = vpop.f32.mrf.mxu2 }
 0x843   :  { %v4537_v5 = vadd.f32 %v4388_v37, %v4075_v51  ;;  %v3489_v13 = vpop.f32.mrf.mxu0  ;;  %v3941_v62 = vpop.f32.mrf.mxu1 }
 0x844   :  { %v3623_v27 = vadd.f32 %v3489_v13, %v15536_v61  ;;  %v4081_v22 = vadd.f32 %v3941_v62, %v3619_v38  ;;  %v4860_v37 = vpop.f32.mrf.mxu3 }
 0x845   :  { %v13333_v28 = vadd.f32 %v4850_v48, %v4537_v5  ;;  %v15544_v5 = vld [vmem:[#allocation12_spill] sm:$0xff] }
 0x846   :  { %8626 = vmatmul.msk.bf16.gmra.mxu0 %vm1380_vm1, %v15538_v15 }
 0x847   :  { %15537 = vst [vmem:[#allocation10_spill] sm:$0xff] %v13333_v28 }
 0x84a   :  { %v13339_v57 = vpop.f32.mrf.mxu2 }
 0x84b   :  { %15540 = vst [vmem:[#allocation38_spill] sm:$0xff] %v13339_v57  ;;  %v3491_v26 = vpop.f32.mrf.mxu0  ;;  %v13341_v58 = vpop.f32.mrf.mxu1 }
 0x84c   :  { %15541 = vst [vmem:[#allocation161_spill] sm:$0xff] %v13341_v58  ;;  %v13344_v41 = vadd.f32 %v3491_v26, %v15542_v50  ;;  %v15548_v58 = vld [vmem:[#allocation5_spill] sm:$0xff]  ;;  %v13357_v50 = vpop.f32.mrf.mxu3 }
 0x84d   :  { %15550 = vst [vmem:[#allocation164_spill] sm:$0xff] %v13357_v50 }
 0x84e   :  { %15543 = vst [vmem:[#allocation22_spill] sm:$0xff] %v13344_v41 }
 0x852   :  { %v4393_v51 = vpop.f32.mrf.mxu2 }
 0x853   :  { %v4539_v40 = vadd.f32 %v4393_v51, %v4077_v11  ;;  %v3494_v13 = vpop.f32.mrf.mxu0  ;;  %v3946_v38 = vpop.f32.mrf.mxu1 }
 0x854   :  { %v3625_v48 = vadd.f32 %v3494_v13, %v15544_v5  ;;  %v4083_v62 = vadd.f32 %v3946_v38, %v3621_v54  ;;  %v15551_v54 = vld [vmem:[#allocation13_spill] sm:$0xff]  ;;  %v4865_v5 = vpop.f32.mrf.mxu3 }
 0x855   :  { %v13347_v61 = vadd.f32 %v4855_v35, %v4539_v40  ;;  %v15553_v38 = vld [vmem:[#allocation25_spill] sm:$0xff] }
 0x856   :  { %5061 = vmatmul.bf16.gmra.mxu0 %v15114_v21 }
 0x857   :  { %15545 = vst [vmem:[#allocation12_spill] sm:$0xff] %v13347_v61 }
 0x85a   :  { %v13350_v15 = vpop.f32.mrf.mxu2 }
 0x85b   :  { %15546 = vst [vmem:[#allocation162_spill] sm:$0xff] %v13350_v15  ;;  %v3496_v25 = vpop.f32.mrf.mxu0  ;;  %v13352_v57 = vpop.f32.mrf.mxu1  ;;  %v15562_v15 = vld [vmem:[#allocation7_spill] sm:$0xff] }
 0x85c   :  { %15547 = vst [vmem:[#allocation163_spill] sm:$0xff] %v13352_v57  ;;  %v13355_v26 = vadd.f32 %v3496_v25, %v15548_v58 }
 0x85e   :  { %15549 = vst [vmem:[#allocation5_spill] sm:$0xff] %v13355_v26  ;;  %v15556_v26 = vld [vmem:[#allocation6_spill] sm:$0xff] }
 0x862   :  { %v4398_v11 = vpop.f32.mrf.mxu2 }
 0x863   :  { %v4541_v51 = vadd.f32 %v4398_v11, %v4079_v7  ;;  %v3951_v41 = vpop.f32.mrf.mxu1  ;;  %v5027_v28 = vpop.f32.mrf.mxu0  ;;  %v9234_v7 = vld [vmem:[%s14982_s3 + $0x8] sm:$0xff] }
 0x864   :  { %v4085_v13 = vadd.f32 %v3951_v41, %v3623_v27  ;;  %v13360_v40 = vadd.f32 %v5027_v28, %v15551_v54  ;;  %6142 = vmatpush.bf16.msrb.mxu2 %v9234_v7  ;;  %v13376_v41 = vpop.f32.mrf.mxu3  ;;  %v9242_v27 = vld [vmem:[%s14982_s3 + $0x48] sm:$0xff] }
 0x865   :  { %v13362_v35 = vadd.f32 %v4860_v37, %v4541_v51  ;;  %15557 = vst [vmem:[#allocation6_spill] sm:$0xff] %v13376_v41  ;;  %v9238_v28 = vld [vmem:[%s14982_s3 + $0x28] sm:$0xff]  ;;  %6264 = vmatpush.bf16.msra.mxu3 %v9242_v27 }
 0x866   :  { %8627 = vmatmul.msk.bf16.gmra.mxu0 %vm1380_vm1, %v15553_v38  ;;  %6029 = vmatpush.bf16.msra.mxu1 %v9238_v28  ;;  %v15558_v38 = vld [vmem:[#allocation15_spill] sm:$0xff] }
 0x867   :  { %15552 = vst [vmem:[#allocation13_spill] sm:$0xff] %v13362_v35 }
 0x86a   :  { %v13366_v57 = vpop.f32.mrf.mxu2 }
 0x86b   :  { %15554 = vst [vmem:[#allocation25_spill] sm:$0xff] %v13366_v57  ;;  %v13368_v25 = vpop.f32.mrf.mxu1  ;;  %v5029_v58 = vpop.f32.mrf.mxu0 }
 0x86c   :  { %15555 = vst [vmem:[#allocation165_spill] sm:$0xff] %v13368_v25  ;;  %v13371_v50 = vadd.f32 %v5029_v58, %v15556_v26  ;;  %v15560_v25 = vld [vmem:[#allocation28_spill] sm:$0xff]  ;;  %v4870_v57 = vpop.f32.mrf.mxu3 }
 0x872   :  { %v4403_v37 = vpop.f32.mrf.mxu2 }
 0x873   :  { %v4543_v26 = vadd.f32 %v4403_v37, %v4081_v22  ;;  %v3956_v11 = vpop.f32.mrf.mxu1  ;;  %v5032_v51 = vpop.f32.mrf.mxu0  ;;  %v15563_v37 = vld [vmem:[#allocation16_spill] sm:$0xff] }
 0x874   :  { %v4087_v54 = vadd.f32 %v3956_v11, %v3625_v48  ;;  %v13385_v58 = vadd.f32 %v5032_v51, %v15558_v38  ;;  %v13399_v11 = vpop.f32.mrf.mxu3  ;;  %v15568_v38 = vld [vmem:[#allocation18_spill] sm:$0xff] }
 0x875   :  { %v13387_v7 = vadd.f32 %v4865_v5, %v4543_v26  ;;  %15564 = vst [vmem:[#allocation7_spill] sm:$0xff] %v13399_v11  ;;  %v15566_v26 = vld [vmem:[#allocation31_spill] sm:$0xff]  ;;  %v15577_v11 = vld [vmem:[#allocation37_spill] sm:$0xff] }
 0x876   :  { %8628 = vmatmul.msk.bf16.gmra.mxu0 %vm1380_vm1, %v15560_v25 }
 0x877   :  { %15559 = vst [vmem:[#allocation15_spill] sm:$0xff] %v13387_v7  ;;  %v15569_v7 = vld [vmem:[#allocation19_spill] sm:$0xff] }
 0x87a   :  { %v13391_v41 = vpop.f32.mrf.mxu2 }
 0x87b   :  { %15561 = vst [vmem:[#allocation28_spill] sm:$0xff] %v13391_v41  ;;  %v5034_v35 = vpop.f32.mrf.mxu0 }
 0x87c   :  { %v13394_v61 = vadd.f32 %v5034_v35, %v15562_v15  ;;  %v4875_v15 = vpop.f32.mrf.mxu3 }
 0x882   :  { %v4408_v27 = vpop.f32.mrf.mxu2 }
 0x883   :  { %v4545_v22 = vadd.f32 %v4408_v27, %v4083_v62  ;;  %v5037_v28 = vpop.f32.mrf.mxu0 }
 0x884   :  { %v13397_v48 = vadd.f32 %v5037_v28, %v15563_v37 }
 0x885   :  { %v13401_v5 = vadd.f32 %v4870_v57, %v4545_v22  ;;  %v15571_v57 = vld [vmem:[#allocation34_spill] sm:$0xff]  ;;  %v13417_v22 = vpop.f32.mrf.mxu3 }
 0x886   :  { %8629 = vmatmul.msk.bf16.gmra.mxu0 %vm1380_vm1, %v15566_v26  ;;  %15572 = vst [vmem:[#allocation19_spill] sm:$0xff] %v13417_v22  ;;  %v9233_v26 = vld [vmem:[%s14982_s3] sm:$0xff] }
 0x887   :  { %15565 = vst [vmem:[#allocation16_spill] sm:$0xff] %v13401_v5  ;;  %6143 = vmatpush.bf16.msrb.mxu2 %v9233_v26  ;;  %v9237_v26 = vld [vmem:[%s14982_s3 + $0x20] sm:$0xff] }
 0x888   :  { %6030 = vmatpush.bf16.msra.mxu1 %v9237_v26 }
 0x88a   :  { %v13405_v25 = vpop.f32.mrf.mxu2  ;;  %6144 = vmatmul.bf16.vlgmr.msrb.gmra.mxu2 %v15114_v21 }
 0x88b   :  { %15567 = vst [vmem:[#allocation31_spill] sm:$0xff] %v13405_v25  ;;  %v5039_v51 = vpop.f32.mrf.mxu0  ;;  %6031 = vmatmul.bf16.vlgmr.msra.gmra.mxu1 %v15114_v21 }
 0x88c   :  { %v13408_v41 = vadd.f32 %v5039_v51, %v15568_v38 }
 0x892   :  { %v4413_v35 = vpop.f32.mrf.mxu2 }
 0x893   :  { %v4547_v62 = vadd.f32 %v4413_v35, %v4085_v13  ;;  %v5042_v27 = vpop.f32.mrf.mxu0  ;;  %v15574_v13 = vld [vmem:[#allocation20_spill] sm:$0xff] }
 0x894   :  { %v13411_v28 = vadd.f32 %v5042_v27, %v15569_v7 }
 0x895   :  { %v13413_v37 = vadd.f32 %v4875_v15, %v4547_v62  ;;  %v4880_v15 = vpop.f32.mrf.mxu3 }
 0x896   :  { %8630 = vmatmul.msk.bf16.gmra.mxu0 %vm1380_vm1, %v15571_v57  ;;  %v15575_v57 = vld [vmem:[#allocation21_spill] sm:$0xff] }
 0x897   :  { %15570 = vst [vmem:[#allocation18_spill] sm:$0xff] %v13413_v37 }
 0x89a   :  { %v13422_v51 = vpop.f32.mrf.mxu2  ;;  %6149 = vmatmul.bf16.gmra.mxu2 %v15114_v21 }
 0x89b   :  { %15573 = vst [vmem:[#allocation34_spill] sm:$0xff] %v13422_v51  ;;  %v5044_v38 = vpop.f32.mrf.mxu0  ;;  %6036 = vmatmul.bf16.gmra.mxu1 %v15114_v21 }
 0x89c   :  { %v13425_v35 = vadd.f32 %v5044_v38, %v15574_v13  ;;  %v15578_v13 = vld [vmem:[#allocation23_spill] sm:$0xff] }
 0x8a2   :  { %v4418_v7 = vpop.f32.mrf.mxu2 }
 0x8a3   :  { %v4549_v62 = vadd.f32 %v4418_v7, %v4087_v54  ;;  %v5047_v27 = vpop.f32.mrf.mxu0  ;;  %v15579_v7 = vld [vmem:[#allocation24_spill] sm:$0xff] }
 0x8a4   :  { %v13429_v37 = vadd.f32 %v5047_v27, %v15575_v57  ;;  %v15581_v27 = vld [vmem:[#allocation26_spill] sm:$0xff] }
 0x8a5   :  { %v13431_v22 = vadd.f32 %v4880_v15, %v4549_v62  ;;  %v15580_v62 = vld [vmem:[#allocation41_spill] sm:$0xff] }
 0x8a6   :  { %8631 = vmatmul.msk.bf16.gmra.mxu0 %vm1380_vm1, %v15577_v11 }
 0x8a7   :  { %15576 = vst [vmem:[#allocation20_spill] sm:$0xff] %v13431_v22  ;;  %v15583_v22 = vld [vmem:[#allocation62_spill] sm:$0xff] }
 0x8aa   :  { %6154 = vmatmul.bf16.gmra.mxu2 %v15114_v21 }
 0x8ab   :  { %v5049_v38 = vpop.f32.mrf.mxu0  ;;  %6041 = vmatmul.bf16.gmra.mxu1 %v15114_v21 }
 0x8ac   :  { %v13439_v51 = vadd.f32 %v5049_v38, %v15578_v13  ;;  %v15582_v38 = vld [vmem:[#allocation27_spill] sm:$0xff] }
 0x8b3   :  { %v5052_v54 = vpop.f32.mrf.mxu0 }
 0x8b4   :  { %v13444_v15 = vadd.f32 %v5052_v54, %v15579_v7  ;;  %v9241_v54 = vld [vmem:[%s14982_s3 + $0x40] sm:$0xff] }
 0x8b5   :  { %6265 = vmatpush.bf16.msra.mxu3 %v9241_v54  ;;  %v13480_v54 = vld [vmem:[%s14983_s2] ss:$0 sm:$0xff] }
 0x8b6   :  { %8632 = vmatmul.msk.bf16.gmra.mxu0 %vm1380_vm1, %v15580_v62  ;;  %v15584_v62 = vld [vmem:[#allocation29_spill] sm:$0xff]  ;;  %v5480_v10 = vadd.f32 %v13480_v54, %v13371_v50 }
 0x8b8   :  { %6266 = vmatmul.bf16.vlgmr.msra.gmra.mxu3 %v15114_v21 }
 0x8ba   :  { %6159 = vmatmul.bf16.gmra.mxu2 %v15114_v21 }
 0x8bb   :  { %v5054_v11 = vpop.f32.mrf.mxu0  ;;  %6046 = vmatmul.bf16.gmra.mxu1 %v15114_v21 }
 0x8bc   :  { %v13449_v57 = vadd.f32 %v5054_v11, %v15581_v27  ;;  %v15585_v27 = vld [vmem:[#allocation30_spill] sm:$0xff] }
 0x8c3   :  { %v5057_v26 = vpop.f32.mrf.mxu0 }
 0x8c4   :  { %v13454_v13 = vadd.f32 %v5057_v26, %v15582_v38  ;;  %v15586_v38 = vld [vmem:[#allocation32_spill] sm:$0xff] }
 0x8c6   :  { %8633 = vmatmul.msk.bf16.gmra.mxu0 %vm1380_vm1, %v15583_v22 }
 0x8c8   :  { %6271 = vmatmul.bf16.gmra.mxu3 %v15114_v21 }
 0x8ca   :  { %6164 = vmatmul.bf16.gmra.mxu2 %v15114_v21 }
 0x8cb   :  { %v5059_v7 = vpop.f32.mrf.mxu0 }
 0x8cc   :  { %v13462_v25 = vadd.f32 %v5059_v7, %v15584_v62  ;;  %v5479_v62 = vadd.f32 %v13480_v54, %v13360_v40  ;;  %v5608_v40 = vmax.f32 %v5480_v10, 0.0  ;;  %v5482_v10 = vadd.f32 %v13480_v54, %v13394_v61  ;;  %v15594_v61 = vld [vmem:[#allocation55_spill] sm:$0xff] }
 0x8ce   :  { %v5607_v33 = vmax.f32 %v5479_v62, 0.0  ;;  %v15590_v62 = vld [vmem:[#allocation35_spill] sm:$0xff] }
 0x8d3   :  { %v5062_v11 = vpop.f32.mrf.mxu0 }
 0x8d4   :  { %v13468_v26 = vadd.f32 %v5062_v11, %v15585_v27  ;;  %v15587_v11 = vld [vmem:[#allocation33_spill] sm:$0xff] }
 0x8d6   :  { %5101 = vmatmul.bf16.gmra.mxu0 %v15114_v21 }
 0x8d8   :  { %6276 = vmatmul.bf16.gmra.mxu3 %v15114_v21 }
 0x8db   :  { %v5064_v22 = vpop.f32.mrf.mxu0 }
 0x8dc   :  { %v13472_v5 = vadd.f32 %v5064_v22, %v15586_v38  ;;  %v15588_v38 = vld [vmem:[#allocation49_spill] sm:$0xff] }
 0x8e3   :  { %v5067_v7 = vpop.f32.mrf.mxu0 }
 0x8e4   :  { %v5363_v27 = vadd.f32 %v5067_v7, %v15587_v11 }
 0x8e6   :  { %v5495_v22 = vadd.f32 %v13480_v54, %v5363_v27  ;;  %8634 = vmatmul.msk.bf16.gmra.mxu0 %vm1380_vm1, %v15588_v38  ;;  %v5481_v38 = vadd.f32 %v13480_v54, %v13385_v58  ;;  %v5610_v58 = vmax.f32 %v5482_v10, 0.0 }
 0x8e8   :  { %v5623_v44 = vmax.f32 %v5495_v22, 0.0  ;;  %v5609_v50 = vmax.f32 %v5481_v38, 0.0  ;;  %6281 = vmatmul.bf16.gmra.mxu3 %v15114_v21  ;;  %v5483_v38 = vadd.f32 %v13480_v54, %v13397_v48  ;;  %v5484_v48 = vadd.f32 %v13480_v54, %v13408_v41 }
 0x8ea   :  { %v5735_v2 = vmax.f32 %v5607_v33, %v5623_v44  ;;  %v15591_v33 = vld [vmem:[#allocation52_spill] sm:$0xff] }
 0x8eb   :  { %v5069_v63 = vpop.f32.mrf.mxu0 }
 0x8ec   :  { %v5364_v29 = vadd.f32 %v5069_v63, %v15589_v9 }
 0x8ee   :  { %v5496_v34 = vadd.f32 %v13480_v54, %v5364_v29 }
 0x8f0   :  { %v5624_v7 = vmax.f32 %v5496_v34, 0.0 }
 0x8f2   :  { %v5736_v11 = vmax.f32 %v5608_v40, %v5624_v7  ;;  %v15592_v40 = vld [vmem:[#allocation36_spill] sm:$0xff] }
 0x8f3   :  { %v5072_v27 = vpop.f32.mrf.mxu0 }
 0x8f4   :  { %v5365_v22 = vadd.f32 %v5072_v27, %v15590_v62 }
 0x8f6   :  { %v5497_v44 = vadd.f32 %v13480_v54, %v5365_v22  ;;  %8635 = vmatmul.msk.bf16.gmra.mxu0 %vm1380_vm1, %v15591_v33 }
 0x8f8   :  { %v5625_v63 = vmax.f32 %v5497_v44, 0.0 }
 0x8fa   :  { %v5737_v9 = vmax.f32 %v5609_v50, %v5625_v63  ;;  %v15593_v50 = vld [vmem:[#allocation39_spill] sm:$0xff] }
 0x8fb   :  { %v5074_v29 = vpop.f32.mrf.mxu0 }
 0x8fc   :  { %v5799_v34 = vmax.f32 %v5735_v2, %v5737_v9  ;;  %v5366_v7 = vadd.f32 %v5074_v29, %v15592_v40  ;;  %v5611_v9 = vmax.f32 %v5483_v38, 0.0 }
 0x8fe   :  { %v5498_v59 = vadd.f32 %v13480_v54, %v5366_v7  ;;  %v5831_v44 = vpack.c.bf16 %v5799_v34, %v5799_v34 }
 0x900   :  { %v5626_v27 = vmax.f32 %v5498_v59, 0.0  ;;  %v5895_v29 = vunpack.c.l.b16 %v5831_v44  ;;  %v5485_v44 = vadd.f32 %v13480_v54, %v13411_v28 }
 0x902   :  { %v5738_v62 = vmax.f32 %v5610_v58, %v5626_v27 }
 0x903   :  { %v5077_v22 = vpop.f32.mrf.mxu0 }
 0x904   :  { %v5800_v33 = vmax.f32 %v5736_v11, %v5738_v62  ;;  %v5367_v63 = vadd.f32 %v5077_v22, %v15593_v50  ;;  %v15595_v11 = vld [vmem:[#allocation40_spill] sm:$0xff] }
 0x906   :  { %v5832_v18 = vpack.c.bf16 %v5800_v33, %v5800_v33  ;;  %v5499_v2 = vadd.f32 %v13480_v54, %v5367_v63  ;;  %8636 = vmatmul.msk.bf16.gmra.mxu0 %vm1380_vm1, %v15594_v61  ;;  %v15596_v33 = vld [vmem:[#allocation42_spill] sm:$0xff] }
 0x907   :  { %v15597_v63 = vld [vmem:[#allocation58_spill] sm:$0xff] }
 0x908   :  { %v5896_v40 = vunpack.c.l.b16 %v5832_v18  ;;  %v5627_v10 = vmax.f32 %v5499_v2, 0.0  ;;  %v5612_v18 = vmax.f32 %v5484_v48, 0.0  ;;  %v5613_v2 = vmax.f32 %v5485_v44, 0.0  ;;  %v15599_v48 = vld [vmem:[#allocation43_spill] sm:$0xff] }
 0x90a   :  { %v5739_v59 = vmax.f32 %v5611_v9, %v5627_v10  ;;  %v13510_v7 = vpack.c.b16 %v5896_v40, %v5895_v29  ;;  %v13526_v9 = vpop.f32.mrf.mxu2  ;;  %v5486_v10 = vadd.f32 %v13480_v54, %v13425_v35 }
 0x90b   :  { %v5079_v58 = vpop.f32.mrf.mxu0  ;;  %15598 = vst [vmem:[#allocation21_spill] sm:$0xff] %v13526_v9 }
 0x90c   :  { %v5368_v34 = vadd.f32 %v5079_v58, %v15595_v11  ;;  %8693 = vmatmul.msk.bf16.gmra.mxu1 %vm5984_vm2, %v13510_v7  ;;  %8721 = vmatmul.msk.bf16.gmra.mxu2 %vm5984_vm2, %v13510_v7 }
 0x90e   :  { %v5500_v27 = vadd.f32 %v13480_v54, %v5368_v34  ;;  %v5614_v34 = vmax.f32 %v5486_v10, 0.0 }
 0x910   :  { %v5628_v62 = vmax.f32 %v5500_v27, 0.0 }
 0x912   :  { %v5740_v22 = vmax.f32 %v5612_v18, %v5628_v62  ;;  %v13532_v18 = vpop.f32.mrf.mxu1 }
 0x913   :  { %v5082_v38 = vpop.f32.mrf.mxu0  ;;  %15600 = vst [vmem:[#allocation37_spill] sm:$0xff] %v13532_v18 }
 0x914   :  { %v5369_v50 = vadd.f32 %v5082_v38, %v15596_v33  ;;  %v6145_v38 = vpop.f32.mrf.mxu2  ;;  %v5487_v33 = vadd.f32 %v13480_v54, %v13429_v37 }
 0x916   :  { %v5501_v41 = vadd.f32 %v13480_v54, %v5369_v50  ;;  %8637 = vmatmul.msk.bf16.gmra.mxu0 %vm1380_vm1, %v15597_v63  ;;  %v15601_v63 = vld [vmem:[#allocation44_spill] sm:$0xff] }
 0x918   :  { %v5629_v61 = vmax.f32 %v5501_v41, 0.0 }
 0x91a   :  { %v5741_v29 = vmax.f32 %v5613_v2, %v5629_v61  ;;  %v15602_v61 = vld [vmem:[#allocation61_spill] sm:$0xff]  ;;  %v6032_v37 = vpop.f32.mrf.mxu1 }
 0x91b   :  { %v5084_v40 = vpop.f32.mrf.mxu0 }
 0x91c   :  { %v5801_v58 = vmax.f32 %v5739_v59, %v5741_v29  ;;  %v5370_v11 = vadd.f32 %v5084_v40, %v15599_v48  ;;  %v5615_v29 = vmax.f32 %v5487_v33, 0.0 }
 0x91e   :  { %v5502_v28 = vadd.f32 %v13480_v54, %v5370_v11  ;;  %v5833_v50 = vpack.c.bf16 %v5801_v58, %v5801_v58 }
 0x920   :  { %v5630_v27 = vmax.f32 %v5502_v28, 0.0  ;;  %v5897_v40 = vunpack.c.l.b16 %v5833_v50 }
 0x922   :  { %v5742_v62 = vmax.f32 %v5614_v34, %v5630_v27  ;;  %v13542_v34 = vpop.f32.mrf.mxu2  ;;  %v5488_v27 = vadd.f32 %v13480_v54, %v13439_v51  ;;  %v5489_v51 = vadd.f32 %v13480_v54, %v13444_v15 }
 0x923   :  { %v5087_v44 = vpop.f32.mrf.mxu0  ;;  %15603 = vst [vmem:[#allocation23_spill] sm:$0xff] %v13542_v34  ;;  %v15655_v34 = vld [vmem:[#allocation75_spill] sm:$0xff] }
 0x924   :  { %v5802_v41 = vmax.f32 %v5740_v22, %v5742_v62  ;;  %v5371_v2 = vadd.f32 %v5087_v44, %v15601_v63  ;;  %v13544_v22 = vadd.f32 %v6145_v38, %v6032_v37  ;;  %v15604_v62 = vld [vmem:[#allocation45_spill] sm:$0xff]  ;;  %v5616_v50 = vmax.f32 %v5488_v27, 0.0  ;;  %v13556_v63 = vpop.f32.mrf.mxu1 }
 0x925   :  { %15605 = vst [vmem:[#allocation24_spill] sm:$0xff] %v13556_v63  ;;  %v5490_v27 = vadd.f32 %v13480_v54, %v13449_v57 }
 0x926   :  { %v5834_v35 = vpack.c.bf16 %v5802_v41, %v5802_v41  ;;  %v5503_v59 = vadd.f32 %v13480_v54, %v5371_v2  ;;  %8638 = vmatmul.msk.bf16.gmra.mxu0 %vm1380_vm1, %v15602_v61 }
 0x928   :  { %v5898_v10 = vunpack.c.l.b16 %v5834_v35  ;;  %v5631_v48 = vmax.f32 %v5503_v59, 0.0  ;;  %v15606_v35 = vld [vmem:[#allocation47_spill] sm:$0xff] }
 0x92a   :  { %v13540_v11 = vpack.c.b16 %v5898_v10, %v5897_v40  ;;  %v5743_v28 = vmax.f32 %v5615_v29, %v5631_v48  ;;  %v6150_v61 = vpop.f32.mrf.mxu2  ;;  %v15607_v40 = vld [vmem:[#allocation65_spill] sm:$0xff]  ;;  %v5617_v10 = vmax.f32 %v5489_v51, 0.0  ;;  %v5491_v51 = vadd.f32 %v13480_v54, %v13454_v13 }
 0x92b   :  { %v5089_v58 = vpop.f32.mrf.mxu0 }
 0x92c   :  { %v5372_v44 = vadd.f32 %v5089_v58, %v15604_v62  ;;  %8694 = vmatmul.msk.bf16.gmra.mxu1 %vm5984_vm2, %v13540_v11  ;;  %8722 = vmatmul.msk.bf16.gmra.mxu2 %vm5984_vm2, %v13540_v11 }
 0x92d   :  { %8754 = vmatmul.msk.bf16.gmra.mxu3 %vm5984_vm2, %v13540_v11 }
 0x92e   :  { %v5504_v33 = vadd.f32 %v13480_v54, %v5372_v44  ;;  %v15608_v44 = vld [vmem:[#allocation48_spill] sm:$0xff] }
 0x930   :  { %v5632_v41 = vmax.f32 %v5504_v33, 0.0 }
 0x932   :  { %v5744_v38 = vmax.f32 %v5616_v50, %v5632_v41  ;;  %v6037_v50 = vpop.f32.mrf.mxu1  ;;  %v13568_v41 = vpop.f32.mrf.mxu2 }
 0x933   :  { %v5092_v2 = vpop.f32.mrf.mxu0  ;;  %15609 = vst [vmem:[#allocation41_spill] sm:$0xff] %v13568_v41 }
 0x934   :  { %v5373_v59 = vadd.f32 %v5092_v2, %v15606_v35  ;;  %v5618_v2 = vmax.f32 %v5490_v27, 0.0  ;;  %v5619_v27 = vmax.f32 %v5491_v51, 0.0 }
 0x936   :  { %v5505_v29 = vadd.f32 %v13480_v54, %v5373_v59  ;;  %8639 = vmatmul.msk.bf16.gmra.mxu0 %vm1380_vm1, %v15607_v40  ;;  %v6151_v59 = vadd.f32 %v6150_v61, %v6037_v50 }
 0x938   :  { %v5633_v48 = vmax.f32 %v5505_v29, 0.0 }
 0x93a   :  { %v5745_v37 = vmax.f32 %v5617_v10, %v5633_v48  ;;  %v15610_v48 = vld [vmem:[#allocation50_spill] sm:$0xff] }
 0x93b   :  { %v5094_v58 = vpop.f32.mrf.mxu0 }
 0x93c   :  { %v5803_v62 = vmax.f32 %v5743_v28, %v5745_v37  ;;  %v5374_v33 = vadd.f32 %v5094_v58, %v15608_v44  ;;  %v13573_v28 = vpop.f32.mrf.mxu1  ;;  %v15612_v44 = vld [vmem:[#allocation86_spill] sm:$0xff] }
 0x93d   :  { %15611 = vst [vmem:[#allocation26_spill] sm:$0xff] %v13573_v28  ;;  %v15645_v28 = vld [vmem:[#allocation68_spill] sm:$0xff] }
 0x93e   :  { %v5506_v15 = vadd.f32 %v13480_v54, %v5374_v33  ;;  %v5835_v29 = vpack.c.bf16 %v5803_v62, %v5803_v62  ;;  %v5492_v62 = vadd.f32 %v13480_v54, %v13462_v25 }
 0x940   :  { %v5634_v35 = vmax.f32 %v5506_v15, 0.0  ;;  %v5899_v33 = vunpack.c.l.b16 %v5835_v29  ;;  %v6155_v15 = vpop.f32.mrf.mxu2 }
 0x942   :  { %v5746_v9 = vmax.f32 %v5618_v2, %v5634_v35  ;;  %v13578_v2 = vpop.f32.mrf.mxu3  ;;  %v15614_v35 = vld [vmem:[#allocation51_spill] sm:$0xff] }
 0x943   :  { %v5097_v40 = vpop.f32.mrf.mxu0  ;;  %15613 = vst [vmem:[#allocation27_spill] sm:$0xff] %v13578_v2 }
 0x944   :  { %v5804_v10 = vmax.f32 %v5744_v38, %v5746_v9  ;;  %v5375_v57 = vadd.f32 %v5097_v40, %v15610_v48  ;;  %v6042_v51 = vpop.f32.mrf.mxu1  ;;  %v5620_v48 = vmax.f32 %v5492_v62, 0.0 }
 0x945   :  { %v6156_v29 = vadd.f32 %v6155_v15, %v6042_v51 }
 0x946   :  { %v5836_v37 = vpack.c.bf16 %v5804_v10, %v5804_v10  ;;  %v5507_v58 = vadd.f32 %v13480_v54, %v5375_v57  ;;  %8640 = vmatmul.msk.bf16.gmra.mxu0 %vm1380_vm1, %v15612_v44 }
 0x948   :  { %v5900_v61 = vunpack.c.l.b16 %v5836_v37  ;;  %v5635_v50 = vmax.f32 %v5507_v58, 0.0  ;;  %v13592_v58 = vpop.f32.mrf.mxu2 }
 0x949   :  { %15615 = vst [vmem:[#allocation62_spill] sm:$0xff] %v13592_v58 }
 0x94a   :  { %v13580_v13 = vpack.c.b16 %v5900_v61, %v5899_v33  ;;  %v5747_v9 = vmax.f32 %v5619_v27, %v5635_v50  ;;  %v6267_v25 = vpop.f32.mrf.mxu3  ;;  %v5493_v33 = vadd.f32 %v13480_v54, %v13468_v26  ;;  %v15617_v61 = vld [vmem:[#allocation53_spill] sm:$0xff] }
 0x94b   :  { %v5099_v38 = vpop.f32.mrf.mxu0  ;;  %v13595_v27 = vadd.f32 %v6267_v25, %v13544_v22  ;;  %v5494_v22 = vadd.f32 %v13480_v54, %v13472_v5  ;;  %v15622_v5 = vld [vmem:[#allocation56_spill] sm:$0xff] }
 0x94c   :  { %v5376_v40 = vadd.f32 %v5099_v38, %v15614_v35  ;;  %8695 = vmatmul.msk.bf16.gmra.mxu1 %vm5984_vm2, %v13580_v13  ;;  %8723 = vmatmul.msk.bf16.gmra.mxu2 %vm5984_vm2, %v13580_v13  ;;  %v13600_v38 = vpop.f32.mrf.mxu1  ;;  %v5621_v62 = vmax.f32 %v5493_v33, 0.0 }
 0x94d   :  { %8755 = vmatmul.msk.bf16.gmra.mxu3 %vm5984_vm2, %v13580_v13  ;;  %15616 = vst [vmem:[#allocation29_spill] sm:$0xff] %v13595_v27  ;;  %v5622_v2 = vmax.f32 %v5494_v22, 0.0 }
 0x94e   :  { %v5508_v10 = vadd.f32 %v13480_v54, %v5376_v40  ;;  %15618 = vst [vmem:[#allocation30_spill] sm:$0xff] %v13600_v38 }
 0x950   :  { %v5636_v57 = vmax.f32 %v5508_v10, 0.0  ;;  %v6160_v25 = vpop.f32.mrf.mxu2 }
 0x952   :  { %v5748_v37 = vmax.f32 %v5620_v48, %v5636_v57  ;;  %v13604_v51 = vpop.f32.mrf.mxu3  ;;  %v15620_v57 = vld [vmem:[#allocation54_spill] sm:$0xff] }
 0x953   :  { %v5102_v44 = vpop.f32.mrf.mxu0  ;;  %15619 = vst [vmem:[#allocation32_spill] sm:$0xff] %v13604_v51 }
 0x954   :  { %v5377_v50 = vadd.f32 %v5102_v44, %v15617_v61  ;;  %v6047_v44 = vpop.f32.mrf.mxu1 }
 0x955   :  { %v6161_v61 = vadd.f32 %v6160_v25, %v6047_v44 }
 0x956   :  { %v5509_v15 = vadd.f32 %v13480_v54, %v5377_v50  ;;  %5141 = vmatmul.bf16.gmra.mxu0 %v15114_v21 }
 0x958   :  { %v5637_v35 = vmax.f32 %v5509_v15, 0.0 }
 0x95a   :  { %v5749_v40 = vmax.f32 %v5621_v62, %v5637_v35  ;;  %v6272_v62 = vpop.f32.mrf.mxu3 }
 0x95b   :  { %v5104_v10 = vpop.f32.mrf.mxu0  ;;  %v13611_v18 = vadd.f32 %v6272_v62, %v6151_v59 }
 0x95c   :  { %v5805_v48 = vmax.f32 %v5747_v9, %v5749_v40  ;;  %v5378_v26 = vadd.f32 %v5104_v10, %v15620_v57  ;;  %6184 = vmatmul.bf16.gmra.mxu2 %v15114_v21  ;;  %v15623_v10 = vld [vmem:[#allocation73_spill] sm:$0xff] }
 0x95d   :  { %15621 = vst [vmem:[#allocation33_spill] sm:$0xff] %v13611_v18  ;;  %v15647_v18 = vld [vmem:[#allocation69_spill] sm:$0xff] }
 0x95e   :  { %v5510_v50 = vadd.f32 %v13480_v54, %v5378_v26  ;;  %v5837_v58 = vpack.c.bf16 %v5805_v48, %v5805_v48  ;;  %v15625_v26 = vld [vmem:[#allocation57_spill] sm:$0xff] }
 0x960   :  { %v5638_v33 = vmax.f32 %v5510_v50, 0.0  ;;  %v5901_v57 = vunpack.c.l.b16 %v5837_v58  ;;  %v15627_v58 = vld [vmem:[#allocation70_spill] sm:$0xff] }
 0x962   :  { %v5750_v15 = vmax.f32 %v5622_v2, %v5638_v33  ;;  %v13620_v22 = vpop.f32.mrf.mxu3  ;;  %v15628_v33 = vld [vmem:[#allocation76_spill] sm:$0xff] }
 0x963   :  { %v5107_v35 = vpop.f32.mrf.mxu0  ;;  %15624 = vst [vmem:[#allocation49_spill] sm:$0xff] %v13620_v22  ;;  %v15638_v22 = vld [vmem:[#allocation82_spill] sm:$0xff] }
 0x964   :  { %v5806_v38 = vmax.f32 %v5748_v37, %v5750_v15  ;;  %v13614_v9 = vadd.f32 %v5107_v35, %v15622_v5  ;;  %v15630_v35 = vld [vmem:[#allocation59_spill] sm:$0xff] }
 0x966   :  { %v5838_v40 = vpack.c.bf16 %v5806_v38, %v5806_v38  ;;  %8641 = vmatmul.msk.bf16.gmra.mxu0 %vm1380_vm1, %v15623_v10  ;;  %v13644_v10 = vpop.f32.mrf.mxu1 }
 0x967   :  { %15632 = vst [vmem:[#allocation36_spill] sm:$0xff] %v13644_v10 }
 0x968   :  { %v5902_v25 = vunpack.c.l.b16 %v5838_v40  ;;  %v13642_v40 = vpop.f32.mrf.mxu2 }
 0x969   :  { %15631 = vst [vmem:[#allocation52_spill] sm:$0xff] %v13642_v40 }
 0x96a   :  { %v13618_v44 = vpack.c.b16 %v5902_v25, %v5901_v57  ;;  %v6277_v59 = vpop.f32.mrf.mxu3 }
 0x96b   :  { %v5109_v2 = vpop.f32.mrf.mxu0  ;;  %v13629_v38 = vadd.f32 %v6277_v59, %v6156_v29  ;;  %v15635_v59 = vld [vmem:[#allocation79_spill] sm:$0xff] }
 0x96c   :  { %v13623_v50 = vadd.f32 %v5109_v2, %v15625_v26  ;;  %8696 = vmatmul.msk.bf16.gmra.mxu1 %vm5984_vm2, %v13618_v44  ;;  %8756 = vmatmul.msk.bf16.gmra.mxu3 %vm5984_vm2, %v13618_v44  ;;  %v15634_v2 = vld [vmem:[#allocation60_spill] sm:$0xff] }
 0x96d   :  { %15626 = vst [vmem:[#allocation46_spill] sm:$0xff] %v13629_v38  ;;  %v15637_v38 = vld [vmem:[#allocation64_spill] sm:$0xff] }
 0x96e   :  { %v5512_v3 = vadd.f32 %v13480_v54, %v13623_v50 }
 0x972   :  { %v13636_v15 = vpop.f32.mrf.mxu3 }
 0x973   :  { %v5112_v37 = vpop.f32.mrf.mxu0  ;;  %15629 = vst [vmem:[#allocation35_spill] sm:$0xff] %v13636_v15 }
 0x974   :  { %v13632_v48 = vadd.f32 %v5112_v37, %v15627_v58  ;;  %v6165_v37 = vpop.f32.mrf.mxu2 }
 0x976   :  { %8642 = vmatmul.msk.bf16.gmra.mxu0 %vm1380_vm1, %v15628_v33 }
 0x97a   :  { %v6282_v29 = vpop.f32.mrf.mxu3 }
 0x97b   :  { %v5114_v62 = vpop.f32.mrf.mxu0  ;;  %v13646_v25 = vadd.f32 %v6282_v29, %v6161_v61  ;;  %v15639_v29 = vld [vmem:[#allocation66_spill] sm:$0xff] }
 0x97c   :  { %v13639_v5 = vadd.f32 %v5114_v62, %v15630_v35  ;;  %6301 = vmatmul.bf16.gmra.mxu3 %v15114_v21  ;;  %v15636_v35 = vld [vmem:[#allocation63_spill] sm:$0xff] }
 0x97d   :  { %15633 = vst [vmem:[#allocation39_spill] sm:$0xff] %v13646_v25 }
 0x983   :  { %v5117_v57 = vpop.f32.mrf.mxu0 }
 0x984   :  { %v13649_v26 = vadd.f32 %v5117_v57, %v15634_v2  ;;  %v13664_v2 = vpop.f32.mrf.mxu2 }
 0x985   :  { %15640 = vst [vmem:[#allocation55_spill] sm:$0xff] %v13664_v2 }
 0x986   :  { %8643 = vmatmul.msk.bf16.gmra.mxu0 %vm1380_vm1, %v15635_v59 }
 0x989   :  { %v6052_v58 = vpop.f32.mrf.mxu1 }
 0x98a   :  { %v6166_v33 = vadd.f32 %v6165_v37, %v6052_v58  ;;  %v15642_v58 = vld [vmem:[#allocation67_spill] sm:$0xff] }
 0x98b   :  { %v5119_v62 = vpop.f32.mrf.mxu0 }
 0x98c   :  { %v13654_v15 = vadd.f32 %v5119_v62, %v15636_v35  ;;  %v15643_v62 = vld [vmem:[#allocation85_spill] sm:$0xff] }
 0x991   :  { %v13666_v59 = vpop.f32.mrf.mxu1 }
 0x992   :  { %15641 = vst [vmem:[#allocation40_spill] sm:$0xff] %v13666_v59 }
 0x993   :  { %v5122_v40 = vpop.f32.mrf.mxu0 }
 0x994   :  { %v13657_v10 = vadd.f32 %v5122_v40, %v15637_v38  ;;  %v13673_v38 = vpop.f32.mrf.mxu3  ;;  %v6170_v40 = vpop.f32.mrf.mxu2 }
 0x995   :  { %15644 = vst [vmem:[#allocation42_spill] sm:$0xff] %v13673_v38 }
 0x996   :  { %8644 = vmatmul.msk.bf16.gmra.mxu0 %vm1380_vm1, %v15638_v22 }
 0x99b   :  { %v5124_v61 = vpop.f32.mrf.mxu0 }
 0x99c   :  { %v13662_v57 = vadd.f32 %v5124_v61, %v15639_v29  ;;  %v13688_v38 = vpop.f32.mrf.mxu2 }
 0x99d   :  { %15649 = vst [vmem:[#allocation43_spill] sm:$0xff] %v13688_v38 }
 0x9a3   :  { %v5127_v37 = vpop.f32.mrf.mxu0 }
 0x9a4   :  { %v13669_v25 = vadd.f32 %v5127_v37, %v15642_v58  ;;  %v15648_v58 = vld [vmem:[#allocation71_spill] sm:$0xff] }
 0x9a6   :  { %8645 = vmatmul.msk.bf16.gmra.mxu0 %vm1380_vm1, %v15643_v62 }
 0x9a9   :  { %v6057_v35 = vpop.f32.mrf.mxu1 }
 0x9aa   :  { %v6171_v22 = vadd.f32 %v6170_v40, %v6057_v35 }
 0x9ab   :  { %v5129_v41 = vpop.f32.mrf.mxu0 }
 0x9ac   :  { %v13676_v61 = vadd.f32 %v5129_v41, %v15645_v28  ;;  %v15651_v28 = vld [vmem:[#allocation72_spill] sm:$0xff] }
 0x9b0   :  { %v6287_v29 = vpop.f32.mrf.mxu3 }
 0x9b1   :  { %v13678_v2 = vadd.f32 %v6287_v29, %v6166_v33  ;;  %v13690_v40 = vpop.f32.mrf.mxu1  ;;  %v6175_v33 = vpop.f32.mrf.mxu2 }
 0x9b2   :  { %15650 = vst [vmem:[#allocation44_spill] sm:$0xff] %v13690_v40 }
 0x9b3   :  { %15646 = vst [vmem:[#allocation58_spill] sm:$0xff] %v13678_v2  ;;  %v5132_v59 = vpop.f32.mrf.mxu0  ;;  %v15653_v2 = vld [vmem:[#allocation74_spill] sm:$0xff] }
 0x9b4   :  { %v13681_v51 = vadd.f32 %v5132_v59, %v15647_v18 }
 0x9b6   :  { %8646 = vmatmul.msk.bf16.gmra.mxu0 %vm1380_vm1, %v15375_v56 }
 0x9b8   :  { %v13697_v18 = vpop.f32.mrf.mxu3 }
 0x9b9   :  { %15652 = vst [vmem:[#allocation61_spill] sm:$0xff] %v13697_v18  ;;  %v13711_v18 = vpop.f32.mrf.mxu2 }
 0x9ba   :  { %15657 = vst [vmem:[#allocation47_spill] sm:$0xff] %v13711_v18 }
 0x9bb   :  { %v5134_v37 = vpop.f32.mrf.mxu0 }
 0x9bc   :  { %v13686_v62 = vadd.f32 %v5134_v37, %v15648_v58 }
 0x9c3   :  { %v5137_v41 = vpop.f32.mrf.mxu0 }
 0x9c4   :  { %v13693_v35 = vadd.f32 %v5137_v41, %v15651_v28 }
 0x9c6   :  { %8647 = vmatmul.msk.bf16.gmra.mxu0 %vm1380_vm1, %v15380_v52  ;;  %v15656_v52 = vld [vmem:[#allocation89_spill] sm:$0xff] }
 0x9c9   :  { %v6062_v59 = vpop.f32.mrf.mxu1 }
 0x9ca   :  { %v6176_v56 = vadd.f32 %v6175_v33, %v6062_v59 }
 0x9cb   :  { %v5139_v29 = vpop.f32.mrf.mxu0 }
 0x9cc   :  { %v13700_v37 = vadd.f32 %v5139_v29, %v15653_v2  ;;  %v5511_v2 = vadd.f32 %v13480_v54, %v13614_v9  ;;  %v15661_v9 = vld [vmem:[#allocation78_spill] sm:$0xff] }
 0x9d0   :  { %v6292_v58 = vpop.f32.mrf.mxu3 }
 0x9d1   :  { %v13702_v38 = vadd.f32 %v6292_v58, %v6171_v22  ;;  %v13713_v33 = vpop.f32.mrf.mxu1  ;;  %v15659_v22 = vld [vmem:[#allocation77_spill] sm:$0xff] }
 0x9d2   :  { %15658 = vst [vmem:[#allocation65_spill] sm:$0xff] %v13713_v33 }
 0x9d3   :  { %15654 = vst [vmem:[#allocation45_spill] sm:$0xff] %v13702_v38  ;;  %v5142_v40 = vpop.f32.mrf.mxu0 }
 0x9d4   :  { %v13705_v63 = vadd.f32 %v5142_v40, %v15655_v34  ;;  %v5639_v40 = vmax.f32 %v5511_v2, 0.0 }
 0x9d6   :  { %5181 = vmatmul.bf16.gmra.mxu0 %v15114_v21 }
 0x9d8   :  { %v13721_v34 = vpop.f32.mrf.mxu3 }
 0x9d9   :  { %15660 = vst [vmem:[#allocation48_spill] sm:$0xff] %v13721_v34 }
 0x9db   :  { %v5144_v41 = vpop.f32.mrf.mxu0 }
 0x9dc   :  { %v13709_v28 = vadd.f32 %v5144_v41, %v15656_v52  ;;  %v6180_v52 = vpop.f32.mrf.mxu2 }
 0x9e3   :  { %v5147_v59 = vpop.f32.mrf.mxu0 }
 0x9e4   :  { %v5395_v29 = vadd.f32 %v5147_v59, %v15659_v22 }
 0x9e6   :  { %v5527_v58 = vadd.f32 %v13480_v54, %v5395_v29  ;;  %8648 = vmatmul.msk.bf16.gmra.mxu0 %vm1380_vm1, %v15390_v23  ;;  %v5640_v29 = vmax.f32 %v5512_v3, 0.0 }
 0x9e8   :  { %v5655_v41 = vmax.f32 %v5527_v58, 0.0  ;;  %v5513_v58 = vadd.f32 %v13480_v54, %v13632_v48 }
 0x9e9   :  { %v6067_v38 = vpop.f32.mrf.mxu1 }
 0x9ea   :  { %v5751_v18 = vmax.f32 %v5639_v40, %v5655_v41  ;;  %v6181_v27 = vadd.f32 %v6180_v52, %v6067_v38  ;;  %v15663_v40 = vld [vmem:[#allocation110_spill] sm:$0xff] }
 0x9eb   :  { %v5149_v33 = vpop.f32.mrf.mxu0 }
 0x9ec   :  { %v5396_v31 = vadd.f32 %v5149_v33, %v15661_v9  ;;  %v15665_v9 = vld [vmem:[#allocation80_spill] sm:$0xff] }
 0x9ee   :  { %v5528_v59 = vadd.f32 %v13480_v54, %v5396_v31  ;;  %v5641_v31 = vmax.f32 %v5513_v58, 0.0  ;;  %v5515_v58 = vadd.f32 %v13480_v54, %v13649_v26  ;;  %v5516_v26 = vadd.f32 %v13480_v54, %v13654_v15 }
 0x9ef   :  { %v6297_v22 = vpop.f32.mrf.mxu3 }
 0x9f0   :  { %v5656_v16 = vmax.f32 %v5528_v59, 0.0  ;;  %v13727_v23 = vadd.f32 %v6297_v22, %v6176_v56 }
 0x9f2   :  { %15662 = vst [vmem:[#allocation50_spill] sm:$0xff] %v13727_v23  ;;  %v5752_v34 = vmax.f32 %v5640_v29, %v5656_v16  ;;  %v5514_v16 = vadd.f32 %v13480_v54, %v13639_v5 }
 0x9f3   :  { %v5152_v2 = vpop.f32.mrf.mxu0 }
 0x9f4   :  { %v5397_v38 = vadd.f32 %v5152_v2, %v15663_v40  ;;  %v5642_v29 = vmax.f32 %v5514_v16, 0.0 }
 0x9f6   :  { %v5529_v41 = vadd.f32 %v13480_v54, %v5397_v38  ;;  %8649 = vmatmul.msk.bf16.gmra.mxu0 %vm1380_vm1, %v15395_v39 }
 0x9f7   :  { %v13735_v50 = vpop.f32.mrf.mxu3 }
 0x9f8   :  { %15664 = vst [vmem:[#allocation86_spill] sm:$0xff] %v13735_v50  ;;  %v5657_v33 = vmax.f32 %v5529_v41, 0.0 }
 0x9fa   :  { %v5753_v3 = vmax.f32 %v5641_v31, %v5657_v33  ;;  %v15667_v33 = vld [vmem:[#allocation81_spill] sm:$0xff] }
 0x9fb   :  { %v5154_v52 = vpop.f32.mrf.mxu0 }
 0x9fc   :  { %v5807_v56 = vmax.f32 %v5751_v18, %v5753_v3  ;;  %v5398_v59 = vadd.f32 %v5154_v52, %v15665_v9  ;;  %v5643_v3 = vmax.f32 %v5515_v58, 0.0 }
 0x9fe   :  { %v5530_v48 = vadd.f32 %v13480_v54, %v5398_v59  ;;  %v5839_v41 = vpack.c.bf16 %v5807_v56, %v5807_v56 }
 0x9ff   :  { %v6302_v22 = vpop.f32.mrf.mxu3 }
 0xa00   :  { %v5658_v2 = vmax.f32 %v5530_v48, 0.0  ;;  %v13741_v40 = vadd.f32 %v6302_v22, %v6181_v27  ;;  %v5903_v52 = vunpack.c.l.b16 %v5839_v41  ;;  %v15670_v41 = vld [vmem:[#allocation106_spill] sm:$0xff] }
 0xa02   :  { %15666 = vst [vmem:[#allocation51_spill] sm:$0xff] %v13741_v40  ;;  %v5754_v39 = vmax.f32 %v5642_v29, %v5658_v2 }
 0xa03   :  { %v5157_v38 = vpop.f32.mrf.mxu0 }
 0xa04   :  { %v5808_v31 = vmax.f32 %v5752_v34, %v5754_v39  ;;  %v5399_v50 = vadd.f32 %v5157_v38, %v15667_v33  ;;  %v15668_v34 = vld [vmem:[#allocation94_spill] sm:$0xff]  ;;  %v5517_v39 = vadd.f32 %v13480_v54, %v13657_v10  ;;  %v15669_v38 = vld [vmem:[#allocation83_spill] sm:$0xff] }
 0xa06   :  { %v5840_v5 = vpack.c.bf16 %v5808_v31, %v5808_v31  ;;  %v5531_v18 = vadd.f32 %v13480_v54, %v5399_v50  ;;  %8650 = vmatmul.msk.bf16.gmra.mxu0 %vm1380_vm1, %v15400_v36  ;;  %v5644_v50 = vmax.f32 %v5516_v26, 0.0  ;;  %v5645_v31 = vmax.f32 %v5517_v39, 0.0 }
 0xa08   :  { %v5904_v16 = vunpack.c.l.b16 %v5840_v5  ;;  %v5659_v27 = vmax.f32 %v5531_v18, 0.0 }
 0xa0a   :  { %v13749_v9 = vpack.c.b16 %v5904_v16, %v5903_v52  ;;  %v5755_v59 = vmax.f32 %v5643_v3, %v5659_v27  ;;  %v5518_v3 = vadd.f32 %v13480_v54, %v13662_v57  ;;  %v15671_v16 = vld [vmem:[#allocation84_spill] sm:$0xff]  ;;  %v15673_v57 = vld [vmem:[#allocation109_spill] sm:$0xff] }
 0xa0b   :  { %v5159_v48 = vpop.f32.mrf.mxu0 }
 0xa0c   :  { %v5400_v56 = vadd.f32 %v5159_v48, %v15668_v34  ;;  %8697 = vmatmul.msk.bf16.gmra.mxu1 %vm5984_vm2, %v13749_v9  ;;  %8724 = vmatmul.msk.bf16.gmra.mxu2 %vm5984_vm2, %v13749_v9  ;;  %v5646_v10 = vmax.f32 %v5518_v3, 0.0 }
 0xa0e   :  { %v5532_v36 = vadd.f32 %v13480_v54, %v5400_v56 }
 0xa10   :  { %v5660_v22 = vmax.f32 %v5532_v36, 0.0  ;;  %v5519_v36 = vadd.f32 %v13480_v54, %v13669_v25  ;;  %v5520_v25 = vadd.f32 %v13480_v54, %v13676_v61  ;;  %v5521_v61 = vadd.f32 %v13480_v54, %v13681_v51 }
 0xa12   :  { %v5756_v29 = vmax.f32 %v5644_v50, %v5660_v22 }
 0xa13   :  { %v5162_v2 = vpop.f32.mrf.mxu0 }
 0xa14   :  { %v5401_v58 = vadd.f32 %v5162_v2, %v15669_v38  ;;  %v15672_v2 = vld [vmem:[#allocation97_spill] sm:$0xff] }
 0xa16   :  { %v5533_v15 = vadd.f32 %v13480_v54, %v5401_v58  ;;  %8651 = vmatmul.msk.bf16.gmra.mxu0 %vm1380_vm1, %v15670_v41 }
 0xa18   :  { %v5661_v33 = vmax.f32 %v5533_v15, 0.0 }
 0xa1a   :  { %v5757_v5 = vmax.f32 %v5645_v31, %v5661_v33 }
 0xa1b   :  { %v5164_v18 = vpop.f32.mrf.mxu0 }
 0xa1c   :  { %v5809_v52 = vmax.f32 %v5755_v59, %v5757_v5  ;;  %v5402_v27 = vadd.f32 %v5164_v18, %v15671_v16  ;;  %v5647_v59 = vmax.f32 %v5519_v36, 0.0  ;;  %v5648_v16 = vmax.f32 %v5520_v25, 0.0  ;;  %v15676_v36 = vld [vmem:[#allocation113_spill] sm:$0xff] }
 0xa1d   :  { %v5523_v25 = vadd.f32 %v13480_v54, %v13693_v35  ;;  %v5524_v35 = vadd.f32 %v13480_v54, %v13700_v37  ;;  %v5525_v37 = vadd.f32 %v13480_v54, %v13705_v63 }
 0xa1e   :  { %v5534_v48 = vadd.f32 %v13480_v54, %v5402_v27  ;;  %v5841_v50 = vpack.c.bf16 %v5809_v52, %v5809_v52 }
 0xa20   :  { %v5662_v26 = vmax.f32 %v5534_v48, 0.0  ;;  %v5905_v15 = vunpack.c.l.b16 %v5841_v50  ;;  %v5649_v50 = vmax.f32 %v5521_v61, 0.0 }
 0xa22   :  { %v5758_v34 = vmax.f32 %v5646_v10, %v5662_v26  ;;  %v15675_v26 = vld [vmem:[#allocation88_spill] sm:$0xff] }
 0xa23   :  { %v5167_v56 = vpop.f32.mrf.mxu0 }
 0xa24   :  { %v5810_v22 = vmax.f32 %v5756_v29, %v5758_v34  ;;  %v5403_v39 = vadd.f32 %v5167_v56, %v15672_v2  ;;  %v15674_v29 = vld [vmem:[#allocation87_spill] sm:$0xff] }
 0xa26   :  { %v5842_v38 = vpack.c.bf16 %v5810_v22, %v5810_v22  ;;  %v5535_v58 = vadd.f32 %v13480_v54, %v5403_v39  ;;  %8652 = vmatmul.msk.bf16.gmra.mxu0 %vm1380_vm1, %v15673_v57  ;;  %v15677_v57 = vld [vmem:[#allocation100_spill] sm:$0xff] }
 0xa28   :  { %v5906_v41 = vunpack.c.l.b16 %v5842_v38  ;;  %v5663_v31 = vmax.f32 %v5535_v58, 0.0  ;;  %v5522_v38 = vadd.f32 %v13480_v54, %v13686_v62  ;;  %v15679_v62 = vld [vmem:[#allocation133_spill] sm:$0xff] }
 0xa2a   :  { %v13775_v33 = vpack.c.b16 %v5906_v41, %v5905_v15  ;;  %v5759_v5 = vmax.f32 %v5647_v59, %v5663_v31  ;;  %v5650_v51 = vmax.f32 %v5522_v38, 0.0 }
 0xa2b   :  { %v5169_v18 = vpop.f32.mrf.mxu0 }
 0xa2c   :  { %v5404_v3 = vadd.f32 %v5169_v18, %v15674_v29  ;;  %8698 = vmatmul.msk.bf16.gmra.mxu1 %vm5984_vm2, %v13775_v33  ;;  %8725 = vmatmul.msk.bf16.gmra.mxu2 %vm5984_vm2, %v13775_v33 }
 0xa2d   :  { %8757 = vmatmul.msk.bf16.gmra.mxu3 %vm5984_vm2, %v13775_v33 }
 0xa2e   :  { %v5536_v52 = vadd.f32 %v13480_v54, %v5404_v3 }
 0xa30   :  { %v5664_v27 = vmax.f32 %v5536_v52, 0.0  ;;  %v15678_v52 = vld [vmem:[#allocation90_spill] sm:$0xff] }
 0xa32   :  { %v5760_v48 = vmax.f32 %v5648_v16, %v5664_v27 }
 0xa33   :  { %v5172_v10 = vpop.f32.mrf.mxu0 }
 0xa34   :  { %v5405_v34 = vadd.f32 %v5172_v10, %v15675_v26 }
 0xa36   :  { %v5537_v56 = vadd.f32 %v13480_v54, %v5405_v34  ;;  %8653 = vmatmul.msk.bf16.gmra.mxu0 %vm1380_vm1, %v15676_v36 }
 0xa38   :  { %v5665_v22 = vmax.f32 %v5537_v56, 0.0 }
 0xa3a   :  { %v5761_v2 = vmax.f32 %v5649_v50, %v5665_v22 }
 0xa3b   :  { %v5174_v39 = vpop.f32.mrf.mxu0 }
 0xa3c   :  { %v5811_v58 = vmax.f32 %v5759_v5, %v5761_v2  ;;  %v5406_v59 = vadd.f32 %v5174_v39, %v15677_v57  ;;  %v5651_v5 = vmax.f32 %v5523_v25, 0.0  ;;  %v5652_v39 = vmax.f32 %v5524_v35, 0.0 }
 0xa3e   :  { %v5538_v15 = vadd.f32 %v13480_v54, %v5406_v59  ;;  %v5843_v29 = vpack.c.bf16 %v5811_v58, %v5811_v58  ;;  %v15681_v59 = vld [vmem:[#allocation103_spill] sm:$0xff] }
 0xa40   :  { %v5666_v41 = vmax.f32 %v5538_v15, 0.0  ;;  %v5907_v61 = vunpack.c.l.b16 %v5843_v29  ;;  %v5526_v29 = vadd.f32 %v13480_v54, %v13709_v28 }
 0xa42   :  { %v5762_v31 = vmax.f32 %v5650_v51, %v5666_v41  ;;  %v5653_v41 = vmax.f32 %v5525_v37, 0.0  ;;  %v9248_v37 = vld [vmem:[%s14982_s3 + $0x78] sm:$0xff] }
 0xa43   :  { %v5177_v18 = vpop.f32.mrf.mxu0  ;;  %6425 = vmatpush.bf16.msrb.mxu1 %v9248_v37 }
 0xa44   :  { %v5812_v3 = vmax.f32 %v5760_v48, %v5762_v31  ;;  %v5407_v16 = vadd.f32 %v5177_v18, %v15678_v52  ;;  %v15680_v48 = vld [vmem:[#allocation91_spill] sm:$0xff]  ;;  %v15682_v52 = vld [vmem:[#allocation92_spill] sm:$0xff] }
 0xa46   :  { %v5844_v27 = vpack.c.bf16 %v5812_v3, %v5812_v3  ;;  %v5539_v10 = vadd.f32 %v13480_v54, %v5407_v16  ;;  %8654 = vmatmul.msk.bf16.gmra.mxu0 %vm1380_vm1, %v15679_v62 }
 0xa48   :  { %v5908_v26 = vunpack.c.l.b16 %v5844_v27  ;;  %v5667_v34 = vmax.f32 %v5539_v10, 0.0  ;;  %v5654_v27 = vmax.f32 %v5526_v29, 0.0  ;;  %v13857_v29 = vpop.f32.mrf.mxu2 }
 0xa49   :  { %15689 = vst [vmem:[#allocation53_spill] sm:$0xff] %v13857_v29  ;;  %v15714_v29 = vld [vmem:[#allocation115_spill] sm:$0xff] }
 0xa4a   :  { %v13803_v56 = vpack.c.b16 %v5908_v26, %v5907_v61  ;;  %v5763_v36 = vmax.f32 %v5651_v5, %v5667_v34  ;;  %v15683_v34 = vld [vmem:[#allocation93_spill] sm:$0xff] }
 0xa4b   :  { %v5179_v50 = vpop.f32.mrf.mxu0 }
 0xa4c   :  { %v5408_v22 = vadd.f32 %v5179_v50, %v15680_v48  ;;  %8699 = vmatmul.msk.bf16.gmra.mxu1 %vm5984_vm2, %v13803_v56  ;;  %8726 = vmatmul.msk.bf16.gmra.mxu2 %vm5984_vm2, %v13803_v56  ;;  %v15684_v48 = vld [vmem:[#allocation120_spill] sm:$0xff] }
 0xa4d   :  { %8758 = vmatmul.msk.bf16.gmra.mxu3 %vm5984_vm2, %v13803_v56 }
 0xa4e   :  { %v5540_v2 = vadd.f32 %v13480_v54, %v5408_v22 }
 0xa50   :  { %v5668_v38 = vmax.f32 %v5540_v2, 0.0  ;;  %v9252_v2 = vld [vmem:[%s14982_s3 + $0x98] sm:$0xff] }
 0xa51   :  { %6582 = vmatpush.bf16.msra.mxu2 %v9252_v2 }
 0xa52   :  { %v5764_v58 = vmax.f32 %v5652_v39, %v5668_v38  ;;  %v15685_v38 = vld [vmem:[#allocation95_spill] sm:$0xff] }
 0xa53   :  { %v5182_v57 = vpop.f32.mrf.mxu0 }
 0xa54   :  { %v5409_v15 = vadd.f32 %v5182_v57, %v15681_v59 }
 0xa56   :  { %v5541_v51 = vadd.f32 %v13480_v54, %v5409_v15  ;;  %5221 = vmatmul.bf16.gmra.mxu0 %v15114_v21  ;;  %v15686_v15 = vld [vmem:[#allocation96_spill] sm:$0xff] }
 0xa58   :  { %v5669_v31 = vmax.f32 %v5541_v51, 0.0 }
 0xa5a   :  { %v5765_v18 = vmax.f32 %v5653_v41, %v5669_v31  ;;  %v15687_v41 = vld [vmem:[#allocation123_spill] sm:$0xff] }
 0xa5b   :  { %v5184_v25 = vpop.f32.mrf.mxu0 }
 0xa5c   :  { %v5813_v3 = vmax.f32 %v5763_v36, %v5765_v18  ;;  %v5410_v16 = vadd.f32 %v5184_v25, %v15682_v52  ;;  %6204 = vmatmul.bf16.gmra.mxu2 %v15114_v21  ;;  %v15688_v18 = vld [vmem:[#allocation98_spill] sm:$0xff] }
 0xa5e   :  { %v5542_v63 = vadd.f32 %v13480_v54, %v5410_v16  ;;  %v5845_v61 = vpack.c.bf16 %v5813_v3, %v5813_v3  ;;  %v13859_v3 = vpop.f32.mrf.mxu1  ;;  %v15691_v16 = vld [vmem:[#allocation99_spill] sm:$0xff] }
 0xa5f   :  { %15690 = vst [vmem:[#allocation54_spill] sm:$0xff] %v13859_v3 }
 0xa60   :  { %v5670_v10 = vmax.f32 %v5542_v63, 0.0  ;;  %v5909_v28 = vunpack.c.l.b16 %v5845_v61 }
 0xa62   :  { %v5766_v62 = vmax.f32 %v5654_v27, %v5670_v10  ;;  %v15692_v27 = vld [vmem:[#allocation126_spill] sm:$0xff]  ;;  %v6185_v10 = vpop.f32.mrf.mxu2 }
 0xa63   :  { %v5187_v5 = vpop.f32.mrf.mxu0 }
 0xa64   :  { %v5814_v26 = vmax.f32 %v5764_v58, %v5766_v62  ;;  %v13826_v50 = vadd.f32 %v5187_v5, %v15683_v34  ;;  %v9256_v58 = vld [vmem:[%s14982_s3 + $0xb8] sm:$0xff] }
 0xa65   :  { %6736 = vmatpush.bf16.msrb.mxu3 %v9256_v58 }
 0xa66   :  { %v5846_v35 = vpack.c.bf16 %v5814_v26, %v5814_v26  ;;  %8655 = vmatmul.msk.bf16.gmra.mxu0 %vm1380_vm1, %v15684_v48  ;;  %v15693_v26 = vld [vmem:[#allocation101_spill] sm:$0xff]  ;;  %v15694_v48 = vld [vmem:[#allocation102_spill] sm:$0xff] }
 0xa68   :  { %v5910_v36 = vunpack.c.l.b16 %v5846_v35 }
 0xa6a   :  { %v13830_v22 = vpack.c.b16 %v5910_v36, %v5909_v28  ;;  %v15695_v36 = vld [vmem:[#allocation129_spill] sm:$0xff]  ;;  %v13877_v58 = vpop.f32.mrf.mxu2 }
 0xa6b   :  { %v5189_v39 = vpop.f32.mrf.mxu0  ;;  %15697 = vst [vmem:[#allocation56_spill] sm:$0xff] %v13877_v58 }
 0xa6c   :  { %v13836_v57 = vadd.f32 %v5189_v39, %v15685_v38  ;;  %8700 = vmatmul.msk.bf16.gmra.mxu1 %vm5984_vm2, %v13830_v22  ;;  %8759 = vmatmul.msk.bf16.gmra.mxu3 %vm5984_vm2, %v13830_v22  ;;  %v15696_v39 = vld [vmem:[#allocation104_spill] sm:$0xff] }
 0xa73   :  { %v5192_v59 = vpop.f32.mrf.mxu0 }
 0xa74   :  { %v13849_v51 = vadd.f32 %v5192_v59, %v15686_v15  ;;  %v15699_v15 = vld [vmem:[#allocation105_spill] sm:$0xff] }
 0xa76   :  { %8656 = vmatmul.msk.bf16.gmra.mxu0 %vm1380_vm1, %v15687_v41 }
 0xa7b   :  { %v5194_v31 = vpop.f32.mrf.mxu0 }
 0xa7c   :  { %v13854_v25 = vadd.f32 %v5194_v31, %v15688_v18  ;;  %6321 = vmatmul.bf16.gmra.mxu3 %v15114_v21  ;;  %v15700_v31 = vld [vmem:[#allocation132_spill] sm:$0xff]  ;;  %v13886_v18 = vpop.f32.mrf.mxu3 }
 0xa7d   :  { %15701 = vst [vmem:[#allocation57_spill] sm:$0xff] %v13886_v18  ;;  %v15712_v18 = vld [vmem:[#allocation114_spill] sm:$0xff] }
 0xa83   :  { %v5197_v52 = vpop.f32.mrf.mxu0 }
 0xa84   :  { %v13862_v63 = vadd.f32 %v5197_v52, %v15691_v16 }
 0xa86   :  { %8657 = vmatmul.msk.bf16.gmra.mxu0 %vm1380_vm1, %v15692_v27 }
 0xa89   :  { %v6072_v62 = vpop.f32.mrf.mxu1 }
 0xa8a   :  { %v6186_v5 = vadd.f32 %v6185_v10, %v6072_v62  ;;  %v9251_v10 = vld [vmem:[%s14982_s3 + $0x90] sm:$0xff] }
 0xa8b   :  { %v5199_v61 = vpop.f32.mrf.mxu0  ;;  %6583 = vmatpush.bf16.msra.mxu2 %v9251_v10 }
 0xa8c   :  { %v13867_v34 = vadd.f32 %v5199_v61, %v15693_v26  ;;  %v15702_v61 = vld [vmem:[#allocation107_spill] sm:$0xff] }
 0xa8f   :  { %v6190_v52 = vpop.f32.mrf.mxu2 }
 0xa91   :  { %v13879_v37 = vpop.f32.mrf.mxu1 }
 0xa92   :  { %15698 = vst [vmem:[#allocation73_spill] sm:$0xff] %v13879_v37 }
 0xa93   :  { %v5202_v35 = vpop.f32.mrf.mxu0 }
 0xa94   :  { %v13870_v28 = vadd.f32 %v5202_v35, %v15694_v48  ;;  %v9255_v48 = vld [vmem:[%s14982_s3 + $0xb0] sm:$0xff] }
 0xa95   :  { %6737 = vmatpush.bf16.msrb.mxu3 %v9255_v48  ;;  %v15710_v48 = vld [vmem:[#allocation3_spill] sm:$0xff] }
 0xa96   :  { %8658 = vmatmul.msk.bf16.gmra.mxu0 %vm1380_vm1, %v15695_v36  ;;  %v9247_v36 = vld [vmem:[%s14982_s3 + $0x70] sm:$0xff] }
 0xa97   :  { %6426 = vmatpush.bf16.msrb.mxu1 %v9247_v36 }
 0xa9b   :  { %v5204_v2 = vpop.f32.mrf.mxu0 }
 0xa9c   :  { %v13875_v38 = vadd.f32 %v5204_v2, %v15696_v39 }
 0xaa3   :  { %v5207_v59 = vpop.f32.mrf.mxu0 }
 0xaa4   :  { %v13882_v41 = vadd.f32 %v5207_v59, %v15699_v15  ;;  %v15704_v59 = vld [vmem:[#allocation108_spill] sm:$0xff] }
 0xaa6   :  { %8659 = vmatmul.msk.bf16.gmra.mxu0 %vm1380_vm1, %v15700_v31  ;;  %v15705_v31 = vld [vmem:[#allocation2_spill] sm:$0xff] }
 0xaa9   :  { %v6077_v16 = vpop.f32.mrf.mxu1 }
 0xaaa   :  { %v6191_v27 = vadd.f32 %v6190_v52, %v6077_v16  ;;  %v15706_v16 = vld [vmem:[#allocation111_spill] sm:$0xff] }
 0xaab   :  { %v5209_v62 = vpop.f32.mrf.mxu0 }
 0xaac   :  { %v13892_v26 = vadd.f32 %v5209_v62, %v15702_v61  ;;  %v13910_v62 = vpop.f32.mrf.mxu2 }
 0xaad   :  { %15707 = vst [vmem:[#allocation76_spill] sm:$0xff] %v13910_v62 }
 0xab0   :  { %v6307_v35 = vpop.f32.mrf.mxu3 }
 0xab1   :  { %v13900_v2 = vadd.f32 %v6307_v35, %v6186_v5  ;;  %v13912_v61 = vpop.f32.mrf.mxu1  ;;  %v15709_v5 = vld [vmem:[#allocation112_spill] sm:$0xff] }
 0xab2   :  { %15708 = vst [vmem:[#allocation59_spill] sm:$0xff] %v13912_v61 }
 0xab3   :  { %15703 = vst [vmem:[#allocation70_spill] sm:$0xff] %v13900_v2  ;;  %v5212_v39 = vpop.f32.mrf.mxu0 }
 0xab4   :  { %v13903_v15 = vadd.f32 %v5212_v39, %v15704_v59  ;;  %v6195_v39 = vpop.f32.mrf.mxu2 }
 0xab6   :  { %8660 = vmatmul.msk.bf16.gmra.mxu0 %vm1380_vm1, %v15705_v31 }
 0xab8   :  { %v13919_v36 = vpop.f32.mrf.mxu3 }
 0xab9   :  { %15711 = vst [vmem:[#allocation60_spill] sm:$0xff] %v13919_v36 }
 0xabb   :  { %v5214_v52 = vpop.f32.mrf.mxu0 }
 0xabc   :  { %v13908_v10 = vadd.f32 %v5214_v52, %v15706_v16  ;;  %v13933_v36 = vpop.f32.mrf.mxu2 }
 0xabd   :  { %15716 = vst [vmem:[#allocation63_spill] sm:$0xff] %v13933_v36 }
 0xac3   :  { %v5217_v58 = vpop.f32.mrf.mxu0 }
 0xac4   :  { %v13915_v35 = vadd.f32 %v5217_v58, %v15709_v5  ;;  %v15715_v5 = vld [vmem:[#allocation116_spill] sm:$0xff] }
 0xac6   :  { %8661 = vmatmul.msk.bf16.gmra.mxu0 %vm1380_vm1, %v15710_v48 }
 0xac9   :  { %v6082_v59 = vpop.f32.mrf.mxu1 }
 0xaca   :  { %v6196_v31 = vadd.f32 %v6195_v39, %v6082_v59 }
 0xacb   :  { %v5219_v37 = vpop.f32.mrf.mxu0 }
 0xacc   :  { %v13922_v52 = vadd.f32 %v5219_v37, %v15712_v18  ;;  %v5543_v37 = vadd.f32 %v13480_v54, %v13826_v50  ;;  %v15718_v18 = vld [vmem:[#allocation117_spill] sm:$0xff] }
 0xad0   :  { %v6312_v16 = vpop.f32.mrf.mxu3 }
 0xad1   :  { %v13924_v62 = vadd.f32 %v6312_v16, %v6191_v27  ;;  %v13935_v39 = vpop.f32.mrf.mxu1 }
 0xad2   :  { %15717 = vst [vmem:[#allocation64_spill] sm:$0xff] %v13935_v39  ;;  %v9250_v39 = vld [vmem:[%s14982_s3 + $0x88] sm:$0xff] }
 0xad3   :  { %15713 = vst [vmem:[#allocation79_spill] sm:$0xff] %v13924_v62  ;;  %v5222_v61 = vpop.f32.mrf.mxu0  ;;  %6584 = vmatpush.bf16.msra.mxu2 %v9250_v39 }
 0xad4   :  { %v13927_v3 = vadd.f32 %v5222_v61, %v15714_v29  ;;  %v5671_v61 = vmax.f32 %v5543_v37, 0.0 }
 0xad6   :  { %5261 = vmatmul.bf16.gmra.mxu0 %v15114_v21 }
 0xad8   :  { %v13943_v29 = vpop.f32.mrf.mxu3 }
 0xad9   :  { %15719 = vst [vmem:[#allocation82_spill] sm:$0xff] %v13943_v29  ;;  %v9246_v29 = vld [vmem:[%s14982_s3 + $0x68] sm:$0xff] }
 0xada   :  { %6427 = vmatpush.bf16.msrb.mxu1 %v9246_v29 }
 0xadb   :  { %v5224_v58 = vpop.f32.mrf.mxu0 }
 0xadc   :  { %v13931_v48 = vadd.f32 %v5224_v58, %v15715_v5  ;;  %v6200_v5 = vpop.f32.mrf.mxu2 }
 0xae3   :  { %v5227_v59 = vpop.f32.mrf.mxu0 }
 0xae4   :  { %v5427_v27 = vadd.f32 %v5227_v59, %v15718_v18  ;;  %v15720_v59 = vld [vmem:[#allocation118_spill] sm:$0xff] }
 0xae6   :  { %v5559_v16 = vadd.f32 %v13480_v54, %v5427_v27  ;;  %8662 = vmatmul.msk.bf16.gmra.mxu0 %vm1380_vm1, %v15458_v20  ;;  %v13951_v54 = vld [vmem:[%s14983_s2] ss:$0 sm:$0xff] }
 0xae7   :  { %v5544_v20 = vadd.f32 %v13951_v54, %v13836_v57  ;;  %v5545_v39 = vadd.f32 %v13951_v54, %v13849_v51  ;;  %v15724_v51 = vld [vmem:[#allocation121_spill] sm:$0xff] }
 0xae8   :  { %v5687_v58 = vmax.f32 %v5559_v16, 0.0 }
 0xae9   :  { %v6087_v62 = vpop.f32.mrf.mxu1 }
 0xaea   :  { %v5767_v36 = vmax.f32 %v5671_v61, %v5687_v58  ;;  %v6201_v2 = vadd.f32 %v6200_v5, %v6087_v62  ;;  %v5672_v62 = vmax.f32 %v5544_v20, 0.0  ;;  %v9254_v5 = vld [vmem:[%s14982_s3 + $0xa8] sm:$0xff] }
 0xaeb   :  { %v5229_v50 = vpop.f32.mrf.mxu0  ;;  %6738 = vmatpush.bf16.msrb.mxu3 %v9254_v5 }
 0xaec   :  { %v5428_v37 = vadd.f32 %v5229_v50, %v15720_v59  ;;  %v15722_v50 = vld [vmem:[#allocation119_spill] sm:$0xff] }
 0xaee   :  { %v5560_v18 = vadd.f32 %v13951_v54, %v5428_v37  ;;  %v5673_v37 = vmax.f32 %v5545_v39, 0.0  ;;  %v5547_v39 = vadd.f32 %v13951_v54, %v13862_v63  ;;  %v5548_v63 = vadd.f32 %v13951_v54, %v13867_v34 }
 0xaef   :  { %v6317_v27 = vpop.f32.mrf.mxu3 }
 0xaf0   :  { %v5688_v16 = vmax.f32 %v5560_v18, 0.0  ;;  %v13957_v61 = vadd.f32 %v6317_v27, %v6196_v31 }
 0xaf2   :  { %15721 = vst [vmem:[#allocation66_spill] sm:$0xff] %v13957_v61  ;;  %v5768_v58 = vmax.f32 %v5672_v62, %v5688_v16  ;;  %v5546_v16 = vadd.f32 %v13951_v54, %v13854_v25 }
 0xaf3   :  { %v5232_v57 = vpop.f32.mrf.mxu0 }
 0xaf4   :  { %v5429_v59 = vadd.f32 %v5232_v57, %v15722_v50  ;;  %v5674_v57 = vmax.f32 %v5546_v16, 0.0 }
 0xaf6   :  { %v5561_v31 = vadd.f32 %v13951_v54, %v5429_v59  ;;  %8663 = vmatmul.msk.bf16.gmra.mxu0 %vm1380_vm1, %v15463_v6 }
 0xaf7   :  { %v13971_v20 = vpop.f32.mrf.mxu3 }
 0xaf8   :  { %15723 = vst [vmem:[#allocation67_spill] sm:$0xff] %v13971_v20  ;;  %v5689_v18 = vmax.f32 %v5561_v31, 0.0 }
 0xafa   :  { %v5769_v27 = vmax.f32 %v5673_v37, %v5689_v18  ;;  %v15725_v18 = vld [vmem:[#allocation122_spill] sm:$0xff] }
 0xafb   :  { %v5234_v62 = vpop.f32.mrf.mxu0 }
 0xafc   :  { %v5815_v61 = vmax.f32 %v5767_v36, %v5769_v27  ;;  %v5430_v40 = vadd.f32 %v5234_v62, %v15724_v51 }
 0xafe   :  { %v5562_v5 = vadd.f32 %v13951_v54, %v5430_v40  ;;  %v5847_v31 = vpack.c.bf16 %v5815_v61, %v5815_v61  ;;  %v5675_v40 = vmax.f32 %v5547_v39, 0.0  ;;  %v15726_v61 = vld [vmem:[#allocation124_spill] sm:$0xff] }
 0xaff   :  { %v6322_v29 = vpop.f32.mrf.mxu3 }
 0xb00   :  { %v5690_v50 = vmax.f32 %v5562_v5, 0.0  ;;  %v13977_v59 = vadd.f32 %v6322_v29, %v6201_v2  ;;  %v5911_v27 = vunpack.c.l.b16 %v5847_v31 }
 0xb02   :  { %v5770_v6 = vmax.f32 %v5674_v57, %v5690_v50  ;;  %v5549_v50 = vadd.f32 %v13951_v54, %v13870_v28 }
 0xb03   :  { %v5237_v23 = vpop.f32.mrf.mxu0 }
 0xb04   :  { %v5816_v37 = vmax.f32 %v5768_v58, %v5770_v6  ;;  %v5431_v20 = vadd.f32 %v5237_v23, %v15725_v18  ;;  %v5676_v23 = vmax.f32 %v5548_v63, 0.0  ;;  %v15727_v6 = vld [vmem:[#allocation125_spill] sm:$0xff]  ;;  %v5677_v31 = vmax.f32 %v5549_v50, 0.0 }
 0xb06   :  { %v5848_v25 = vpack.c.bf16 %v5816_v37, %v5816_v37  ;;  %v5563_v36 = vadd.f32 %v13951_v54, %v5431_v20  ;;  %8664 = vmatmul.msk.bf16.gmra.mxu0 %vm1380_vm1, %v15468_v53 }
 0xb08   :  { %v5912_v62 = vunpack.c.l.b16 %v5848_v25  ;;  %v5691_v2 = vmax.f32 %v5563_v36, 0.0  ;;  %v5550_v36 = vadd.f32 %v13951_v54, %v13875_v38 }
 0xb0a   :  { %v13985_v16 = vpack.c.b16 %v5912_v62, %v5911_v27  ;;  %v5771_v51 = vmax.f32 %v5675_v40, %v5691_v2  ;;  %v15728_v27 = vld [vmem:[#allocation127_spill] sm:$0xff]  ;;  %v5678_v28 = vmax.f32 %v5550_v36, 0.0 }
 0xb0b   :  { %v5239_v5 = vpop.f32.mrf.mxu0 }
 0xb0c   :  { %v5432_v58 = vadd.f32 %v5239_v5, %v15726_v61  ;;  %8701 = vmatmul.msk.bf16.gmra.mxu1 %vm5984_vm2, %v13985_v16  ;;  %8727 = vmatmul.msk.bf16.gmra.mxu2 %vm5984_vm2, %v13985_v16 }
 0xb0e   :  { %v5564_v53 = vadd.f32 %v13951_v54, %v5432_v58  ;;  %v5551_v58 = vadd.f32 %v13951_v54, %v13882_v41  ;;  %v9249_v41 = vld [vmem:[%s14982_s3 + $0x80] sm:$0xff] }
 0xb0f   :  { %6585 = vmatpush.bf16.msra.mxu2 %v9249_v41 }
 0xb10   :  { %v5692_v20 = vmax.f32 %v5564_v53, 0.0  ;;  %v5679_v38 = vmax.f32 %v5551_v58, 0.0 }
 0xb12   :  { %v5772_v29 = vmax.f32 %v5676_v23, %v5692_v20  ;;  %v15729_v23 = vld [vmem:[#allocation128_spill] sm:$0xff] }
 0xb13   :  { %v5242_v57 = vpop.f32.mrf.mxu0 }
 0xb14   :  { %v5433_v39 = vadd.f32 %v5242_v57, %v15727_v6 }
 0xb16   :  { %v5565_v34 = vadd.f32 %v13951_v54, %v5433_v39  ;;  %8665 = vmatmul.msk.bf16.gmra.mxu0 %vm1380_vm1, %v12213_v46 }
 0xb18   :  { %v5693_v37 = vmax.f32 %v5565_v34, 0.0 }
 0xb1a   :  { %v5773_v18 = vmax.f32 %v5677_v31, %v5693_v37  ;;  %v5552_v37 = vadd.f32 %v13951_v54, %v13892_v26  ;;  %v9253_v26 = vld [vmem:[%s14982_s3 + $0xa0] sm:$0xff] }
 0xb1b   :  { %v5244_v25 = vpop.f32.mrf.mxu0  ;;  %6739 = vmatpush.bf16.msrb.mxu3 %v9253_v26 }
 0xb1c   :  { %v5817_v40 = vmax.f32 %v5771_v51, %v5773_v18  ;;  %v5434_v62 = vadd.f32 %v5244_v25, %v15728_v27  ;;  %v5680_v25 = vmax.f32 %v5552_v37, 0.0 }
 0xb1e   :  { %v5566_v2 = vadd.f32 %v13951_v54, %v5434_v62  ;;  %v5849_v46 = vpack.c.bf16 %v5817_v40, %v5817_v40  ;;  %v5553_v62 = vadd.f32 %v13951_v54, %v13903_v15 }
 0xb20   :  { %v5694_v5 = vmax.f32 %v5566_v2, 0.0  ;;  %v5913_v51 = vunpack.c.l.b16 %v5849_v46  ;;  %v5554_v46 = vadd.f32 %v13951_v54, %v13908_v10 }
 0xb22   :  { %v5774_v63 = vmax.f32 %v5678_v28, %v5694_v5  ;;  %v5681_v5 = vmax.f32 %v5553_v62, 0.0 }
 0xb23   :  { %v5247_v61 = vpop.f32.mrf.mxu0 }
 0xb24   :  { %v5818_v53 = vmax.f32 %v5772_v29, %v5774_v63  ;;  %v5435_v20 = vadd.f32 %v5247_v61, %v15729_v23 }
 0xb26   :  { %v5850_v57 = vpack.c.bf16 %v5818_v53, %v5818_v53  ;;  %v5567_v50 = vadd.f32 %v13951_v54, %v5435_v20  ;;  %8666 = vmatmul.msk.bf16.gmra.mxu0 %vm1380_vm1, %v15477_v45 }
 0xb28   :  { %v5914_v6 = vunpack.c.l.b16 %v5850_v57  ;;  %v5695_v39 = vmax.f32 %v5567_v50, 0.0 }
 0xb2a   :  { %v14011_v34 = vpack.c.b16 %v5914_v6, %v5913_v51  ;;  %v5775_v31 = vmax.f32 %v5679_v38, %v5695_v39  ;;  %v5555_v38 = vadd.f32 %v13951_v54, %v13915_v35  ;;  %v5556_v35 = vadd.f32 %v13951_v54, %v13922_v52 }
 0xb2b   :  { %v5249_v29 = vpop.f32.mrf.mxu0  ;;  %v5557_v52 = vadd.f32 %v13951_v54, %v13927_v3 }
 0xb2c   :  { %v5436_v18 = vadd.f32 %v5249_v29, %v13137_v12  ;;  %8702 = vmatmul.msk.bf16.gmra.mxu1 %vm5984_vm2, %v14011_v34  ;;  %8728 = vmatmul.msk.bf16.gmra.mxu2 %vm5984_vm2, %v14011_v34  ;;  %v9245_v12 = vld [vmem:[%s14982_s3 + $0x60] sm:$0xff] }
 0xb2d   :  { %8760 = vmatmul.msk.bf16.gmra.mxu3 %vm5984_vm2, %v14011_v34  ;;  %6428 = vmatpush.bf16.msrb.mxu1 %v9245_v12 }
 0xb2e   :  { %v5568_v45 = vadd.f32 %v13951_v54, %v5436_v18 }
 0xb30   :  { %v5696_v36 = vmax.f32 %v5568_v45, 0.0 }
 0xb32   :  { %v5776_v40 = vmax.f32 %v5680_v25, %v5696_v36 }
 0xb33   :  { %v5252_v27 = vpop.f32.mrf.mxu0 }
 0xb34   :  { %v5437_v2 = vadd.f32 %v5252_v27, %v13148_v17  ;;  %v5682_v17 = vmax.f32 %v5554_v46, 0.0  ;;  %v5685_v27 = vmax.f32 %v5557_v52, 0.0  ;;  %v15732_v52 = vld [vmem:[#allocation139_spill] sm:$0xff] }
 0xb36   :  { %v5569_v28 = vadd.f32 %v13951_v54, %v5437_v2  ;;  %8667 = vmatmul.msk.bf16.gmra.mxu0 %vm1380_vm1, %v12305_v30 }
 0xb38   :  { %v5697_v63 = vmax.f32 %v5569_v28, 0.0 }
 0xb3a   :  { %v5777_v61 = vmax.f32 %v5681_v5, %v5697_v63  ;;  %v5558_v5 = vadd.f32 %v13951_v54, %v13931_v48 }
 0xb3b   :  { %v5254_v58 = vpop.f32.mrf.mxu0 }
 0xb3c   :  { %v5819_v53 = vmax.f32 %v5775_v31, %v5777_v61  ;;  %v5438_v23 = vadd.f32 %v5254_v58, %v13158_v24  ;;  %v5683_v24 = vmax.f32 %v5555_v38, 0.0 }
 0xb3e   :  { %v5570_v15 = vadd.f32 %v13951_v54, %v5438_v23  ;;  %v5851_v30 = vpack.c.bf16 %v5819_v53, %v5819_v53 }
 0xb40   :  { %v5698_v20 = vmax.f32 %v5570_v15, 0.0  ;;  %v5915_v10 = vunpack.c.l.b16 %v5851_v30 }
 0xb42   :  { %v5778_v57 = vmax.f32 %v5682_v17, %v5698_v20 }
 0xb43   :  { %v5257_v50 = vpop.f32.mrf.mxu0 }
 0xb44   :  { %v5820_v51 = vmax.f32 %v5776_v40, %v5778_v57  ;;  %v5439_v6 = vadd.f32 %v5257_v50, %v13165_v32  ;;  %v5684_v32 = vmax.f32 %v5556_v35, 0.0  ;;  %v9264_v50 = vld [vmem:[%s14982_s3 + $0xf8] sm:$0xff] }
 0xb45   :  { %7044 = vmatpush.bf16.msrb.mxu2 %v9264_v50  ;;  %v15738_v50 = vld [vmem:[#allocation146_spill] sm:$0xff] }
 0xb46   :  { %v5852_v39 = vpack.c.bf16 %v5820_v51, %v5820_v51  ;;  %v5571_v41 = vadd.f32 %v13951_v54, %v5439_v6  ;;  %8668 = vmatmul.msk.bf16.gmra.mxu0 %vm1380_vm1, %v13141_v47  ;;  %v9260_v51 = vld [vmem:[%s14982_s3 + $0xd8] sm:$0xff] }
 0xb47   :  { %6890 = vmatpush.bf16.msra.mxu1 %v9260_v51 }
 0xb48   :  { %v5916_v31 = vunpack.c.l.b16 %v5852_v39  ;;  %v5699_v29 = vmax.f32 %v5571_v41, 0.0 }
 0xb4a   :  { %v14048_v37 = vpack.c.b16 %v5916_v31, %v5915_v10  ;;  %v5779_v18 = vmax.f32 %v5683_v24, %v5699_v29  ;;  %v14106_v24 = vpop.f32.mrf.mxu2  ;;  %v14108_v10 = vpop.f32.mrf.mxu1 }
 0xb4b   :  { %v5259_v45 = vpop.f32.mrf.mxu0 }
 0xb4c   :  { %v5440_v25 = vadd.f32 %v5259_v45, %v13173_v60  ;;  %8703 = vmatmul.msk.bf16.gmra.mxu1 %vm5984_vm2, %v14048_v37  ;;  %8729 = vmatmul.msk.bf16.gmra.mxu2 %vm5984_vm2, %v14048_v37 }
 0xb4d   :  { %8761 = vmatmul.msk.bf16.gmra.mxu3 %vm5984_vm2, %v14048_v37 }
 0xb4e   :  { %v5572_v47 = vadd.f32 %v13951_v54, %v5440_v25 }
 0xb50   :  { %v5700_v36 = vmax.f32 %v5572_v47, 0.0 }
 0xb52   :  { %v5780_v40 = vmax.f32 %v5684_v32, %v5700_v36  ;;  %v6205_v29 = vpop.f32.mrf.mxu2  ;;  %v15730_v36 = vld [vmem:[#allocation130_spill] sm:$0xff] }
 0xb53   :  { %v5262_v26 = vpop.f32.mrf.mxu0 }
 0xb54   :  { %v5441_v60 = vadd.f32 %v5262_v26, %v13180_v55  ;;  %v5686_v55 = vmax.f32 %v5558_v5, 0.0 }
 0xb56   :  { %v5573_v12 = vadd.f32 %v13951_v54, %v5441_v60  ;;  %5301 = vmatmul.bf16.gmra.mxu0 %v15114_v21  ;;  %v15733_v60 = vld [vmem:[#allocation140_spill] sm:$0xff] }
 0xb58   :  { %v5701_v62 = vmax.f32 %v5573_v12, 0.0 }
 0xb5a   :  { %v5781_v2 = vmax.f32 %v5685_v27, %v5701_v62 }
 0xb5b   :  { %v5264_v28 = vpop.f32.mrf.mxu0 }
 0xb5c   :  { %v5821_v63 = vmax.f32 %v5779_v18, %v5781_v2  ;;  %v5442_v61 = vadd.f32 %v5264_v28, %v13189_v49  ;;  %8823 = vmatmul.msk.bf16.vlgmr.msra.gmra.mxu2 %vm5984_vm2, %v13510_v7  ;;  %v15734_v2 = vld [vmem:[#allocation136_spill] sm:$0xff] }
 0xb5e   :  { %v5574_v3 = vadd.f32 %v13951_v54, %v5442_v61  ;;  %v5853_v23 = vpack.c.bf16 %v5821_v63, %v5821_v63  ;;  %v9263_v63 = vld [vmem:[%s14982_s3 + $0xf0] sm:$0xff] }
 0xb5f   :  { %7045 = vmatpush.bf16.msrb.mxu2 %v9263_v63 }
 0xb60   :  { %v5702_v58 = vmax.f32 %v5574_v3, 0.0  ;;  %v5917_v48 = vunpack.c.l.b16 %v5853_v23  ;;  %v15735_v23 = vld [vmem:[#allocation131_spill] sm:$0xff] }
 0xb62   :  { %v5782_v46 = vmax.f32 %v5686_v55, %v5702_v58  ;;  %v9267_v58 = vld [vmem:[%s14982_s3 + $0x110] sm:$0xff] }
 0xb63   :  { %v5267_v53 = vpop.f32.mrf.mxu0 }
 0xb64   :  { %v5822_v15 = vmax.f32 %v5780_v40, %v5782_v46  ;;  %v14072_v17 = vadd.f32 %v5267_v53, %v13194_v8  ;;  %v9268_v8 = vld [vmem:[%s14982_s3 + $0x118] sm:$0xff]  ;;  %v15731_v40 = vld [vmem:[#allocation142_spill] sm:$0xff]  ;;  %v9259_v46 = vld [vmem:[%s14982_s3 + $0xd0] sm:$0xff] }
 0xb65   :  { %7198 = vmatpush.bf16.msra.mxu3 %v9268_v8  ;;  %v4066_v26 = vadd.f32 %v15731_v40, %v15730_v36  ;;  %6891 = vmatpush.bf16.msra.mxu1 %v9259_v46  ;;  %v15739_v8 = vld [vmem:[#allocation138_spill] sm:$0xff]  ;;  %v15743_v36 = vld [vmem:[#allocation152_spill] sm:$0xff]  ;;  %v15745_v46 = vld [vmem:[#allocation145_spill] sm:$0xff] }
 0xb66   :  { %v5854_v20 = vpack.c.bf16 %v5822_v15, %v5822_v15  ;;  %5306 = vmatmul.bf16.gmra.mxu0 %v15114_v21 }
 0xb67   :  { %v4528_v12 = vadd.f32 %v15733_v60, %v4066_v26 }
 0xb68   :  { %v5918_v57 = vunpack.c.l.b16 %v5854_v20  ;;  %v15737_v20 = vld [vmem:[#allocation144_spill] sm:$0xff] }
 0xb69   :  { %v4990_v28 = vadd.f32 %v15734_v2, %v4528_v12  ;;  %7199 = vmatpush.bf16.msra.mxu3 %v9267_v58  ;;  %v15744_v12 = vld [vmem:[#allocation143_spill] sm:$0xff] }
 0xb6a   :  { %v14075_v49 = vpack.c.b16 %v5918_v57, %v5917_v48 }
 0xb6b   :  { %v5269_v38 = vpop.f32.mrf.mxu0 }
 0xb6c   :  { %v14081_v30 = vadd.f32 %v5269_v38, %v13203_v42  ;;  %8704 = vmatmul.msk.bf16.gmra.mxu1 %vm5984_vm2, %v14075_v49  ;;  %8762 = vmatmul.msk.bf16.gmra.mxu3 %vm5984_vm2, %v14075_v49 }
 0xb6d   :  { %8824 = vmatmul.msk.bf16.gmra.mxu2 %vm5984_vm2, %v13540_v11 }
 0xb73   :  { %v5272_v42 = vpop.f32.mrf.mxu0 }
 0xb74   :  { %v14096_v6 = vadd.f32 %v5272_v42, %v13208_v14 }
 0xb76   :  { %5311 = vmatmul.bf16.gmra.mxu0 %v15114_v21 }
 0xb7b   :  { %v5274_v39 = vpop.f32.mrf.mxu0 }
 0xb7c   :  { %v14100_v41 = vadd.f32 %v5274_v39, %v13219_v4  ;;  %6341 = vmatmul.bf16.gmra.mxu3 %v15114_v21  ;;  %6429 = vmatmul.bf16.vlgmr.msrb.gmra.mxu1 %v15114_v21 }
 0xb7d   :  { %8825 = vmatmul.msk.bf16.gmra.mxu2 %vm5984_vm2, %v13580_v13 }
 0xb83   :  { %v5277_v31 = vpop.f32.mrf.mxu0 }
 0xb84   :  { %v14111_v14 = vadd.f32 %v5277_v31, %v13224_v1 }
 0xb86   :  { %5316 = vmatmul.bf16.gmra.mxu0 %v15114_v21 }
 0xb89   :  { %v6092_v4 = vpop.f32.mrf.mxu1 }
 0xb8a   :  { %v6206_v18 = vadd.f32 %v6205_v29, %v6092_v4 }
 0xb8b   :  { %v5279_v45 = vpop.f32.mrf.mxu0 }
 0xb8c   :  { %v14115_v35 = vadd.f32 %v5279_v45, %v13235_v43  ;;  %8787 = vmatmul.msk.bf16.gmra.mxu1 %vm5984_vm2, %v13510_v7  ;;  %8863 = vmatmul.msk.bf16.vlgmr.msrb.gmra.mxu3 %vm5984_vm2, %v13540_v11  ;;  %v14136_v43 = vpop.f32.mrf.mxu2  ;;  %v15741_v45 = vld [vmem:[#allocation137_spill] sm:$0xff] }
 0xb8d   :  { %8826 = vmatmul.msk.bf16.gmra.mxu2 %vm5984_vm2, %v13618_v44 }
 0xb91   :  { %v14138_v7 = vpop.f32.mrf.mxu1 }
 0xb93   :  { %v5282_v1 = vpop.f32.mrf.mxu0 }
 0xb94   :  { %v14124_v25 = vadd.f32 %v5282_v1, %v13242_v0  ;;  %v6210_v27 = vpop.f32.mrf.mxu2 }
 0xb96   :  { %5321 = vmatmul.bf16.gmra.mxu0 %v15114_v21 }
 0xb9b   :  { %v5284_v47 = vpop.f32.mrf.mxu0 }
 0xb9c   :  { %v14128_v32 = vadd.f32 %v5284_v47, %v13253_v19  ;;  %8788 = vmatmul.msk.bf16.gmra.mxu1 %vm5984_vm2, %v13540_v11  ;;  %8864 = vmatmul.msk.bf16.gmra.mxu3 %vm5984_vm2, %v13580_v13  ;;  %v14147_v11 = vpop.f32.mrf.mxu3  ;;  %v14174_v57 = vpop.f32.mrf.mxu2  ;;  %v15742_v47 = vld [vmem:[#allocation151_spill] sm:$0xff] }
 0xb9d   :  { %8827 = vmatmul.msk.bf16.gmra.mxu2 %vm5984_vm2, %v13749_v9 }
 0xba3   :  { %v5287_v0 = vpop.f32.mrf.mxu0 }
 0xba4   :  { %v14143_v19 = vadd.f32 %v5287_v0, %v15732_v52 }
 0xba6   :  { %5326 = vmatmul.bf16.gmra.mxu0 %v15114_v21 }
 0xba9   :  { %v6097_v62 = vpop.f32.mrf.mxu1 }
 0xbaa   :  { %v6211_v5 = vadd.f32 %v6210_v27, %v6097_v62 }
 0xbab   :  { %v5289_v61 = vpop.f32.mrf.mxu0 }
 0xbac   :  { %v14153_v3 = vadd.f32 %v5289_v61, %v4990_v28  ;;  %8789 = vmatmul.msk.bf16.gmra.mxu1 %vm5984_vm2, %v13580_v13  ;;  %8865 = vmatmul.msk.bf16.gmra.mxu3 %vm5984_vm2, %v13618_v44  ;;  %v15736_v44 = vld [vmem:[#allocation135_spill] sm:$0xff] }
 0xbad   :  { %8828 = vmatmul.msk.bf16.gmra.mxu2 %vm5984_vm2, %v13775_v33  ;;  %v4068_v15 = vadd.f32 %v15736_v44, %v15735_v23  ;;  %v15747_v44 = vld [vmem:[#allocation157_spill] sm:$0xff] }
 0xbaf   :  { %v4530_v38 = vadd.f32 %v15738_v50, %v4068_v15  ;;  %v6215_v31 = vpop.f32.mrf.mxu2 }
 0xbb0   :  { %v6327_v55 = vpop.f32.mrf.mxu3 }
 0xbb1   :  { %v14167_v53 = vadd.f32 %v6327_v55, %v6206_v18  ;;  %v4992_v51 = vadd.f32 %v15739_v8, %v4530_v38  ;;  %v14185_v29 = vpop.f32.mrf.mxu1  ;;  %v15740_v18 = vld [vmem:[#allocation134_spill] sm:$0xff] }
 0xbb2   :  { %v4070_v1 = vadd.f32 %v15741_v45, %v15740_v18  ;;  %v15749_v8 = vld [vmem:[#allocation150_spill] sm:$0xff]  ;;  %v15750_v45 = vld [vmem:[#allocation148_spill] sm:$0xff] }
 0xbb3   :  { %v5292_v13 = vpop.f32.mrf.mxu0 }
 0xbb4   :  { %v14172_v48 = vadd.f32 %v5292_v13, %v15737_v20  ;;  %v4532_v40 = vadd.f32 %v15743_v36, %v4070_v1  ;;  %v15746_v13 = vld [vmem:[#allocation141_spill] sm:$0xff]  ;;  %v15748_v20 = vld [vmem:[#allocation158_spill] sm:$0xff]  ;;  %v15751_v1 = vld [vmem:[#allocation147_spill] sm:$0xff]  ;;  %v5575_v36 = vadd.f32 %v13951_v54, %v14072_v17 }
 0xbb5   :  { %v4072_v23 = vadd.f32 %v15746_v13, %v15745_v46  ;;  %v9262_v17 = vld [vmem:[%s14982_s3 + $0xe8] sm:$0xff] }
 0xbb6   :  { %5331 = vmatmul.bf16.gmra.mxu0 %v15114_v21  ;;  %v4994_v27 = vadd.f32 %v15744_v12, %v4532_v40  ;;  %v15752_v40 = vld [vmem:[#allocation14_spill] sm:$0xff]  ;;  %v15753_v12 = vld [vmem:[#allocation8_spill] sm:$0xff]  ;;  %v5703_v46 = vmax.f32 %v5575_v36, 0.0  ;;  %7046 = vmatpush.bf16.msrb.mxu2 %v9262_v17 }
 0xbb7   :  { %v14194_v26 = vpop.f32.mrf.mxu2  ;;  %v4534_v50 = vadd.f32 %v15748_v20, %v4072_v23 }
 0xbb8   :  { %v14196_v52 = vpop.f32.mrf.mxu3 }
 0xbbb   :  { %v5294_v42 = vpop.f32.mrf.mxu0 }
 0xbbc   :  { %v14179_v39 = vadd.f32 %v5294_v42, %v4992_v51  ;;  %6449 = vmatmul.bf16.gmra.mxu1 %v15114_v21  ;;  %6755 = vmatmul.bf16.gmra.mxu3 %v15114_v21  ;;  %v4996_v51 = vadd.f32 %v15749_v8, %v4534_v50 }
 0xbbd   :  { %8829 = vmatmul.msk.bf16.gmra.mxu2 %vm5984_vm2, %v13803_v56 }
 0xbc3   :  { %v5297_v4 = vpop.f32.mrf.mxu0 }
 0xbc4   :  { %v14190_v0 = vadd.f32 %v5297_v4, %v15742_v47  ;;  %v4074_v47 = vadd.f32 %v15751_v1, %v15750_v45 }
 0xbc6   :  { %5336 = vmatmul.bf16.gmra.mxu0 %v15114_v21 }
 0xbc9   :  { %v6102_v60 = vpop.f32.mrf.mxu1 }
 0xbca   :  { %v6216_v62 = vadd.f32 %v6215_v31, %v6102_v60 }
 0xbcb   :  { %v5299_v2 = vpop.f32.mrf.mxu0 }
 0xbcc   :  { %v14199_v28 = vadd.f32 %v5299_v2, %v4994_v27  ;;  %8790 = vmatmul.msk.bf16.gmra.mxu1 %vm5984_vm2, %v13749_v9  ;;  %8866 = vmatmul.msk.bf16.gmra.mxu3 %vm5984_vm2, %v13775_v33  ;;  %v4536_v27 = vadd.f32 %v15753_v12, %v4074_v47 }
 0xbcd   :  { %8830 = vmatmul.msk.bf16.gmra.mxu2 %vm5984_vm2, %v13830_v22 }
 0xbcf   :  { %v6220_v63 = vpop.f32.mrf.mxu2 }
 0xbd0   :  { %v6332_v61 = vpop.f32.mrf.mxu3 }
 0xbd1   :  { %v14207_v55 = vadd.f32 %v6332_v61, %v6211_v5  ;;  %v6104_v4 = vpop.f32.mrf.mxu1 }
 0xbd3   :  { %v5302_v58 = vpop.f32.mrf.mxu0 }
 0xbd4   :  { %v14212_v15 = vadd.f32 %v5302_v58, %v15747_v44  ;;  %v15754_v44 = vld [vmem:[#allocation156_spill] sm:$0xff] }
 0xbd5   :  { %v4998_v20 = vadd.f32 %v15754_v44, %v4536_v27  ;;  %v9266_v27 = vld [vmem:[%s14982_s3 + $0x108] sm:$0xff] }
 0xbd6   :  { %5341 = vmatmul.bf16.gmra.mxu0 %v15114_v21  ;;  %7200 = vmatpush.bf16.msra.mxu3 %v9266_v27 }
 0xbd7   :  { %v6222_v38 = vpop.f32.mrf.mxu2 }
 0xbd8   :  { %v14232_v61 = vpop.f32.mrf.mxu3 }
 0xbdb   :  { %v5304_v42 = vpop.f32.mrf.mxu0 }
 0xbdc   :  { %v14217_v31 = vadd.f32 %v5304_v42, %v4996_v51  ;;  %8791 = vmatmul.msk.bf16.gmra.mxu1 %vm5984_vm2, %v13775_v33  ;;  %8867 = vmatmul.msk.bf16.gmra.mxu3 %vm5984_vm2, %v13803_v56  ;;  %v5576_v42 = vadd.f32 %v13951_v54, %v14081_v30 }
 0xbdd   :  { %8831 = vmatmul.msk.bf16.gmra.mxu2 %vm5984_vm2, %v13985_v16 }
 0xbde   :  { %v5704_v1 = vmax.f32 %v5576_v42, 0.0  ;;  %v6218_v42 = vadd.f32 %v14194_v26, %v6104_v4  ;;  %v5578_v26 = vadd.f32 %v13951_v54, %v14100_v41 }
 0xbdf   :  { %v6587_v5 = vpop.f32.mrf.mxu2 }
 0xbe3   :  { %v5307_v18 = vpop.f32.mrf.mxu0 }
 0xbe4   :  { %v5459_v60 = vadd.f32 %v5307_v18, %v15752_v40 }
 0xbe6   :  { %v5591_v2 = vadd.f32 %v13951_v54, %v5459_v60 }
 0xbe7   :  { %v14234_v58 = vpop.f32.mrf.mxu2 }
 0xbe8   :  { %v5719_v13 = vmax.f32 %v5591_v2, 0.0  ;;  %v9258_v2 = vld [vmem:[%s14982_s3 + $0xc8] sm:$0xff] }
 0xbe9   :  { %v6107_v23 = vpop.f32.mrf.mxu1  ;;  %6892 = vmatpush.bf16.msra.mxu1 %v9258_v2  ;;  %v15762_v2 = vld [vmem:[#allocation24_spill] sm:$0xff] }
 0xbea   :  { %v5783_v50 = vmax.f32 %v5703_v46, %v5719_v13  ;;  %v6221_v8 = vadd.f32 %v6220_v63, %v6107_v23  ;;  %v15756_v13 = vld [vmem:[#allocation153_spill] sm:$0xff]  ;;  %v15757_v23 = vld [vmem:[#allocation154_spill] sm:$0xff] }
 0xbeb   :  { %v5309_v51 = vpop.f32.mrf.mxu0  ;;  %v4076_v44 = vadd.f32 %v15757_v23, %v15756_v13  ;;  %v15760_v23 = vld [vmem:[#allocation160_spill] sm:$0xff] }
 0xbec   :  { %v5460_v18 = vadd.f32 %v5309_v51, %v4998_v20  ;;  %8792 = vmatmul.msk.bf16.gmra.mxu1 %vm5984_vm2, %v13803_v56  ;;  %8868 = vmatmul.msk.bf16.gmra.mxu3 %vm5984_vm2, %v13830_v22  ;;  %v15758_v20 = vld [vmem:[#allocation10_spill] sm:$0xff] }
 0xbed   :  { %8832 = vmatmul.msk.bf16.gmra.mxu2 %vm5984_vm2, %v14011_v34 }
 0xbee   :  { %v5592_v63 = vadd.f32 %v13951_v54, %v5460_v18 }
 0xbef   :  { %v6337_v45 = vpop.f32.mrf.mxu3 }
 0xbf0   :  { %v5720_v47 = vmax.f32 %v5592_v63, 0.0  ;;  %v14249_v36 = vadd.f32 %v6337_v45, %v6216_v62  ;;  %v14251_v40 = vpop.f32.mrf.mxu2  ;;  %v5577_v62 = vadd.f32 %v13951_v54, %v14096_v6 }
 0xbf1   :  { %v6109_v30 = vpop.f32.mrf.mxu1 }
 0xbf2   :  { %15755 = vst [vmem:[#allocation85_spill] sm:$0xff] %v14249_v36  ;;  %v5784_v60 = vmax.f32 %v5704_v1, %v5720_v47  ;;  %v6223_v12 = vadd.f32 %v6222_v38, %v6109_v30  ;;  %v15759_v38 = vld [vmem:[#allocation38_spill] sm:$0xff]  ;;  %v5705_v45 = vmax.f32 %v5577_v62, 0.0 }
 0xbf3   :  { %v5312_v46 = vpop.f32.mrf.mxu0  ;;  %v4538_v51 = vadd.f32 %v15759_v38, %v4076_v44 }
 0xbf4   :  { %v5461_v17 = vadd.f32 %v5312_v46, %v15758_v20  ;;  %v15761_v46 = vld [vmem:[#allocation29_spill] sm:$0xff]  ;;  %v15763_v20 = vld [vmem:[#allocation23_spill] sm:$0xff] }
 0xbf5   :  { %v5000_v6 = vadd.f32 %v15760_v23, %v4538_v51  ;;  %v6148_v44 = vadd.f32 %v15763_v20, %v15762_v2 }
 0xbf6   :  { %v5593_v18 = vadd.f32 %v13951_v54, %v5461_v17 }
 0xbf7   :  { %v6339_v63 = vpop.f32.mrf.mxu3 }
 0xbf8   :  { %v5721_v1 = vmax.f32 %v5593_v18, 0.0  ;;  %v14267_v47 = vadd.f32 %v6339_v63, %v6218_v42  ;;  %v14269_v30 = vpop.f32.mrf.mxu2  ;;  %v15764_v18 = vld [vmem:[#allocation32_spill] sm:$0xff] }
 0xbf9   :  { %v6430_v13 = vpop.f32.mrf.mxu1  ;;  %v6348_v63 = vadd.f32 %v15764_v18, %v6148_v44 }
 0xbfa   :  { %v5785_v36 = vmax.f32 %v5705_v45, %v5721_v1  ;;  %v6510_v27 = vadd.f32 %v6430_v13, %v15761_v46  ;;  %v5706_v45 = vmax.f32 %v5578_v26, 0.0  ;;  %v15766_v46 = vld [vmem:[#allocation11_spill] sm:$0xff] }
 0xbfb   :  { %v5314_v4 = vpop.f32.mrf.mxu0 }
 0xbfc   :  { %v5823_v17 = vmax.f32 %v5783_v50, %v5785_v36  ;;  %v5462_v62 = vadd.f32 %v5314_v4, %v5000_v6  ;;  %6469 = vmatmul.bf16.gmra.mxu1 %v15114_v21  ;;  %6775 = vmatmul.bf16.gmra.mxu3 %v15114_v21  ;;  %v6667_v38 = vadd.f32 %v6587_v5, %v6510_v27  ;;  %v15765_v6 = vld [vmem:[#allocation149_spill] sm:$0xff] }
 0xbfd   :  { %8833 = vmatmul.msk.bf16.gmra.mxu2 %vm5984_vm2, %v14048_v37  ;;  %v4078_v5 = vadd.f32 %v15766_v46, %v15765_v6  ;;  %v5579_v27 = vadd.f32 %v13951_v54, %v14111_v14 }
 0xbfe   :  { %v5594_v51 = vadd.f32 %v13951_v54, %v5462_v62  ;;  %v5855_v20 = vpack.c.bf16 %v5823_v17, %v5823_v17  ;;  %v15767_v62 = vld [vmem:[#allocation12_spill] sm:$0xff] }
 0xbff   :  { %v6342_v42 = vpop.f32.mrf.mxu3 }
 0xc00   :  { %v5722_v1 = vmax.f32 %v5594_v51, 0.0  ;;  %v14283_v13 = vadd.f32 %v6342_v42, %v6221_v8  ;;  %v14285_v41 = vpop.f32.mrf.mxu2  ;;  %v15768_v8 = vld [vmem:[#allocation162_spill] sm:$0xff] }
 0xc01   :  { %v6432_v50 = vpop.f32.mrf.mxu1  ;;  %v4540_v51 = vadd.f32 %v15768_v8, %v4078_v5  ;;  %v15771_v5 = vld [vmem:[#allocation26_spill] sm:$0xff] }
 0xc02   :  { %v5786_v36 = vmax.f32 %v5706_v45, %v5722_v1  ;;  %v6511_v23 = vadd.f32 %v6432_v50, %v6348_v63  ;;  %v5707_v45 = vmax.f32 %v5579_v27, 0.0  ;;  %v5919_v1 = vunpack.c.l.b16 %v5855_v20 }
 0xc03   :  { %v5317_v2 = vpop.f32.mrf.mxu0  ;;  %v5580_v20 = vadd.f32 %v13951_v54, %v14115_v35 }
 0xc04   :  { %v5824_v4 = vmax.f32 %v5784_v60, %v5786_v36  ;;  %v5463_v44 = vadd.f32 %v5317_v2, %v15767_v62  ;;  %v6668_v26 = vadd.f32 %v14234_v58, %v6511_v23  ;;  %v15769_v60 = vld [vmem:[#allocation4_spill] sm:$0xff]  ;;  %v15770_v62 = vld [vmem:[#allocation33_spill] sm:$0xff] }
 0xc05   :  { %v5002_v36 = vadd.f32 %v15769_v60, %v4540_v51 }
 0xc06   :  { %v5856_v42 = vpack.c.bf16 %v5824_v4, %v5824_v4  ;;  %v5595_v18 = vadd.f32 %v13951_v54, %v5463_v44  ;;  %v15772_v4 = vld [vmem:[#allocation41_spill] sm:$0xff] }
 0xc07   :  { %v6344_v63 = vpop.f32.mrf.mxu3  ;;  %v6153_v44 = vadd.f32 %v15772_v4, %v15771_v5  ;;  %v5581_v5 = vadd.f32 %v13951_v54, %v14124_v25  ;;  %v15777_v4 = vld [vmem:[#allocation13_spill] sm:$0xff]  ;;  %v15780_v25 = vld [vmem:[#allocation46_spill] sm:$0xff] }
 0xc08   :  { %v5920_v50 = vunpack.c.l.b16 %v5856_v42  ;;  %v5723_v6 = vmax.f32 %v5595_v18, 0.0  ;;  %v14295_v46 = vadd.f32 %v6344_v63, %v6223_v12  ;;  %v14297_v14 = vpop.f32.mrf.mxu2  ;;  %v15773_v18 = vld [vmem:[#allocation49_spill] sm:$0xff]  ;;  %v5708_v63 = vmax.f32 %v5580_v20, 0.0 }
 0xc09   :  { %v6435_v17 = vpop.f32.mrf.mxu1  ;;  %v15778_v20 = vld [vmem:[#allocation25_spill] sm:$0xff] }
 0xc0a   :  { %v5787_v2 = vmax.f32 %v5707_v45, %v5723_v6  ;;  %v6512_v58 = vadd.f32 %v6435_v17, %v15770_v62  ;;  %v14301_v23 = vpack.c.b16 %v5920_v50, %v5919_v1  ;;  %v6350_v45 = vadd.f32 %v15773_v18, %v6153_v44  ;;  %v15775_v62 = vld [vmem:[#allocation155_spill] sm:$0xff] }
 0xc0b   :  { %v5319_v27 = vpop.f32.mrf.mxu0 }
 0xc0c   :  { %v5464_v8 = vadd.f32 %v5319_v27, %v5002_v36  ;;  %8793 = vmatmul.msk.bf16.gmra.mxu1 %vm5984_vm2, %v13985_v16  ;;  %8869 = vmatmul.msk.bf16.gmra.mxu3 %vm5984_vm2, %v14011_v34  ;;  %v6669_v12 = vadd.f32 %v14251_v40, %v6512_v58  ;;  %v15776_v40 = vld [vmem:[#allocation9_spill] sm:$0xff] }
 0xc0d   :  { %8834 = vmatmul.msk.bf16.gmra.mxu2 %vm5984_vm2, %v14075_v49  ;;  %v4080_v58 = vadd.f32 %v15776_v40, %v15775_v62 }
 0xc0e   :  { %v5596_v51 = vadd.f32 %v13951_v54, %v5464_v8 }
 0xc0f   :  { %v6741_v42 = vpop.f32.mrf.mxu3  ;;  %v4542_v8 = vadd.f32 %v15778_v20, %v4080_v58 }
 0xc10   :  { %v5724_v1 = vmax.f32 %v5596_v51, 0.0  ;;  %v14316_v35 = vpop.f32.mrf.mxu2  ;;  %v14318_v50 = vadd.f32 %v6741_v42, %v6667_v38  ;;  %v5709_v42 = vmax.f32 %v5581_v5, 0.0 }
 0xc11   :  { %v6437_v6 = vpop.f32.mrf.mxu1 }
 0xc12   :  { %15774 = vst [vmem:[#allocation68_spill] sm:$0xff] %v14318_v50  ;;  %v5788_v17 = vmax.f32 %v5708_v63, %v5724_v1  ;;  %v6513_v60 = vadd.f32 %v6437_v6, %v6350_v45  ;;  %v15779_v6 = vld [vmem:[#allocation164_spill] sm:$0xff] }
 0xc13   :  { %v5322_v36 = vpop.f32.mrf.mxu0  ;;  %v5004_v62 = vadd.f32 %v15779_v6, %v4542_v8 }
 0xc14   :  { %v5465_v27 = vadd.f32 %v5322_v36, %v15777_v4  ;;  %v6670_v44 = vadd.f32 %v14269_v30, %v6513_v60  ;;  %v15781_v36 = vld [vmem:[#allocation30_spill] sm:$0xff]  ;;  %v5582_v60 = vadd.f32 %v13951_v54, %v14128_v32 }
 0xc15   :  { %v15782_v4 = vld [vmem:[#allocation62_spill] sm:$0xff] }
 0xc16   :  { %v5597_v51 = vadd.f32 %v13951_v54, %v5465_v27  ;;  %v6158_v30 = vadd.f32 %v15782_v4, %v15781_v36  ;;  %v5710_v32 = vmax.f32 %v5582_v60, 0.0 }
 0xc17   :  { %v6743_v38 = vpop.f32.mrf.mxu3 }
 0xc18   :  { %v5725_v18 = vmax.f32 %v5597_v51, 0.0  ;;  %v14328_v63 = vpop.f32.mrf.mxu2  ;;  %v14330_v45 = vadd.f32 %v6743_v38, %v6668_v26  ;;  %v15783_v51 = vld [vmem:[#allocation35_spill] sm:$0xff] }
 0xc19   :  { %v6440_v1 = vpop.f32.mrf.mxu1  ;;  %v6352_v38 = vadd.f32 %v15783_v51, %v6158_v30 }
 0xc1a   :  { %v5789_v40 = vmax.f32 %v5709_v42, %v5725_v18  ;;  %v6514_v50 = vadd.f32 %v6440_v1, %v15780_v25  ;;  %v15785_v25 = vld [vmem:[#allocation161_spill] sm:$0xff] }
 0xc1b   :  { %v5324_v58 = vpop.f32.mrf.mxu0 }
 0xc1c   :  { %v5825_v27 = vmax.f32 %v5787_v2, %v5789_v40  ;;  %v5466_v5 = vadd.f32 %v5324_v58, %v5004_v62  ;;  %8794 = vmatmul.msk.bf16.gmra.mxu1 %vm5984_vm2, %v14011_v34  ;;  %8870 = vmatmul.msk.bf16.gmra.mxu3 %vm5984_vm2, %v14048_v37  ;;  %v6671_v26 = vadd.f32 %v14285_v41, %v6514_v50  ;;  %v15784_v40 = vld [vmem:[#allocation159_spill] sm:$0xff] }
 0xc1d   :  { %8835 = vmatmul.msk.bf16.gmra.mxu2 %vm5984_vm2, %v14301_v23  ;;  %v4082_v41 = vadd.f32 %v15785_v25, %v15784_v40  ;;  %v5583_v50 = vadd.f32 %v13951_v54, %v14143_v19 }
 0xc1e   :  { %v5598_v20 = vadd.f32 %v13951_v54, %v5466_v5  ;;  %v5857_v4 = vpack.c.bf16 %v5825_v27, %v5825_v27  ;;  %v15786_v5 = vld [vmem:[#allocation15_spill] sm:$0xff] }
 0xc1f   :  { %v6746_v8 = vpop.f32.mrf.mxu3 }
 0xc20   :  { %v5726_v42 = vmax.f32 %v5598_v20, 0.0  ;;  %v14347_v2 = vpop.f32.mrf.mxu2  ;;  %v14349_v18 = vadd.f32 %v6746_v8, %v6669_v12  ;;  %v15787_v20 = vld [vmem:[#allocation28_spill] sm:$0xff] }
 0xc21   :  { %v6442_v1 = vpop.f32.mrf.mxu1  ;;  %v4544_v51 = vadd.f32 %v15787_v20, %v4082_v41 }
 0xc22   :  { %v5790_v6 = vmax.f32 %v5710_v32, %v5726_v42  ;;  %v6515_v62 = vadd.f32 %v6442_v1, %v6352_v38  ;;  %v5711_v32 = vmax.f32 %v5583_v50, 0.0  ;;  %v5921_v42 = vunpack.c.l.b16 %v5857_v4  ;;  %v9261_v50 = vld [vmem:[%s14982_s3 + $0xe0] sm:$0xff] }
 0xc23   :  { %v5327_v36 = vpop.f32.mrf.mxu0  ;;  %v5584_v4 = vadd.f32 %v13951_v54, %v14153_v3  ;;  %7047 = vmatpush.bf16.msrb.mxu2 %v9261_v50 }
 0xc24   :  { %v5826_v58 = vmax.f32 %v5788_v17, %v5790_v6  ;;  %v5467_v30 = vadd.f32 %v5327_v36, %v15786_v5  ;;  %v6672_v60 = vadd.f32 %v14297_v14, %v6515_v62  ;;  %v15789_v17 = vld [vmem:[#allocation6_spill] sm:$0xff]  ;;  %v15790_v62 = vld [vmem:[#allocation39_spill] sm:$0xff] }
 0xc25   :  { %v5006_v6 = vadd.f32 %v15789_v17, %v4544_v51  ;;  %v5712_v51 = vmax.f32 %v5584_v4, 0.0 }
 0xc26   :  { %v5858_v12 = vpack.c.bf16 %v5826_v58, %v5826_v58  ;;  %v5599_v8 = vadd.f32 %v13951_v54, %v5467_v30 }
 0xc27   :  { %v6748_v38 = vpop.f32.mrf.mxu3 }
 0xc28   :  { %v5922_v1 = vunpack.c.l.b16 %v5858_v12  ;;  %v5727_v40 = vmax.f32 %v5599_v8, 0.0  ;;  %v14359_v25 = vpop.f32.mrf.mxu2  ;;  %v14361_v19 = vadd.f32 %v6748_v38, %v6670_v44 }
 0xc29   :  { %v6445_v27 = vpop.f32.mrf.mxu1 }
 0xc2a   :  { %15788 = vst [vmem:[#allocation69_spill] sm:$0xff] %v14361_v19  ;;  %v14364_v36 = vpack.c.b16 %v5922_v1, %v5921_v42  ;;  %v5791_v14 = vmax.f32 %v5711_v32, %v5727_v40  ;;  %v6516_v41 = vadd.f32 %v6445_v27, %v15790_v62  ;;  %v9265_v42 = vld [vmem:[%s14982_s3 + $0x100] sm:$0xff]  ;;  %v15792_v40 = vld [vmem:[#allocation17_spill] sm:$0xff]  ;;  %v15793_v27 = vld [vmem:[#allocation163_spill] sm:$0xff] }
 0xc2b   :  { %v5329_v58 = vpop.f32.mrf.mxu0  ;;  %v4084_v17 = vadd.f32 %v15793_v27, %v15792_v40  ;;  %v15794_v62 = vld [vmem:[#allocation16_spill] sm:$0xff]  ;;  %7201 = vmatpush.bf16.msra.mxu3 %v9265_v42  ;;  %v15797_v40 = vld [vmem:[#allocation7_spill] sm:$0xff] }
 0xc2c   :  { %v5468_v5 = vadd.f32 %v5329_v58, %v5006_v6  ;;  %8795 = vmatmul.msk.bf16.gmra.mxu1 %vm5984_vm2, %v14048_v37  ;;  %8871 = vmatmul.msk.bf16.gmra.mxu3 %vm5984_vm2, %v14075_v49  ;;  %v6673_v44 = vadd.f32 %v14316_v35, %v6516_v41  ;;  %v9257_v35 = vld [vmem:[%s14982_s3 + $0xc0] sm:$0xff]  ;;  %v5585_v6 = vadd.f32 %v13951_v54, %v14172_v48  ;;  %v15795_v41 = vld [vmem:[#allocation31_spill] sm:$0xff]  ;;  %v15800_v42 = vld [vmem:[#allocation52_spill] sm:$0xff] }
 0xc2d   :  { %8836 = vmatmul.msk.bf16.gmra.mxu2 %vm5984_vm2, %v14364_v36  ;;  %6893 = vmatpush.bf16.msra.mxu1 %v9257_v35  ;;  %v4546_v50 = vadd.f32 %v15795_v41, %v4084_v17  ;;  %v15798_v48 = vld [vmem:[#allocation58_spill] sm:$0xff]  ;;  %v5586_v17 = vadd.f32 %v13951_v54, %v14179_v39 }
 0xc2e   :  { %v5600_v30 = vadd.f32 %v13951_v54, %v5468_v5  ;;  %v5713_v5 = vmax.f32 %v5585_v6, 0.0 }
 0xc2f   :  { %v6751_v20 = vpop.f32.mrf.mxu3  ;;  %v5008_v27 = vadd.f32 %v15797_v40, %v4546_v50 }
 0xc30   :  { %v5728_v12 = vmax.f32 %v5600_v30, 0.0  ;;  %v14380_v8 = vpop.f32.mrf.mxu2  ;;  %v14382_v3 = vadd.f32 %v6751_v20, %v6671_v26 }
 0xc31   :  { %v6447_v32 = vpop.f32.mrf.mxu1 }
 0xc32   :  { %15791 = vst [vmem:[#allocation71_spill] sm:$0xff] %v14382_v3  ;;  %v5792_v38 = vmax.f32 %v5712_v51, %v5728_v12 }
 0xc33   :  { %v5332_v1 = vpop.f32.mrf.mxu0 }
 0xc34   :  { %v5469_v26 = vadd.f32 %v5332_v1, %v15794_v62  ;;  %v15799_v1 = vld [vmem:[#allocation36_spill] sm:$0xff] }
 0xc35   :  { %v6163_v35 = vadd.f32 %v15800_v42, %v15799_v1  ;;  %v15803_v1 = vld [vmem:[#allocation22_spill] sm:$0xff] }
 0xc36   :  { %v5601_v58 = vadd.f32 %v13951_v54, %v5469_v26 }
 0xc37   :  { %v6753_v4 = vpop.f32.mrf.mxu3 }
 0xc38   :  { %v5729_v30 = vmax.f32 %v5601_v58, 0.0  ;;  %v14397_v20 = vpop.f32.mrf.mxu2  ;;  %v14399_v51 = vadd.f32 %v6753_v4, %v6672_v60  ;;  %v15801_v58 = vld [vmem:[#allocation42_spill] sm:$0xff] }
 0xc39   :  { %v6450_v12 = vpop.f32.mrf.mxu1  ;;  %v6354_v4 = vadd.f32 %v15801_v58, %v6163_v35 }
 0xc3a   :  { %15796 = vst [vmem:[#allocation72_spill] sm:$0xff] %v14399_v51  ;;  %v5793_v3 = vmax.f32 %v5713_v5, %v5729_v30  ;;  %v6518_v19 = vadd.f32 %v6450_v12, %v15798_v48  ;;  %v5714_v5 = vmax.f32 %v5586_v17, 0.0  ;;  %v15806_v17 = vld [vmem:[#allocation34_spill] sm:$0xff] }
 0xc3b   :  { %v5334_v62 = vpop.f32.mrf.mxu0 }
 0xc3c   :  { %v5827_v26 = vmax.f32 %v5791_v14, %v5793_v3  ;;  %v5470_v6 = vadd.f32 %v5334_v62, %v5008_v27  ;;  %6489 = vmatmul.bf16.gmra.mxu1 %v15114_v21  ;;  %6795 = vmatmul.bf16.gmra.mxu3 %v15114_v21  ;;  %v6675_v60 = vadd.f32 %v14347_v2, %v6518_v19  ;;  %v15804_v2 = vld [vmem:[#allocation165_spill] sm:$0xff] }
 0xc3d   :  { %v6517_v14 = vadd.f32 %v6447_v32, %v6354_v4  ;;  %v5587_v27 = vadd.f32 %v13951_v54, %v14190_v0  ;;  %v4086_v19 = vadd.f32 %v15804_v2, %v15803_v1  ;;  %v15808_v2 = vld [vmem:[#allocation45_spill] sm:$0xff] }
 0xc3e   :  { %v5602_v41 = vadd.f32 %v13951_v54, %v5470_v6  ;;  %v5859_v42 = vpack.c.bf16 %v5827_v26, %v5827_v26  ;;  %v15805_v6 = vld [vmem:[#allocation18_spill] sm:$0xff] }
 0xc3f   :  { %v6756_v50 = vpop.f32.mrf.mxu3  ;;  %v5715_v32 = vmax.f32 %v5587_v27, 0.0 }
 0xc40   :  { %v5730_v30 = vmax.f32 %v5602_v41, 0.0  ;;  %v14412_v12 = vpop.f32.mrf.mxu2  ;;  %v14414_v40 = vadd.f32 %v6756_v50, %v6673_v44  ;;  %v4548_v41 = vadd.f32 %v15806_v17, %v4086_v19  ;;  %v6674_v50 = vadd.f32 %v14328_v63, %v6517_v14  ;;  %v9320_v63 = vld [vmem:[%s14983_s2] ss:$0 sm:$0xff] }
 0xc41   :  { %v6452_v39 = vpop.f32.mrf.mxu1  ;;  %v5588_v14 = vadd.f32 %v9320_v63, %v14199_v28 }
 0xc42   :  { %15802 = vst [vmem:[#allocation74_spill] sm:$0xff] %v14414_v40  ;;  %v5794_v3 = vmax.f32 %v5714_v5, %v5730_v30  ;;  %v5923_v5 = vunpack.c.l.b16 %v5859_v42 }
 0xc43   :  { %v5337_v48 = vpop.f32.mrf.mxu0  ;;  %v5716_v28 = vmax.f32 %v5588_v14, 0.0 }
 0xc44   :  { %v5828_v62 = vmax.f32 %v5792_v38, %v5794_v3  ;;  %v5471_v35 = vadd.f32 %v5337_v48, %v15805_v6  ;;  %v15807_v38 = vld [vmem:[#allocation19_spill] sm:$0xff] }
 0xc45   :  { %v5010_v3 = vadd.f32 %v15807_v38, %v4548_v41  ;;  %v15810_v6 = vld [vmem:[#allocation55_spill] sm:$0xff]  ;;  %v15813_v38 = vld [vmem:[#allocation37_spill] sm:$0xff] }
 0xc46   :  { %v5860_v58 = vpack.c.bf16 %v5828_v62, %v5828_v62  ;;  %v5603_v44 = vadd.f32 %v13951_v54, %v5471_v35  ;;  %v15809_v62 = vld [vmem:[#allocation40_spill] sm:$0xff] }
 0xc47   :  { %v6758_v4 = vpop.f32.mrf.mxu3  ;;  %v6168_v35 = vadd.f32 %v15810_v6, %v15809_v62 }
 0xc48   :  { %v5924_v30 = vunpack.c.l.b16 %v5860_v58  ;;  %v5731_v0 = vmax.f32 %v5603_v44, 0.0  ;;  %v14424_v40 = vpop.f32.mrf.mxu2  ;;  %v14426_v51 = vadd.f32 %v6758_v4, %v6674_v50  ;;  %v15811_v58 = vld [vmem:[#allocation61_spill] sm:$0xff] }
 0xc49   :  { %v6455_v26 = vpop.f32.mrf.mxu1  ;;  %v6356_v44 = vadd.f32 %v15811_v58, %v6168_v35 }
 0xc4a   :  { %v14429_v48 = vpack.c.b16 %v5924_v30, %v5923_v5  ;;  %v5795_v1 = vmax.f32 %v5715_v32, %v5731_v0  ;;  %v6520_v19 = vadd.f32 %v6455_v26, %v15808_v2  ;;  %v5589_v2 = vadd.f32 %v9320_v63, %v14212_v15 }
 0xc4b   :  { %v5339_v54 = vpop.f32.mrf.mxu0  ;;  %v6519_v30 = vadd.f32 %v6452_v39, %v6356_v44  ;;  %v15816_v44 = vld [vmem:[#allocation27_spill] sm:$0xff] }
 0xc4c   :  { %v5472_v27 = vadd.f32 %v5339_v54, %v5010_v3  ;;  %8796 = vmatmul.msk.bf16.gmra.mxu1 %vm5984_vm2, %v14301_v23  ;;  %8837 = vmatmul.msk.bf16.gmra.mxu2 %vm5984_vm2, %v14429_v48  ;;  %v6677_v42 = vadd.f32 %v14380_v8, %v6520_v19  ;;  %v15812_v8 = vld [vmem:[#allocation5_spill] sm:$0xff]  ;;  %v15814_v19 = vld [vmem:[#allocation20_spill] sm:$0xff] }
 0xc4d   :  { %8872 = vmatmul.msk.bf16.gmra.mxu3 %vm5984_vm2, %v14364_v36  ;;  %v4088_v3 = vadd.f32 %v15813_v38, %v15812_v8  ;;  %v6676_v14 = vadd.f32 %v14359_v25, %v6519_v30  ;;  %v15817_v8 = vld [vmem:[#allocation50_spill] sm:$0xff]  ;;  %v15818_v30 = vld [vmem:[#allocation44_spill] sm:$0xff] }
 0xc4e   :  { %v5604_v17 = vadd.f32 %v9320_v63, %v5472_v27  ;;  %v15815_v27 = vld [vmem:[#allocation21_spill] sm:$0xff] }
 0xc4f   :  { %v6761_v41 = vpop.f32.mrf.mxu3  ;;  %v4550_v62 = vadd.f32 %v15815_v27, %v4088_v3 }
 0xc50   :  { %v5732_v50 = vmax.f32 %v5604_v17, 0.0  ;;  %v6622_v32 = vpop.f32.mrf.mxu2  ;;  %v14446_v4 = vadd.f32 %v6761_v41, %v6675_v60  ;;  %v5717_v17 = vmax.f32 %v5589_v2, 0.0  ;;  %v15819_v2 = vld [vmem:[#allocation43_spill] sm:$0xff] }
 0xc51   :  { %v6457_v5 = vpop.f32.mrf.mxu1 }
 0xc52   :  { %v5796_v0 = vmax.f32 %v5716_v28, %v5732_v50  ;;  %v5012_v28 = vadd.f32 %v15816_v44, %v4550_v62 }
 0xc53   :  { %v5342_v26 = vpop.f32.mrf.mxu0 }
 0xc54   :  { %v5473_v54 = vadd.f32 %v5342_v26, %v15814_v19  ;;  %v5590_v26 = vadd.f32 %v9320_v63, %v14217_v31 }
 0xc56   :  { %v5605_v6 = vadd.f32 %v9320_v63, %v5473_v54  ;;  %v6173_v54 = vadd.f32 %v15819_v2, %v15818_v30  ;;  %v15821_v2 = vld [vmem:[#allocation51_spill] sm:$0xff] }
 0xc57   :  { %v6763_v35 = vpop.f32.mrf.mxu3 }
 0xc58   :  { %v5733_v60 = vmax.f32 %v5605_v6, 0.0  ;;  %v14454_v41 = vadd.f32 %v6763_v35, %v6676_v14  ;;  %v6624_v39 = vpop.f32.mrf.mxu2  ;;  %v15820_v6 = vld [vmem:[#allocation48_spill] sm:$0xff]  ;;  %v5718_v35 = vmax.f32 %v5590_v26, 0.0 }
 0xc59   :  { %v6460_v58 = vpop.f32.mrf.mxu1  ;;  %v6358_v14 = vadd.f32 %v15820_v6, %v6173_v54 }
 0xc5a   :  { %v5797_v50 = vmax.f32 %v5717_v17, %v5733_v60  ;;  %v6522_v38 = vadd.f32 %v6460_v58, %v15817_v8 }
 0xc5b   :  { %v5344_v15 = vpop.f32.mrf.mxu0  ;;  %v6521_v60 = vadd.f32 %v6457_v5, %v6358_v14 }
 0xc5c   :  { %v5829_v19 = vmax.f32 %v5795_v1, %v5797_v50  ;;  %v5474_v3 = vadd.f32 %v5344_v15, %v5012_v28  ;;  %8797 = vmatmul.msk.bf16.gmra.mxu1 %vm5984_vm2, %v14364_v36  ;;  %v6679_v25 = vadd.f32 %v14412_v12, %v6522_v38 }
 0xc5d   :  { %8873 = vmatmul.msk.bf16.gmra.mxu3 %vm5984_vm2, %v14429_v48  ;;  %v6678_v8 = vadd.f32 %v14397_v20, %v6521_v60  ;;  %v15822_v20 = vld [vmem:[#allocation65_spill] sm:$0xff] }
 0xc5e   :  { %v5606_v27 = vadd.f32 %v9320_v63, %v5474_v3  ;;  %v5861_v28 = vpack.c.bf16 %v5829_v19, %v5829_v19 }
 0xc5f   :  { %v6766_v62 = vpop.f32.mrf.mxu3 }
 0xc60   :  { %v5734_v17 = vmax.f32 %v5606_v27, 0.0  ;;  %v14467_v31 = vadd.f32 %v6766_v62, %v6677_v42  ;;  %v6627_v44 = vpop.f32.mrf.mxu2  ;;  %v5925_v15 = vunpack.c.l.b16 %v5861_v28  ;;  %v15824_v62 = vld [vmem:[#allocation86_spill] sm:$0xff] }
 0xc61   :  { %v6462_v1 = vpop.f32.mrf.mxu1 }
 0xc62   :  { %v5798_v58 = vmax.f32 %v5718_v35, %v5734_v17 }
 0xc64   :  { %v5830_v12 = vmax.f32 %v5796_v0, %v5798_v58  ;;  %v15823_v0 = vld [vmem:[#allocation47_spill] sm:$0xff] }
 0xc65   :  { %v6178_v19 = vadd.f32 %v15823_v0, %v15822_v20 }
 0xc66   :  { %v5862_v50 = vpack.c.bf16 %v5830_v12, %v5830_v12 }
 0xc67   :  { %v6768_v38 = vpop.f32.mrf.mxu3  ;;  %v6360_v6 = vadd.f32 %v15824_v62, %v6178_v19 }
 0xc68   :  { %v5926_v30 = vunpack.c.l.b16 %v5862_v50  ;;  %v14470_v63 = vadd.f32 %v6768_v38, %v6678_v8  ;;  %v6629_v5 = vpop.f32.mrf.mxu2  ;;  %v15825_v50 = vld [vmem:[#allocation70_spill] sm:$0xff] }
 0xc69   :  { %v6465_v3 = vpop.f32.mrf.mxu1  ;;  %v6523_v17 = vadd.f32 %v6462_v1, %v6360_v6 }
 0xc6a   :  { %v6524_v26 = vadd.f32 %v6465_v3, %v15821_v2  ;;  %v14473_v54 = vpack.c.b16 %v5926_v30, %v5925_v15  ;;  %v15827_v15 = vld [vmem:[#allocation53_spill] sm:$0xff] }
 0xc6b   :  { %v6680_v60 = vadd.f32 %v14424_v40, %v6523_v17  ;;  %v15828_v40 = vld [vmem:[#allocation57_spill] sm:$0xff]  ;;  %v15829_v17 = vld [vmem:[#allocation79_spill] sm:$0xff] }
 0xc6c   :  { %8798 = vmatmul.msk.bf16.gmra.mxu1 %vm5984_vm2, %v14429_v48  ;;  %8838 = vmatmul.msk.bf16.gmra.mxu2 %vm5984_vm2, %v14473_v54  ;;  %v6681_v42 = vadd.f32 %v6622_v32, %v6524_v26 }
 0xc6d   :  { %8874 = vmatmul.msk.bf16.gmra.mxu3 %vm5984_vm2, %v14473_v54 }
 0xc6f   :  { %v6771_v27 = vpop.f32.mrf.mxu3 }
 0xc70   :  { %v14484_v14 = vadd.f32 %v6771_v27, %v6679_v25  ;;  %v6632_v58 = vpop.f32.mrf.mxu2  ;;  %v15826_v25 = vld [vmem:[#allocation54_spill] sm:$0xff] }
 0xc71   :  { %v6467_v35 = vpop.f32.mrf.mxu1  ;;  %v6183_v1 = vadd.f32 %v15827_v15, %v15826_v25 }
 0xc73   :  { %v6362_v3 = vadd.f32 %v15828_v40, %v6183_v1 }
 0xc75   :  { %v6525_v0 = vadd.f32 %v6467_v35, %v6362_v3  ;;  %v15831_v35 = vld [vmem:[#allocation56_spill] sm:$0xff] }
 0xc77   :  { %v6773_v28 = vpop.f32.mrf.mxu3  ;;  %v6682_v19 = vadd.f32 %v6624_v39, %v6525_v0  ;;  %v9280_v0 = vld [vmem:[%s14984_s5 + $0x58] sm:$0xff] }
 0xc78   :  { %v14487_v12 = vadd.f32 %v6773_v28, %v6680_v60  ;;  %v6634_v26 = vpop.f32.mrf.mxu2  ;;  %7601 = vmatpush.bf16.msrb.mxu3 %v9280_v0 }
 0xc79   :  { %v6470_v32 = vpop.f32.mrf.mxu1 }
 0xc7a   :  { %v6526_v8 = vadd.f32 %v6470_v32, %v15825_v50  ;;  %v15832_v50 = vld [vmem:[#allocation60_spill] sm:$0xff] }
 0xc7c   :  { %6894 = vmatmul.bf16.vlgmr.msra.gmra.mxu1 %v15114_v21  ;;  %8932 = vmatmul.msk.bf16.vlgmr.msrb.gmra.mxu2 %vm5984_vm2, %v13749_v9  ;;  %v6683_v38 = vadd.f32 %v6627_v44, %v6526_v8 }
 0xc7d   :  { %6815 = vmatmul.bf16.gmra.mxu3 %v15114_v21 }
 0xc7f   :  { %v6776_v30 = vpop.f32.mrf.mxu3 }
 0xc80   :  { %v14497_v2 = vadd.f32 %v6776_v30, %v6681_v42  ;;  %v6637_v60 = vpop.f32.mrf.mxu2  ;;  %v15830_v42 = vld [vmem:[#allocation73_spill] sm:$0xff] }
 0xc81   :  { %v6472_v20 = vpop.f32.mrf.mxu1  ;;  %v6188_v39 = vadd.f32 %v15831_v35, %v15830_v42 }
 0xc83   :  { %v6364_v8 = vadd.f32 %v15832_v50, %v6188_v39  ;;  %v15836_v39 = vld [vmem:[#allocation82_spill] sm:$0xff] }
 0xc85   :  { %v6527_v1 = vadd.f32 %v6472_v20, %v6364_v8  ;;  %v9276_v20 = vld [vmem:[%s14984_s5 + $0x38] sm:$0xff] }
 0xc86   :  { %7486 = vmatpush.bf16.msrb.mxu1 %v9276_v20 }
 0xc87   :  { %v6778_v27 = vpop.f32.mrf.mxu3 }
 0xc88   :  { %v14499_v62 = vadd.f32 %v6778_v27, %v6682_v19  ;;  %v6639_v30 = vpop.f32.mrf.mxu2  ;;  %v15833_v27 = vld [vmem:[#allocation66_spill] sm:$0xff] }
 0xc89   :  { %v6475_v6 = vpop.f32.mrf.mxu1 }
 0xc8a   :  { %v6528_v44 = vadd.f32 %v6475_v6, %v15829_v17  ;;  %v15834_v6 = vld [vmem:[#allocation59_spill] sm:$0xff]  ;;  %v15835_v17 = vld [vmem:[#allocation76_spill] sm:$0xff] }
 0xc8c   :  { %8899 = vmatmul.msk.bf16.gmra.mxu1 %vm5984_vm2, %v13749_v9  ;;  %8933 = vmatmul.msk.bf16.gmra.mxu2 %vm5984_vm2, %v13775_v33  ;;  %v6685_v28 = vadd.f32 %v6632_v58, %v6528_v44  ;;  %v9272_v9 = vld [vmem:[%s14984_s5 + $0x18] sm:$0xff]  ;;  %v6684_v58 = vadd.f32 %v6629_v5, %v6527_v1  ;;  %v6193_v44 = vadd.f32 %v15835_v17, %v15834_v6 }
 0xc8d   :  { %8968 = vmatmul.msk.bf16.vlgmr.msra.gmra.mxu3 %vm5984_vm2, %v13775_v33  ;;  %7539 = vmatpush.bf16.msra.mxu2 %v9272_v9 }
 0xc8f   :  { %v6781_v32 = vpop.f32.mrf.mxu3 }
 0xc90   :  { %v14511_v25 = vadd.f32 %v6781_v32, %v6683_v38  ;;  %v6642_v42 = vpop.f32.mrf.mxu2  ;;  %v6366_v32 = vadd.f32 %v15836_v39, %v6193_v44 }
 0xc91   :  { %v6477_v15 = vpop.f32.mrf.mxu1 }
 0xc92   :  { %v6529_v1 = vadd.f32 %v6477_v15, %v6366_v32  ;;  %v15838_v15 = vld [vmem:[#allocation63_spill] sm:$0xff] }
 0xc97   :  { %v6783_v40 = vpop.f32.mrf.mxu3 }
 0xc98   :  { %v14516_v3 = vadd.f32 %v6783_v40, %v6684_v58 }
 0xc99   :  { %v6480_v19 = vpop.f32.mrf.mxu1 }
 0xc9a   :  { %v6530_v38 = vadd.f32 %v6480_v19, %v15833_v27 }
 0xc9c   :  { %8900 = vmatmul.msk.bf16.gmra.mxu1 %vm5984_vm2, %v13775_v33  ;;  %8934 = vmatmul.msk.bf16.gmra.mxu2 %vm5984_vm2, %v13803_v56  ;;  %v6687_v5 = vadd.f32 %v6637_v60, %v6530_v38  ;;  %v6686_v33 = vadd.f32 %v6634_v26, %v6529_v1  ;;  %v6644_v60 = vpop.f32.mrf.mxu2  ;;  %v15839_v38 = vld [vmem:[#allocation67_spill] sm:$0xff] }
 0xc9d   :  { %8969 = vmatmul.msk.bf16.gmra.mxu3 %vm5984_vm2, %v13803_v56 }
 0xc9f   :  { %v6786_v35 = vpop.f32.mrf.mxu3 }
 0xca0   :  { %v14534_v50 = vadd.f32 %v6786_v35, %v6685_v28  ;;  %v15837_v28 = vld [vmem:[#allocation64_spill] sm:$0xff] }
 0xca1   :  { %v6482_v8 = vpop.f32.mrf.mxu1  ;;  %v6198_v26 = vadd.f32 %v15838_v15, %v15837_v28 }
 0xca3   :  { %v6368_v20 = vadd.f32 %v15839_v38, %v6198_v26 }
 0xca4   :  { %v6647_v44 = vpop.f32.mrf.mxu2 }
 0xca7   :  { %v6788_v9 = vpop.f32.mrf.mxu3 }
 0xca8   :  { %v14536_v58 = vadd.f32 %v6788_v9, %v6686_v33 }
 0xca9   :  { %v6485_v40 = vpop.f32.mrf.mxu1 }
 0xcaa   :  { %v6532_v0 = vadd.f32 %v6485_v40, %v13977_v59  ;;  %v6531_v59 = vadd.f32 %v6482_v8, %v6368_v20 }
 0xcac   :  { %8901 = vmatmul.msk.bf16.gmra.mxu1 %vm5984_vm2, %v13803_v56  ;;  %8935 = vmatmul.msk.bf16.gmra.mxu2 %vm5984_vm2, %v13830_v22  ;;  %v6689_v19 = vadd.f32 %v6642_v42, %v6532_v0  ;;  %v6688_v35 = vadd.f32 %v6639_v30, %v6531_v59  ;;  %v6649_v1 = vpop.f32.mrf.mxu2  ;;  %v9271_v59 = vld [vmem:[%s14984_s5 + $0x10] sm:$0xff] }
 0xcad   :  { %8970 = vmatmul.msk.bf16.gmra.mxu3 %vm5984_vm2, %v13830_v22  ;;  %7540 = vmatpush.bf16.msra.mxu2 %v9271_v59 }
 0xcaf   :  { %v6791_v27 = vpop.f32.mrf.mxu3 }
 0xcb0   :  { %v14548_v6 = vadd.f32 %v6791_v27, %v6687_v5  ;;  %v6203_v5 = vadd.f32 %v14106_v24, %v14108_v10  ;;  %v6213_v10 = vadd.f32 %v14174_v57, %v14185_v29 }
 0xcb1   :  { %v6487_v17 = vpop.f32.mrf.mxu1 }
 0xcb2   :  { %v6370_v30 = vadd.f32 %v14147_v11, %v6203_v5  ;;  %v6208_v11 = vadd.f32 %v14136_v43, %v14138_v7 }
 0xcb4   :  { %v6533_v40 = vadd.f32 %v6487_v17, %v6370_v30  ;;  %v6652_v0 = vpop.f32.mrf.mxu2 }
 0xcb7   :  { %v6793_v56 = vpop.f32.mrf.mxu3 }
 0xcb8   :  { %v14550_v39 = vadd.f32 %v6793_v56, %v6688_v35  ;;  %v15840_v56 = vld [vmem:[#allocation85_spill] sm:$0xff] }
 0xcb9   :  { %v6490_v32 = vpop.f32.mrf.mxu1 }
 0xcba   :  { %v6534_v42 = vadd.f32 %v6490_v32, %v14167_v53  ;;  %v6690_v53 = vadd.f32 %v6644_v60, %v6533_v40  ;;  %v6374_v60 = vadd.f32 %v14232_v61, %v6213_v10 }
 0xcbc   :  { %6914 = vmatmul.bf16.gmra.mxu1 %v15114_v21  ;;  %8936 = vmatmul.msk.bf16.gmra.mxu2 %vm5984_vm2, %v13985_v16  ;;  %v6691_v22 = vadd.f32 %v6647_v44, %v6534_v42  ;;  %v6654_v38 = vpop.f32.mrf.mxu2  ;;  %v9275_v42 = vld [vmem:[%s14984_s5 + $0x30] sm:$0xff] }
 0xcbd   :  { %7217 = vmatmul.bf16.gmra.mxu3 %v15114_v21  ;;  %7487 = vmatpush.bf16.msrb.mxu1 %v9275_v42 }
 0xcbf   :  { %v6796_v8 = vpop.f32.mrf.mxu3 }
 0xcc0   :  { %v14560_v33 = vadd.f32 %v6796_v8, %v6689_v19 }
 0xcc1   :  { %v6492_v9 = vpop.f32.mrf.mxu1 }
 0xcc7   :  { %v6798_v28 = vpop.f32.mrf.mxu3 }
 0xcc8   :  { %v14562_v15 = vadd.f32 %v6798_v28, %v6690_v53 }
 0xcc9   :  { %v6495_v26 = vpop.f32.mrf.mxu1 }
 0xcca   :  { %v6536_v27 = vadd.f32 %v6495_v26, %v14207_v55  ;;  %v6372_v55 = vadd.f32 %v14196_v52, %v6208_v11  ;;  %v9279_v52 = vld [vmem:[%s14984_s5 + $0x50] sm:$0xff] }
 0xccb   :  { %7602 = vmatpush.bf16.msrb.mxu3 %v9279_v52 }
 0xccc   :  { %8902 = vmatmul.msk.bf16.gmra.mxu1 %vm5984_vm2, %v13985_v16  ;;  %8937 = vmatmul.msk.bf16.gmra.mxu2 %vm5984_vm2, %v14011_v34  ;;  %v6693_v24 = vadd.f32 %v6652_v0, %v6536_v27  ;;  %v6535_v44 = vadd.f32 %v6492_v9, %v6372_v55 }
 0xccd   :  { %8971 = vmatmul.msk.bf16.gmra.mxu3 %vm5984_vm2, %v14011_v34 }
 0xcce   :  { %v6692_v57 = vadd.f32 %v6649_v1, %v6535_v44 }
 0xccf   :  { %v6657_v43 = vpop.f32.mrf.mxu2 }
 0xcd0   :  { %v6801_v19 = vpop.f32.mrf.mxu3 }
 0xcd1   :  { %v14577_v16 = vadd.f32 %v6801_v19, %v6691_v22  ;;  %v6497_v20 = vpop.f32.mrf.mxu1 }
 0xcd2   :  { %v6537_v17 = vadd.f32 %v6497_v20, %v6374_v60 }
 0xcd4   :  { %v6694_v35 = vadd.f32 %v6654_v38, %v6537_v17  ;;  %v15841_v38 = vld [vmem:[#allocation68_spill] sm:$0xff] }
 0xcd7   :  { %v6659_v9 = vpop.f32.mrf.mxu2 }
 0xcd8   :  { %v6803_v29 = vpop.f32.mrf.mxu3 }
 0xcd9   :  { %v14582_v7 = vadd.f32 %v6803_v29, %v6692_v57  ;;  %v6500_v61 = vpop.f32.mrf.mxu1 }
 0xcda   :  { %v6538_v32 = vadd.f32 %v6500_v61, %v15840_v56 }
 0xcdc   :  { %8903 = vmatmul.msk.bf16.gmra.mxu1 %vm5984_vm2, %v14011_v34  ;;  %8938 = vmatmul.msk.bf16.gmra.mxu2 %vm5984_vm2, %v14048_v37  ;;  %v6695_v22 = vadd.f32 %v6657_v43, %v6538_v32 }
 0xcdd   :  { %8972 = vmatmul.msk.bf16.gmra.mxu3 %vm5984_vm2, %v14048_v37 }
 0xce0   :  { %v6806_v1 = vpop.f32.mrf.mxu3 }
 0xce1   :  { %v14597_v5 = vadd.f32 %v6806_v1, %v6693_v24  ;;  %v6502_v8 = vpop.f32.mrf.mxu1 }
 0xce2   :  { %v6539_v30 = vadd.f32 %v6502_v8, %v14267_v47  ;;  %v15842_v8 = vld [vmem:[#allocation69_spill] sm:$0xff] }
 0xce4   :  { %v6696_v40 = vadd.f32 %v6659_v9, %v6539_v30 }
 0xce8   :  { %v6808_v53 = vpop.f32.mrf.mxu3 }
 0xce9   :  { %v14600_v0 = vadd.f32 %v6808_v53, %v6694_v35  ;;  %v6505_v34 = vpop.f32.mrf.mxu1 }
 0xcea   :  { %v6540_v28 = vadd.f32 %v6505_v34, %v14283_v13 }
 0xcec   :  { %8904 = vmatmul.msk.bf16.gmra.mxu1 %vm5984_vm2, %v14048_v37  ;;  %8939 = vmatmul.msk.bf16.gmra.mxu2 %vm5984_vm2, %v14075_v49 }
 0xced   :  { %8973 = vmatmul.msk.bf16.gmra.mxu3 %vm5984_vm2, %v14075_v49 }
 0xcef   :  { %v6662_v26 = vpop.f32.mrf.mxu2 }
 0xcf0   :  { %v6697_v27 = vadd.f32 %v6662_v26, %v6540_v28  ;;  %v6811_v47 = vpop.f32.mrf.mxu3  ;;  %v15843_v28 = vld [vmem:[#allocation71_spill] sm:$0xff] }
 0xcf1   :  { %v14609_v24 = vadd.f32 %v6811_v47, %v6695_v22  ;;  %v6507_v10 = vpop.f32.mrf.mxu1  ;;  %v9274_v47 = vld [vmem:[%s14984_s5 + $0x28] sm:$0xff] }
 0xcf2   :  { %v6541_v11 = vadd.f32 %v6507_v10, %v14295_v46  ;;  %7488 = vmatpush.bf16.msrb.mxu1 %v9274_v47 }
 0xcf7   :  { %v6664_v60 = vpop.f32.mrf.mxu2 }
 0xcf8   :  { %v6698_v19 = vadd.f32 %v6664_v60, %v6541_v11  ;;  %v6813_v13 = vpop.f32.mrf.mxu3 }
 0xcf9   :  { %v14612_v55 = vadd.f32 %v6813_v13, %v6696_v40  ;;  %v6895_v37 = vpop.f32.mrf.mxu1  ;;  %v15844_v13 = vld [vmem:[#allocation72_spill] sm:$0xff] }
 0xcfa   :  { %v6975_v20 = vadd.f32 %v6895_v37, %v15841_v38 }
 0xcfc   :  { %6934 = vmatmul.bf16.gmra.mxu1 %v15114_v21  ;;  %8940 = vmatmul.msk.bf16.gmra.mxu2 %vm5984_vm2, %v14301_v23 }
 0xcfd   :  { %7237 = vmatmul.bf16.gmra.mxu3 %v15114_v21 }
 0xcff   :  { %v7049_v49 = vpop.f32.mrf.mxu2 }
 0xd00   :  { %v6816_v17 = vpop.f32.mrf.mxu3  ;;  %v7129_v59 = vadd.f32 %v7049_v49, %v6975_v20 }
 0xd01   :  { %v14619_v44 = vadd.f32 %v6816_v17, %v6697_v27  ;;  %v6897_v46 = vpop.f32.mrf.mxu1  ;;  %v9278_v27 = vld [vmem:[%s14984_s5 + $0x48] sm:$0xff] }
 0xd02   :  { %v6976_v35 = vadd.f32 %v6897_v46, %v14330_v45  ;;  %7603 = vmatpush.bf16.msrb.mxu3 %v9278_v27  ;;  %v15845_v46 = vld [vmem:[#allocation74_spill] sm:$0xff] }
 0xd07   :  { %v7051_v57 = vpop.f32.mrf.mxu2 }
 0xd08   :  { %v6818_v29 = vpop.f32.mrf.mxu3  ;;  %v7130_v43 = vadd.f32 %v7051_v57, %v6976_v35 }
 0xd09   :  { %v14622_v61 = vadd.f32 %v6818_v29, %v6698_v19  ;;  %v6900_v52 = vpop.f32.mrf.mxu1 }
 0xd0a   :  { %v6977_v56 = vadd.f32 %v6900_v52, %v14349_v18  ;;  %v9270_v18 = vld [vmem:[%s14984_s5 + $0x8] sm:$0xff] }
 0xd0b   :  { %7541 = vmatpush.bf16.msra.mxu2 %v9270_v18 }
 0xd0c   :  { %8905 = vmatmul.msk.bf16.gmra.mxu1 %vm5984_vm2, %v14301_v23  ;;  %8941 = vmatmul.msk.bf16.gmra.mxu2 %vm5984_vm2, %v14364_v36 }
 0xd0d   :  { %8974 = vmatmul.msk.bf16.gmra.mxu3 %vm5984_vm2, %v14364_v36 }
 0xd0f   :  { %v7054_v32 = vpop.f32.mrf.mxu2 }
 0xd10   :  { %v7131_v42 = vadd.f32 %v7054_v32, %v6977_v56  ;;  %v7203_v45 = vpop.f32.mrf.mxu3 }
 0xd11   :  { %v14631_v22 = vadd.f32 %v7203_v45, %v7129_v59  ;;  %v6902_v1 = vpop.f32.mrf.mxu1 }
 0xd12   :  { %v6978_v30 = vadd.f32 %v6902_v1, %v15842_v8 }
 0xd17   :  { %v7056_v9 = vpop.f32.mrf.mxu2 }
 0xd18   :  { %v7132_v23 = vadd.f32 %v7056_v9, %v6978_v30  ;;  %v7205_v40 = vpop.f32.mrf.mxu3 }
 0xd19   :  { %v14637_v53 = vadd.f32 %v7205_v40, %v7130_v43  ;;  %v6905_v34 = vpop.f32.mrf.mxu1 }
 0xd1a   :  { %v6979_v26 = vadd.f32 %v6905_v34, %v15843_v28  ;;  %v14681_v28 = vld [vmem:[%s14985_s4] ss:$0 sm:$0xff] }
 0xd1c   :  { %8906 = vmatmul.msk.bf16.gmra.mxu1 %vm5984_vm2, %v14364_v36  ;;  %8942 = vmatmul.msk.bf16.gmra.mxu2 %vm5984_vm2, %v14429_v48 }
 0xd1d   :  { %8975 = vmatmul.msk.bf16.gmra.mxu3 %vm5984_vm2, %v14429_v48 }
 0xd1f   :  { %v7059_v10 = vpop.f32.mrf.mxu2 }
 0xd20   :  { %v7133_v11 = vadd.f32 %v7059_v10, %v6979_v26  ;;  %v7208_v60 = vpop.f32.mrf.mxu3 }
 0xd21   :  { %v14652_v36 = vadd.f32 %v7208_v60, %v7131_v42  ;;  %v6907_v19 = vpop.f32.mrf.mxu1 }
 0xd22   :  { %v6980_v37 = vadd.f32 %v6907_v19, %v15844_v13 }
 0xd27   :  { %v7061_v38 = vpop.f32.mrf.mxu2 }
 0xd28   :  { %v7134_v20 = vadd.f32 %v7061_v38, %v6980_v37  ;;  %v7210_v49 = vpop.f32.mrf.mxu3 }
 0xd29   :  { %v14655_v17 = vadd.f32 %v7210_v49, %v7132_v23  ;;  %v6910_v59 = vpop.f32.mrf.mxu1 }
 0xd2a   :  { %v6981_v35 = vadd.f32 %v6910_v59, %v15845_v46 }
 0xd2c   :  { %8907 = vmatmul.msk.bf16.gmra.mxu1 %vm5984_vm2, %v14429_v48  ;;  %8943 = vmatmul.msk.bf16.gmra.mxu2 %vm5984_vm2, %v14473_v54 }
 0xd2d   :  { %8976 = vmatmul.msk.bf16.gmra.mxu3 %vm5984_vm2, %v14473_v54 }
 0xd2f   :  { %v7064_v57 = vpop.f32.mrf.mxu2 }
 0xd30   :  { %v7135_v29 = vadd.f32 %v7064_v57, %v6981_v35  ;;  %v7213_v43 = vpop.f32.mrf.mxu3  ;;  %v7320_v57 = vadd.f32 %v14681_v28, %v14637_v53 }
 0xd31   :  { %v14664_v52 = vadd.f32 %v7213_v43, %v7133_v11  ;;  %v6912_v56 = vpop.f32.mrf.mxu1  ;;  %v7319_v11 = vadd.f32 %v14681_v28, %v14631_v22  ;;  %v9273_v43 = vld [vmem:[%s14984_s5 + $0x20] sm:$0xff] }
 0xd32   :  { %v6982_v32 = vadd.f32 %v6912_v56, %v14426_v51  ;;  %v7352_v56 = vmax.f32 %v7320_v57, 0.0  ;;  %7489 = vmatpush.bf16.msrb.mxu1 %v9273_v43 }
 0xd33   :  { %v7351_v37 = vmax.f32 %v7319_v11, 0.0 }
 0xd37   :  { %v7066_v42 = vpop.f32.mrf.mxu2 }
 0xd38   :  { %v7136_v45 = vadd.f32 %v7066_v42, %v6982_v32  ;;  %v7215_v1 = vpop.f32.mrf.mxu3 }
 0xd39   :  { %v14667_v8 = vadd.f32 %v7215_v1, %v7134_v20  ;;  %v6915_v48 = vpop.f32.mrf.mxu1 }
 0xd3a   :  { %v6983_v26 = vadd.f32 %v6915_v48, %v14446_v4  ;;  %v9269_v4 = vld [vmem:[%s14984_s5] sm:$0xff] }
 0xd3b   :  { %7542 = vmatpush.bf16.msra.mxu2 %v9269_v4  ;;  %v9277_v48 = vld [vmem:[%s14984_s5 + $0x40] sm:$0xff] }
 0xd3c   :  { %6954 = vmatmul.bf16.gmra.mxu1 %v15114_v21  ;;  %7108 = vmatmul.bf16.gmra.mxu2 %v15114_v21 }
 0xd3d   :  { %7257 = vmatmul.bf16.gmra.mxu3 %v15114_v21 }
 0xd3e   :  { %7604 = vmatpush.bf16.msrb.mxu3 %v9277_v48 }
 0xd3f   :  { %v7069_v54 = vpop.f32.mrf.mxu2 }
 0xd40   :  { %v7218_v30 = vpop.f32.mrf.mxu3  ;;  %v7137_v27 = vadd.f32 %v7069_v54, %v6983_v26 }
 0xd41   :  { %v14672_v18 = vadd.f32 %v7218_v30, %v7135_v29  ;;  %v6917_v9 = vpop.f32.mrf.mxu1  ;;  %v7321_v30 = vadd.f32 %v14681_v28, %v14652_v36 }
 0xd42   :  { %v6984_v38 = vadd.f32 %v6917_v9, %v14454_v41 }
 0xd47   :  { %v7071_v23 = vpop.f32.mrf.mxu2 }
 0xd48   :  { %v7220_v40 = vpop.f32.mrf.mxu3  ;;  %v7138_v49 = vadd.f32 %v7071_v23, %v6984_v38 }
 0xd49   :  { %v14674_v51 = vadd.f32 %v7220_v40, %v7136_v45  ;;  %v6920_v34 = vpop.f32.mrf.mxu1  ;;  %v7353_v40 = vmax.f32 %v7321_v30, 0.0 }
 0xd4a   :  { %v6985_v32 = vadd.f32 %v6920_v34, %v14467_v31 }
 0xd4c   :  { %6959 = vmatmul.bf16.gmra.mxu1 %v15114_v21  ;;  %7113 = vmatmul.bf16.gmra.mxu2 %v15114_v21 }
 0xd4d   :  { %7262 = vmatmul.bf16.gmra.mxu3 %v15114_v21 }
 0xd4f   :  { %v7074_v47 = vpop.f32.mrf.mxu2 }
 0xd50   :  { %v7223_v10 = vpop.f32.mrf.mxu3  ;;  %v7139_v53 = vadd.f32 %v7074_v47, %v6985_v32 }
 0xd51   :  { %v7291_v60 = vadd.f32 %v7223_v10, %v7137_v27  ;;  %v6922_v19 = vpop.f32.mrf.mxu1 }
 0xd52   :  { %v6986_v34 = vadd.f32 %v6922_v19, %v14470_v63 }
 0xd53   :  { %v7327_v13 = vadd.f32 %v14681_v28, %v7291_v60  ;;  %v7322_v60 = vadd.f32 %v14681_v28, %v14655_v17  ;;  %v7323_v17 = vadd.f32 %v14681_v28, %v14664_v52 }
 0xd55   :  { %v7359_v20 = vmax.f32 %v7327_v13, 0.0  ;;  %v7355_v32 = vmax.f32 %v7323_v17, 0.0  ;;  %v7326_v17 = vadd.f32 %v14681_v28, %v14674_v51  ;;  %v9288_v51 = vld [vmem:[%s14984_s5 + $0x98] sm:$0xff] }
 0xd56   :  { %7747 = vmatpush.bf16.msrb.mxu2 %v9288_v51 }
 0xd57   :  { %v7383_v59 = vmax.f32 %v7351_v37, %v7359_v20  ;;  %v7076_v46 = vpop.f32.mrf.mxu2  ;;  %v7354_v20 = vmax.f32 %v7322_v60, 0.0 }
 0xd58   :  { %v7225_v35 = vpop.f32.mrf.mxu3  ;;  %v7140_v27 = vadd.f32 %v7076_v46, %v6986_v34 }
 0xd59   :  { %v7292_v22 = vadd.f32 %v7225_v35, %v7138_v49  ;;  %v6925_v29 = vpop.f32.mrf.mxu1 }
 0xd5a   :  { %v6987_v63 = vadd.f32 %v6925_v29, %v14484_v14 }
 0xd5b   :  { %v7328_v41 = vadd.f32 %v14681_v28, %v7292_v22 }
 0xd5c   :  { %6964 = vmatmul.bf16.gmra.mxu1 %v15114_v21  ;;  %7118 = vmatmul.bf16.gmra.mxu2 %v15114_v21 }
 0xd5d   :  { %v7360_v42 = vmax.f32 %v7328_v41, 0.0  ;;  %7267 = vmatmul.bf16.gmra.mxu3 %v15114_v21 }
 0xd5f   :  { %v7384_v45 = vmax.f32 %v7352_v56, %v7360_v42  ;;  %v7079_v1 = vpop.f32.mrf.mxu2 }
 0xd60   :  { %v7228_v54 = vpop.f32.mrf.mxu3  ;;  %v7141_v49 = vadd.f32 %v7079_v1, %v6987_v63 }
 0xd61   :  { %v7293_v9 = vadd.f32 %v7228_v54, %v7139_v53  ;;  %v6927_v23 = vpop.f32.mrf.mxu1 }
 0xd62   :  { %v6988_v14 = vadd.f32 %v6927_v23, %v14487_v12 }
 0xd63   :  { %v7329_v31 = vadd.f32 %v14681_v28, %v7293_v9 }
 0xd65   :  { %v7361_v26 = vmax.f32 %v7329_v31, 0.0 }
 0xd67   :  { %v7385_v47 = vmax.f32 %v7353_v40, %v7361_v26  ;;  %v7081_v10 = vpop.f32.mrf.mxu2 }
 0xd68   :  { %v7230_v11 = vpop.f32.mrf.mxu3  ;;  %v7142_v1 = vadd.f32 %v7081_v10, %v6988_v14 }
 0xd69   :  { %v7399_v13 = vmax.f32 %v7383_v59, %v7385_v47  ;;  %v7294_v37 = vadd.f32 %v7230_v11, %v7140_v27  ;;  %v6930_v38 = vpop.f32.mrf.mxu1 }
 0xd6a   :  { %v6989_v23 = vadd.f32 %v6930_v38, %v14497_v2 }
 0xd6b   :  { %v7330_v36 = vadd.f32 %v14681_v28, %v7294_v37  ;;  %v7407_v35 = vpack.c.bf16 %v7399_v13, %v7399_v13 }
 0xd6c   :  { %6969 = vmatmul.bf16.gmra.mxu1 %v15114_v21  ;;  %7123 = vmatmul.bf16.gmra.mxu2 %v15114_v21 }
 0xd6d   :  { %v7362_v19 = vmax.f32 %v7330_v36, 0.0  ;;  %7272 = vmatmul.bf16.gmra.mxu3 %v15114_v21  ;;  %v7423_v42 = vunpack.c.l.b16 %v7407_v35 }
 0xd6f   :  { %v7386_v46 = vmax.f32 %v7354_v20, %v7362_v19  ;;  %v7084_v4 = vpop.f32.mrf.mxu2 }
 0xd70   :  { %v7233_v59 = vpop.f32.mrf.mxu3  ;;  %v7143_v27 = vadd.f32 %v7084_v4, %v6989_v23 }
 0xd71   :  { %v7400_v57 = vmax.f32 %v7384_v45, %v7386_v46  ;;  %v7295_v22 = vadd.f32 %v7233_v59, %v7141_v49  ;;  %v6932_v43 = vpop.f32.mrf.mxu1  ;;  %v7324_v45 = vadd.f32 %v14681_v28, %v14667_v8 }
 0xd72   :  { %v6990_v2 = vadd.f32 %v6932_v43, %v14499_v62  ;;  %v7358_v62 = vmax.f32 %v7326_v17, 0.0  ;;  %v9284_v43 = vld [vmem:[%s14984_s5 + $0x78] sm:$0xff] }
 0xd73   :  { %v7408_v41 = vpack.c.bf16 %v7400_v57, %v7400_v57  ;;  %v7331_v56 = vadd.f32 %v14681_v28, %v7295_v22  ;;  %v7356_v12 = vmax.f32 %v7324_v45, 0.0  ;;  %7674 = vmatpush.bf16.msra.mxu1 %v9284_v43 }
 0xd75   :  { %v7424_v29 = vunpack.c.l.b16 %v7408_v41  ;;  %v7363_v53 = vmax.f32 %v7331_v56, 0.0 }
 0xd77   :  { %v7387_v48 = vmax.f32 %v7355_v32, %v7363_v53  ;;  %v7086_v54 = vpop.f32.mrf.mxu2  ;;  %v14720_v30 = vpack.c.b16 %v7424_v29, %v7423_v42 }
 0xd78   :  { %v7235_v52 = vpop.f32.mrf.mxu3  ;;  %v7144_v63 = vadd.f32 %v7086_v54, %v6990_v2  ;;  %v9287_v54 = vld [vmem:[%s14984_s5 + $0x90] sm:$0xff]  ;;  %v9290_v2 = vld [vmem:[%s14984_s5 + $0xa8] sm:$0xff] }
 0xd79   :  { %v7296_v9 = vadd.f32 %v7235_v52, %v7142_v1  ;;  %v6935_v31 = vpop.f32.mrf.mxu1  ;;  %7748 = vmatpush.bf16.msrb.mxu2 %v9287_v54 }
 0xd7a   :  { %v6991_v40 = vadd.f32 %v6935_v31, %v14511_v25  ;;  %v7325_v25 = vadd.f32 %v14681_v28, %v14672_v18  ;;  %v9282_v31 = vld [vmem:[%s14984_s5 + $0x68] sm:$0xff] }
 0xd7b   :  { %v7332_v34 = vadd.f32 %v14681_v28, %v7296_v9 }
 0xd7c   :  { %7490 = vmatmul.bf16.vlgmr.msrb.gmra.mxu1 %v15114_v21  ;;  %7543 = vmatmul.bf16.vlgmr.msra.gmra.mxu2 %v15114_v21  ;;  %v7357_v20 = vmax.f32 %v7325_v25, 0.0 }
 0xd7d   :  { %v7364_v26 = vmax.f32 %v7332_v34, 0.0  ;;  %7277 = vmatmul.bf16.gmra.mxu3 %v15114_v21 }
 0xd7f   :  { %v7388_v47 = vmax.f32 %v7356_v12, %v7364_v26  ;;  %v7089_v10 = vpop.f32.mrf.mxu2 }
 0xd80   :  { %v7145_v8 = vadd.f32 %v7089_v10, %v6991_v40  ;;  %v7238_v11 = vpop.f32.mrf.mxu3  ;;  %v9281_v10 = vld [vmem:[%s14984_s5 + $0x60] sm:$0xff] }
 0xd81   :  { %v7297_v60 = vadd.f32 %v7238_v11, %v7143_v27  ;;  %v6937_v13 = vpop.f32.mrf.mxu1  ;;  %v9292_v11 = vld [vmem:[%s14984_s5 + $0xb8] sm:$0xff] }
 0xd82   :  { %v6992_v37 = vadd.f32 %v6937_v13, %v14516_v3  ;;  %7817 = vmatpush.bf16.msra.mxu3 %v9292_v11 }
 0xd83   :  { %v7333_v36 = vadd.f32 %v14681_v28, %v7297_v60 }
 0xd85   :  { %v7365_v38 = vmax.f32 %v7333_v36, 0.0 }
 0xd87   :  { %v7389_v19 = vmax.f32 %v7357_v20, %v7365_v38  ;;  %v7091_v49 = vpop.f32.mrf.mxu2  ;;  %v9291_v20 = vld [vmem:[%s14984_s5 + $0xb0] sm:$0xff] }
 0xd88   :  { %v7146_v46 = vadd.f32 %v7091_v49, %v6992_v37  ;;  %v7240_v4 = vpop.f32.mrf.mxu3  ;;  %7818 = vmatpush.bf16.msra.mxu3 %v9291_v20 }
 0xd89   :  { %v7401_v59 = vmax.f32 %v7387_v48, %v7389_v19  ;;  %v7298_v18 = vadd.f32 %v7240_v4, %v7144_v63  ;;  %v6940_v35 = vpop.f32.mrf.mxu1  ;;  %v9283_v48 = vld [vmem:[%s14984_s5 + $0x70] sm:$0xff] }
 0xd8a   :  { %v6993_v57 = vadd.f32 %v6940_v35, %v14534_v50  ;;  %7675 = vmatpush.bf16.msra.mxu1 %v9283_v48 }
 0xd8b   :  { %v7334_v3 = vadd.f32 %v14681_v28, %v7298_v18  ;;  %v7409_v42 = vpack.c.bf16 %v7401_v59, %v7401_v59 }
 0xd8c   :  { %7495 = vmatmul.bf16.gmra.mxu1 %v15114_v21  ;;  %7548 = vmatmul.bf16.gmra.mxu2 %v15114_v21 }
 0xd8d   :  { %v7366_v22 = vmax.f32 %v7334_v3, 0.0  ;;  %7605 = vmatmul.bf16.vlgmr.msrb.gmra.mxu3 %v15114_v21  ;;  %v7425_v45 = vunpack.c.l.b16 %v7409_v42 }
 0xd8e   :  { %7676 = vmatpush.bf16.msra.mxu1 %v9282_v31  ;;  %7819 = vmatpush.bf16.msra.mxu3 %v9290_v2 }
 0xd8f   :  { %v7390_v41 = vmax.f32 %v7358_v62, %v7366_v22  ;;  %v7094_v50 = vpop.f32.mrf.mxu2 }
 0xd90   :  { %v7147_v56 = vadd.f32 %v7094_v50, %v6993_v57  ;;  %v7243_v32 = vpop.f32.mrf.mxu3 }
 0xd91   :  { %v7402_v14 = vmax.f32 %v7388_v47, %v7390_v41  ;;  %v14748_v29 = vadd.f32 %v7243_v32, %v7145_v8  ;;  %v6942_v53 = vpop.f32.mrf.mxu1  ;;  %v9285_v8 = vld [vmem:[%s14984_s5 + $0x80] sm:$0xff] }
 0xd92   :  { %v6994_v1 = vadd.f32 %v6942_v53, %v14536_v58  ;;  %v9286_v58 = vld [vmem:[%s14984_s5 + $0x88] sm:$0xff]  ;;  %7677 = vmatpush.bf16.msra.mxu1 %v9281_v10 }
 0xd93   :  { %v7410_v52 = vpack.c.bf16 %v7402_v14, %v7402_v14  ;;  %7749 = vmatpush.bf16.msrb.mxu2 %v9286_v58 }
 0xd95   :  { %v7426_v9 = vunpack.c.l.b16 %v7410_v52 }
 0xd97   :  { %v7096_v40 = vpop.f32.mrf.mxu2  ;;  %v7432_v34 = vpack.c.b16 %v7426_v9, %v7425_v45  ;;  %7750 = vmatpush.bf16.msrb.mxu2 %v9285_v8 }
 0xd98   :  { %v7148_v12 = vadd.f32 %v7096_v40, %v6994_v1  ;;  %v7245_v23 = vpop.f32.mrf.mxu3  ;;  %v7335_v1 = vadd.f32 %v14681_v28, %v14748_v29 }
 0xd99   :  { %v14763_v26 = vadd.f32 %v7245_v23, %v7146_v46  ;;  %v6945_v27 = vpop.f32.mrf.mxu1 }
 0xd9a   :  { %v6995_v47 = vadd.f32 %v6945_v27, %v14548_v6  ;;  %v7367_v45 = vmax.f32 %v7335_v1, 0.0  ;;  %v9296_v27 = vld [vmem:[%s14984_s5 + $0xd8] sm:$0xff] }
 0xd9b   :  { %7887 = vmatpush.bf16.msrb.mxu1 %v9296_v27  ;;  %v9298_v27 = vld [vmem:[%s14984_s5 + $0xe8] sm:$0xff] }
 0xd9c   :  { %9001 = vmatmul.msk.bf16.gmra.mxu1 %vm5984_vm2, %v14720_v30  ;;  %7553 = vmatmul.bf16.gmra.mxu2 %v15114_v21 }
 0xd9d   :  { %7610 = vmatmul.bf16.gmra.mxu3 %v15114_v21 }
 0xd9f   :  { %v7099_v6 = vpop.f32.mrf.mxu2 }
 0xda0   :  { %v7149_v25 = vadd.f32 %v7099_v6, %v6995_v47  ;;  %v7248_v60 = vpop.f32.mrf.mxu3 }
 0xda1   :  { %v14779_v13 = vadd.f32 %v7248_v60, %v7147_v56  ;;  %v6947_v37 = vpop.f32.mrf.mxu1  ;;  %v9304_v60 = vld [vmem:[%s14984_s5 + $0x118] sm:$0xff] }
 0xda2   :  { %v14782_v36 = vadd.f32 %v6947_v37, %v14550_v39  ;;  %v9289_v39 = vld [vmem:[%s14984_s5 + $0xa0] sm:$0xff] }
 0xda3   :  { %7820 = vmatpush.bf16.msra.mxu3 %v9289_v39  ;;  %v7337_v20 = vadd.f32 %v14681_v28, %v14779_v13 }
 0xda7   :  { %v14790_v38 = vpop.f32.mrf.mxu2  ;;  %8027 = vmatpush.bf16.msrb.mxu3 %v9304_v60 }
 0xda8   :  { %v7250_v63 = vpop.f32.mrf.mxu3 }
 0xda9   :  { %v14792_v19 = vadd.f32 %v7250_v63, %v7148_v12  ;;  %v6950_v49 = vpop.f32.mrf.mxu1  ;;  %v7336_v12 = vadd.f32 %v14681_v28, %v14763_v26  ;;  %v9295_v26 = vld [vmem:[%s14984_s5 + $0xd0] sm:$0xff]  ;;  %v9294_v63 = vld [vmem:[%s14984_s5 + $0xc8] sm:$0xff] }
 0xdaa   :  { %v6997_v46 = vadd.f32 %v6950_v49, %v14560_v33  ;;  %7888 = vmatpush.bf16.msrb.mxu1 %v9295_v26  ;;  %v9302_v26 = vld [vmem:[%s14984_s5 + $0x108] sm:$0xff] }
 0xdab   :  { %v7368_v47 = vmax.f32 %v7336_v12, 0.0 }
 0xdac   :  { %9002 = vmatmul.msk.bf16.gmra.mxu1 %vm5984_vm2, %v7432_v34  ;;  %9019 = vmatmul.msk.bf16.gmra.mxu2 %vm5984_vm2, %v14720_v30 }
 0xdad   :  { %9044 = vmatmul.msk.bf16.gmra.mxu3 %vm5984_vm2, %v7432_v34 }
 0xdae   :  { %7889 = vmatpush.bf16.msrb.mxu1 %v9294_v63 }
 0xdaf   :  { %v7104_v4 = vpop.f32.mrf.mxu2 }
 0xdb0   :  { %v7151_v17 = vadd.f32 %v7104_v4, %v6997_v46  ;;  %v7253_v59 = vpop.f32.mrf.mxu3  ;;  %v7369_v46 = vmax.f32 %v7337_v20, 0.0 }
 0xdb1   :  { %v14802_v18 = vadd.f32 %v7253_v59, %v7149_v25  ;;  %v6952_v35 = vpop.f32.mrf.mxu1 }
 0xdb2   :  { %v14805_v33 = vadd.f32 %v6952_v35, %v14562_v15 }
 0xdb7   :  { %v14807_v57 = vpop.f32.mrf.mxu2 }
 0xdb8   :  { %v14809_v3 = vpop.f32.mrf.mxu3 }
 0xdb9   :  { %v6955_v62 = vpop.f32.mrf.mxu1 }
 0xdba   :  { %v6999_v32 = vadd.f32 %v6955_v62, %v14577_v16  ;;  %v9300_v16 = vld [vmem:[%s14984_s5 + $0xf8] sm:$0xff] }
 0xdbb   :  { %7957 = vmatpush.bf16.msra.mxu2 %v9300_v16 }
 0xdbc   :  { %7678 = vmatmul.bf16.vlgmr.msra.gmra.mxu1 %v15114_v21  ;;  %9095 = vmatmul.msk.bf16.vlgmr.msrb.gmra.mxu2 %vm5984_vm2, %v14720_v30 }
 0xdbd   :  { %7620 = vmatmul.bf16.gmra.mxu3 %v15114_v21 }
 0xdbf   :  { %v7109_v22 = vpop.f32.mrf.mxu2 }
 0xdc0   :  { %v7258_v43 = vpop.f32.mrf.mxu3  ;;  %v7153_v42 = vadd.f32 %v7109_v22, %v6999_v32  ;;  %v7338_v22 = vadd.f32 %v14681_v28, %v14792_v19  ;;  %v7339_v19 = vadd.f32 %v14681_v28, %v14802_v18  ;;  %v9303_v18 = vld [vmem:[%s14984_s5 + $0x110] sm:$0xff] }
 0xdc1   :  { %v14815_v51 = vadd.f32 %v7258_v43, %v7151_v17  ;;  %v6957_v41 = vpop.f32.mrf.mxu1  ;;  %v9293_v17 = vld [vmem:[%s14984_s5 + $0xc0] sm:$0xff]  ;;  %8028 = vmatpush.bf16.msrb.mxu3 %v9303_v18 }
 0xdc2   :  { %v7000_v9 = vadd.f32 %v6957_v41, %v14582_v7  ;;  %7890 = vmatpush.bf16.msrb.mxu1 %v9293_v17  ;;  %v7152_v17 = vadd.f32 %v14807_v57, %v14805_v33  ;;  %v9301_v57 = vld [vmem:[%s14984_s5 + $0x100] sm:$0xff] }
 0xdc5   :  { %8029 = vmatpush.bf16.msrb.mxu3 %v9302_v26 }
 0xdc7   :  { %v7111_v50 = vpop.f32.mrf.mxu2 }
 0xdc8   :  { %v14817_v15 = vpop.f32.mrf.mxu3  ;;  %v7154_v31 = vadd.f32 %v7111_v50, %v7000_v9 }
 0xdc9   :  { %v6960_v56 = vpop.f32.mrf.mxu1  ;;  %8030 = vmatpush.bf16.msrb.mxu3 %v9301_v57 }
 0xdca   :  { %v7001_v10 = vadd.f32 %v6960_v56, %v14597_v5 }
 0xdcc   :  { %9069 = vmatmul.msk.bf16.gmra.mxu1 %vm5984_vm2, %v14720_v30  ;;  %9096 = vmatmul.msk.bf16.gmra.mxu2 %vm5984_vm2, %v7432_v34 }
 0xdcd   :  { %9123 = vmatmul.msk.bf16.vlgmr.msra.gmra.mxu3 %vm5984_vm2, %v7432_v34 }
 0xdcf   :  { %v7114_v14 = vpop.f32.mrf.mxu2 }
 0xdd0   :  { %v7263_v53 = vpop.f32.mrf.mxu3  ;;  %v7155_v11 = vadd.f32 %v7114_v14, %v7001_v10  ;;  %v9299_v14 = vld [vmem:[%s14984_s5 + $0xf0] sm:$0xff] }
 0xdd1   :  { %v7307_v48 = vadd.f32 %v7263_v53, %v7153_v42  ;;  %v6962_v54 = vpop.f32.mrf.mxu1  ;;  %7958 = vmatpush.bf16.msra.mxu2 %v9299_v14 }
 0xdd2   :  { %v7002_v39 = vadd.f32 %v6962_v54, %v14600_v0  ;;  %v7370_v0 = vmax.f32 %v7338_v22, 0.0 }
 0xdd3   :  { %v7343_v52 = vadd.f32 %v14681_v28, %v7307_v48 }
 0xdd5   :  { %v7375_v30 = vmax.f32 %v7343_v52, 0.0  ;;  %7959 = vmatpush.bf16.msra.mxu2 %v9298_v27 }
 0xdd7   :  { %v7391_v58 = vmax.f32 %v7367_v45, %v7375_v30  ;;  %v7116_v40 = vpop.f32.mrf.mxu2 }
 0xdd8   :  { %v7265_v34 = vpop.f32.mrf.mxu3  ;;  %v7156_v13 = vadd.f32 %v7116_v40, %v7002_v39  ;;  %v7371_v40 = vmax.f32 %v7339_v19, 0.0 }
 0xdd9   :  { %v7308_v29 = vadd.f32 %v7265_v34, %v7154_v31  ;;  %v6965_v23 = vpop.f32.mrf.mxu1 }
 0xdda   :  { %v7003_v32 = vadd.f32 %v6965_v23, %v14609_v24  ;;  %v7150_v24 = vadd.f32 %v14790_v38, %v14782_v36 }
 0xddb   :  { %v7344_v7 = vadd.f32 %v14681_v28, %v7308_v29 }
 0xddc   :  { %7688 = vmatmul.bf16.gmra.mxu1 %v15114_v21  ;;  %v7304_v16 = vadd.f32 %v14809_v3, %v7150_v24 }
 0xddd   :  { %v7376_v8 = vmax.f32 %v7344_v7, 0.0  ;;  %7826 = vmatmul.bf16.gmra.mxu3 %v15114_v21 }
 0xddf   :  { %v7392_v6 = vmax.f32 %v7368_v47, %v7376_v8  ;;  %v7119_v25 = vpop.f32.mrf.mxu2 }
 0xde0   :  { %v7268_v37 = vpop.f32.mrf.mxu3  ;;  %v7157_v53 = vadd.f32 %v7119_v25, %v7003_v32 }
 0xde1   :  { %v7309_v5 = vadd.f32 %v7268_v37, %v7155_v11  ;;  %v6967_v2 = vpop.f32.mrf.mxu1 }
 0xde2   :  { %v7004_v12 = vadd.f32 %v6967_v2, %v14612_v55  ;;  %v7340_v55 = vadd.f32 %v14681_v28, %v7304_v16 }
 0xde3   :  { %v7345_v49 = vadd.f32 %v14681_v28, %v7309_v5 }
 0xde5   :  { %v7377_v4 = vmax.f32 %v7345_v49, 0.0  ;;  %v7341_v49 = vadd.f32 %v14681_v28, %v14815_v51 }
 0xde7   :  { %v7393_v59 = vmax.f32 %v7369_v46, %v7377_v4  ;;  %v7121_v35 = vpop.f32.mrf.mxu2  ;;  %v9297_v4 = vld [vmem:[%s14984_s5 + $0xe0] sm:$0xff] }
 0xde8   :  { %v7270_v62 = vpop.f32.mrf.mxu3  ;;  %v7158_v36 = vadd.f32 %v7121_v35, %v7004_v12  ;;  %7960 = vmatpush.bf16.msra.mxu2 %v9297_v4 }
 0xde9   :  { %v7403_v43 = vmax.f32 %v7391_v58, %v7393_v59  ;;  %v7310_v41 = vadd.f32 %v7270_v62, %v7156_v13  ;;  %v6970_v50 = vpop.f32.mrf.mxu1  ;;  %v7373_v13 = vmax.f32 %v7341_v49, 0.0  ;;  %v7306_v59 = vadd.f32 %v14817_v15, %v7152_v17 }
 0xdea   :  { %v7005_v25 = vadd.f32 %v6970_v50, %v14619_v44 }
 0xdeb   :  { %v7346_v56 = vadd.f32 %v14681_v28, %v7310_v41  ;;  %v7411_v52 = vpack.c.bf16 %v7403_v43, %v7403_v43  ;;  %v7342_v50 = vadd.f32 %v14681_v28, %v7306_v59 }
 0xded   :  { %v7378_v42 = vmax.f32 %v7346_v56, 0.0  ;;  %v7427_v34 = vunpack.c.l.b16 %v7411_v52 }
 0xdef   :  { %v7394_v1 = vmax.f32 %v7370_v0, %v7378_v42  ;;  %v7124_v48 = vpop.f32.mrf.mxu2 }
 0xdf0   :  { %v7273_v54 = vpop.f32.mrf.mxu3  ;;  %v7159_v37 = vadd.f32 %v7124_v48, %v7005_v25 }
 0xdf1   :  { %v7404_v45 = vmax.f32 %v7392_v6, %v7394_v1  ;;  %v7311_v9 = vadd.f32 %v7273_v54, %v7157_v53  ;;  %v6972_v30 = vpop.f32.mrf.mxu1  ;;  %v7372_v6 = vmax.f32 %v7340_v55, 0.0 }
 0xdf2   :  { %v7006_v35 = vadd.f32 %v6972_v30, %v14622_v61  ;;  %v7374_v61 = vmax.f32 %v7342_v50, 0.0 }
 0xdf3   :  { %v7412_v31 = vpack.c.bf16 %v7404_v45, %v7404_v45  ;;  %v7347_v58 = vadd.f32 %v14681_v28, %v7311_v9 }
 0xdf5   :  { %v7428_v29 = vunpack.c.l.b16 %v7412_v31  ;;  %v7379_v23 = vmax.f32 %v7347_v58, 0.0 }
 0xdf7   :  { %v7395_v38 = vmax.f32 %v7371_v40, %v7379_v23  ;;  %v7126_v7 = vpop.f32.mrf.mxu2  ;;  %v14876_v47 = vpack.c.b16 %v7428_v29, %v7427_v34 }
 0xdf8   :  { %v7275_v3 = vpop.f32.mrf.mxu3  ;;  %v7160_v22 = vadd.f32 %v7126_v7, %v7006_v35 }
 0xdf9   :  { %v7312_v10 = vadd.f32 %v7275_v3, %v7158_v36  ;;  %9070 = vmatmul.msk.bf16.gmra.mxu1 %vm5984_vm2, %v14876_v47  ;;  %9097 = vmatmul.msk.bf16.gmra.mxu2 %vm5984_vm2, %v14876_v47  ;;  %v7491_v8 = vpop.f32.mrf.mxu1 }
 0xdfb   :  { %v7348_v11 = vadd.f32 %v14681_v28, %v7312_v10 }
 0xdfd   :  { %v7380_v60 = vmax.f32 %v7348_v11, 0.0 }
 0xdff   :  { %v7396_v20 = vmax.f32 %v7372_v6, %v7380_v60  ;;  %v7544_v5 = vpop.f32.mrf.mxu2 }
 0xe00   :  { %v7278_v2 = vpop.f32.mrf.mxu3  ;;  %v7545_v63 = vadd.f32 %v7544_v5, %v7491_v8 }
 0xe01   :  { %v7313_v46 = vadd.f32 %v7278_v2, %v7159_v37  ;;  %v7493_v39 = vpop.f32.mrf.mxu1 }
 0xe03   :  { %v7349_v44 = vadd.f32 %v14681_v28, %v7313_v46 }
 0xe05   :  { %v7381_v62 = vmax.f32 %v7349_v44, 0.0 }
 0xe07   :  { %v7397_v51 = vmax.f32 %v7373_v13, %v7381_v62  ;;  %v7546_v43 = vpop.f32.mrf.mxu2 }
 0xe08   :  { %v7280_v41 = vpop.f32.mrf.mxu3  ;;  %v7547_v24 = vadd.f32 %v7546_v43, %v7493_v39 }
 0xe09   :  { %v7405_v56 = vmax.f32 %v7395_v38, %v7397_v51  ;;  %v7314_v0 = vadd.f32 %v7280_v41, %v7160_v22  ;;  %7891 = vmatmul.bf16.vlgmr.msrb.gmra.mxu1 %v15114_v21  ;;  %v7496_v33 = vpop.f32.mrf.mxu1 }
 0xe0b   :  { %v7350_v15 = vadd.f32 %v14681_v28, %v7314_v0  ;;  %v7413_v48 = vpack.c.bf16 %v7405_v56, %v7405_v56 }
 0xe0d   :  { %v7382_v32 = vmax.f32 %v7350_v15, 0.0  ;;  %v7429_v9 = vunpack.c.l.b16 %v7413_v48 }
 0xe0f   :  { %v7398_v42 = vmax.f32 %v7374_v61, %v7382_v32  ;;  %v7549_v14 = vpop.f32.mrf.mxu2 }
 0xe10   :  { %v7550_v53 = vadd.f32 %v7549_v14, %v7496_v33  ;;  %v7606_v1 = vpop.f32.mrf.mxu3 }
 0xe11   :  { %v7406_v19 = vmax.f32 %v7396_v20, %v7398_v42  ;;  %v7626_v54 = vadd.f32 %v7606_v1, %v7545_v63  ;;  %v7498_v52 = vpop.f32.mrf.mxu1 }
 0xe13   :  { %v7414_v45 = vpack.c.bf16 %v7406_v19, %v7406_v19 }
 0xe15   :  { %v7430_v30 = vunpack.c.l.b16 %v7414_v45 }
 0xe17   :  { %v7551_v31 = vpop.f32.mrf.mxu2  ;;  %v7434_v58 = vpack.c.b16 %v7430_v30, %v7429_v9 }
 0xe18   :  { %v7552_v40 = vadd.f32 %v7551_v31, %v7498_v52  ;;  %v7608_v16 = vpop.f32.mrf.mxu3 }
 0xe19   :  { %v7627_v28 = vadd.f32 %v7608_v16, %v7547_v24  ;;  %9098 = vmatmul.msk.bf16.gmra.mxu2 %vm5984_vm2, %v7434_v58  ;;  %9124 = vmatmul.msk.bf16.gmra.mxu3 %vm5984_vm2, %v7434_v58  ;;  %v7501_v34 = vpop.f32.mrf.mxu1 }
 0xe1a   :  { %9149 = vmatmul.msk.bf16.gmra.mxu1 %vm5984_vm2, %v14876_v47 }
 0xe1f   :  { %v7554_v12 = vpop.f32.mrf.mxu2 }
 0xe20   :  { %v7555_v29 = vadd.f32 %v7554_v12, %v7501_v34  ;;  %v7611_v23 = vpop.f32.mrf.mxu3  ;;  %v9312_v34 = vld [vmem:[%s14988_s7 + $0x38] sm:$0xff] }
 0xe21   :  { %v7628_v18 = vadd.f32 %v7611_v23, %v7550_v53  ;;  %v7503_v27 = vpop.f32.mrf.mxu1  ;;  %8155 = vmatpush.bf16.msra.mxu1 %v9312_v34 }
 0xe27   :  { %v7556_v36 = vpop.f32.mrf.mxu2 }
 0xe28   :  { %v7557_v38 = vadd.f32 %v7556_v36, %v7503_v27  ;;  %v7613_v7 = vpop.f32.mrf.mxu3 }
 0xe29   :  { %v7629_v3 = vadd.f32 %v7613_v7, %v7552_v40  ;;  %7836 = vmatmul.bf16.gmra.mxu3 %v15114_v21  ;;  %9174 = vmatmul.msk.bf16.vlgmr.msra.gmra.mxu2 %vm5984_vm2, %v14876_v47  ;;  %v7506_v55 = vpop.f32.mrf.mxu1  ;;  %v9310_v7 = vld [vmem:[%s14988_s7 + $0x28] sm:$0xff] }
 0xe2a   :  { %7901 = vmatmul.bf16.gmra.mxu1 %v15114_v21 }
 0xe2f   :  { %v7559_v10 = vpop.f32.mrf.mxu2 }
 0xe30   :  { %v7560_v8 = vadd.f32 %v7559_v10, %v7506_v55  ;;  %v7616_v26 = vpop.f32.mrf.mxu3 }
 0xe31   :  { %v7630_v11 = vadd.f32 %v7616_v26, %v7555_v29  ;;  %v7508_v6 = vpop.f32.mrf.mxu1 }
 0xe37   :  { %v7561_v25 = vpop.f32.mrf.mxu2 }
 0xe38   :  { %v7562_v60 = vadd.f32 %v7561_v25, %v7508_v6  ;;  %v7618_v37 = vpop.f32.mrf.mxu3  ;;  %v9308_v25 = vld [vmem:[%s14988_s7 + $0x18] sm:$0xff] }
 0xe39   :  { %v7631_v20 = vadd.f32 %v7618_v37, %v7557_v38  ;;  %9175 = vmatmul.msk.bf16.gmra.mxu2 %vm5984_vm2, %v7434_v58  ;;  %9200 = vmatmul.msk.bf16.vlgmr.msrb.gmra.mxu3 %vm5984_vm2, %v7434_v58  ;;  %v7679_v5 = vpop.f32.mrf.mxu1 }
 0xe3a   :  { %7906 = vmatmul.bf16.gmra.mxu1 %v15114_v21  ;;  %v7699_v47 = vadd.f32 %v7679_v5, %v7626_v54  ;;  %v9307_v5 = vld [vmem:[%s14988_s7 + $0x10] sm:$0xff] }
 0xe3f   :  { %v7752_v2 = vpop.f32.mrf.mxu2 }
 0xe40   :  { %v7621_v63 = vpop.f32.mrf.mxu3  ;;  %v7772_v49 = vadd.f32 %v7752_v2, %v7699_v47 }
 0xe41   :  { %v7632_v46 = vadd.f32 %v7621_v63, %v7560_v8  ;;  %v7681_v39 = vpop.f32.mrf.mxu1  ;;  %v9309_v8 = vld [vmem:[%s14988_s7 + $0x20] sm:$0xff] }
 0xe42   :  { %v7700_v4 = vadd.f32 %v7681_v39, %v7627_v28  ;;  %v9306_v39 = vld [vmem:[%s14988_s7 + $0x8] sm:$0xff] }
 0xe47   :  { %v7754_v17 = vpop.f32.mrf.mxu2 }
 0xe48   :  { %v7623_v44 = vpop.f32.mrf.mxu3  ;;  %v7773_v13 = vadd.f32 %v7754_v17, %v7700_v4 }
 0xe49   :  { %v14915_v59 = vadd.f32 %v7623_v44, %v7562_v60  ;;  %7971 = vmatmul.bf16.gmra.mxu2 %v15114_v21  ;;  %8036 = vmatmul.bf16.gmra.mxu3 %v15114_v21  ;;  %v7684_v35 = vpop.f32.mrf.mxu1 }
 0xe4a   :  { %v7701_v62 = vadd.f32 %v7684_v35, %v7628_v18  ;;  %v9311_v18 = vld [vmem:[%s14988_s7 + $0x30] sm:$0xff] }
 0xe4b   :  { %8156 = vmatpush.bf16.msra.mxu1 %v9311_v18 }
 0xe4f   :  { %v7757_v22 = vpop.f32.mrf.mxu2  ;;  %8157 = vmatpush.bf16.msra.mxu1 %v9310_v7 }
 0xe50   :  { %v7774_v51 = vadd.f32 %v7757_v22, %v7701_v62  ;;  %v7822_v43 = vpop.f32.mrf.mxu3 }
 0xe51   :  { %v14919_v41 = vadd.f32 %v7822_v43, %v7772_v49  ;;  %v7686_v50 = vpop.f32.mrf.mxu1 }
 0xe52   :  { %v7702_v56 = vadd.f32 %v7686_v50, %v7629_v3 }
 0xe53   :  { %8158 = vmatpush.bf16.msra.mxu1 %v9309_v8 }
 0xe57   :  { %v7759_v0 = vpop.f32.mrf.mxu2  ;;  %8159 = vmatpush.bf16.msra.mxu1 %v9308_v25 }
 0xe58   :  { %v7775_v33 = vadd.f32 %v7759_v0, %v7702_v56  ;;  %v7824_v57 = vpop.f32.mrf.mxu3  ;;  %v9305_v56 = vld [vmem:[%s14988_s7] sm:$0xff] }
 0xe59   :  { %v14921_v15 = vadd.f32 %v7824_v57, %v7773_v13  ;;  %7976 = vmatmul.bf16.gmra.mxu2 %v15114_v21  ;;  %8041 = vmatmul.bf16.gmra.mxu3 %v15114_v21  ;;  %v7689_v61 = vpop.f32.mrf.mxu1  ;;  %v9317_v13 = vld [vmem:[%s14986_s6] ss:$0 sm:$0xff] }
 0xe5a   :  { %v7703_v32 = vadd.f32 %v7689_v61, %v7630_v11 }
 0xe5b   :  { %8160 = vmatpush.bf16.msra.mxu1 %v9307_v5 }
 0xe5f   :  { %8161 = vmatpush.bf16.msra.mxu1 %v9306_v39 }
 0xe60   :  { %v7827_v42 = vpop.f32.mrf.mxu3 }
 0xe61   :  { %v14925_v14 = vadd.f32 %v7827_v42, %v7774_v51  ;;  %v7691_v53 = vpop.f32.mrf.mxu1 }
 0xe62   :  { %v7704_v1 = vadd.f32 %v7691_v53, %v7631_v20 }
 0xe63   :  { %8162 = vmatpush.bf16.msra.mxu1 %v9305_v56 }
 0xe68   :  { %v7829_v48 = vpop.f32.mrf.mxu3 }
 0xe69   :  { %v14927_v19 = vadd.f32 %v7829_v48, %v7775_v33  ;;  %8046 = vmatmul.bf16.gmra.mxu3 %v15114_v21 }
 0xe76   :  { %v7694_v54 = vpop.f32.mrf.mxu1 }
 0xe77   :  { %v7705_v52 = vadd.f32 %v7694_v54, %v7632_v46 }
 0xe7c   :  { %v7762_v45 = vpop.f32.mrf.mxu2 }
 0xe7d   :  { %v7776_v9 = vadd.f32 %v7762_v45, %v7703_v32 }
 0xe7e   :  { %v14930_v28 = vpop.f32.mrf.mxu1 }
 0xe7f   :  { %v7706_v34 = vadd.f32 %v14930_v28, %v14915_v59 }
 0xe84   :  { %v7764_v30 = vpop.f32.mrf.mxu2 }
 0xe85   :  { %v7777_v24 = vadd.f32 %v7764_v30, %v7704_v1 }
 0xe86   :  { %v7892_v23 = vpop.f32.mrf.mxu1 }
 0xe87   :  { %v7912_v46 = vadd.f32 %v7892_v23, %v14919_v41 }
 0xe8e   :  { %v7894_v3 = vpop.f32.mrf.mxu1 }
 0xe8f   :  { %v7913_v43 = vadd.f32 %v7894_v3, %v14921_v15 }
 0xe97   :  { %v7897_v26 = vpop.f32.mrf.mxu1 }
 0xe9c   :  { %v7767_v31 = vpop.f32.mrf.mxu2  ;;  %v7832_v58 = vpop.f32.mrf.mxu3 }
 0xe9d   :  { %v7778_v40 = vadd.f32 %v7767_v31, %v7705_v52  ;;  %v7846_v16 = vadd.f32 %v7832_v58, %v7776_v9  ;;  %v7914_v52 = vadd.f32 %v7897_v26, %v14925_v14 }
 0xe9f   :  { %v7899_v37 = vpop.f32.mrf.mxu1 }
 0xea0   :  { %v7915_v18 = vadd.f32 %v7899_v37, %v14927_v19 }
 0xea4   :  { %v14935_v12 = vpop.f32.mrf.mxu2  ;;  %v7834_v21 = vpop.f32.mrf.mxu3 }
 0xea5   :  { %v7847_v29 = vadd.f32 %v7834_v21, %v7777_v24 }
 0xea7   :  { %v7902_v2 = vpop.f32.mrf.mxu1 }
 0xea8   :  { %v7916_v17 = vadd.f32 %v7902_v2, %v7846_v16 }
 0xeac   :  { %v7837_v27 = vpop.f32.mrf.mxu3  ;;  %v7962_v36 = vpop.f32.mrf.mxu2 }
 0xead   :  { %v7848_v38 = vadd.f32 %v7837_v27, %v7778_v40  ;;  %v7982_v4 = vadd.f32 %v7962_v36, %v7912_v46  ;;  %v7779_v27 = vadd.f32 %v14935_v12, %v7706_v34 }
 0xeaf   :  { %v7904_v35 = vpop.f32.mrf.mxu1 }
 0xeb0   :  { %v7917_v57 = vadd.f32 %v7904_v35, %v7847_v29 }
 0xeb4   :  { %v14943_v55 = vpop.f32.mrf.mxu3  ;;  %v7964_v10 = vpop.f32.mrf.mxu2 }
 0xeb5   :  { %v7983_v0 = vadd.f32 %v7964_v10, %v7913_v43  ;;  %v7849_v3 = vadd.f32 %v14943_v55, %v7779_v27  ;;  %v9318_v55 = vld [vmem:[%s14987_s8] ss:$0 sm:$0xff] }
 0xeb7   :  { %v7907_v48 = vpop.f32.mrf.mxu1 }
 0xeb8   :  { %v7918_v31 = vadd.f32 %v7907_v48, %v7848_v38 }
 0xebc   :  { %v8032_v11 = vpop.f32.mrf.mxu3  ;;  %v7967_v6 = vpop.f32.mrf.mxu2 }
 0xebd   :  { %v8052_v44 = vadd.f32 %v8032_v11, %v7982_v4  ;;  %v7984_v30 = vadd.f32 %v7967_v6, %v7914_v52 }
 0xebf   :  { %v8064_v50 = vadd.f32 %v9317_v13, %v8052_v44  ;;  %v7909_v7 = vpop.f32.mrf.mxu1 }
 0xec0   :  { %v7919_v26 = vadd.f32 %v7909_v7, %v7849_v3 }
 0xec1   :  { %v8072_v61 = vmax.f32 %v8064_v50, 0.0 }
 0xec4   :  { %v8034_v60 = vpop.f32.mrf.mxu3  ;;  %v7969_v20 = vpop.f32.mrf.mxu2 }
 0xec5   :  { %v8053_v32 = vadd.f32 %v8034_v60, %v7983_v0  ;;  %v7985_v10 = vadd.f32 %v7969_v20, %v7915_v18 }
 0xec7   :  { %v8065_v15 = vadd.f32 %v9317_v13, %v8053_v32 }
 0xec9   :  { %v8073_v58 = vmax.f32 %v8065_v15, 0.0 }
 0xecc   :  { %v8037_v47 = vpop.f32.mrf.mxu3  ;;  %v7972_v63 = vpop.f32.mrf.mxu2 }
 0xecd   :  { %v7986_v62 = vadd.f32 %v7972_v63, %v7916_v17  ;;  %v8054_v40 = vadd.f32 %v8037_v47, %v7984_v30 }
 0xecf   :  { %v8066_v14 = vadd.f32 %v9317_v13, %v8054_v40 }
 0xed1   :  { %v8074_v11 = vmax.f32 %v8066_v14, 0.0 }
 0xed4   :  { %v8039_v49 = vpop.f32.mrf.mxu3  ;;  %v7974_v22 = vpop.f32.mrf.mxu2 }
 0xed5   :  { %v7987_v53 = vadd.f32 %v7974_v22, %v7917_v57  ;;  %v8055_v6 = vadd.f32 %v8039_v49, %v7985_v10 }
 0xed7   :  { %v8067_v5 = vadd.f32 %v9317_v13, %v8055_v6 }
 0xed9   :  { %v8075_v12 = vmax.f32 %v8067_v5, 0.0 }
 0xedc   :  { %v8042_v51 = vpop.f32.mrf.mxu3  ;;  %v7977_v9 = vpop.f32.mrf.mxu2 }
 0xedd   :  { %v8056_v41 = vadd.f32 %v8042_v51, %v7986_v62  ;;  %v7988_v21 = vadd.f32 %v7977_v9, %v7918_v31 }
 0xedf   :  { %v8068_v33 = vadd.f32 %v9317_v13, %v8056_v41 }
 0xee1   :  { %v8076_v42 = vmax.f32 %v8068_v33, 0.0 }
 0xee3   :  { %v8080_v1 = vmax.f32 %v8072_v61, %v8076_v42 }
 0xee4   :  { %v8044_v54 = vpop.f32.mrf.mxu3  ;;  %v7979_v8 = vpop.f32.mrf.mxu2 }
 0xee5   :  { %v8057_v45 = vadd.f32 %v8044_v54, %v7987_v53  ;;  %v7989_v59 = vadd.f32 %v7979_v8, %v7919_v26 }
 0xee7   :  { %v8069_v24 = vadd.f32 %v9317_v13, %v8057_v45 }
 0xee9   :  { %v8077_v16 = vmax.f32 %v8069_v24, 0.0 }
 0xeeb   :  { %v8081_v29 = vmax.f32 %v8073_v58, %v8077_v16 }
 0xeec   :  { %v8047_v23 = vpop.f32.mrf.mxu3 }
 0xeed   :  { %v8058_v36 = vadd.f32 %v8047_v23, %v7988_v21 }
 0xeef   :  { %v8070_v38 = vadd.f32 %v9317_v13, %v8058_v36 }
 0xef1   :  { %v8078_v25 = vmax.f32 %v8070_v38, 0.0 }
 0xef3   :  { %v8082_v28 = vmax.f32 %v8074_v11, %v8078_v25 }
 0xef4   :  { %v8049_v60 = vpop.f32.mrf.mxu3 }
 0xef5   :  { %v8084_v47 = vmax.f32 %v8080_v1, %v8082_v28  ;;  %v8059_v19 = vadd.f32 %v8049_v60, %v7989_v59 }
 0xef7   :  { %v8071_v37 = vadd.f32 %v9317_v13, %v8059_v19 }
 0xef9   :  { %v8079_v2 = vmax.f32 %v8071_v37, 0.0 }
 0xefb   :  { %v8083_v63 = vmax.f32 %v8075_v12, %v8079_v2 }
 0xefd   :  { %v8085_v46 = vmax.f32 %v8081_v29, %v8083_v63 }
 0xeff   :  { %v8086_v39 = vpack.c.bf16 %v8085_v46, %v8084_v47 }
 0xf01   :  { %8163 = vmatmul.bf16.vlgmr.msra.gmra.mxu1 %v8086_v39 }
 0xf7e   :  { %v8164_v20 = vpop.f32.mrf.mxu1 }
 0xf7f   :  { %v8165_v49 = vadd.f32 %v9318_v55, %v8164_v20 }
 0xf81   :  { %v8169_v4 = vmax.f32 %v8165_v49, 0.0 }
 0xf83   :  { %8171 = vst [vmem:[%s14989_s9] sm:$0xff] %v8169_v4 }
 0xf86   :  { %v8166_v17 = vpop.f32.mrf.mxu1 }
 0xf87   :  { %v8167_v44 = vadd.f32 %v9318_v55, %v8166_v17 }
 0xf89   :  { %v8170_v13 = vmax.f32 %v8167_v44, 0.0 }
 0xf8b   :  { %8172 = vst [vmem:[%s14989_s9 + $0x8] sm:$0xff] %v8170_v13 }

</bundles_post_ra>
